<compile_context>
chip_gen: v6e
topology: v6e:2x2x1
jax: 0.10.0
libtpu: 0.0.40
codegen_flags: <defaults>
</compile_context>

<pallas_src>
import functools

import jax
import jax.numpy as jnp
from jax.experimental import pallas as pl
from jax.experimental.pallas import tpu as pltpu

# ResNet-34 stage config: (planes, num_blocks, first_stride). Static Python
# constant so conv strides / tap lists stay static integers.
_LAYER_CFG = ((64, 3, 1), (128, 4, 2), (256, 6, 2), (512, 3, 2))

_VMEM_SPEC = pl.BlockSpec(memory_space=pltpu.MemorySpace.VMEM)


def _round_up(x, m):
    return (x + m - 1) // m * m


# ----------------------- static plan (shapes, conv taps) ---------------------

def _contributing_taps(h, w, k, stride, pad):
    """Conv taps (i, j) that touch at least one real (non-padding) pixel."""
    ho = (h + 2 * pad - k) // stride + 1
    wo = (w + 2 * pad - k) // stride + 1

    def axis_taps(size, out):
        return [t for t in range(k)
                if any(pad <= t + stride * r < pad + size for r in range(out))]

    ti, tj = axis_taps(h, ho), axis_taps(w, wo)
    return [(i, j) for i in ti for j in tj], ho, wo


def build_plan(image_hw):
    """Static (Python-only) per-conv metadata for a fixed input spatial size."""
    h, w = image_hw
    taps, h, w = _contributing_taps(h, w, 7, 2, 3)
    plan = {"conv1": dict(k=7, stride=2, pad=3, taps=taps, cin=3, cout=64)}
    # max-pool 3x3 stride 2 pad 1
    h, w = (h - 1) // 2 + 1, (w - 1) // 2 + 1
    layers = []
    in_ch = 64
    for planes, nblocks, first_stride in _LAYER_CFG:
        blocks = []
        for bi in range(nblocks):
            s = first_stride if bi == 0 else 1
            t1, h1, w1 = _contributing_taps(h, w, 3, s, 1)
            t2, h2, w2 = _contributing_taps(h1, w1, 3, 1, 1)
            blk = {"conv1": dict(k=3, stride=s, pad=1, taps=t1,
                                 cin=in_ch, cout=planes),
                   "conv2": dict(k=3, stride=1, pad=1, taps=t2,
                                 cin=planes, cout=planes)}
            if s != 1 or in_ch != planes:
                td, _, _ = _contributing_taps(h, w, 1, s, 0)
                blk["down"] = dict(k=1, stride=s, pad=0, taps=td,
                                   cin=in_ch, cout=planes)
            blocks.append(blk)
            in_ch = planes
            h, w = h2, w2
        layers.append(blocks)
    plan["layers"] = layers
    plan["final_hw"] = (h, w)
    return plan


# ---------------- single-pass matmul kernel with fused epilogue --------------

def _mm_kernel(*refs, relu, has_res):
    if has_res:
        a_ref, b_ref, bias_ref, res_ref, o_ref = refs
    else:
        a_ref, b_ref, bias_ref, o_ref = refs
        res_ref = None
    out = jnp.dot(a_ref[...], b_ref[...], preferred_element_type=jnp.float32)
    out = out + bias_ref[...]
    if res_ref is not None:
        out = out + res_ref[...].astype(jnp.float32)
    if relu:
        out = jnp.maximum(out, 0.0)
    o_ref[...] = out.astype(o_ref.dtype)


def matmul_packed(a, b, bias, n_out, residual=None, relu=False,
                  out_dtype=jnp.bfloat16):
    """(M,K) @ pre-packed bf16 (k_pad,n_pad) + bias [+ residual] [+ ReLU].

    Single MXU pass over K (no reduction grid axis, no accumulator scratch).
    """
    m, k = a.shape
    k_pad, n_pad = b.shape
    m_pad = _round_up(m, 8)

    a_p = a.astype(jnp.bfloat16)
    if (m_pad - m) or (k_pad - k):
        a_p = jnp.pad(a_p, ((0, m_pad - m), (0, k_pad - k)))

    # Keep >=2 parallel tiles when possible (v7x megacore); N/K stay 128-aligned
    # so stores are lane-dense and unmasked.
    if n_pad % 256 == 0:
        tm, tn = m_pad, n_pad // 2
    elif m_pad % 16 == 0:
        tm, tn = m_pad // 2, n_pad
    else:
        tm, tn = m_pad, n_pad
    grid = (m_pad // tm, n_pad // tn)

    operands = [a_p, b, bias]
    in_specs = [
        pl.BlockSpec((tm, k_pad), lambda i, j: (i, 0)),
        pl.BlockSpec((k_pad, tn), lambda i, j: (0, j)),
        pl.BlockSpec((1, tn), lambda i, j: (0, j)),
    ]
    has_res = residual is not None
    if has_res:
        r = residual.astype(jnp.bfloat16)
        if (m_pad - m) or (n_pad - n_out):
            r = jnp.pad(r, ((0, m_pad - m), (0, n_pad - n_out)))
        operands.append(r)
        in_specs.append(pl.BlockSpec((tm, tn), lambda i, j: (i, j)))

    out = pl.pallas_call(
        functools.partial(_mm_kernel, relu=relu, has_res=has_res),
        out_shape=jax.ShapeDtypeStruct((m_pad, n_pad), out_dtype),
        grid=grid,
        in_specs=in_specs,
        out_specs=pl.BlockSpec((tm, tn), lambda i, j: (i, j)),
        compiler_params=pltpu.CompilerParams(
            dimension_semantics=("parallel", "parallel")),
    )(*operands)
    return out[:m, :n_out]


# -------------------------- small elementwise kernels ------------------------

def _maxpool_kernel(x_ref, o_ref):
    m = x_ref[0]
    for i in range(1, x_ref.shape[0]):
        m = jnp.maximum(m, x_ref[i])
    o_ref[...] = m


def _mean_axis0_kernel(x_ref, o_ref):
    o_ref[...] = jnp.mean(x_ref[...].astype(jnp.float32), axis=0, keepdims=True)


# ------------------------------- JAX glue -------------------------------------

def conv_bn_packed(x, pk, mt, residual=None, relu=True):
    """Conv + folded BN (pre-packed bf16 weights) + fused residual/ReLU."""
    stride, pad, taps = mt["stride"], mt["pad"], mt["taps"]
    k, cout = mt["k"], mt["cout"]
    n, h, w, cin = x.shape
    xp = jnp.pad(x, ((0, 0), (pad, pad), (pad, pad), (0, 0))) if pad else x
    ho = (h + 2 * pad - k) // stride + 1
    wo = (w + 2 * pad - k) // stride + 1
    # im2col restricted to contributing taps (column order matches weight pack)
    cols = [xp[:, i:i + stride * ho:stride, j:j + stride * wo:stride, :]
            .reshape(n * ho * wo, cin) for (i, j) in taps]
    a = cols[0] if len(cols) == 1 else jnp.concatenate(cols, axis=1)
    res2d = None if residual is None else residual.reshape(n * ho * wo, cout)
    out = matmul_packed(a, pk["b"], pk["bias"], cout,
                        residual=res2d, relu=relu, out_dtype=jnp.bfloat16)
    return out.reshape(n, ho, wo, cout)


def maxpool_3x3_s2(x):
    n, h, w, c = x.shape
    neg = jnp.finfo(x.dtype).min               # PyTorch pads max-pool with -inf
    xp = jnp.pad(x, ((0, 0), (1, 1), (1, 1), (0, 0)), constant_values=neg)
    ho, wo = (h - 1) // 2 + 1, (w - 1) // 2 + 1
    total = n * ho * wo * c
    lanes = 256 if total % 256 == 0 else (128 if total % 128 == 0 else c)
    views = [xp[:, i:i + 2 * ho:2, j:j + 2 * wo:2, :].reshape(total // lanes, lanes)
             for i in range(3) for j in range(3)]
    stacked = jnp.stack(views, axis=0)          # one operand, one DMA
    out = pl.pallas_call(
        _maxpool_kernel,
        out_shape=jax.ShapeDtypeStruct((total // lanes, lanes), x.dtype),
        in_specs=[_VMEM_SPEC],
        out_specs=_VMEM_SPEC,
    )(stacked)
    return out.reshape(n, ho, wo, c)


def global_avg_pool(x):
    # F.adaptive_avg_pool2d(x, 1) == mean over spatial dims.
    n, h, w, c = x.shape
    if h * w == 1:                              # pure reshape: no kernel at all
        return x.reshape(n, c)
    xt = jnp.transpose(x, (1, 2, 0, 3)).reshape(h * w, n * c)
    pooled = pl.pallas_call(
        _mean_axis0_kernel,
        out_shape=jax.ShapeDtypeStruct((1, n * c), jnp.float32),
        in_specs=[_VMEM_SPEC],
        out_specs=_VMEM_SPEC,
    )(xt)
    return pooled.reshape(n, c)


# ------------------------------- parameters -----------------------------------

def init_params(key):
    key_box = [key]

    def nxt():
        key_box[0], sub = jax.random.split(key_box[0])
        return sub

    def conv_p(kh, kw, cin, cout):
        w = jax.random.normal(nxt(), (kh, kw, cin, cout), jnp.float32)
        w = w * jnp.sqrt(2.0 / (kh * kw * cin))
        bn = (jnp.ones((cout,), jnp.float32),    # gamma
              jnp.zeros((cout,), jnp.float32),   # beta
              jnp.zeros((cout,), jnp.float32),   # running_mean
              jnp.ones((cout,), jnp.float32))    # running_var
        return {"w": w, "bn": bn}

    def linear_p(din, dout):
        w = jax.random.normal(nxt(), (din, dout), jnp.float32) * jnp.sqrt(1.0 / din)
        b = jax.random.normal(nxt(), (dout,), jnp.float32) * 0.01
        return {"w": w, "b": b}

    params = {"conv1": conv_p(7, 7, 3, 64)}
    layers = []
    in_ch = 64
    for planes, nblocks, first_stride in _LAYER_CFG:
        blocks = []
        for bi in range(nblocks):
            s = first_stride if bi == 0 else 1
            blk = {"conv1": conv_p(3, 3, in_ch, planes),
                   "conv2": conv_p(3, 3, planes, planes)}
            if s != 1 or in_ch != planes:
                blk["down"] = conv_p(1, 1, in_ch, planes)
            blocks.append(blk)
            in_ch = planes
        layers.append(blocks)
    params["layers"] = layers

    params["l0"] = linear_p(512, 168)
    params["l1"] = linear_p(512, 11)
    params["l2"] = linear_p(512, 7)
    return params


def prepare_params(params, plan, eps=1e-5):
    """One-time prep: fold BN, keep only contributing taps, pad, cast bf16."""

    def pack(conv, mt):
        gamma, beta, mean, var = conv["bn"]
        scale = gamma / jnp.sqrt(var + eps)
        wf = conv["w"] * scale[None, None, None, :]
        bias = beta - mean * scale
        cin, cout = conv["w"].shape[2], conv["w"].shape[3]
        rows = jnp.concatenate([wf[i, j] for (i, j) in mt["taps"]], axis=0)
        k = rows.shape[0]
        k_pad, n_pad = _round_up(k, 128), _round_up(cout, 128)
        b = jnp.pad(rows, ((0, k_pad - k), (0, n_pad - cout))).astype(jnp.bfloat16)
        bias_p = jnp.pad(bias, (0, n_pad - cout)).astype(jnp.float32).reshape(1, n_pad)
        return {"b": b, "bias": bias_p}

    packed = {"conv1": pack(params["conv1"], plan["conv1"])}
    layers = []
    for blocks_p, blocks_m in zip(params["layers"], plan["layers"]):
        blks = []
        for bp, bm in zip(blocks_p, blocks_m):
            d = {"conv1": pack(bp["conv1"], bm["conv1"]),
                 "conv2": pack(bp["conv2"], bm["conv2"])}
            if "down" in bp:
                d["down"] = pack(bp["down"], bm["down"])
            blks.append(d)
        layers.append(blks)
    packed["layers"] = layers

    # fused classifier heads: one lane-dense matmul
    w_cat = jnp.concatenate([params["l0"]["w"], params["l1"]["w"],
                             params["l2"]["w"]], axis=1)          # (512, 186)
    b_cat = jnp.concatenate([params["l0"]["b"], params["l1"]["b"],
                             params["l2"]["b"]])                  # (186,)
    kin, nout = w_cat.shape
    k_pad, n_pad = _round_up(kin, 128), _round_up(nout, 128)
    packed["head"] = {
        "b": jnp.pad(w_cat, ((0, k_pad - kin), (0, n_pad - nout))).astype(jnp.bfloat16),
        "bias": jnp.pad(b_cat, (0, n_pad - nout)).astype(jnp.float32).reshape(1, n_pad),
    }
    return packed


# --------------------------------- forward ------------------------------------

def basic_block(x, pk, mt):
    out = conv_bn_packed(x, pk["conv1"], mt["conv1"], relu=True)
    if "down" in pk:
        identity = conv_bn_packed(x, pk["down"], mt["down"], relu=False)
    else:
        identity = x
    # conv2 + BN + residual add + ReLU fused into one matmul epilogue
    out = conv_bn_packed(out, pk["conv2"], mt["conv2"],
                         residual=identity, relu=True)
    return out


def resnet34_forward(plan, packed, x_nchw):
    x = jnp.transpose(x_nchw, (0, 2, 3, 1)).astype(jnp.bfloat16)  # NCHW -> NHWC

    # stem
    x = conv_bn_packed(x, packed["conv1"], plan["conv1"], relu=True)
    x = maxpool_3x3_s2(x)

    # residual stages
    for blocks_pk, blocks_mt in zip(packed["layers"], plan["layers"]):
        for blk_pk, blk_mt in zip(blocks_pk, blocks_mt):
            x = basic_block(x, blk_pk, blk_mt)

    # global average pool + fused classifier heads
    feat = global_avg_pool(x)                                     # (N, 512)
    logits = matmul_packed(feat, packed["head"]["b"], packed["head"]["bias"],
                           n_out=186, relu=False, out_dtype=jnp.float32)
    return logits[:, :168], logits[:, 168:179], logits[:, 179:186]


# ----------------------------------- main --------------------------------------

if __name__ == "__main__":
    key = jax.random.PRNGKey(0)
    x_key, p_key = jax.random.split(key)

    # Small input consistent with the module: batch=2, RGB, 16x16 spatial.
    x = jax.random.normal(x_key, (2, 3, 16, 16), jnp.float32)

    params = init_params(p_key)
    plan = build_plan((16, 16))                 # static shape/tap plan
    packed = prepare_params(params, plan)       # one-time weight prep

    fwd = jax.jit(functools.partial(resnet34_forward, plan))
    l0, l1, l2 = fwd(packed, x)
    jax.block_until_ready((l0, l1, l2))

    assert l0.shape == (2, 168) and l0.dtype == jnp.float32
    assert l1.shape == (2, 11) and l1.dtype == jnp.float32
    assert l2.shape == (2, 7) and l2.dtype == jnp.float32
    assert bool(jnp.all(jnp.isfinite(l0)))
    assert bool(jnp.all(jnp.isfinite(l1)))
    assert bool(jnp.all(jnp.isfinite(l2)))
    print("KERNEL_OK")
</pallas_src>

<mosaic_0001>
module attributes {stable_mosaic.version = 11 : i64} {
  func.func @_mm_kernel(%arg0: i32, %arg1: i32, %arg2: memref<64x256xbf16, #tpu.memory_space<vmem>>, %arg3: memref<256x128xbf16, #tpu.memory_space<vmem>>, %arg4: memref<1x128xf32, #tpu.memory_space<vmem>>, %arg5: memref<64x128xbf16, #tpu.memory_space<vmem>>) attributes {dimension_semantics = [#tpu.dimension_semantics<parallel>, #tpu.dimension_semantics<parallel>], iteration_bounds = array<i64: 2, 1>, scalar_prefetch = 0 : i64, scratch_operands = 0 : i64, tpu.core_type = #tpu.core_type<tc>, window_params = [{transform_indices = @transform_0, window_bounds = array<i64: 64, 256>}, {transform_indices = @transform_1, window_bounds = array<i64: 256, 128>}, {transform_indices = @transform_2, window_bounds = array<i64: 1, 128>}, {transform_indices = @transform_3, window_bounds = array<i64: 64, 128>}]} {
    %c0 = arith.constant 0 : index
    %c0_0 = arith.constant 0 : index
    %0 = vector.load %arg2[%c0, %c0_0] : memref<64x256xbf16, #tpu.memory_space<vmem>>, vector<64x256xbf16>
    %c0_1 = arith.constant 0 : index
    %c0_2 = arith.constant 0 : index
    %1 = vector.load %arg3[%c0_1, %c0_2] : memref<256x128xbf16, #tpu.memory_space<vmem>>, vector<256x128xbf16>
    %cst = arith.constant dense<0.000000e+00> : vector<64x128xf32>
    %2 = tpu.matmul %0, %1, %cst {dimension_numbers = #tpu.dot_dimension_numbers<[1], [0], [0], [1], [0, 0, 1, 1], [], []>} : vector<64x256xbf16>, vector<256x128xbf16>, vector<64x128xf32> -> vector<64x128xf32>
    %c0_3 = arith.constant 0 : index
    %c0_4 = arith.constant 0 : index
    %3 = vector.load %arg4[%c0_3, %c0_4] : memref<1x128xf32, #tpu.memory_space<vmem>>, vector<1x128xf32>
    %4 = vector.broadcast %3 : vector<1x128xf32> to vector<64x128xf32>
    %5 = arith.addf %2, %4 : vector<64x128xf32>
    %cst_5 = arith.constant 0.000000e+00 : f32
    %6 = vector.broadcast %cst_5 : f32 to vector<64x128xf32>
    %7 = arith.maximumf %5, %6 : vector<64x128xf32>
    %8 = arith.truncf %7 : vector<64x128xf32> to vector<64x128xbf16>
    %c0_6 = arith.constant 0 : index
    %c0_7 = arith.constant 0 : index
    %9 = vector.load %arg5[%c0_6, %c0_7] : memref<64x128xbf16, #tpu.memory_space<vmem>>, vector<64x128xbf16>
    tpu.vector_store %arg5[%c0_6, %c0_7], %8 {strides = array<i32>} : memref<64x128xbf16, #tpu.memory_space<vmem>>, vector<64x128xbf16>,
    return
  }
  func.func @transform_0(%arg0: i32, %arg1: i32) -> (i32, i32) {
    %c0_i32 = arith.constant 0 : i32
    %c0_i32_0 = arith.constant 0 : i32
    return %arg0, %c0_i32 : i32, i32
  }
  func.func @transform_1(%arg0: i32, %arg1: i32) -> (i32, i32) {
    %c0_i32 = arith.constant 0 : i32
    %c0_i32_0 = arith.constant 0 : i32
    return %c0_i32, %arg1 : i32, i32
  }
  func.func @transform_2(%arg0: i32, %arg1: i32) -> (i32, i32) {
    %c0_i32 = arith.constant 0 : i32
    %c0_i32_0 = arith.constant 0 : i32
    return %c0_i32, %arg1 : i32, i32
  }
  func.func @transform_3(%arg0: i32, %arg1: i32) -> (i32, i32) {
    %c0_i32 = arith.constant 0 : i32
    return %arg0, %arg1 : i32, i32
  }
}

module attributes {stable_mosaic.version = 11 : i64} {
  func.func @_maxpool_kernel(%arg0: memref<9x8x256xbf16, #tpu.memory_space<vmem>>, %arg1: memref<8x256xbf16, #tpu.memory_space<vmem>>) attributes {dimension_semantics = [], scalar_prefetch = 0 : i64, scratch_operands = 0 : i64, tpu.core_type = #tpu.core_type<tc>} {
    %c0 = arith.constant 0 : index
    %c0_0 = arith.constant 0 : index
    %c0_1 = arith.constant 0 : index
    %0 = vector.load %arg0[%c0, %c0_0, %c0_1] : memref<9x8x256xbf16, #tpu.memory_space<vmem>>, vector<1x8x256xbf16>
    %1 = vector.shape_cast %0 : vector<1x8x256xbf16> to vector<8x256xbf16>
    %c1 = arith.constant 1 : index
    %c0_2 = arith.constant 0 : index
    %c0_3 = arith.constant 0 : index
    %2 = vector.load %arg0[%c1, %c0_2, %c0_3] : memref<9x8x256xbf16, #tpu.memory_space<vmem>>, vector<1x8x256xbf16>
    %3 = vector.shape_cast %2 : vector<1x8x256xbf16> to vector<8x256xbf16>
    %4 = arith.maximumf %1, %3 : vector<8x256xbf16>
    %c2 = arith.constant 2 : index
    %c0_4 = arith.constant 0 : index
    %c0_5 = arith.constant 0 : index
    %5 = vector.load %arg0[%c2, %c0_4, %c0_5] : memref<9x8x256xbf16, #tpu.memory_space<vmem>>, vector<1x8x256xbf16>
    %6 = vector.shape_cast %5 : vector<1x8x256xbf16> to vector<8x256xbf16>
    %7 = arith.maximumf %4, %6 : vector<8x256xbf16>
    %c3 = arith.constant 3 : index
    %c0_6 = arith.constant 0 : index
    %c0_7 = arith.constant 0 : index
    %8 = vector.load %arg0[%c3, %c0_6, %c0_7] : memref<9x8x256xbf16, #tpu.memory_space<vmem>>, vector<1x8x256xbf16>
    %9 = vector.shape_cast %8 : vector<1x8x256xbf16> to vector<8x256xbf16>
    %10 = arith.maximumf %7, %9 : vector<8x256xbf16>
    %c4 = arith.constant 4 : index
    %c0_8 = arith.constant 0 : index
    %c0_9 = arith.constant 0 : index
    %11 = vector.load %arg0[%c4, %c0_8, %c0_9] : memref<9x8x256xbf16, #tpu.memory_space<vmem>>, vector<1x8x256xbf16>
    %12 = vector.shape_cast %11 : vector<1x8x256xbf16> to vector<8x256xbf16>
    %13 = arith.maximumf %10, %12 : vector<8x256xbf16>
    %c5 = arith.constant 5 : index
    %c0_10 = arith.constant 0 : index
    %c0_11 = arith.constant 0 : index
    %14 = vector.load %arg0[%c5, %c0_10, %c0_11] : memref<9x8x256xbf16, #tpu.memory_space<vmem>>, vector<1x8x256xbf16>
    %15 = vector.shape_cast %14 : vector<1x8x256xbf16> to vector<8x256xbf16>
    %16 = arith.maximumf %13, %15 : vector<8x256xbf16>
    %c6 = arith.constant 6 : index
    %c0_12 = arith.constant 0 : index
    %c0_13 = arith.constant 0 : index
    %17 = vector.load %arg0[%c6, %c0_12, %c0_13] : memref<9x8x256xbf16, #tpu.memory_space<vmem>>, vector<1x8x256xbf16>
    %18 = vector.shape_cast %17 : vector<1x8x256xbf16> to vector<8x256xbf16>
    %19 = arith.maximumf %16, %18 : vector<8x256xbf16>
    %c7 = arith.constant 7 : index
    %c0_14 = arith.constant 0 : index
    %c0_15 = arith.constant 0 : index
    %20 = vector.load %arg0[%c7, %c0_14, %c0_15] : memref<9x8x256xbf16, #tpu.memory_space<vmem>>, vector<1x8x256xbf16>
    %21 = vector.shape_cast %20 : vector<1x8x256xbf16> to vector<8x256xbf16>
    %22 = arith.maximumf %19, %21 : vector<8x256xbf16>
    %c8 = arith.constant 8 : index
    %c0_16 = arith.constant 0 : index
    %c0_17 = arith.constant 0 : index
    %23 = vector.load %arg0[%c8, %c0_16, %c0_17] : memref<9x8x256xbf16, #tpu.memory_space<vmem>>, vector<1x8x256xbf16>
    %24 = vector.shape_cast %23 : vector<1x8x256xbf16> to vector<8x256xbf16>
    %25 = arith.maximumf %22, %24 : vector<8x256xbf16>
    %c0_18 = arith.constant 0 : index
    %c0_19 = arith.constant 0 : index
    %26 = vector.load %arg1[%c0_18, %c0_19] : memref<8x256xbf16, #tpu.memory_space<vmem>>, vector<8x256xbf16>
    tpu.vector_store %arg1[%c0_18, %c0_19], %25 {strides = array<i32>} : memref<8x256xbf16, #tpu.memory_space<vmem>>, vector<8x256xbf16>,
    return
  }
}

module attributes {stable_mosaic.version = 11 : i64} {
  func.func @_mm_kernel(%arg0: i32, %arg1: i32, %arg2: memref<16x640xbf16, #tpu.memory_space<vmem>>, %arg3: memref<640x128xbf16, #tpu.memory_space<vmem>>, %arg4: memref<1x128xf32, #tpu.memory_space<vmem>>, %arg5: memref<16x128xbf16, #tpu.memory_space<vmem>>) attributes {dimension_semantics = [#tpu.dimension_semantics<parallel>, #tpu.dimension_semantics<parallel>], iteration_bounds = array<i64: 2, 1>, scalar_prefetch = 0 : i64, scratch_operands = 0 : i64, tpu.core_type = #tpu.core_type<tc>, window_params = [{transform_indices = @transform_0, window_bounds = array<i64: 16, 640>}, {transform_indices = @transform_1, window_bounds = array<i64: 640, 128>}, {transform_indices = @transform_2, window_bounds = array<i64: 1, 128>}, {transform_indices = @transform_3, window_bounds = array<i64: 16, 128>}]} {
    %c0 = arith.constant 0 : index
    %c0_0 = arith.constant 0 : index
    %0 = vector.load %arg2[%c0, %c0_0] : memref<16x640xbf16, #tpu.memory_space<vmem>>, vector<16x640xbf16>
    %c0_1 = arith.constant 0 : index
    %c0_2 = arith.constant 0 : index
    %1 = vector.load %arg3[%c0_1, %c0_2] : memref<640x128xbf16, #tpu.memory_space<vmem>>, vector<640x128xbf16>
    %cst = arith.constant dense<0.000000e+00> : vector<16x128xf32>
    %2 = tpu.matmul %0, %1, %cst {dimension_numbers = #tpu.dot_dimension_numbers<[1], [0], [0], [1], [0, 0, 1, 1], [], []>} : vector<16x640xbf16>, vector<640x128xbf16>, vector<16x128xf32> -> vector<16x128xf32>
    %c0_3 = arith.constant 0 : index
    %c0_4 = arith.constant 0 : index
    %3 = vector.load %arg4[%c0_3, %c0_4] : memref<1x128xf32, #tpu.memory_space<vmem>>, vector<1x128xf32>
    %4 = vector.broadcast %3 : vector<1x128xf32> to vector<16x128xf32>
    %5 = arith.addf %2, %4 : vector<16x128xf32>
    %cst_5 = arith.constant 0.000000e+00 : f32
    %6 = vector.broadcast %cst_5 : f32 to vector<16x128xf32>
    %7 = arith.maximumf %5, %6 : vector<16x128xf32>
    %8 = arith.truncf %7 : vector<16x128xf32> to vector<16x128xbf16>
    %c0_6 = arith.constant 0 : index
    %c0_7 = arith.constant 0 : index
    %9 = vector.load %arg5[%c0_6, %c0_7] : memref<16x128xbf16, #tpu.memory_space<vmem>>, vector<16x128xbf16>
    tpu.vector_store %arg5[%c0_6, %c0_7], %8 {strides = array<i32>} : memref<16x128xbf16, #tpu.memory_space<vmem>>, vector<16x128xbf16>,
    return
  }
  func.func @transform_0(%arg0: i32, %arg1: i32) -> (i32, i32) {
    %c0_i32 = arith.constant 0 : i32
    %c0_i32_0 = arith.constant 0 : i32
    return %arg0, %c0_i32 : i32, i32
  }
  func.func @transform_1(%arg0: i32, %arg1: i32) -> (i32, i32) {
    %c0_i32 = arith.constant 0 : i32
    %c0_i32_0 = arith.constant 0 : i32
    return %c0_i32, %arg1 : i32, i32
  }
  func.func @transform_2(%arg0: i32, %arg1: i32) -> (i32, i32) {
    %c0_i32 = arith.constant 0 : i32
    %c0_i32_0 = arith.constant 0 : i32
    return %c0_i32, %arg1 : i32, i32
  }
  func.func @transform_3(%arg0: i32, %arg1: i32) -> (i32, i32) {
    %c0_i32 = arith.constant 0 : i32
    return %arg0, %arg1 : i32, i32
  }
}

module attributes {stable_mosaic.version = 11 : i64} {
  func.func @_mm_kernel(%arg0: i32, %arg1: i32, %arg2: memref<16x640xbf16, #tpu.memory_space<vmem>>, %arg3: memref<640x128xbf16, #tpu.memory_space<vmem>>, %arg4: memref<1x128xf32, #tpu.memory_space<vmem>>, %arg5: memref<16x128xbf16, #tpu.memory_space<vmem>>, %arg6: memref<16x128xbf16, #tpu.memory_space<vmem>>) attributes {dimension_semantics = [#tpu.dimension_semantics<parallel>, #tpu.dimension_semantics<parallel>], iteration_bounds = array<i64: 2, 1>, scalar_prefetch = 0 : i64, scratch_operands = 0 : i64, tpu.core_type = #tpu.core_type<tc>, window_params = [{transform_indices = @transform_0, window_bounds = array<i64: 16, 640>}, {transform_indices = @transform_1, window_bounds = array<i64: 640, 128>}, {transform_indices = @transform_2, window_bounds = array<i64: 1, 128>}, {transform_indices = @transform_3, window_bounds = array<i64: 16, 128>}, {transform_indices = @transform_4, window_bounds = array<i64: 16, 128>}]} {
    %c0 = arith.constant 0 : index
    %c0_0 = arith.constant 0 : index
    %0 = vector.load %arg2[%c0, %c0_0] : memref<16x640xbf16, #tpu.memory_space<vmem>>, vector<16x640xbf16>
    %c0_1 = arith.constant 0 : index
    %c0_2 = arith.constant 0 : index
    %1 = vector.load %arg3[%c0_1, %c0_2] : memref<640x128xbf16, #tpu.memory_space<vmem>>, vector<640x128xbf16>
    %cst = arith.constant dense<0.000000e+00> : vector<16x128xf32>
    %2 = tpu.matmul %0, %1, %cst {dimension_numbers = #tpu.dot_dimension_numbers<[1], [0], [0], [1], [0, 0, 1, 1], [], []>} : vector<16x640xbf16>, vector<640x128xbf16>, vector<16x128xf32> -> vector<16x128xf32>
    %c0_3 = arith.constant 0 : index
    %c0_4 = arith.constant 0 : index
    %3 = vector.load %arg4[%c0_3, %c0_4] : memref<1x128xf32, #tpu.memory_space<vmem>>, vector<1x128xf32>
    %4 = vector.broadcast %3 : vector<1x128xf32> to vector<16x128xf32>
    %5 = arith.addf %2, %4 : vector<16x128xf32>
    %c0_5 = arith.constant 0 : index
    %c0_6 = arith.constant 0 : index
    %6 = vector.load %arg5[%c0_5, %c0_6] : memref<16x128xbf16, #tpu.memory_space<vmem>>, vector<16x128xbf16>
    %7 = arith.extf %6 : vector<16x128xbf16> to vector<16x128xf32>
    %8 = arith.addf %5, %7 : vector<16x128xf32>
    %cst_7 = arith.constant 0.000000e+00 : f32
    %9 = vector.broadcast %cst_7 : f32 to vector<16x128xf32>
    %10 = arith.maximumf %8, %9 : vector<16x128xf32>
    %11 = arith.truncf %10 : vector<16x128xf32> to vector<16x128xbf16>
    %c0_8 = arith.constant 0 : index
    %c0_9 = arith.constant 0 : index
    %12 = vector.load %arg6[%c0_8, %c0_9] : memref<16x128xbf16, #tpu.memory_space<vmem>>, vector<16x128xbf16>
    tpu.vector_store %arg6[%c0_8, %c0_9], %11 {strides = array<i32>} : memref<16x128xbf16, #tpu.memory_space<vmem>>, vector<16x128xbf16>,
    return
  }
  func.func @transform_0(%arg0: i32, %arg1: i32) -> (i32, i32) {
    %c0_i32 = arith.constant 0 : i32
    %c0_i32_0 = arith.constant 0 : i32
    return %arg0, %c0_i32 : i32, i32
  }
  func.func @transform_1(%arg0: i32, %arg1: i32) -> (i32, i32) {
    %c0_i32 = arith.constant 0 : i32
    %c0_i32_0 = arith.constant 0 : i32
    return %c0_i32, %arg1 : i32, i32
  }
  func.func @transform_2(%arg0: i32, %arg1: i32) -> (i32, i32) {
    %c0_i32 = arith.constant 0 : i32
    %c0_i32_0 = arith.constant 0 : i32
    return %c0_i32, %arg1 : i32, i32
  }
  func.func @transform_3(%arg0: i32, %arg1: i32) -> (i32, i32) {
    %c0_i32 = arith.constant 0 : i32
    return %arg0, %arg1 : i32, i32
  }
  func.func @transform_4(%arg0: i32, %arg1: i32) -> (i32, i32) {
    %c0_i32 = arith.constant 0 : i32
    return %arg0, %arg1 : i32, i32
  }
}

module attributes {stable_mosaic.version = 11 : i64} {
  func.func @_mm_kernel(%arg0: i32, %arg1: i32, %arg2: memref<8x128xbf16, #tpu.memory_space<vmem>>, %arg3: memref<128x128xbf16, #tpu.memory_space<vmem>>, %arg4: memref<1x128xf32, #tpu.memory_space<vmem>>, %arg5: memref<8x128xbf16, #tpu.memory_space<vmem>>) attributes {dimension_semantics = [#tpu.dimension_semantics<parallel>, #tpu.dimension_semantics<parallel>], iteration_bounds = array<i64: 1, 1>, scalar_prefetch = 0 : i64, scratch_operands = 0 : i64, tpu.core_type = #tpu.core_type<tc>, window_params = [{transform_indices = @transform_0, window_bounds = array<i64: 8, 128>}, {transform_indices = @transform_1, window_bounds = array<i64: 128, 128>}, {transform_indices = @transform_2, window_bounds = array<i64: 1, 128>}, {transform_indices = @transform_3, window_bounds = array<i64: 8, 128>}]} {
    %c0 = arith.constant 0 : index
    %c0_0 = arith.constant 0 : index
    %0 = vector.load %arg2[%c0, %c0_0] : memref<8x128xbf16, #tpu.memory_space<vmem>>, vector<8x128xbf16>
    %c0_1 = arith.constant 0 : index
    %c0_2 = arith.constant 0 : index
    %1 = vector.load %arg3[%c0_1, %c0_2] : memref<128x128xbf16, #tpu.memory_space<vmem>>, vector<128x128xbf16>
    %cst = arith.constant dense<0.000000e+00> : vector<8x128xf32>
    %2 = tpu.matmul %0, %1, %cst {dimension_numbers = #tpu.dot_dimension_numbers<[1], [0], [0], [1], [0, 0, 1, 1], [], []>} : vector<8x128xbf16>, vector<128x128xbf16>, vector<8x128xf32> -> vector<8x128xf32>
    %c0_3 = arith.constant 0 : index
    %c0_4 = arith.constant 0 : index
    %3 = vector.load %arg4[%c0_3, %c0_4] : memref<1x128xf32, #tpu.memory_space<vmem>>, vector<1x128xf32>
    %4 = vector.broadcast %3 : vector<1x128xf32> to vector<8x128xf32>
    %5 = arith.addf %2, %4 : vector<8x128xf32>
    %6 = arith.truncf %5 : vector<8x128xf32> to vector<8x128xbf16>
    %c0_5 = arith.constant 0 : index
    %c0_6 = arith.constant 0 : index
    %7 = vector.load %arg5[%c0_5, %c0_6] : memref<8x128xbf16, #tpu.memory_space<vmem>>, vector<8x128xbf16>
    tpu.vector_store %arg5[%c0_5, %c0_6], %6 {strides = array<i32>} : memref<8x128xbf16, #tpu.memory_space<vmem>>, vector<8x128xbf16>,
    return
  }
  func.func @transform_0(%arg0: i32, %arg1: i32) -> (i32, i32) {
    %c0_i32 = arith.constant 0 : i32
    %c0_i32_0 = arith.constant 0 : i32
    return %arg0, %c0_i32 : i32, i32
  }
  func.func @transform_1(%arg0: i32, %arg1: i32) -> (i32, i32) {
    %c0_i32 = arith.constant 0 : i32
    %c0_i32_0 = arith.constant 0 : i32
    return %c0_i32, %arg1 : i32, i32
  }
  func.func @transform_2(%arg0: i32, %arg1: i32) -> (i32, i32) {
    %c0_i32 = arith.constant 0 : i32
    %c0_i32_0 = arith.constant 0 : i32
    return %c0_i32, %arg1 : i32, i32
  }
  func.func @transform_3(%arg0: i32, %arg1: i32) -> (i32, i32) {
    %c0_i32 = arith.constant 0 : i32
    return %arg0, %arg1 : i32, i32
  }
}

module attributes {stable_mosaic.version = 11 : i64} {
  func.func @_mm_kernel(%arg0: i32, %arg1: i32, %arg2: memref<8x640xbf16, #tpu.memory_space<vmem>>, %arg3: memref<640x128xbf16, #tpu.memory_space<vmem>>, %arg4: memref<1x128xf32, #tpu.memory_space<vmem>>, %arg5: memref<8x128xbf16, #tpu.memory_space<vmem>>) attributes {dimension_semantics = [#tpu.dimension_semantics<parallel>, #tpu.dimension_semantics<parallel>], iteration_bounds = array<i64: 1, 1>, scalar_prefetch = 0 : i64, scratch_operands = 0 : i64, tpu.core_type = #tpu.core_type<tc>, window_params = [{transform_indices = @transform_0, window_bounds = array<i64: 8, 640>}, {transform_indices = @transform_1, window_bounds = array<i64: 640, 128>}, {transform_indices = @transform_2, window_bounds = array<i64: 1, 128>}, {transform_indices = @transform_3, window_bounds = array<i64: 8, 128>}]} {
    %c0 = arith.constant 0 : index
    %c0_0 = arith.constant 0 : index
    %0 = vector.load %arg2[%c0, %c0_0] : memref<8x640xbf16, #tpu.memory_space<vmem>>, vector<8x640xbf16>
    %c0_1 = arith.constant 0 : index
    %c0_2 = arith.constant 0 : index
    %1 = vector.load %arg3[%c0_1, %c0_2] : memref<640x128xbf16, #tpu.memory_space<vmem>>, vector<640x128xbf16>
    %cst = arith.constant dense<0.000000e+00> : vector<8x128xf32>
    %2 = tpu.matmul %0, %1, %cst {dimension_numbers = #tpu.dot_dimension_numbers<[1], [0], [0], [1], [0, 0, 1, 1], [], []>} : vector<8x640xbf16>, vector<640x128xbf16>, vector<8x128xf32> -> vector<8x128xf32>
    %c0_3 = arith.constant 0 : index
    %c0_4 = arith.constant 0 : index
    %3 = vector.load %arg4[%c0_3, %c0_4] : memref<1x128xf32, #tpu.memory_space<vmem>>, vector<1x128xf32>
    %4 = vector.broadcast %3 : vector<1x128xf32> to vector<8x128xf32>
    %5 = arith.addf %2, %4 : vector<8x128xf32>
    %cst_5 = arith.constant 0.000000e+00 : f32
    %6 = vector.broadcast %cst_5 : f32 to vector<8x128xf32>
    %7 = arith.maximumf %5, %6 : vector<8x128xf32>
    %8 = arith.truncf %7 : vector<8x128xf32> to vector<8x128xbf16>
    %c0_6 = arith.constant 0 : index
    %c0_7 = arith.constant 0 : index
    %9 = vector.load %arg5[%c0_6, %c0_7] : memref<8x128xbf16, #tpu.memory_space<vmem>>, vector<8x128xbf16>
    tpu.vector_store %arg5[%c0_6, %c0_7], %8 {strides = array<i32>} : memref<8x128xbf16, #tpu.memory_space<vmem>>, vector<8x128xbf16>,
    return
  }
  func.func @transform_0(%arg0: i32, %arg1: i32) -> (i32, i32) {
    %c0_i32 = arith.constant 0 : i32
    %c0_i32_0 = arith.constant 0 : i32
    return %arg0, %c0_i32 : i32, i32
  }
  func.func @transform_1(%arg0: i32, %arg1: i32) -> (i32, i32) {
    %c0_i32 = arith.constant 0 : i32
    %c0_i32_0 = arith.constant 0 : i32
    return %c0_i32, %arg1 : i32, i32
  }
  func.func @transform_2(%arg0: i32, %arg1: i32) -> (i32, i32) {
    %c0_i32 = arith.constant 0 : i32
    %c0_i32_0 = arith.constant 0 : i32
    return %c0_i32, %arg1 : i32, i32
  }
  func.func @transform_3(%arg0: i32, %arg1: i32) -> (i32, i32) {
    %c0_i32 = arith.constant 0 : i32
    return %arg0, %arg1 : i32, i32
  }
}

module attributes {stable_mosaic.version = 11 : i64} {
  func.func @_mm_kernel(%arg0: i32, %arg1: i32, %arg2: memref<8x1152xbf16, #tpu.memory_space<vmem>>, %arg3: memref<1152x128xbf16, #tpu.memory_space<vmem>>, %arg4: memref<1x128xf32, #tpu.memory_space<vmem>>, %arg5: memref<8x128xbf16, #tpu.memory_space<vmem>>) attributes {dimension_semantics = [#tpu.dimension_semantics<parallel>, #tpu.dimension_semantics<parallel>], iteration_bounds = array<i64: 1, 1>, scalar_prefetch = 0 : i64, scratch_operands = 0 : i64, tpu.core_type = #tpu.core_type<tc>, window_params = [{transform_indices = @transform_0, window_bounds = array<i64: 8, 1152>}, {transform_indices = @transform_1, window_bounds = array<i64: 1152, 128>}, {transform_indices = @transform_2, window_bounds = array<i64: 1, 128>}, {transform_indices = @transform_3, window_bounds = array<i64: 8, 128>}]} {
    %c0 = arith.constant 0 : index
    %c0_0 = arith.constant 0 : index
    %0 = vector.load %arg2[%c0, %c0_0] : memref<8x1152xbf16, #tpu.memory_space<vmem>>, vector<8x1152xbf16>
    %c0_1 = arith.constant 0 : index
    %c0_2 = arith.constant 0 : index
    %1 = vector.load %arg3[%c0_1, %c0_2] : memref<1152x128xbf16, #tpu.memory_space<vmem>>, vector<1152x128xbf16>
    %cst = arith.constant dense<0.000000e+00> : vector<8x128xf32>
    %2 = tpu.matmul %0, %1, %cst {dimension_numbers = #tpu.dot_dimension_numbers<[1], [0], [0], [1], [0, 0, 1, 1], [], []>} : vector<8x1152xbf16>, vector<1152x128xbf16>, vector<8x128xf32> -> vector<8x128xf32>
    %c0_3 = arith.constant 0 : index
    %c0_4 = arith.constant 0 : index
    %3 = vector.load %arg4[%c0_3, %c0_4] : memref<1x128xf32, #tpu.memory_space<vmem>>, vector<1x128xf32>
    %4 = vector.broadcast %3 : vector<1x128xf32> to vector<8x128xf32>
    %5 = arith.addf %2, %4 : vector<8x128xf32>
    %cst_5 = arith.constant 0.000000e+00 : f32
    %6 = vector.broadcast %cst_5 : f32 to vector<8x128xf32>
    %7 = arith.maximumf %5, %6 : vector<8x128xf32>
    %8 = arith.truncf %7 : vector<8x128xf32> to vector<8x128xbf16>
    %c0_6 = arith.constant 0 : index
    %c0_7 = arith.constant 0 : index
    %9 = vector.load %arg5[%c0_6, %c0_7] : memref<8x128xbf16, #tpu.memory_space<vmem>>, vector<8x128xbf16>
    tpu.vector_store %arg5[%c0_6, %c0_7], %8 {strides = array<i32>} : memref<8x128xbf16, #tpu.memory_space<vmem>>, vector<8x128xbf16>,
    return
  }
  func.func @transform_0(%arg0: i32, %arg1: i32) -> (i32, i32) {
    %c0_i32 = arith.constant 0 : i32
    %c0_i32_0 = arith.constant 0 : i32
    return %arg0, %c0_i32 : i32, i32
  }
  func.func @transform_1(%arg0: i32, %arg1: i32) -> (i32, i32) {
    %c0_i32 = arith.constant 0 : i32
    %c0_i32_0 = arith.constant 0 : i32
    return %c0_i32, %arg1 : i32, i32
  }
  func.func @transform_2(%arg0: i32, %arg1: i32) -> (i32, i32) {
    %c0_i32 = arith.constant 0 : i32
    %c0_i32_0 = arith.constant 0 : i32
    return %c0_i32, %arg1 : i32, i32
  }
  func.func @transform_3(%arg0: i32, %arg1: i32) -> (i32, i32) {
    %c0_i32 = arith.constant 0 : i32
    return %arg0, %arg1 : i32, i32
  }
}

module attributes {stable_mosaic.version = 11 : i64} {
  func.func @_mm_kernel(%arg0: i32, %arg1: i32, %arg2: memref<8x1152xbf16, #tpu.memory_space<vmem>>, %arg3: memref<1152x128xbf16, #tpu.memory_space<vmem>>, %arg4: memref<1x128xf32, #tpu.memory_space<vmem>>, %arg5: memref<8x128xbf16, #tpu.memory_space<vmem>>, %arg6: memref<8x128xbf16, #tpu.memory_space<vmem>>) attributes {dimension_semantics = [#tpu.dimension_semantics<parallel>, #tpu.dimension_semantics<parallel>], iteration_bounds = array<i64: 1, 1>, scalar_prefetch = 0 : i64, scratch_operands = 0 : i64, tpu.core_type = #tpu.core_type<tc>, window_params = [{transform_indices = @transform_0, window_bounds = array<i64: 8, 1152>}, {transform_indices = @transform_1, window_bounds = array<i64: 1152, 128>}, {transform_indices = @transform_2, window_bounds = array<i64: 1, 128>}, {transform_indices = @transform_3, window_bounds = array<i64: 8, 128>}, {transform_indices = @transform_4, window_bounds = array<i64: 8, 128>}]} {
    %c0 = arith.constant 0 : index
    %c0_0 = arith.constant 0 : index
    %0 = vector.load %arg2[%c0, %c0_0] : memref<8x1152xbf16, #tpu.memory_space<vmem>>, vector<8x1152xbf16>
    %c0_1 = arith.constant 0 : index
    %c0_2 = arith.constant 0 : index
    %1 = vector.load %arg3[%c0_1, %c0_2] : memref<1152x128xbf16, #tpu.memory_space<vmem>>, vector<1152x128xbf16>
    %cst = arith.constant dense<0.000000e+00> : vector<8x128xf32>
    %2 = tpu.matmul %0, %1, %cst {dimension_numbers = #tpu.dot_dimension_numbers<[1], [0], [0], [1], [0, 0, 1, 1], [], []>} : vector<8x1152xbf16>, vector<1152x128xbf16>, vector<8x128xf32> -> vector<8x128xf32>
    %c0_3 = arith.constant 0 : index
    %c0_4 = arith.constant 0 : index
    %3 = vector.load %arg4[%c0_3, %c0_4] : memref<1x128xf32, #tpu.memory_space<vmem>>, vector<1x128xf32>
    %4 = vector.broadcast %3 : vector<1x128xf32> to vector<8x128xf32>
    %5 = arith.addf %2, %4 : vector<8x128xf32>
    %c0_5 = arith.constant 0 : index
    %c0_6 = arith.constant 0 : index
    %6 = vector.load %arg5[%c0_5, %c0_6] : memref<8x128xbf16, #tpu.memory_space<vmem>>, vector<8x128xbf16>
    %7 = arith.extf %6 : vector<8x128xbf16> to vector<8x128xf32>
    %8 = arith.addf %5, %7 : vector<8x128xf32>
    %cst_7 = arith.constant 0.000000e+00 : f32
    %9 = vector.broadcast %cst_7 : f32 to vector<8x128xf32>
    %10 = arith.maximumf %8, %9 : vector<8x128xf32>
    %11 = arith.truncf %10 : vector<8x128xf32> to vector<8x128xbf16>
    %c0_8 = arith.constant 0 : index
    %c0_9 = arith.constant 0 : index
    %12 = vector.load %arg6[%c0_8, %c0_9] : memref<8x128xbf16, #tpu.memory_space<vmem>>, vector<8x128xbf16>
    tpu.vector_store %arg6[%c0_8, %c0_9], %11 {strides = array<i32>} : memref<8x128xbf16, #tpu.memory_space<vmem>>, vector<8x128xbf16>,
    return
  }
  func.func @transform_0(%arg0: i32, %arg1: i32) -> (i32, i32) {
    %c0_i32 = arith.constant 0 : i32
    %c0_i32_0 = arith.constant 0 : i32
    return %arg0, %c0_i32 : i32, i32
  }
  func.func @transform_1(%arg0: i32, %arg1: i32) -> (i32, i32) {
    %c0_i32 = arith.constant 0 : i32
    %c0_i32_0 = arith.constant 0 : i32
    return %c0_i32, %arg1 : i32, i32
  }
  func.func @transform_2(%arg0: i32, %arg1: i32) -> (i32, i32) {
    %c0_i32 = arith.constant 0 : i32
    %c0_i32_0 = arith.constant 0 : i32
    return %c0_i32, %arg1 : i32, i32
  }
  func.func @transform_3(%arg0: i32, %arg1: i32) -> (i32, i32) {
    %c0_i32 = arith.constant 0 : i32
    return %arg0, %arg1 : i32, i32
  }
  func.func @transform_4(%arg0: i32, %arg1: i32) -> (i32, i32) {
    %c0_i32 = arith.constant 0 : i32
    return %arg0, %arg1 : i32, i32
  }
}

module attributes {stable_mosaic.version = 11 : i64} {
  func.func @_mm_kernel(%arg0: i32, %arg1: i32, %arg2: memref<8x128xbf16, #tpu.memory_space<vmem>>, %arg3: memref<128x128xbf16, #tpu.memory_space<vmem>>, %arg4: memref<1x128xf32, #tpu.memory_space<vmem>>, %arg5: memref<8x128xbf16, #tpu.memory_space<vmem>>) attributes {dimension_semantics = [#tpu.dimension_semantics<parallel>, #tpu.dimension_semantics<parallel>], iteration_bounds = array<i64: 1, 2>, scalar_prefetch = 0 : i64, scratch_operands = 0 : i64, tpu.core_type = #tpu.core_type<tc>, window_params = [{transform_indices = @transform_0, window_bounds = array<i64: 8, 128>}, {transform_indices = @transform_1, window_bounds = array<i64: 128, 128>}, {transform_indices = @transform_2, window_bounds = array<i64: 1, 128>}, {transform_indices = @transform_3, window_bounds = array<i64: 8, 128>}]} {
    %c0 = arith.constant 0 : index
    %c0_0 = arith.constant 0 : index
    %0 = vector.load %arg2[%c0, %c0_0] : memref<8x128xbf16, #tpu.memory_space<vmem>>, vector<8x128xbf16>
    %c0_1 = arith.constant 0 : index
    %c0_2 = arith.constant 0 : index
    %1 = vector.load %arg3[%c0_1, %c0_2] : memref<128x128xbf16, #tpu.memory_space<vmem>>, vector<128x128xbf16>
    %cst = arith.constant dense<0.000000e+00> : vector<8x128xf32>
    %2 = tpu.matmul %0, %1, %cst {dimension_numbers = #tpu.dot_dimension_numbers<[1], [0], [0], [1], [0, 0, 1, 1], [], []>} : vector<8x128xbf16>, vector<128x128xbf16>, vector<8x128xf32> -> vector<8x128xf32>
    %c0_3 = arith.constant 0 : index
    %c0_4 = arith.constant 0 : index
    %3 = vector.load %arg4[%c0_3, %c0_4] : memref<1x128xf32, #tpu.memory_space<vmem>>, vector<1x128xf32>
    %4 = vector.broadcast %3 : vector<1x128xf32> to vector<8x128xf32>
    %5 = arith.addf %2, %4 : vector<8x128xf32>
    %6 = arith.truncf %5 : vector<8x128xf32> to vector<8x128xbf16>
    %c0_5 = arith.constant 0 : index
    %c0_6 = arith.constant 0 : index
    %7 = vector.load %arg5[%c0_5, %c0_6] : memref<8x128xbf16, #tpu.memory_space<vmem>>, vector<8x128xbf16>
    tpu.vector_store %arg5[%c0_5, %c0_6], %6 {strides = array<i32>} : memref<8x128xbf16, #tpu.memory_space<vmem>>, vector<8x128xbf16>,
    return
  }
  func.func @transform_0(%arg0: i32, %arg1: i32) -> (i32, i32) {
    %c0_i32 = arith.constant 0 : i32
    %c0_i32_0 = arith.constant 0 : i32
    return %arg0, %c0_i32 : i32, i32
  }
  func.func @transform_1(%arg0: i32, %arg1: i32) -> (i32, i32) {
    %c0_i32 = arith.constant 0 : i32
    %c0_i32_0 = arith.constant 0 : i32
    return %c0_i32, %arg1 : i32, i32
  }
  func.func @transform_2(%arg0: i32, %arg1: i32) -> (i32, i32) {
    %c0_i32 = arith.constant 0 : i32
    %c0_i32_0 = arith.constant 0 : i32
    return %c0_i32, %arg1 : i32, i32
  }
  func.func @transform_3(%arg0: i32, %arg1: i32) -> (i32, i32) {
    %c0_i32 = arith.constant 0 : i32
    return %arg0, %arg1 : i32, i32
  }
}

module attributes {stable_mosaic.version = 11 : i64} {
  func.func @_mm_kernel(%arg0: i32, %arg1: i32, %arg2: memref<8x512xbf16, #tpu.memory_space<vmem>>, %arg3: memref<512x128xbf16, #tpu.memory_space<vmem>>, %arg4: memref<1x128xf32, #tpu.memory_space<vmem>>, %arg5: memref<8x128xbf16, #tpu.memory_space<vmem>>) attributes {dimension_semantics = [#tpu.dimension_semantics<parallel>, #tpu.dimension_semantics<parallel>], iteration_bounds = array<i64: 1, 2>, scalar_prefetch = 0 : i64, scratch_operands = 0 : i64, tpu.core_type = #tpu.core_type<tc>, window_params = [{transform_indices = @transform_0, window_bounds = array<i64: 8, 512>}, {transform_indices = @transform_1, window_bounds = array<i64: 512, 128>}, {transform_indices = @transform_2, window_bounds = array<i64: 1, 128>}, {transform_indices = @transform_3, window_bounds = array<i64: 8, 128>}]} {
    %c0 = arith.constant 0 : index
    %c0_0 = arith.constant 0 : index
    %0 = vector.load %arg2[%c0, %c0_0] : memref<8x512xbf16, #tpu.memory_space<vmem>>, vector<8x512xbf16>
    %c0_1 = arith.constant 0 : index
    %c0_2 = arith.constant 0 : index
    %1 = vector.load %arg3[%c0_1, %c0_2] : memref<512x128xbf16, #tpu.memory_space<vmem>>, vector<512x128xbf16>
    %cst = arith.constant dense<0.000000e+00> : vector<8x128xf32>
    %2 = tpu.matmul %0, %1, %cst {dimension_numbers = #tpu.dot_dimension_numbers<[1], [0], [0], [1], [0, 0, 1, 1], [], []>} : vector<8x512xbf16>, vector<512x128xbf16>, vector<8x128xf32> -> vector<8x128xf32>
    %c0_3 = arith.constant 0 : index
    %c0_4 = arith.constant 0 : index
    %3 = vector.load %arg4[%c0_3, %c0_4] : memref<1x128xf32, #tpu.memory_space<vmem>>, vector<1x128xf32>
    %4 = vector.broadcast %3 : vector<1x128xf32> to vector<8x128xf32>
    %5 = arith.addf %2, %4 : vector<8x128xf32>
    %cst_5 = arith.constant 0.000000e+00 : f32
    %6 = vector.broadcast %cst_5 : f32 to vector<8x128xf32>
    %7 = arith.maximumf %5, %6 : vector<8x128xf32>
    %8 = arith.truncf %7 : vector<8x128xf32> to vector<8x128xbf16>
    %c0_6 = arith.constant 0 : index
    %c0_7 = arith.constant 0 : index
    %9 = vector.load %arg5[%c0_6, %c0_7] : memref<8x128xbf16, #tpu.memory_space<vmem>>, vector<8x128xbf16>
    tpu.vector_store %arg5[%c0_6, %c0_7], %8 {strides = array<i32>} : memref<8x128xbf16, #tpu.memory_space<vmem>>, vector<8x128xbf16>,
    return
  }
  func.func @transform_0(%arg0: i32, %arg1: i32) -> (i32, i32) {
    %c0_i32 = arith.constant 0 : i32
    %c0_i32_0 = arith.constant 0 : i32
    return %arg0, %c0_i32 : i32, i32
  }
  func.func @transform_1(%arg0: i32, %arg1: i32) -> (i32, i32) {
    %c0_i32 = arith.constant 0 : i32
    %c0_i32_0 = arith.constant 0 : i32
    return %c0_i32, %arg1 : i32, i32
  }
  func.func @transform_2(%arg0: i32, %arg1: i32) -> (i32, i32) {
    %c0_i32 = arith.constant 0 : i32
    %c0_i32_0 = arith.constant 0 : i32
    return %c0_i32, %arg1 : i32, i32
  }
  func.func @transform_3(%arg0: i32, %arg1: i32) -> (i32, i32) {
    %c0_i32 = arith.constant 0 : i32
    return %arg0, %arg1 : i32, i32
  }
}

module attributes {stable_mosaic.version = 11 : i64} {
  func.func @_mm_kernel(%arg0: i32, %arg1: i32, %arg2: memref<8x256xbf16, #tpu.memory_space<vmem>>, %arg3: memref<256x128xbf16, #tpu.memory_space<vmem>>, %arg4: memref<1x128xf32, #tpu.memory_space<vmem>>, %arg5: memref<8x128xbf16, #tpu.memory_space<vmem>>, %arg6: memref<8x128xbf16, #tpu.memory_space<vmem>>) attributes {dimension_semantics = [#tpu.dimension_semantics<parallel>, #tpu.dimension_semantics<parallel>], iteration_bounds = array<i64: 1, 2>, scalar_prefetch = 0 : i64, scratch_operands = 0 : i64, tpu.core_type = #tpu.core_type<tc>, window_params = [{transform_indices = @transform_0, window_bounds = array<i64: 8, 256>}, {transform_indices = @transform_1, window_bounds = array<i64: 256, 128>}, {transform_indices = @transform_2, window_bounds = array<i64: 1, 128>}, {transform_indices = @transform_3, window_bounds = array<i64: 8, 128>}, {transform_indices = @transform_4, window_bounds = array<i64: 8, 128>}]} {
    %c0 = arith.constant 0 : index
    %c0_0 = arith.constant 0 : index
    %0 = vector.load %arg2[%c0, %c0_0] : memref<8x256xbf16, #tpu.memory_space<vmem>>, vector<8x256xbf16>
    %c0_1 = arith.constant 0 : index
    %c0_2 = arith.constant 0 : index
    %1 = vector.load %arg3[%c0_1, %c0_2] : memref<256x128xbf16, #tpu.memory_space<vmem>>, vector<256x128xbf16>
    %cst = arith.constant dense<0.000000e+00> : vector<8x128xf32>
    %2 = tpu.matmul %0, %1, %cst {dimension_numbers = #tpu.dot_dimension_numbers<[1], [0], [0], [1], [0, 0, 1, 1], [], []>} : vector<8x256xbf16>, vector<256x128xbf16>, vector<8x128xf32> -> vector<8x128xf32>
    %c0_3 = arith.constant 0 : index
    %c0_4 = arith.constant 0 : index
    %3 = vector.load %arg4[%c0_3, %c0_4] : memref<1x128xf32, #tpu.memory_space<vmem>>, vector<1x128xf32>
    %4 = vector.broadcast %3 : vector<1x128xf32> to vector<8x128xf32>
    %5 = arith.addf %2, %4 : vector<8x128xf32>
    %c0_5 = arith.constant 0 : index
    %c0_6 = arith.constant 0 : index
    %6 = vector.load %arg5[%c0_5, %c0_6] : memref<8x128xbf16, #tpu.memory_space<vmem>>, vector<8x128xbf16>
    %7 = arith.extf %6 : vector<8x128xbf16> to vector<8x128xf32>
    %8 = arith.addf %5, %7 : vector<8x128xf32>
    %cst_7 = arith.constant 0.000000e+00 : f32
    %9 = vector.broadcast %cst_7 : f32 to vector<8x128xf32>
    %10 = arith.maximumf %8, %9 : vector<8x128xf32>
    %11 = arith.truncf %10 : vector<8x128xf32> to vector<8x128xbf16>
    %c0_8 = arith.constant 0 : index
    %c0_9 = arith.constant 0 : index
    %12 = vector.load %arg6[%c0_8, %c0_9] : memref<8x128xbf16, #tpu.memory_space<vmem>>, vector<8x128xbf16>
    tpu.vector_store %arg6[%c0_8, %c0_9], %11 {strides = array<i32>} : memref<8x128xbf16, #tpu.memory_space<vmem>>, vector<8x128xbf16>,
    return
  }
  func.func @transform_0(%arg0: i32, %arg1: i32) -> (i32, i32) {
    %c0_i32 = arith.constant 0 : i32
    %c0_i32_0 = arith.constant 0 : i32
    return %arg0, %c0_i32 : i32, i32
  }
  func.func @transform_1(%arg0: i32, %arg1: i32) -> (i32, i32) {
    %c0_i32 = arith.constant 0 : i32
    %c0_i32_0 = arith.constant 0 : i32
    return %c0_i32, %arg1 : i32, i32
  }
  func.func @transform_2(%arg0: i32, %arg1: i32) -> (i32, i32) {
    %c0_i32 = arith.constant 0 : i32
    %c0_i32_0 = arith.constant 0 : i32
    return %c0_i32, %arg1 : i32, i32
  }
  func.func @transform_3(%arg0: i32, %arg1: i32) -> (i32, i32) {
    %c0_i32 = arith.constant 0 : i32
    return %arg0, %arg1 : i32, i32
  }
  func.func @transform_4(%arg0: i32, %arg1: i32) -> (i32, i32) {
    %c0_i32 = arith.constant 0 : i32
    return %arg0, %arg1 : i32, i32
  }
}

module attributes {stable_mosaic.version = 11 : i64} {
  func.func @_mm_kernel(%arg0: i32, %arg1: i32, %arg2: memref<8x256xbf16, #tpu.memory_space<vmem>>, %arg3: memref<256x256xbf16, #tpu.memory_space<vmem>>, %arg4: memref<1x256xf32, #tpu.memory_space<vmem>>, %arg5: memref<8x256xbf16, #tpu.memory_space<vmem>>) attributes {dimension_semantics = [#tpu.dimension_semantics<parallel>, #tpu.dimension_semantics<parallel>], iteration_bounds = array<i64: 1, 2>, scalar_prefetch = 0 : i64, scratch_operands = 0 : i64, tpu.core_type = #tpu.core_type<tc>, window_params = [{transform_indices = @transform_0, window_bounds = array<i64: 8, 256>}, {transform_indices = @transform_1, window_bounds = array<i64: 256, 256>}, {transform_indices = @transform_2, window_bounds = array<i64: 1, 256>}, {transform_indices = @transform_3, window_bounds = array<i64: 8, 256>}]} {
    %c0 = arith.constant 0 : index
    %c0_0 = arith.constant 0 : index
    %0 = vector.load %arg2[%c0, %c0_0] : memref<8x256xbf16, #tpu.memory_space<vmem>>, vector<8x256xbf16>
    %c0_1 = arith.constant 0 : index
    %c0_2 = arith.constant 0 : index
    %1 = vector.load %arg3[%c0_1, %c0_2] : memref<256x256xbf16, #tpu.memory_space<vmem>>, vector<256x256xbf16>
    %cst = arith.constant dense<0.000000e+00> : vector<8x256xf32>
    %2 = tpu.matmul %0, %1, %cst {dimension_numbers = #tpu.dot_dimension_numbers<[1], [0], [0], [1], [0, 0, 1, 1], [], []>} : vector<8x256xbf16>, vector<256x256xbf16>, vector<8x256xf32> -> vector<8x256xf32>
    %c0_3 = arith.constant 0 : index
    %c0_4 = arith.constant 0 : index
    %3 = vector.load %arg4[%c0_3, %c0_4] : memref<1x256xf32, #tpu.memory_space<vmem>>, vector<1x256xf32>
    %4 = vector.broadcast %3 : vector<1x256xf32> to vector<8x256xf32>
    %5 = arith.addf %2, %4 : vector<8x256xf32>
    %6 = arith.truncf %5 : vector<8x256xf32> to vector<8x256xbf16>
    %c0_5 = arith.constant 0 : index
    %c0_6 = arith.constant 0 : index
    %7 = vector.load %arg5[%c0_5, %c0_6] : memref<8x256xbf16, #tpu.memory_space<vmem>>, vector<8x256xbf16>
    tpu.vector_store %arg5[%c0_5, %c0_6], %6 {strides = array<i32>} : memref<8x256xbf16, #tpu.memory_space<vmem>>, vector<8x256xbf16>,
    return
  }
  func.func @transform_0(%arg0: i32, %arg1: i32) -> (i32, i32) {
    %c0_i32 = arith.constant 0 : i32
    %c0_i32_0 = arith.constant 0 : i32
    return %arg0, %c0_i32 : i32, i32
  }
  func.func @transform_1(%arg0: i32, %arg1: i32) -> (i32, i32) {
    %c0_i32 = arith.constant 0 : i32
    %c0_i32_0 = arith.constant 0 : i32
    return %c0_i32, %arg1 : i32, i32
  }
  func.func @transform_2(%arg0: i32, %arg1: i32) -> (i32, i32) {
    %c0_i32 = arith.constant 0 : i32
    %c0_i32_0 = arith.constant 0 : i32
    return %c0_i32, %arg1 : i32, i32
  }
  func.func @transform_3(%arg0: i32, %arg1: i32) -> (i32, i32) {
    %c0_i32 = arith.constant 0 : i32
    return %arg0, %arg1 : i32, i32
  }
}

module attributes {stable_mosaic.version = 11 : i64} {
  func.func @_mm_kernel(%arg0: i32, %arg1: i32, %arg2: memref<8x256xbf16, #tpu.memory_space<vmem>>, %arg3: memref<256x128xbf16, #tpu.memory_space<vmem>>, %arg4: memref<1x128xf32, #tpu.memory_space<vmem>>, %arg5: memref<8x128xbf16, #tpu.memory_space<vmem>>) attributes {dimension_semantics = [#tpu.dimension_semantics<parallel>, #tpu.dimension_semantics<parallel>], iteration_bounds = array<i64: 1, 2>, scalar_prefetch = 0 : i64, scratch_operands = 0 : i64, tpu.core_type = #tpu.core_type<tc>, window_params = [{transform_indices = @transform_0, window_bounds = array<i64: 8, 256>}, {transform_indices = @transform_1, window_bounds = array<i64: 256, 128>}, {transform_indices = @transform_2, window_bounds = array<i64: 1, 128>}, {transform_indices = @transform_3, window_bounds = array<i64: 8, 128>}]} {
    %c0 = arith.constant 0 : index
    %c0_0 = arith.constant 0 : index
    %0 = vector.load %arg2[%c0, %c0_0] : memref<8x256xbf16, #tpu.memory_space<vmem>>, vector<8x256xbf16>
    %c0_1 = arith.constant 0 : index
    %c0_2 = arith.constant 0 : index
    %1 = vector.load %arg3[%c0_1, %c0_2] : memref<256x128xbf16, #tpu.memory_space<vmem>>, vector<256x128xbf16>
    %cst = arith.constant dense<0.000000e+00> : vector<8x128xf32>
    %2 = tpu.matmul %0, %1, %cst {dimension_numbers = #tpu.dot_dimension_numbers<[1], [0], [0], [1], [0, 0, 1, 1], [], []>} : vector<8x256xbf16>, vector<256x128xbf16>, vector<8x128xf32> -> vector<8x128xf32>
    %c0_3 = arith.constant 0 : index
    %c0_4 = arith.constant 0 : index
    %3 = vector.load %arg4[%c0_3, %c0_4] : memref<1x128xf32, #tpu.memory_space<vmem>>, vector<1x128xf32>
    %4 = vector.broadcast %3 : vector<1x128xf32> to vector<8x128xf32>
    %5 = arith.addf %2, %4 : vector<8x128xf32>
    %cst_5 = arith.constant 0.000000e+00 : f32
    %6 = vector.broadcast %cst_5 : f32 to vector<8x128xf32>
    %7 = arith.maximumf %5, %6 : vector<8x128xf32>
    %8 = arith.truncf %7 : vector<8x128xf32> to vector<8x128xbf16>
    %c0_6 = arith.constant 0 : index
    %c0_7 = arith.constant 0 : index
    %9 = vector.load %arg5[%c0_6, %c0_7] : memref<8x128xbf16, #tpu.memory_space<vmem>>, vector<8x128xbf16>
    tpu.vector_store %arg5[%c0_6, %c0_7], %8 {strides = array<i32>} : memref<8x128xbf16, #tpu.memory_space<vmem>>, vector<8x128xbf16>,
    return
  }
  func.func @transform_0(%arg0: i32, %arg1: i32) -> (i32, i32) {
    %c0_i32 = arith.constant 0 : i32
    %c0_i32_0 = arith.constant 0 : i32
    return %arg0, %c0_i32 : i32, i32
  }
  func.func @transform_1(%arg0: i32, %arg1: i32) -> (i32, i32) {
    %c0_i32 = arith.constant 0 : i32
    %c0_i32_0 = arith.constant 0 : i32
    return %c0_i32, %arg1 : i32, i32
  }
  func.func @transform_2(%arg0: i32, %arg1: i32) -> (i32, i32) {
    %c0_i32 = arith.constant 0 : i32
    %c0_i32_0 = arith.constant 0 : i32
    return %c0_i32, %arg1 : i32, i32
  }
  func.func @transform_3(%arg0: i32, %arg1: i32) -> (i32, i32) {
    %c0_i32 = arith.constant 0 : i32
    return %arg0, %arg1 : i32, i32
  }
}

module attributes {stable_mosaic.version = 11 : i64} {
  func.func @_mm_kernel(%arg0: i32, %arg1: i32, %arg2: memref<8x256xbf16, #tpu.memory_space<vmem>>, %arg3: memref<256x256xbf16, #tpu.memory_space<vmem>>, %arg4: memref<1x256xf32, #tpu.memory_space<vmem>>, %arg5: memref<8x256xbf16, #tpu.memory_space<vmem>>) attributes {dimension_semantics = [#tpu.dimension_semantics<parallel>, #tpu.dimension_semantics<parallel>], iteration_bounds = array<i64: 1, 2>, scalar_prefetch = 0 : i64, scratch_operands = 0 : i64, tpu.core_type = #tpu.core_type<tc>, window_params = [{transform_indices = @transform_0, window_bounds = array<i64: 8, 256>}, {transform_indices = @transform_1, window_bounds = array<i64: 256, 256>}, {transform_indices = @transform_2, window_bounds = array<i64: 1, 256>}, {transform_indices = @transform_3, window_bounds = array<i64: 8, 256>}]} {
    %c0 = arith.constant 0 : index
    %c0_0 = arith.constant 0 : index
    %0 = vector.load %arg2[%c0, %c0_0] : memref<8x256xbf16, #tpu.memory_space<vmem>>, vector<8x256xbf16>
    %c0_1 = arith.constant 0 : index
    %c0_2 = arith.constant 0 : index
    %1 = vector.load %arg3[%c0_1, %c0_2] : memref<256x256xbf16, #tpu.memory_space<vmem>>, vector<256x256xbf16>
    %cst = arith.constant dense<0.000000e+00> : vector<8x256xf32>
    %2 = tpu.matmul %0, %1, %cst {dimension_numbers = #tpu.dot_dimension_numbers<[1], [0], [0], [1], [0, 0, 1, 1], [], []>} : vector<8x256xbf16>, vector<256x256xbf16>, vector<8x256xf32> -> vector<8x256xf32>
    %c0_3 = arith.constant 0 : index
    %c0_4 = arith.constant 0 : index
    %3 = vector.load %arg4[%c0_3, %c0_4] : memref<1x256xf32, #tpu.memory_space<vmem>>, vector<1x256xf32>
    %4 = vector.broadcast %3 : vector<1x256xf32> to vector<8x256xf32>
    %5 = arith.addf %2, %4 : vector<8x256xf32>
    %cst_5 = arith.constant 0.000000e+00 : f32
    %6 = vector.broadcast %cst_5 : f32 to vector<8x256xf32>
    %7 = arith.maximumf %5, %6 : vector<8x256xf32>
    %8 = arith.truncf %7 : vector<8x256xf32> to vector<8x256xbf16>
    %c0_6 = arith.constant 0 : index
    %c0_7 = arith.constant 0 : index
    %9 = vector.load %arg5[%c0_6, %c0_7] : memref<8x256xbf16, #tpu.memory_space<vmem>>, vector<8x256xbf16>
    tpu.vector_store %arg5[%c0_6, %c0_7], %8 {strides = array<i32>} : memref<8x256xbf16, #tpu.memory_space<vmem>>, vector<8x256xbf16>,
    return
  }
  func.func @transform_0(%arg0: i32, %arg1: i32) -> (i32, i32) {
    %c0_i32 = arith.constant 0 : i32
    %c0_i32_0 = arith.constant 0 : i32
    return %arg0, %c0_i32 : i32, i32
  }
  func.func @transform_1(%arg0: i32, %arg1: i32) -> (i32, i32) {
    %c0_i32 = arith.constant 0 : i32
    %c0_i32_0 = arith.constant 0 : i32
    return %c0_i32, %arg1 : i32, i32
  }
  func.func @transform_2(%arg0: i32, %arg1: i32) -> (i32, i32) {
    %c0_i32 = arith.constant 0 : i32
    %c0_i32_0 = arith.constant 0 : i32
    return %c0_i32, %arg1 : i32, i32
  }
  func.func @transform_3(%arg0: i32, %arg1: i32) -> (i32, i32) {
    %c0_i32 = arith.constant 0 : i32
    return %arg0, %arg1 : i32, i32
  }
}

module attributes {stable_mosaic.version = 11 : i64} {
  func.func @_mm_kernel(%arg0: i32, %arg1: i32, %arg2: memref<8x512xbf16, #tpu.memory_space<vmem>>, %arg3: memref<512x256xbf16, #tpu.memory_space<vmem>>, %arg4: memref<1x256xf32, #tpu.memory_space<vmem>>, %arg5: memref<8x256xbf16, #tpu.memory_space<vmem>>, %arg6: memref<8x256xbf16, #tpu.memory_space<vmem>>) attributes {dimension_semantics = [#tpu.dimension_semantics<parallel>, #tpu.dimension_semantics<parallel>], iteration_bounds = array<i64: 1, 2>, scalar_prefetch = 0 : i64, scratch_operands = 0 : i64, tpu.core_type = #tpu.core_type<tc>, window_params = [{transform_indices = @transform_0, window_bounds = array<i64: 8, 512>}, {transform_indices = @transform_1, window_bounds = array<i64: 512, 256>}, {transform_indices = @transform_2, window_bounds = array<i64: 1, 256>}, {transform_indices = @transform_3, window_bounds = array<i64: 8, 256>}, {transform_indices = @transform_4, window_bounds = array<i64: 8, 256>}]} {
    %c0 = arith.constant 0 : index
    %c0_0 = arith.constant 0 : index
    %0 = vector.load %arg2[%c0, %c0_0] : memref<8x512xbf16, #tpu.memory_space<vmem>>, vector<8x512xbf16>
    %c0_1 = arith.constant 0 : index
    %c0_2 = arith.constant 0 : index
    %1 = vector.load %arg3[%c0_1, %c0_2] : memref<512x256xbf16, #tpu.memory_space<vmem>>, vector<512x256xbf16>
    %cst = arith.constant dense<0.000000e+00> : vector<8x256xf32>
    %2 = tpu.matmul %0, %1, %cst {dimension_numbers = #tpu.dot_dimension_numbers<[1], [0], [0], [1], [0, 0, 1, 1], [], []>} : vector<8x512xbf16>, vector<512x256xbf16>, vector<8x256xf32> -> vector<8x256xf32>
    %c0_3 = arith.constant 0 : index
    %c0_4 = arith.constant 0 : index
    %3 = vector.load %arg4[%c0_3, %c0_4] : memref<1x256xf32, #tpu.memory_space<vmem>>, vector<1x256xf32>
    %4 = vector.broadcast %3 : vector<1x256xf32> to vector<8x256xf32>
    %5 = arith.addf %2, %4 : vector<8x256xf32>
    %c0_5 = arith.constant 0 : index
    %c0_6 = arith.constant 0 : index
    %6 = vector.load %arg5[%c0_5, %c0_6] : memref<8x256xbf16, #tpu.memory_space<vmem>>, vector<8x256xbf16>
    %7 = arith.extf %6 : vector<8x256xbf16> to vector<8x256xf32>
    %8 = arith.addf %5, %7 : vector<8x256xf32>
    %cst_7 = arith.constant 0.000000e+00 : f32
    %9 = vector.broadcast %cst_7 : f32 to vector<8x256xf32>
    %10 = arith.maximumf %8, %9 : vector<8x256xf32>
    %11 = arith.truncf %10 : vector<8x256xf32> to vector<8x256xbf16>
    %c0_8 = arith.constant 0 : index
    %c0_9 = arith.constant 0 : index
    %12 = vector.load %arg6[%c0_8, %c0_9] : memref<8x256xbf16, #tpu.memory_space<vmem>>, vector<8x256xbf16>
    tpu.vector_store %arg6[%c0_8, %c0_9], %11 {strides = array<i32>} : memref<8x256xbf16, #tpu.memory_space<vmem>>, vector<8x256xbf16>,
    return
  }
  func.func @transform_0(%arg0: i32, %arg1: i32) -> (i32, i32) {
    %c0_i32 = arith.constant 0 : i32
    %c0_i32_0 = arith.constant 0 : i32
    return %arg0, %c0_i32 : i32, i32
  }
  func.func @transform_1(%arg0: i32, %arg1: i32) -> (i32, i32) {
    %c0_i32 = arith.constant 0 : i32
    %c0_i32_0 = arith.constant 0 : i32
    return %c0_i32, %arg1 : i32, i32
  }
  func.func @transform_2(%arg0: i32, %arg1: i32) -> (i32, i32) {
    %c0_i32 = arith.constant 0 : i32
    %c0_i32_0 = arith.constant 0 : i32
    return %c0_i32, %arg1 : i32, i32
  }
  func.func @transform_3(%arg0: i32, %arg1: i32) -> (i32, i32) {
    %c0_i32 = arith.constant 0 : i32
    return %arg0, %arg1 : i32, i32
  }
  func.func @transform_4(%arg0: i32, %arg1: i32) -> (i32, i32) {
    %c0_i32 = arith.constant 0 : i32
    return %arg0, %arg1 : i32, i32
  }
}

module attributes {stable_mosaic.version = 11 : i64} {
  func.func @_mm_kernel(%arg0: i32, %arg1: i32, %arg2: memref<8x512xbf16, #tpu.memory_space<vmem>>, %arg3: memref<512x128xbf16, #tpu.memory_space<vmem>>, %arg4: memref<1x128xf32, #tpu.memory_space<vmem>>, %arg5: memref<8x128xf32, #tpu.memory_space<vmem>>) attributes {dimension_semantics = [#tpu.dimension_semantics<parallel>, #tpu.dimension_semantics<parallel>], iteration_bounds = array<i64: 1, 2>, scalar_prefetch = 0 : i64, scratch_operands = 0 : i64, tpu.core_type = #tpu.core_type<tc>, window_params = [{transform_indices = @transform_0, window_bounds = array<i64: 8, 512>}, {transform_indices = @transform_1, window_bounds = array<i64: 512, 128>}, {transform_indices = @transform_2, window_bounds = array<i64: 1, 128>}, {transform_indices = @transform_3, window_bounds = array<i64: 8, 128>}]} {
    %c0 = arith.constant 0 : index
    %c0_0 = arith.constant 0 : index
    %0 = vector.load %arg2[%c0, %c0_0] : memref<8x512xbf16, #tpu.memory_space<vmem>>, vector<8x512xbf16>
    %c0_1 = arith.constant 0 : index
    %c0_2 = arith.constant 0 : index
    %1 = vector.load %arg3[%c0_1, %c0_2] : memref<512x128xbf16, #tpu.memory_space<vmem>>, vector<512x128xbf16>
    %cst = arith.constant dense<0.000000e+00> : vector<8x128xf32>
    %2 = tpu.matmul %0, %1, %cst {dimension_numbers = #tpu.dot_dimension_numbers<[1], [0], [0], [1], [0, 0, 1, 1], [], []>} : vector<8x512xbf16>, vector<512x128xbf16>, vector<8x128xf32> -> vector<8x128xf32>
    %c0_3 = arith.constant 0 : index
    %c0_4 = arith.constant 0 : index
    %3 = vector.load %arg4[%c0_3, %c0_4] : memref<1x128xf32, #tpu.memory_space<vmem>>, vector<1x128xf32>
    %4 = vector.broadcast %3 : vector<1x128xf32> to vector<8x128xf32>
    %5 = arith.addf %2, %4 : vector<8x128xf32>
    %c0_5 = arith.constant 0 : index
    %c0_6 = arith.constant 0 : index
    %6 = vector.load %arg5[%c0_5, %c0_6] : memref<8x128xf32, #tpu.memory_space<vmem>>, vector<8x128xf32>
    tpu.vector_store %arg5[%c0_5, %c0_6], %5 {strides = array<i32>} : memref<8x128xf32, #tpu.memory_space<vmem>>, vector<8x128xf32>,
    return
  }
  func.func @transform_0(%arg0: i32, %arg1: i32) -> (i32, i32) {
    %c0_i32 = arith.constant 0 : i32
    %c0_i32_0 = arith.constant 0 : i32
    return %arg0, %c0_i32 : i32, i32
  }
  func.func @transform_1(%arg0: i32, %arg1: i32) -> (i32, i32) {
    %c0_i32 = arith.constant 0 : i32
    %c0_i32_0 = arith.constant 0 : i32
    return %c0_i32, %arg1 : i32, i32
  }
  func.func @transform_2(%arg0: i32, %arg1: i32) -> (i32, i32) {
    %c0_i32 = arith.constant 0 : i32
    %c0_i32_0 = arith.constant 0 : i32
    return %c0_i32, %arg1 : i32, i32
  }
  func.func @transform_3(%arg0: i32, %arg1: i32) -> (i32, i32) {
    %c0_i32 = arith.constant 0 : i32
    return %arg0, %arg1 : i32, i32
  }
}

module attributes {stable_mosaic.version = 11 : i64} {
  func.func @_mm_kernel(%arg0: i32, %arg1: i32, %arg2: memref<8x512xbf16, #tpu.memory_space<vmem>>, %arg3: memref<512x256xbf16, #tpu.memory_space<vmem>>, %arg4: memref<1x256xf32, #tpu.memory_space<vmem>>, %arg5: memref<8x256xbf16, #tpu.memory_space<vmem>>) attributes {dimension_semantics = [#tpu.dimension_semantics<parallel>, #tpu.dimension_semantics<parallel>], iteration_bounds = array<i64: 1, 2>, scalar_prefetch = 0 : i64, scratch_operands = 0 : i64, tpu.core_type = #tpu.core_type<tc>, window_params = [{transform_indices = @transform_0, window_bounds = array<i64: 8, 512>}, {transform_indices = @transform_1, window_bounds = array<i64: 512, 256>}, {transform_indices = @transform_2, window_bounds = array<i64: 1, 256>}, {transform_indices = @transform_3, window_bounds = array<i64: 8, 256>}]} {
    %c0 = arith.constant 0 : index
    %c0_0 = arith.constant 0 : index
    %0 = vector.load %arg2[%c0, %c0_0] : memref<8x512xbf16, #tpu.memory_space<vmem>>, vector<8x512xbf16>
    %c0_1 = arith.constant 0 : index
    %c0_2 = arith.constant 0 : index
    %1 = vector.load %arg3[%c0_1, %c0_2] : memref<512x256xbf16, #tpu.memory_space<vmem>>, vector<512x256xbf16>
    %cst = arith.constant dense<0.000000e+00> : vector<8x256xf32>
    %2 = tpu.matmul %0, %1, %cst {dimension_numbers = #tpu.dot_dimension_numbers<[1], [0], [0], [1], [0, 0, 1, 1], [], []>} : vector<8x512xbf16>, vector<512x256xbf16>, vector<8x256xf32> -> vector<8x256xf32>
    %c0_3 = arith.constant 0 : index
    %c0_4 = arith.constant 0 : index
    %3 = vector.load %arg4[%c0_3, %c0_4] : memref<1x256xf32, #tpu.memory_space<vmem>>, vector<1x256xf32>
    %4 = vector.broadcast %3 : vector<1x256xf32> to vector<8x256xf32>
    %5 = arith.addf %2, %4 : vector<8x256xf32>
    %cst_5 = arith.constant 0.000000e+00 : f32
    %6 = vector.broadcast %cst_5 : f32 to vector<8x256xf32>
    %7 = arith.maximumf %5, %6 : vector<8x256xf32>
    %8 = arith.truncf %7 : vector<8x256xf32> to vector<8x256xbf16>
    %c0_6 = arith.constant 0 : index
    %c0_7 = arith.constant 0 : index
    %9 = vector.load %arg5[%c0_6, %c0_7] : memref<8x256xbf16, #tpu.memory_space<vmem>>, vector<8x256xbf16>
    tpu.vector_store %arg5[%c0_6, %c0_7], %8 {strides = array<i32>} : memref<8x256xbf16, #tpu.memory_space<vmem>>, vector<8x256xbf16>,
    return
  }
  func.func @transform_0(%arg0: i32, %arg1: i32) -> (i32, i32) {
    %c0_i32 = arith.constant 0 : i32
    %c0_i32_0 = arith.constant 0 : i32
    return %arg0, %c0_i32 : i32, i32
  }
  func.func @transform_1(%arg0: i32, %arg1: i32) -> (i32, i32) {
    %c0_i32 = arith.constant 0 : i32
    %c0_i32_0 = arith.constant 0 : i32
    return %c0_i32, %arg1 : i32, i32
  }
  func.func @transform_2(%arg0: i32, %arg1: i32) -> (i32, i32) {
    %c0_i32 = arith.constant 0 : i32
    %c0_i32_0 = arith.constant 0 : i32
    return %c0_i32, %arg1 : i32, i32
  }
  func.func @transform_3(%arg0: i32, %arg1: i32) -> (i32, i32) {
    %c0_i32 = arith.constant 0 : i32
    return %arg0, %arg1 : i32, i32
  }
}

</mosaic_0001>

<bundles_post_ra>
// kernel: resnet34_forward.38
= control target key start
LH: loop header
LB: loop body
LE: loop exit
PB: predicated region body
PF: predicated region fallthrough
CT: control target
= control target key end

     0   :  { %s858_s12 = smov 0   ;;  %s860_s13 = smov 0   ;;  %s956_s0 = inlined_call_operand.vmem [shape: bf16[128,256], index: 0, kind: input, shape index: {}]   ;;  %s957_s1 = inlined_call_operand.vmem [shape: bf16[256,128], index: 1, kind: input, shape index: {}]   ;;  %s958_s2 = inlined_call_operand.vmem [shape: f32[1,128], index: 2, kind: input, shape index: {}]   ;;  %s959_s3 = inlined_call_operand.vmem [shape: bf16[128,128], index: 3, kind: output, shape index: {}]  }
   0x1   :  { %s862_s14 = smov 0  }
   0x2 LB: > { %s25_s15 = sadd.s32 1, %s832_s13  ;;  %p633_p0 = scmp.ge.s32.totalorder %s836_s14, 1  ;;  %s836_s14 = sphi %s862_s14, %s13_s14   ;;  %s832_s13 = sphi %s860_s13, %s961_s13   ;;  %s828_s12 = sphi %s858_s12, %s960_s12  }
   0x3   : > { %p27_p1 = scmp.ge.s32.totalorder %s25_s15, 2  ;;  %p170_p2 = scmp.lt.s32.totalorder %s836_s14, 3 }
   0x5   : > { %s963_s15 = smov (%p27_p1, %s25_s15), 0  ;;  %p171_p3 = pnand %p633_p0, %p170_p2 }
   0x6   : > { %s634_s18 = sshll.u32 (!%p171_p3), %s828_s12, 3 }
   0x7   : > { %174 = sbr.rel (%p171_p3) target bundleno = 261 (0x105), region = 32  ;;  %p206_p4 = scmp.lt.s32.totalorder (!%p171_p3), %s634_s18, 15 }
   0xc   : > { %v786_v0 = vld [vmem:[%s957_s1 + $0x78] sm:$0xff]   ;;  %v788_v2 = vld [vmem:[%s957_s1 + $0x70] sm:$0xff]   ;;  %v790_v4 = vld [vmem:[%s957_s1 + $0x68] sm:$0xff]   ;;  %s965_s18 = smov (!%p206_p4, %s634_s18), 15 }
   0xd   : > { %v787_v1 = vld [vmem:[%s957_s1 + $0x38] sm:$0xff]   ;;  %706 = vmatprep.subr.bf16.mxu0 %v786_v0  ;;  %746 = vmatprep.subr.bf16.mxu1 %v786_v0  ;;  %v789_v3 = vld [vmem:[%s957_s1 + $0x30] sm:$0xff]   ;;  %v791_v5 = vld [vmem:[%s957_s1 + $0x28] sm:$0xff]   ;;  %s674_s6 = sshll.u32 %s965_s18, 3  ;;  %s638_s5 = sshll.u32 %s965_s18, 2 }
   0xe   : > { %707 = vmatpush3.bf16.msra.mxu0 %v787_v1  ;;  %754 = vmatpush3.bf16.msra.mxu1 %v787_v1  ;;  %v792_v6 = vld [vmem:[%s957_s1 + $0x60] sm:$0xff]   ;;  %v794_v8 = vld [vmem:[%s957_s1 + $0x58] sm:$0xff]   ;;  %s909_s11 = scalar_lea.vmem %s956_s0, %s674_s6  ;;  %v796_v10 = vld [vmem:[%s957_s1 + $0x50] sm:$0xff]   ;;  %s226_s8 = scalar_lea.vmem %s959_s3, %s638_s5 }
   0xf   : > { %708 = vmatprep.subr.bf16.mxu0 %v788_v2  ;;  %747 = vmatprep.subr.bf16.mxu1 %v788_v2  ;;  %v793_v7 = vld [vmem:[%s957_s1 + $0x20] sm:$0xff]   ;;  %v795_v9 = vld [vmem:[%s957_s1 + $0x18] sm:$0xff]   ;;  %v797_v13 = vld [vmem:[%s957_s1 + $0x10] sm:$0xff]  }
  0x10   : > { %v804_v11 = vld [vmem:[%s909_s11 + $0x4] ss:$8 sps:$4 sm:$0xff]   ;;  %v802_v18 = vld [vmem:[%s909_s11] ss:$8 sps:$4 sm:$0xff]   ;;  %v808_v20 = vld [vmem:[%s909_s11 + $0x14] ss:$8 sps:$4 sm:$0xff]  }
  0x11   : > { %v807_v12 = vld [vmem:[%s909_s11 + $0x24] ss:$8 sps:$4 sm:$0xff]   ;;  %444 = vmatprep.mubr.bf16.mxu0 %v804_v11  ;;  %v805_v19 = vld [vmem:[%s909_s11 + $0x20] ss:$8 sps:$4 sm:$0xff]   ;;  %v810_v21 = vld [vmem:[%s909_s11 + $0x34] ss:$8 sps:$4 sm:$0xff]  }
  0x12   : > { %709 = vmatpush3.bf16.msra.mxu0 %v789_v3  ;;  %755 = vmatpush3.bf16.msra.mxu1 %v789_v3  ;;  %v798_v14 = vld [vmem:[%s957_s1 + $0x48] sm:$0xff]   ;;  %v800_v16 = vld [vmem:[%s957_s1 + $0x40] sm:$0xff]   ;;  %v812_v22 = vld [vmem:[%s909_s11 + $0x10] ss:$8 sps:$4 sm:$0xff]  }
  0x13   : > { %710 = vmatprep.subr.bf16.mxu0 %v790_v4  ;;  %748 = vmatprep.subr.bf16.mxu1 %v790_v4  ;;  %v799_v15 = vld [vmem:[%s957_s1 + $0x8] sm:$0xff]   ;;  %v801_v17 = vld [vmem:[%s957_s1] sm:$0xff]   ;;  %v813_v23 = vld [vmem:[%s909_s11 + $0x30] ss:$8 sps:$4 sm:$0xff]  }
  0x14   : > { %460 = vmatprep.mubr.bf16.mxu1 %v807_v12  ;;  %v639_v28 = vld [vmem:[%s958_s2] ss:$0 sm:$0xff] }
  0x16   : > { %711 = vmatpush3.bf16.msra.mxu0 %v791_v5  ;;  %756 = vmatpush3.bf16.msra.mxu1 %v791_v5 }
  0x17   : > { %712 = vmatprep.subr.bf16.mxu0 %v792_v6  ;;  %749 = vmatprep.subr.bf16.mxu1 %v792_v6 }
  0x1a   : > { %713 = vmatpush3.bf16.msra.mxu0 %v793_v7  ;;  %757 = vmatpush3.bf16.msra.mxu1 %v793_v7 }
  0x1b   : > { %714 = vmatprep.subr.bf16.mxu0 %v794_v8  ;;  %750 = vmatprep.subr.bf16.mxu1 %v794_v8 }
  0x1e   : > { %715 = vmatpush3.bf16.msra.mxu0 %v795_v9  ;;  %758 = vmatpush3.bf16.msra.mxu1 %v795_v9 }
  0x1f   : > { %716 = vmatprep.subr.bf16.mxu0 %v796_v10  ;;  %751 = vmatprep.subr.bf16.mxu1 %v796_v10 }
  0x22   : > { %717 = vmatpush3.bf16.msra.mxu0 %v797_v13  ;;  %759 = vmatpush3.bf16.msra.mxu1 %v797_v13 }
  0x23   : > { %718 = vmatprep.subr.bf16.mxu0 %v798_v14  ;;  %752 = vmatprep.subr.bf16.mxu1 %v798_v14 }
  0x26   : > { %719 = vmatpush3.bf16.msra.mxu0 %v799_v15  ;;  %760 = vmatpush3.bf16.msra.mxu1 %v799_v15 }
  0x27   : > { %720 = vmatprep.subr.bf16.mxu0 %v800_v16  ;;  %753 = vmatprep.subr.bf16.mxu1 %v800_v16 }
  0x2a   : > { %721 = vmatpush3.bf16.msra.mxu0 %v801_v17  ;;  %761 = vmatpush3.bf16.msra.mxu1 %v801_v17 }
  0x2d   : > { %445 = vmatmul.mubr.bf16.vlgmr.msra.gmra.mxu0 %v802_v18  ;;  %461 = vmatmul.mubr.bf16.vlgmr.msra.gmra.mxu1 %v805_v19 }
  0x2e   : > { %452 = vmatprep.mubr.bf16.mxu0 %v808_v20  ;;  %468 = vmatprep.mubr.bf16.mxu1 %v810_v21 }
  0x35   : > { %453 = vmatmul.mubr.bf16.gmra.mxu0 %v812_v22  ;;  %469 = vmatmul.mubr.bf16.gmra.mxu1 %v813_v23 }
  0xed   : > { %v722_v24 = vpop.f32.mrf.mxu0  ;;  %v734_v25 = vpop.f32.mrf.mxu1 }
  0xef   : > { %v723_v26 = vpop.f32.mrf.mxu0  ;;  %v735_v27 = vpop.f32.mrf.mxu1 }
  0xf0   : > { %v724_v29 = vadd.f32 %v723_v26, %v722_v24  ;;  %v736_v30 = vadd.f32 %v735_v27, %v734_v25 }
  0xf1   : > { %v725_v31 = vpop.f32.mrf.mxu0  ;;  %v737_v32 = vpop.f32.mrf.mxu1 }
  0xf2   : > { %v447_v33 = vadd.f32 %v724_v29, %v639_v28  ;;  %v463_v34 = vadd.f32 %v736_v30, %v639_v28 }
  0xf3   : > { %v726_v35 = vpop.f32.mrf.mxu0  ;;  %v738_v36 = vpop.f32.mrf.mxu1 }
  0xf4   : > { %v727_v37 = vadd.f32 %v726_v35, %v725_v31  ;;  %v739_v38 = vadd.f32 %v738_v36, %v737_v32  ;;  %v477_v43 = vmax.f32 %v447_v33, 0.0  ;;  %v481_v44 = vmax.f32 %v463_v34, 0.0 }
  0xf5   : > { %v728_v39 = vpop.f32.mrf.mxu0  ;;  %v740_v40 = vpop.f32.mrf.mxu1 }
  0xf6   : > { %v450_v41 = vadd.f32 %v727_v37, %v639_v28  ;;  %v466_v42 = vadd.f32 %v739_v38, %v639_v28 }
  0xf7   : > { %v729_v45 = vpop.f32.mrf.mxu0  ;;  %v741_v46 = vpop.f32.mrf.mxu1 }
  0xf8   : > { %v478_v47 = vmax.f32 %v450_v41, 0.0  ;;  %v482_v48 = vmax.f32 %v466_v42, 0.0  ;;  %v730_v49 = vadd.f32 %v729_v45, %v728_v39  ;;  %v742_v50 = vadd.f32 %v741_v46, %v740_v40 }
  0xf9   : > { %v731_v51 = vpop.f32.mrf.mxu0  ;;  %v743_v52 = vpop.f32.mrf.mxu1 }
  0xfa   : > { %v686_v53 = vpack.c.bf16 %v478_v47, %v477_v43  ;;  %v696_v54 = vpack.c.bf16 %v482_v48, %v481_v44  ;;  %v455_v57 = vadd.f32 %v730_v49, %v639_v28  ;;  %v471_v58 = vadd.f32 %v742_v50, %v639_v28 }
  0xfb   : > { %v732_v55 = vpop.f32.mrf.mxu0  ;;  %v744_v56 = vpop.f32.mrf.mxu1 }
  0xfc   : > { %687 = vst [vmem:[%s226_s8] sm:$0xff] %v686_v53   ;;  %704 = vst [vmem:[%s226_s8 + $0x10] sm:$0xff] %v696_v54   ;;  %v733_v59 = vadd.f32 %v732_v55, %v731_v51  ;;  %v745_v60 = vadd.f32 %v744_v56, %v743_v52  ;;  %v479_v63 = vmax.f32 %v455_v57, 0.0  ;;  %v483_v0 = vmax.f32 %v471_v58, 0.0 }
  0xfe   : > { %v458_v61 = vadd.f32 %v733_v59, %v639_v28  ;;  %v474_v62 = vadd.f32 %v745_v60, %v639_v28 }
 0x100   : > { %v480_v1 = vmax.f32 %v458_v61, 0.0  ;;  %v484_v2 = vmax.f32 %v474_v62, 0.0 }
 0x102   : > { %v691_v3 = vpack.c.bf16 %v480_v1, %v479_v63  ;;  %v701_v4 = vpack.c.bf16 %v484_v2, %v483_v0 }
 0x104   : > { %703 = vst [vmem:[%s226_s8 + $0x8] sm:$0xff] %v691_v3   ;;  %705 = vst [vmem:[%s226_s8 + $0x18] sm:$0xff] %v701_v4  }
 0x105 PF: > { %s13_s14 = sadd.s32 1, %s836_s14   ;;  %s960_s12 = smov %s832_s13 }
 0x106   : > { %p10_p5 = scmp.ge.s32.totalorder %s13_s14, 4   ;;  %s961_s13 = smov %s963_s15 }
 0x108   :  { %12 = sbr.rel (!%p10_p5) target bundleno = 2 (0x2), region = 68 }

// kernel: resnet34_forward.39
= control target key start
LH: loop header
LB: loop body
LE: loop exit
PB: predicated region body
PF: predicated region fallthrough
CT: control target
= control target key end

     0   :  { %s86_s0 = inlined_call_operand.vmem [shape: bf16[9,8,256], index: 0, kind: input, shape index: {}]   ;;  %s87_s1 = inlined_call_operand.vmem [shape: bf16[8,256], index: 1, kind: output, shape index: {}]  }
   0x1   :  { %v8_v0 = vld [vmem:[%s86_s0] sm:$0xff]  ;;  %v38_v1 = vld [vmem:[%s86_s0 + $0x8] sm:$0xff]  ;;  %v39_v2 = vld [vmem:[%s86_s0 + $0x10] sm:$0xff] }
   0x2   :  { %v11_v3 = vmax.bf16 %v38_v1, %v8_v0  ;;  %v40_v4 = vld [vmem:[%s86_s0 + $0x18] sm:$0xff]  ;;  %v41_v6 = vld [vmem:[%s86_s0 + $0x20] sm:$0xff]  ;;  %v42_v8 = vld [vmem:[%s86_s0 + $0x28] sm:$0xff] }
   0x3   :  { %v43_v10 = vld [vmem:[%s86_s0 + $0x30] sm:$0xff]  ;;  %v44_v12 = vld [vmem:[%s86_s0 + $0x38] sm:$0xff]  ;;  %v45_v14 = vld [vmem:[%s86_s0 + $0x40] sm:$0xff] }
   0x4   :  { %v14_v5 = vmax.bf16 %v39_v2, %v11_v3 }
   0x6   :  { %v17_v7 = vmax.bf16 %v40_v4, %v14_v5 }
   0x8   :  { %v20_v9 = vmax.bf16 %v41_v6, %v17_v7 }
   0xa   :  { %v23_v11 = vmax.bf16 %v42_v8, %v20_v9 }
   0xc   :  { %v26_v13 = vmax.bf16 %v43_v10, %v23_v11 }
   0xe   :  { %v29_v15 = vmax.bf16 %v44_v12, %v26_v13 }
  0x10   :  { %v32_v16 = vmax.bf16 %v45_v14, %v29_v15 }
  0x12   :  { %33 = vst [vmem:[%s87_s1] sm:$0xff] %v32_v16 }

// kernel: resnet34_forward.40
= control target key start
LH: loop header
LB: loop body
LE: loop exit
PB: predicated region body
PF: predicated region fallthrough
CT: control target
= control target key end

     0   :  { %s1086_s12 = smov 0   ;;  %s1088_s13 = smov 0   ;;  %s1256_s0 = inlined_call_operand.vmem [shape: bf16[32,640], index: 0, kind: input, shape index: {}]   ;;  %s1257_s1 = inlined_call_operand.vmem [shape: bf16[640,128], index: 1, kind: input, shape index: {}]   ;;  %s1258_s2 = inlined_call_operand.vmem [shape: f32[1,128], index: 2, kind: input, shape index: {}]   ;;  %s1259_s3 = inlined_call_operand.vmem [shape: bf16[32,128], index: 3, kind: output, shape index: {}]  }
   0x1   :  { %s1090_s14 = smov 0  }
   0x2 LB: > { %s25_s15 = sadd.s32 1, %s1058_s13  ;;  %p831_p0 = scmp.ge.s32.totalorder %s1062_s14, 1  ;;  %s1062_s14 = sphi %s1090_s14, %s13_s14   ;;  %s1058_s13 = sphi %s1088_s13, %s1261_s13   ;;  %s1054_s12 = sphi %s1086_s12, %s1260_s12  }
   0x3   : > { %p27_p1 = scmp.ge.s32.totalorder %s25_s15, 2  ;;  %p170_p2 = scmp.lt.s32.totalorder %s1062_s14, 3 }
   0x5   : > { %s1263_s15 = smov (%p27_p1, %s25_s15), 0  ;;  %p171_p3 = pnand %p831_p0, %p170_p2 }
   0x6   : > { %s832_s21 = sshll.u32 (!%p171_p3), %s1054_s12, 1 }
   0x7   : > { %174 = sbr.rel (%p171_p3) target bundleno = 281 (0x119), region = 32  ;;  %p206_p4 = scmp.lt.s32.totalorder (!%p171_p3), %s832_s21, 3 }
   0xc   : > { %v993_v0 = vld [vmem:[%s1257_s1 + $0x78] sm:$0xff]   ;;  %v997_v4 = vld [vmem:[%s1257_s1 + $0x70] sm:$0xff]   ;;  %v1001_v8 = vld [vmem:[%s1257_s1 + $0x68] sm:$0xff]   ;;  %s1265_s21 = smov (!%p206_p4, %s832_s21), 3  ;;  %v1064_v33 = vmov 0.0   ;;  %vm1065_vm0 = vmmov 0  }
   0xd   : > { %v994_v1 = vld [vmem:[%s1257_s1 + $0x38] sm:$0xff]   ;;  %893 = vmatprep.subr.bf16.mxu0 %v993_v0  ;;  %v998_v5 = vld [vmem:[%s1257_s1 + $0x30] sm:$0xff]   ;;  %v1002_v9 = vld [vmem:[%s1257_s1 + $0x28] sm:$0xff]   ;;  %s966_s20 = smul.u32 20, %s1265_s21 }
   0xe   : > { %v995_v2 = vld [vmem:[%s1257_s1 + $0xf8] sm:$0xff]   ;;  %894 = vmatpush3.bf16.msra.mxu0 %v994_v1  ;;  %v999_v6 = vld [vmem:[%s1257_s1 + $0xf0] sm:$0xff]   ;;  %v1003_v10 = vld [vmem:[%s1257_s1 + $0xe8] sm:$0xff]  }
   0xf   : > { %v996_v3 = vld [vmem:[%s1257_s1 + $0xb8] sm:$0xff]   ;;  %915 = vmatprep.subr.bf16.mxu1 %v995_v2  ;;  %895 = vmatprep.subr.bf16.mxu0 %v997_v4  ;;  %v1000_v7 = vld [vmem:[%s1257_s1 + $0xb0] sm:$0xff]   ;;  %v1004_v11 = vld [vmem:[%s1257_s1 + $0xa8] sm:$0xff]   ;;  %s1200_s4 = scalar_lea.vmem %s1256_s0, %s966_s20 }
  0x10   : > { %916 = vmatpush3.bf16.msra.mxu1 %v996_v3  ;;  %v1005_v12 = vld [vmem:[%s1257_s1 + $0x60] sm:$0xff]   ;;  %v1009_v16 = vld [vmem:[%s1257_s1 + $0x58] sm:$0xff]   ;;  %v1013_v20 = vld [vmem:[%s1257_s1 + $0x50] sm:$0xff]  }
  0x11   : > { %917 = vmatprep.subr.bf16.mxu1 %v999_v6  ;;  %v1006_v13 = vld [vmem:[%s1257_s1 + $0x20] sm:$0xff]   ;;  %v1010_v17 = vld [vmem:[%s1257_s1 + $0x18] sm:$0xff]   ;;  %v1014_v21 = vld [vmem:[%s1257_s1 + $0x10] sm:$0xff]  }
  0x12   : > { %896 = vmatpush3.bf16.msra.mxu0 %v998_v5  ;;  %v1007_v14 = vld [vmem:[%s1257_s1 + $0xe0] sm:$0xff]   ;;  %v1011_v18 = vld [vmem:[%s1257_s1 + $0xd8] sm:$0xff]   ;;  %v1015_v22 = vld [vmem:[%s1257_s1 + $0xd0] sm:$0xff]  }
  0x13   : > { %897 = vmatprep.subr.bf16.mxu0 %v1001_v8  ;;  %v1008_v15 = vld [vmem:[%s1257_s1 + $0xa0] sm:$0xff]   ;;  %v1012_v19 = vld [vmem:[%s1257_s1 + $0x98] sm:$0xff]   ;;  %v1016_v23 = vld [vmem:[%s1257_s1 + $0x90] sm:$0xff]  }
  0x14   : > { %918 = vmatpush3.bf16.msra.mxu1 %v1000_v7  ;;  %v1017_v24 = vld [vmem:[%s1257_s1 + $0x48] sm:$0xff]   ;;  %v1021_v28 = vld [vmem:[%s1257_s1 + $0x40] sm:$0xff]   ;;  %v1031_v37 = vld [vmem:[%s1257_s1 + $0x138] sm:$0xff]  }
  0x15   : > { %919 = vmatprep.subr.bf16.mxu1 %v1003_v10  ;;  %v1018_v25 = vld [vmem:[%s1257_s1 + $0x8] sm:$0xff]   ;;  %v1022_v29 = vld [vmem:[%s1257_s1] sm:$0xff]   ;;  %v1032_v38 = vld [vmem:[%s1257_s1 + $0x130] sm:$0xff]  }
  0x16   : > { %898 = vmatpush3.bf16.msra.mxu0 %v1002_v9  ;;  %v1019_v26 = vld [vmem:[%s1257_s1 + $0xc8] sm:$0xff]   ;;  %v1023_v30 = vld [vmem:[%s1257_s1 + $0xc0] sm:$0xff]   ;;  %v1035_v41 = vld [vmem:[%s1257_s1 + $0x118] sm:$0xff]  }
  0x17   : > { %899 = vmatprep.subr.bf16.mxu0 %v1005_v12  ;;  %v1020_v27 = vld [vmem:[%s1257_s1 + $0x88] sm:$0xff]   ;;  %v1024_v31 = vld [vmem:[%s1200_s4] ss:$20 sps:$4 sm:$0xff]   ;;  %v1026_v32 = vld [vmem:[%s1200_s4 + $0x4] ss:$20 sps:$4 sm:$0xff]  }
  0x18   : > { %920 = vmatpush3.bf16.msra.mxu1 %v1004_v11  ;;  %v1027_v34 = vld [vmem:[%s1257_s1 + $0x80] sm:$0xff]   ;;  %620 = vmatprep.mubr.bf16.mxu0 %v1026_v32  ;;  %v1028_v35 = vld [vmem:[%s1200_s4 + $0x8] ss:$20 sps:$4 sm:$0xff]   ;;  %v1036_v42 = vld [vmem:[%s1257_s1 + $0x110] sm:$0xff]  }
  0x19   : > { %921 = vmatprep.subr.bf16.mxu1 %v1007_v14  ;;  %v1030_v36 = vld [vmem:[%s1200_s4 + $0xc] ss:$20 sps:$4 sm:$0xff]   ;;  %v1039_v45 = vld [vmem:[%s1200_s4 + $0x10] ss:$20 sps:$4 sm:$0xff]   ;;  %s835_s4 = sshll.u32 %s1265_s21, 2 }
  0x1a   : > { %900 = vmatpush3.bf16.msra.mxu0 %v1006_v13  ;;  %661 = vmatprep.mubr.bf16.mxu1 %v1030_v36  ;;  %v1033_v39 = vld [vmem:[%s1257_s1 + $0x128] sm:$0xff]   ;;  %v1034_v40 = vld [vmem:[%s1257_s1 + $0x120] sm:$0xff]   ;;  %s226_s9 = scalar_lea.vmem %s1259_s3, %s835_s4 }
  0x1b   : > { %901 = vmatprep.subr.bf16.mxu0 %v1009_v16  ;;  %v1037_v43 = vld [vmem:[%s1257_s1 + $0x108] sm:$0xff]   ;;  %v1038_v44 = vld [vmem:[%s1257_s1 + $0x100] sm:$0xff]  }
  0x1c   : > { %922 = vmatpush3.bf16.msra.mxu1 %v1008_v15  ;;  %v836_v54 = vld [vmem:[%s1258_s2] ss:$0 sm:$0xff] }
  0x1d   : > { %923 = vmatprep.subr.bf16.mxu1 %v1011_v18 }
  0x1e   : > { %902 = vmatpush3.bf16.msra.mxu0 %v1010_v17 }
  0x1f   : > { %903 = vmatprep.subr.bf16.mxu0 %v1013_v20 }
  0x20   : > { %924 = vmatpush3.bf16.msra.mxu1 %v1012_v19 }
  0x21   : > { %925 = vmatprep.subr.bf16.mxu1 %v1015_v22 }
  0x22   : > { %904 = vmatpush3.bf16.msra.mxu0 %v1014_v21 }
  0x23   : > { %905 = vmatprep.subr.bf16.mxu0 %v1017_v24 }
  0x24   : > { %926 = vmatpush3.bf16.msra.mxu1 %v1016_v23 }
  0x25   : > { %927 = vmatprep.subr.bf16.mxu1 %v1019_v26 }
  0x26   : > { %906 = vmatpush3.bf16.msra.mxu0 %v1018_v25 }
  0x27   : > { %907 = vmatprep.subr.bf16.mxu0 %v1021_v28 }
  0x28   : > { %928 = vmatpush3.bf16.msra.mxu1 %v1020_v27 }
  0x29   : > { %929 = vmatprep.subr.bf16.mxu1 %v1023_v30 }
  0x2a   : > { %908 = vmatpush3.bf16.msra.mxu0 %v1022_v29 }
  0x2b   : > { %946 = vmatprep.subr.bf16.mxu0 %v1064_v33 }
  0x2c   : > { %930 = vmatpush3.bf16.msra.mxu1 %v1027_v34 }
  0x2d   : > { %621 = vmatmul.mubr.bf16.vlgmr.msra.gmra.mxu0 %v1024_v31 }
  0x2e   : > { %962 = vmatprep.mubr.msk.bf16.mxu0 %vm1065_vm0, %v1064_v33  ;;  %947 = vmatpush3.bf16.msra.mxu0 %v1031_v37 }
  0x2f   : > { %662 = vmatmul.mubr.bf16.vlgmr.msra.gmra.mxu1 %v1028_v35  ;;  %948 = vmatprep.subr.bf16.mxu0 %v1064_v33 }
  0x32   : > { %949 = vmatpush3.bf16.msra.mxu0 %v1032_v38 }
  0x33   : > { %950 = vmatprep.subr.bf16.mxu0 %v1064_v33 }
  0x36   : > { %951 = vmatpush3.bf16.msra.mxu0 %v1033_v39 }
  0x37   : > { %952 = vmatprep.subr.bf16.mxu0 %v1064_v33 }
  0x3a   : > { %953 = vmatpush3.bf16.msra.mxu0 %v1034_v40 }
  0x3b   : > { %954 = vmatprep.subr.bf16.mxu0 %v1064_v33 }
  0x3e   : > { %955 = vmatpush3.bf16.msra.mxu0 %v1035_v41 }
  0x3f   : > { %956 = vmatprep.subr.bf16.mxu0 %v1064_v33 }
  0x42   : > { %957 = vmatpush3.bf16.msra.mxu0 %v1036_v42 }
  0x43   : > { %958 = vmatprep.subr.bf16.mxu0 %v1064_v33 }
  0x46   : > { %959 = vmatpush3.bf16.msra.mxu0 %v1037_v43 }
  0x47   : > { %960 = vmatprep.subr.bf16.mxu0 %v1064_v33 }
  0x4a   : > { %961 = vmatpush3.bf16.msra.mxu0 %v1038_v44 }
  0x4d   : > { %963 = vmatmul.mubr.bf16.vlgmr.msra.gmra.mxu0 %v1039_v45 }
  0xed   : > { %v909_v46 = vpop.f32.mrf.mxu0 }
  0xef   : > { %v910_v47 = vpop.f32.mrf.mxu0  ;;  %v931_v48 = vpop.f32.mrf.mxu1 }
  0xf0   : > { %v911_v53 = vadd.f32 %v910_v47, %v909_v46 }
  0xf1   : > { %v912_v49 = vpop.f32.mrf.mxu0  ;;  %v932_v50 = vpop.f32.mrf.mxu1 }
  0xf2   : > { %v623_v57 = vadd.f32 %v911_v53, %v836_v54  ;;  %v933_v58 = vadd.f32 %v932_v50, %v931_v48 }
  0xf3   : > { %v913_v51 = vpop.f32.mrf.mxu0  ;;  %v934_v52 = vpop.f32.mrf.mxu1 }
  0xf4   : > { %v914_v55 = vadd.f32 %v913_v51, %v912_v49  ;;  %v664_v62 = vadd.f32 %v933_v58, %v623_v57 }
  0xf5   : > { %v935_v56 = vpop.f32.mrf.mxu1 }
  0xf6   : > { %v626_v59 = vadd.f32 %v914_v55, %v836_v54  ;;  %v936_v60 = vadd.f32 %v935_v56, %v934_v52 }
  0xf8   : > { %v667_v1 = vadd.f32 %v936_v60, %v626_v59 }
 0x10d   : > { %v704_v61 = vpop.f32.mrf.mxu0 }
 0x10e   : > { %v705_v0 = vadd.f32 %v704_v61, %v664_v62 }
 0x10f   : > { %v964_v63 = vpop.f32.mrf.mxu0 }
 0x110   : > { %v711_v5 = vmax.f32 %v705_v0, 0.0 }
 0x111   : > { %v707_v2 = vpop.f32.mrf.mxu0 }
 0x112   : > { %v708_v3 = vadd.f32 %v707_v2, %v667_v1 }
 0x113   : > { %v965_v4 = vpop.f32.mrf.mxu0 }
 0x114   : > { %v712_v6 = vmax.f32 %v708_v3, 0.0 }
 0x116   : > { %v891_v7 = vpack.c.bf16 %v712_v6, %v711_v5 }
 0x118   : > { %892 = vst [vmem:[%s226_s9] sm:$0xff] %v891_v7  }
 0x119 PF: > { %s13_s14 = sadd.s32 1, %s1062_s14   ;;  %s1260_s12 = smov %s1058_s13 }
 0x11a   : > { %p10_p5 = scmp.ge.s32.totalorder %s13_s14, 4   ;;  %s1261_s13 = smov %s1263_s15 }
 0x11c   :  { %12 = sbr.rel (!%p10_p5) target bundleno = 2 (0x2), region = 68 }

// kernel: resnet34_forward.47
= control target key start
LH: loop header
LB: loop body
LE: loop exit
PB: predicated region body
PF: predicated region fallthrough
CT: control target
= control target key end

     0   :  { %v181_v0 = vmov 0.0   ;;  %vm182_vm0 = vmmov 0   ;;  %s236_s1 = inlined_call_operand.vmem [shape: bf16[128,128], index: 1, kind: input, shape index: {}]   ;;  %s237_s0 = inlined_call_operand.vmem [shape: bf16[8,128], index: 0, kind: input, shape index: {}]   ;;  %s238_s2 = inlined_call_operand.vmem [shape: f32[1,128], index: 2, kind: input, shape index: {}]   ;;  %s239_s3 = inlined_call_operand.vmem [shape: bf16[8,128], index: 3, kind: output, shape index: {}]  }
   0x1   :  { %151 = vmatprep.subr.bf16.mxu0 %v181_v0  ;;  %v173_v1 = vld [vmem:[%s236_s1 + $0x38] sm:$0xff]   ;;  %167 = vmatprep.mubr.msk.bf16.mxu0 %vm182_vm0, %v181_v0  ;;  %v174_v2 = vld [vmem:[%s236_s1 + $0x30] sm:$0xff]   ;;  %v175_v3 = vld [vmem:[%s236_s1 + $0x28] sm:$0xff]  }
   0x2   :  { %152 = vmatpush3.bf16.msra.mxu0 %v173_v1  ;;  %v176_v4 = vld [vmem:[%s236_s1 + $0x20] sm:$0xff]   ;;  %v177_v5 = vld [vmem:[%s236_s1 + $0x18] sm:$0xff]   ;;  %v178_v6 = vld [vmem:[%s236_s1 + $0x10] sm:$0xff]  }
   0x3   :  { %153 = vmatprep.subr.bf16.mxu0 %v181_v0  ;;  %v179_v7 = vld [vmem:[%s236_s1 + $0x8] sm:$0xff]   ;;  %v180_v8 = vld [vmem:[%s236_s1] sm:$0xff]  }
   0x4   :  { %v15_v9 = vld [vmem:[%s237_s0] sm:$0xf] }
   0x5   :  { %v133_v10 = vld [vmem:[%s238_s2] ss:$0 sm:$0xff] }
   0x6   :  { %154 = vmatpush3.bf16.msra.mxu0 %v174_v2 }
   0x7   :  { %155 = vmatprep.subr.bf16.mxu0 %v181_v0 }
   0xa   :  { %156 = vmatpush3.bf16.msra.mxu0 %v175_v3 }
   0xb   :  { %157 = vmatprep.subr.bf16.mxu0 %v181_v0 }
   0xe   :  { %158 = vmatpush3.bf16.msra.mxu0 %v176_v4 }
   0xf   :  { %159 = vmatprep.subr.bf16.mxu0 %v181_v0 }
  0x12   :  { %160 = vmatpush3.bf16.msra.mxu0 %v177_v5 }
  0x13   :  { %161 = vmatprep.subr.bf16.mxu0 %v181_v0 }
  0x16   :  { %162 = vmatpush3.bf16.msra.mxu0 %v178_v6 }
  0x17   :  { %163 = vmatprep.subr.bf16.mxu0 %v181_v0 }
  0x1a   :  { %164 = vmatpush3.bf16.msra.mxu0 %v179_v7 }
  0x1b   :  { %165 = vmatprep.subr.bf16.mxu0 %v181_v0 }
  0x1e   :  { %166 = vmatpush3.bf16.msra.mxu0 %v180_v8 }
  0x21   :  { %168 = vmatmul.mubr.bf16.vlgmr.msra.gmra.mxu0 %v15_v9 }
  0xe1   :  { %v121_v11 = vpop.f32.mrf.mxu0 }
  0xe2   :  { %v122_v12 = vadd.f32 %v133_v10, %v121_v11 }
  0xe3   :  { %v169_v13 = vpop.f32.mrf.mxu0 }
  0xe4   :  { %v127_v14 = vpack.c.bf16 %v122_v12, %v122_v12 }
  0xe5   :  { %v124_v15 = vpop.f32.mrf.mxu0 }
  0xe6   :  { %128 = vst [vmem:[%s239_s3] sm:$0xf] %v127_v14 }
  0xe7   :  { %v170_v16 = vpop.f32.mrf.mxu0 }

// kernel: resnet34_forward.41
= control target key start
LH: loop header
LB: loop body
LE: loop exit
PB: predicated region body
PF: predicated region fallthrough
CT: control target
= control target key end

     0   :  { %s1178_s15 = smov 0   ;;  %s1180_s16 = smov 0   ;;  %s1351_s0 = inlined_call_operand.vmem [shape: bf16[32,640], index: 0, kind: input, shape index: {}]   ;;  %s1352_s1 = inlined_call_operand.vmem [shape: bf16[640,128], index: 1, kind: input, shape index: {}]   ;;  %s1353_s2 = inlined_call_operand.vmem [shape: f32[1,128], index: 2, kind: input, shape index: {}]   ;;  %s1354_s3 = inlined_call_operand.vmem [shape: bf16[32,128], index: 3, kind: input, shape index: {}]   ;;  %s1355_s4 = inlined_call_operand.vmem [shape: bf16[32,128], index: 4, kind: output, shape index: {}]  }
   0x1   :  { %s1182_s17 = smov 0  }
   0x2 LB: > { %s26_s18 = sadd.s32 1, %s1145_s16  ;;  %p912_p0 = scmp.ge.s32.totalorder %s1149_s17, 1  ;;  %s1149_s17 = sphi %s1182_s17, %s14_s17   ;;  %s1145_s16 = sphi %s1180_s16, %s1357_s16   ;;  %s1141_s15 = sphi %s1178_s15, %s1356_s15  }
   0x3   : > { %p28_p1 = scmp.ge.s32.totalorder %s26_s18, 2  ;;  %p211_p2 = scmp.lt.s32.totalorder %s1149_s17, 3 }
   0x5   : > { %s1359_s18 = smov (%p28_p1, %s26_s18), 0  ;;  %p212_p3 = pnand %p912_p0, %p211_p2 }
   0x6   : > { %s913_s25 = sshll.u32 (!%p212_p3), %s1141_s15, 1 }
   0x7   : > { %215 = sbr.rel (%p212_p3) target bundleno = 283 (0x11b), region = 36  ;;  %p257_p4 = scmp.lt.s32.totalorder (!%p212_p3), %s913_s25, 3 }
   0xc   : > { %v1080_v0 = vld [vmem:[%s1352_s1 + $0x78] sm:$0xff]   ;;  %v1084_v4 = vld [vmem:[%s1352_s1 + $0x70] sm:$0xff]   ;;  %v1088_v8 = vld [vmem:[%s1352_s1 + $0x68] sm:$0xff]   ;;  %s1361_s25 = smov (!%p257_p4, %s913_s25), 3  ;;  %v1151_v33 = vmov 0.0   ;;  %vm1152_vm0 = vmmov 0  }
   0xd   : > { %v1081_v1 = vld [vmem:[%s1352_s1 + $0x38] sm:$0xff]   ;;  %980 = vmatprep.subr.bf16.mxu0 %v1080_v0  ;;  %v1085_v5 = vld [vmem:[%s1352_s1 + $0x30] sm:$0xff]   ;;  %v1089_v9 = vld [vmem:[%s1352_s1 + $0x28] sm:$0xff]   ;;  %s1053_s26 = smul.u32 20, %s1361_s25  ;;  %s916_s14 = sshll.u32 %s1361_s25, 2 }
   0xe   : > { %v1082_v2 = vld [vmem:[%s1352_s1 + $0xf8] sm:$0xff]   ;;  %981 = vmatpush3.bf16.msra.mxu0 %v1081_v1  ;;  %v1086_v6 = vld [vmem:[%s1352_s1 + $0xf0] sm:$0xff]   ;;  %v1090_v10 = vld [vmem:[%s1352_s1 + $0xe8] sm:$0xff]   ;;  %s277_s20 = scalar_lea.vmem %s1354_s3, %s916_s14  ;;  %s286_s22 = scalar_lea.vmem %s1355_s4, %s916_s14 }
   0xf   : > { %v1083_v3 = vld [vmem:[%s1352_s1 + $0xb8] sm:$0xff]   ;;  %1002 = vmatprep.subr.bf16.mxu1 %v1082_v2  ;;  %982 = vmatprep.subr.bf16.mxu0 %v1084_v4  ;;  %v1087_v7 = vld [vmem:[%s1352_s1 + $0xb0] sm:$0xff]   ;;  %v1091_v11 = vld [vmem:[%s1352_s1 + $0xa8] sm:$0xff]   ;;  %s1292_s10 = scalar_lea.vmem %s1351_s0, %s1053_s26 }
  0x10   : > { %1003 = vmatpush3.bf16.msra.mxu1 %v1083_v3  ;;  %v1092_v12 = vld [vmem:[%s1352_s1 + $0x60] sm:$0xff]   ;;  %v1096_v16 = vld [vmem:[%s1352_s1 + $0x58] sm:$0xff]   ;;  %v1100_v20 = vld [vmem:[%s1352_s1 + $0x50] sm:$0xff]  }
  0x11   : > { %1004 = vmatprep.subr.bf16.mxu1 %v1086_v6  ;;  %v1093_v13 = vld [vmem:[%s1352_s1 + $0x20] sm:$0xff]   ;;  %v1097_v17 = vld [vmem:[%s1352_s1 + $0x18] sm:$0xff]   ;;  %v1101_v21 = vld [vmem:[%s1352_s1 + $0x10] sm:$0xff]  }
  0x12   : > { %983 = vmatpush3.bf16.msra.mxu0 %v1085_v5  ;;  %v1094_v14 = vld [vmem:[%s1352_s1 + $0xe0] sm:$0xff]   ;;  %v1098_v18 = vld [vmem:[%s1352_s1 + $0xd8] sm:$0xff]   ;;  %v1102_v22 = vld [vmem:[%s1352_s1 + $0xd0] sm:$0xff]  }
  0x13   : > { %984 = vmatprep.subr.bf16.mxu0 %v1088_v8  ;;  %v1095_v15 = vld [vmem:[%s1352_s1 + $0xa0] sm:$0xff]   ;;  %v1099_v19 = vld [vmem:[%s1352_s1 + $0x98] sm:$0xff]   ;;  %v1103_v23 = vld [vmem:[%s1352_s1 + $0x90] sm:$0xff]  }
  0x14   : > { %1005 = vmatpush3.bf16.msra.mxu1 %v1087_v7  ;;  %v1104_v24 = vld [vmem:[%s1352_s1 + $0x48] sm:$0xff]   ;;  %v1108_v28 = vld [vmem:[%s1352_s1 + $0x40] sm:$0xff]   ;;  %v1118_v37 = vld [vmem:[%s1352_s1 + $0x138] sm:$0xff]  }
  0x15   : > { %1006 = vmatprep.subr.bf16.mxu1 %v1090_v10  ;;  %v1105_v25 = vld [vmem:[%s1352_s1 + $0x8] sm:$0xff]   ;;  %v1109_v29 = vld [vmem:[%s1352_s1] sm:$0xff]   ;;  %v1119_v38 = vld [vmem:[%s1352_s1 + $0x130] sm:$0xff]  }
  0x16   : > { %985 = vmatpush3.bf16.msra.mxu0 %v1089_v9  ;;  %v1106_v26 = vld [vmem:[%s1352_s1 + $0xc8] sm:$0xff]   ;;  %v1110_v30 = vld [vmem:[%s1352_s1 + $0xc0] sm:$0xff]   ;;  %v1122_v41 = vld [vmem:[%s1352_s1 + $0x118] sm:$0xff]  }
  0x17   : > { %986 = vmatprep.subr.bf16.mxu0 %v1092_v12  ;;  %v1107_v27 = vld [vmem:[%s1352_s1 + $0x88] sm:$0xff]   ;;  %v1111_v31 = vld [vmem:[%s1292_s10] ss:$20 sps:$4 sm:$0xff]   ;;  %v1113_v32 = vld [vmem:[%s1292_s10 + $0x4] ss:$20 sps:$4 sm:$0xff]  }
  0x18   : > { %1007 = vmatpush3.bf16.msra.mxu1 %v1091_v11  ;;  %v1114_v34 = vld [vmem:[%s1352_s1 + $0x80] sm:$0xff]   ;;  %680 = vmatprep.mubr.bf16.mxu0 %v1113_v32  ;;  %v1115_v35 = vld [vmem:[%s1292_s10 + $0x8] ss:$20 sps:$4 sm:$0xff]   ;;  %v1123_v42 = vld [vmem:[%s1352_s1 + $0x110] sm:$0xff]  }
  0x19   : > { %1008 = vmatprep.subr.bf16.mxu1 %v1094_v14  ;;  %v1117_v36 = vld [vmem:[%s1292_s10 + $0xc] ss:$20 sps:$4 sm:$0xff]   ;;  %v1126_v45 = vld [vmem:[%s1292_s10 + $0x10] ss:$20 sps:$4 sm:$0xff]  }
  0x1a   : > { %987 = vmatpush3.bf16.msra.mxu0 %v1093_v13  ;;  %721 = vmatprep.mubr.bf16.mxu1 %v1117_v36  ;;  %v1120_v39 = vld [vmem:[%s1352_s1 + $0x128] sm:$0xff]   ;;  %v1121_v40 = vld [vmem:[%s1352_s1 + $0x120] sm:$0xff]  }
  0x1b   : > { %988 = vmatprep.subr.bf16.mxu0 %v1096_v16  ;;  %v1124_v43 = vld [vmem:[%s1352_s1 + $0x108] sm:$0xff]   ;;  %v1125_v44 = vld [vmem:[%s1352_s1 + $0x100] sm:$0xff]  }
  0x1c   : > { %1009 = vmatpush3.bf16.msra.mxu1 %v1095_v15  ;;  %v919_v52 = vld [vmem:[%s1353_s2] ss:$0 sm:$0xff] }
  0x1d   : > { %1010 = vmatprep.subr.bf16.mxu1 %v1098_v18  ;;  %v972_v59 = vld [vmem:[%s277_s20] sm:$0xff]  }
  0x1e   : > { %989 = vmatpush3.bf16.msra.mxu0 %v1097_v17  ;;  %v973_v1 = vunpack.c.l.bf16 %v972_v59  ;;  %v974_v4 = vunpack.c.h.bf16 %v972_v59 }
  0x1f   : > { %990 = vmatprep.subr.bf16.mxu0 %v1100_v20 }
  0x20   : > { %1011 = vmatpush3.bf16.msra.mxu1 %v1099_v19 }
  0x21   : > { %1012 = vmatprep.subr.bf16.mxu1 %v1102_v22 }
  0x22   : > { %991 = vmatpush3.bf16.msra.mxu0 %v1101_v21 }
  0x23   : > { %992 = vmatprep.subr.bf16.mxu0 %v1104_v24 }
  0x24   : > { %1013 = vmatpush3.bf16.msra.mxu1 %v1103_v23 }
  0x25   : > { %1014 = vmatprep.subr.bf16.mxu1 %v1106_v26 }
  0x26   : > { %993 = vmatpush3.bf16.msra.mxu0 %v1105_v25 }
  0x27   : > { %994 = vmatprep.subr.bf16.mxu0 %v1108_v28 }
  0x28   : > { %1015 = vmatpush3.bf16.msra.mxu1 %v1107_v27 }
  0x29   : > { %1016 = vmatprep.subr.bf16.mxu1 %v1110_v30 }
  0x2a   : > { %995 = vmatpush3.bf16.msra.mxu0 %v1109_v29 }
  0x2b   : > { %1033 = vmatprep.subr.bf16.mxu0 %v1151_v33 }
  0x2c   : > { %1017 = vmatpush3.bf16.msra.mxu1 %v1114_v34 }
  0x2d   : > { %681 = vmatmul.mubr.bf16.vlgmr.msra.gmra.mxu0 %v1111_v31 }
  0x2e   : > { %1049 = vmatprep.mubr.msk.bf16.mxu0 %vm1152_vm0, %v1151_v33  ;;  %1034 = vmatpush3.bf16.msra.mxu0 %v1118_v37 }
  0x2f   : > { %722 = vmatmul.mubr.bf16.vlgmr.msra.gmra.mxu1 %v1115_v35  ;;  %1035 = vmatprep.subr.bf16.mxu0 %v1151_v33 }
  0x32   : > { %1036 = vmatpush3.bf16.msra.mxu0 %v1119_v38 }
  0x33   : > { %1037 = vmatprep.subr.bf16.mxu0 %v1151_v33 }
  0x36   : > { %1038 = vmatpush3.bf16.msra.mxu0 %v1120_v39 }
  0x37   : > { %1039 = vmatprep.subr.bf16.mxu0 %v1151_v33 }
  0x3a   : > { %1040 = vmatpush3.bf16.msra.mxu0 %v1121_v40 }
  0x3b   : > { %1041 = vmatprep.subr.bf16.mxu0 %v1151_v33 }
  0x3e   : > { %1042 = vmatpush3.bf16.msra.mxu0 %v1122_v41 }
  0x3f   : > { %1043 = vmatprep.subr.bf16.mxu0 %v1151_v33 }
  0x42   : > { %1044 = vmatpush3.bf16.msra.mxu0 %v1123_v42 }
  0x43   : > { %1045 = vmatprep.subr.bf16.mxu0 %v1151_v33 }
  0x46   : > { %1046 = vmatpush3.bf16.msra.mxu0 %v1124_v43 }
  0x47   : > { %1047 = vmatprep.subr.bf16.mxu0 %v1151_v33 }
  0x4a   : > { %1048 = vmatpush3.bf16.msra.mxu0 %v1125_v44 }
  0x4d   : > { %1050 = vmatmul.mubr.bf16.vlgmr.msra.gmra.mxu0 %v1126_v45 }
  0xed   : > { %v996_v46 = vpop.f32.mrf.mxu0 }
  0xef   : > { %v997_v47 = vpop.f32.mrf.mxu0  ;;  %v1018_v48 = vpop.f32.mrf.mxu1 }
  0xf0   : > { %v998_v51 = vadd.f32 %v997_v47, %v996_v46 }
  0xf1   : > { %v999_v49 = vpop.f32.mrf.mxu0  ;;  %v1019_v50 = vpop.f32.mrf.mxu1 }
  0xf2   : > { %v683_v55 = vadd.f32 %v998_v51, %v919_v52  ;;  %v1020_v56 = vadd.f32 %v1019_v50, %v1018_v48 }
  0xf3   : > { %v1000_v53 = vpop.f32.mrf.mxu0  ;;  %v1021_v54 = vpop.f32.mrf.mxu1 }
  0xf4   : > { %v1001_v57 = vadd.f32 %v1000_v53, %v999_v49  ;;  %v724_v62 = vadd.f32 %v1020_v56, %v683_v55 }
  0xf5   : > { %v1022_v58 = vpop.f32.mrf.mxu1 }
  0xf6   : > { %v686_v60 = vadd.f32 %v1001_v57, %v919_v52  ;;  %v1023_v61 = vadd.f32 %v1022_v58, %v1021_v54 }
  0xf8   : > { %v727_v3 = vadd.f32 %v1023_v61, %v686_v60 }
 0x10d   : > { %v764_v63 = vpop.f32.mrf.mxu0 }
 0x10e   : > { %v765_v0 = vadd.f32 %v764_v63, %v724_v62 }
 0x10f   : > { %v1051_v2 = vpop.f32.mrf.mxu0 }
 0x110   : > { %v775_v6 = vadd.f32 %v973_v1, %v765_v0 }
 0x111   : > { %v767_v5 = vpop.f32.mrf.mxu0 }
 0x112   : > { %v768_v7 = vadd.f32 %v767_v5, %v727_v3  ;;  %v777_v10 = vmax.f32 %v775_v6, 0.0 }
 0x113   : > { %v1052_v8 = vpop.f32.mrf.mxu0 }
 0x114   : > { %v776_v9 = vadd.f32 %v974_v4, %v768_v7 }
 0x116   : > { %v778_v11 = vmax.f32 %v776_v9, 0.0 }
 0x118   : > { %v978_v12 = vpack.c.bf16 %v778_v11, %v777_v10 }
 0x11a   : > { %979 = vst [vmem:[%s286_s22] sm:$0xff] %v978_v12  }
 0x11b PF: > { %s14_s17 = sadd.s32 1, %s1149_s17   ;;  %s1356_s15 = smov %s1145_s16 }
 0x11c   : > { %p11_p5 = scmp.ge.s32.totalorder %s14_s17, 4   ;;  %s1357_s16 = smov %s1359_s18 }
 0x11e   :  { %13 = sbr.rel (!%p11_p5) target bundleno = 2 (0x2), region = 75 }

// kernel: resnet34_forward.46
= control target key start
LH: loop header
LB: loop body
LE: loop exit
PB: predicated region body
PF: predicated region fallthrough
CT: control target
= control target key end

     0   :  { %v656_v35 = vmov 0.0   ;;  %vm657_vm0 = vmmov 0   ;;  %s813_s1 = inlined_call_operand.vmem [shape: bf16[640,128], index: 1, kind: input, shape index: {}]   ;;  %s814_s0 = inlined_call_operand.vmem [shape: bf16[8,640], index: 0, kind: input, shape index: {}]   ;;  %s815_s2 = inlined_call_operand.vmem [shape: f32[1,128], index: 2, kind: input, shape index: {}]   ;;  %s816_s3 = inlined_call_operand.vmem [shape: bf16[8,128], index: 3, kind: output, shape index: {}]  }
   0x1   :  { %v611_v0 = vld [vmem:[%s813_s1 + $0x78] sm:$0xff]   ;;  %v615_v4 = vld [vmem:[%s813_s1 + $0x70] sm:$0xff]   ;;  %v619_v8 = vld [vmem:[%s813_s1 + $0x68] sm:$0xff]  }
   0x2   :  { %v612_v1 = vld [vmem:[%s813_s1 + $0x38] sm:$0xff]   ;;  %536 = vmatprep.subr.bf16.mxu0 %v611_v0  ;;  %v616_v5 = vld [vmem:[%s813_s1 + $0x30] sm:$0xff]   ;;  %v620_v9 = vld [vmem:[%s813_s1 + $0x28] sm:$0xff]  }
   0x3   :  { %v613_v2 = vld [vmem:[%s813_s1 + $0xf8] sm:$0xff]   ;;  %537 = vmatpush3.bf16.msra.mxu0 %v612_v1  ;;  %v617_v6 = vld [vmem:[%s813_s1 + $0xf0] sm:$0xff]   ;;  %v621_v10 = vld [vmem:[%s813_s1 + $0xe8] sm:$0xff]  }
   0x4   :  { %v614_v3 = vld [vmem:[%s813_s1 + $0xb8] sm:$0xff]   ;;  %558 = vmatprep.subr.bf16.mxu1 %v613_v2  ;;  %538 = vmatprep.subr.bf16.mxu0 %v615_v4  ;;  %v618_v7 = vld [vmem:[%s813_s1 + $0xb0] sm:$0xff]   ;;  %v622_v11 = vld [vmem:[%s813_s1 + $0xa8] sm:$0xff]  }
   0x5   :  { %559 = vmatpush3.bf16.msra.mxu1 %v614_v3  ;;  %v623_v12 = vld [vmem:[%s813_s1 + $0x60] sm:$0xff]   ;;  %v627_v16 = vld [vmem:[%s813_s1 + $0x58] sm:$0xff]   ;;  %v631_v20 = vld [vmem:[%s813_s1 + $0x50] sm:$0xff]  }
   0x6   :  { %560 = vmatprep.subr.bf16.mxu1 %v617_v6  ;;  %v624_v13 = vld [vmem:[%s813_s1 + $0x20] sm:$0xff]   ;;  %v628_v17 = vld [vmem:[%s813_s1 + $0x18] sm:$0xff]   ;;  %v632_v21 = vld [vmem:[%s813_s1 + $0x10] sm:$0xff]  }
   0x7   :  { %539 = vmatpush3.bf16.msra.mxu0 %v616_v5  ;;  %v625_v14 = vld [vmem:[%s813_s1 + $0xe0] sm:$0xff]   ;;  %v629_v18 = vld [vmem:[%s813_s1 + $0xd8] sm:$0xff]   ;;  %v633_v22 = vld [vmem:[%s813_s1 + $0xd0] sm:$0xff]  }
   0x8   :  { %540 = vmatprep.subr.bf16.mxu0 %v619_v8  ;;  %v626_v15 = vld [vmem:[%s813_s1 + $0xa0] sm:$0xff]   ;;  %v630_v19 = vld [vmem:[%s813_s1 + $0x98] sm:$0xff]   ;;  %v634_v23 = vld [vmem:[%s813_s1 + $0x90] sm:$0xff]  }
   0x9   :  { %561 = vmatpush3.bf16.msra.mxu1 %v618_v7  ;;  %v635_v24 = vld [vmem:[%s813_s1 + $0x48] sm:$0xff]   ;;  %v639_v28 = vld [vmem:[%s813_s1 + $0x40] sm:$0xff]   ;;  %v648_v39 = vld [vmem:[%s813_s1 + $0x138] sm:$0xff]  }
   0xa   :  { %562 = vmatprep.subr.bf16.mxu1 %v621_v10  ;;  %v636_v25 = vld [vmem:[%s813_s1 + $0x8] sm:$0xff]   ;;  %v640_v29 = vld [vmem:[%s813_s1] sm:$0xff]   ;;  %v649_v40 = vld [vmem:[%s813_s1 + $0x130] sm:$0xff]  }
   0xb   :  { %541 = vmatpush3.bf16.msra.mxu0 %v620_v9  ;;  %v637_v26 = vld [vmem:[%s813_s1 + $0xc8] sm:$0xff]   ;;  %v641_v30 = vld [vmem:[%s813_s1 + $0xc0] sm:$0xff]   ;;  %v652_v43 = vld [vmem:[%s813_s1 + $0x118] sm:$0xff]  }
   0xc   :  { %542 = vmatprep.subr.bf16.mxu0 %v623_v12  ;;  %v638_v27 = vld [vmem:[%s813_s1 + $0x88] sm:$0xff]   ;;  %v15_v31 = vld [vmem:[%s814_s0] sm:$0xff]  ;;  %v653_v44 = vld [vmem:[%s813_s1 + $0x110] sm:$0xff]  }
   0xd   :  { %563 = vmatpush3.bf16.msra.mxu1 %v622_v11  ;;  %v491_v32 = vcombine.low %v15_v31, %v15_v31  ;;  %v492_v33 = vcombine.high %v15_v31, %v15_v31  ;;  %v645_v34 = vld [vmem:[%s813_s1 + $0x80] sm:$0xff]   ;;  %v16_v36 = vld [vmem:[%s814_s0 + $0x8] sm:$0xff]  ;;  %v644_v47 = vld [vmem:[%s814_s0 + $0x10] ss:$0 sps:$4 sm:$0xff]  }
   0xe   :  { %564 = vmatprep.subr.bf16.mxu1 %v625_v14  ;;  %v493_v37 = vcombine.low %v16_v36, %v16_v36  ;;  %v494_v38 = vcombine.high %v16_v36, %v16_v36  ;;  %v650_v41 = vld [vmem:[%s813_s1 + $0x128] sm:$0xff]   ;;  %v651_v42 = vld [vmem:[%s813_s1 + $0x120] sm:$0xff]  }
   0xf   :  { %543 = vmatpush3.bf16.msra.mxu0 %v624_v13  ;;  %395 = vmatprep.mubr.bf16.mxu0 %v492_v33  ;;  %v654_v45 = vld [vmem:[%s813_s1 + $0x108] sm:$0xff]   ;;  %v655_v46 = vld [vmem:[%s813_s1 + $0x100] sm:$0xff]  }
  0x10   :  { %544 = vmatprep.subr.bf16.mxu0 %v627_v16  ;;  %435 = vmatprep.mubr.bf16.mxu1 %v494_v38  ;;  %v490_v57 = vld [vmem:[%s815_s2] ss:$0 sm:$0xff] }
  0x11   :  { %565 = vmatpush3.bf16.msra.mxu1 %v626_v15 }
  0x12   :  { %566 = vmatprep.subr.bf16.mxu1 %v629_v18 }
  0x13   :  { %545 = vmatpush3.bf16.msra.mxu0 %v628_v17 }
  0x14   :  { %546 = vmatprep.subr.bf16.mxu0 %v631_v20 }
  0x15   :  { %567 = vmatpush3.bf16.msra.mxu1 %v630_v19 }
  0x16   :  { %568 = vmatprep.subr.bf16.mxu1 %v633_v22 }
  0x17   :  { %547 = vmatpush3.bf16.msra.mxu0 %v632_v21 }
  0x18   :  { %548 = vmatprep.subr.bf16.mxu0 %v635_v24 }
  0x19   :  { %569 = vmatpush3.bf16.msra.mxu1 %v634_v23 }
  0x1a   :  { %570 = vmatprep.subr.bf16.mxu1 %v637_v26 }
  0x1b   :  { %549 = vmatpush3.bf16.msra.mxu0 %v636_v25 }
  0x1c   :  { %550 = vmatprep.subr.bf16.mxu0 %v639_v28 }
  0x1d   :  { %571 = vmatpush3.bf16.msra.mxu1 %v638_v27 }
  0x1e   :  { %572 = vmatprep.subr.bf16.mxu1 %v641_v30 }
  0x1f   :  { %551 = vmatpush3.bf16.msra.mxu0 %v640_v29 }
  0x20   :  { %589 = vmatprep.subr.bf16.mxu0 %v656_v35 }
  0x21   :  { %573 = vmatpush3.bf16.msra.mxu1 %v645_v34 }
  0x22   :  { %396 = vmatmul.mubr.bf16.vlgmr.msra.gmra.mxu0 %v491_v32 }
  0x23   :  { %590 = vmatpush3.bf16.msra.mxu0 %v648_v39  ;;  %605 = vmatprep.mubr.msk.bf16.mxu0 %vm657_vm0, %v656_v35 }
  0x24   :  { %436 = vmatmul.mubr.bf16.vlgmr.msra.gmra.mxu1 %v493_v37  ;;  %591 = vmatprep.subr.bf16.mxu0 %v656_v35 }
  0x27   :  { %592 = vmatpush3.bf16.msra.mxu0 %v649_v40 }
  0x28   :  { %593 = vmatprep.subr.bf16.mxu0 %v656_v35 }
  0x2b   :  { %594 = vmatpush3.bf16.msra.mxu0 %v650_v41 }
  0x2c   :  { %595 = vmatprep.subr.bf16.mxu0 %v656_v35 }
  0x2f   :  { %596 = vmatpush3.bf16.msra.mxu0 %v651_v42 }
  0x30   :  { %597 = vmatprep.subr.bf16.mxu0 %v656_v35 }
  0x33   :  { %598 = vmatpush3.bf16.msra.mxu0 %v652_v43 }
  0x34   :  { %599 = vmatprep.subr.bf16.mxu0 %v656_v35 }
  0x37   :  { %600 = vmatpush3.bf16.msra.mxu0 %v653_v44 }
  0x38   :  { %601 = vmatprep.subr.bf16.mxu0 %v656_v35 }
  0x3b   :  { %602 = vmatpush3.bf16.msra.mxu0 %v654_v45 }
  0x3c   :  { %603 = vmatprep.subr.bf16.mxu0 %v656_v35 }
  0x3f   :  { %604 = vmatpush3.bf16.msra.mxu0 %v655_v46 }
  0x42   :  { %606 = vmatmul.mubr.bf16.vlgmr.msra.gmra.mxu0 %v644_v47 }
  0xe2   :  { %v552_v48 = vpop.f32.mrf.mxu0 }
  0xe4   :  { %v553_v49 = vpop.f32.mrf.mxu0  ;;  %v574_v50 = vpop.f32.mrf.mxu1 }
  0xe5   :  { %v554_v56 = vadd.f32 %v553_v49, %v552_v48 }
  0xe6   :  { %v555_v51 = vpop.f32.mrf.mxu0  ;;  %v575_v52 = vpop.f32.mrf.mxu1 }
  0xe7   :  { %v398_v58 = vadd.f32 %v554_v56, %v490_v57  ;;  %v576_v59 = vadd.f32 %v575_v52, %v574_v50 }
  0xe8   :  { %v556_v53 = vpop.f32.mrf.mxu0  ;;  %v577_v54 = vpop.f32.mrf.mxu1 }
  0xe9   :  { %v438_v60 = vadd.f32 %v576_v59, %v398_v58 }
  0xea   :  { %v578_v55 = vpop.f32.mrf.mxu1 }
 0x102   :  { %v477_v61 = vpop.f32.mrf.mxu0 }
 0x103   :  { %v478_v62 = vadd.f32 %v477_v61, %v438_v60 }
 0x104   :  { %v607_v63 = vpop.f32.mrf.mxu0 }
 0x105   :  { %v483_v0 = vmax.f32 %v478_v62, 0.0 }
 0x106   :  { %v480_v1 = vpop.f32.mrf.mxu0 }
 0x107   :  { %v484_v2 = vpack.c.bf16 %v483_v0, %v483_v0 }
 0x108   :  { %v608_v3 = vpop.f32.mrf.mxu0 }
 0x109   :  { %485 = vst [vmem:[%s816_s3] sm:$0xf] %v484_v2 }

// kernel: resnet34_forward.56
= control target key start
LH: loop header
LB: loop body
LE: loop exit
PB: predicated region body
PF: predicated region fallthrough
CT: control target
= control target key end

     0   :  { %s710_s12 = smov 0   ;;  %s712_s13 = smov 0   ;;  %s800_s0 = inlined_call_operand.vmem [shape: bf16[8,128], index: 0, kind: input, shape index: {}]   ;;  %s801_s1 = inlined_call_operand.vmem [shape: bf16[128,256], index: 1, kind: input, shape index: {}]   ;;  %s802_s2 = inlined_call_operand.vmem [shape: f32[1,256], index: 2, kind: input, shape index: {}]   ;;  %s803_s3 = inlined_call_operand.vmem [shape: bf16[8,256], index: 3, kind: output, shape index: {}]  }
   0x1   :  { %s714_s14 = smov 0   ;;  %s716_s15 = smov 0  }
   0x2   :  { %s718_s16 = smov 0  }
   0x3 LB: > { %s22_s17 = sadd.s32 1, %s682_s15  ;;  %p65_p1 = scmp.ne.s32.totalorder %s674_s13, %s670_s12  ;;  %s686_s16 = sphi %s718_s16, %s13_s16   ;;  %s682_s15 = sphi %s716_s15, %s807_s15   ;;  %s678_s14 = sphi %s714_s14, %s806_s14   ;;  %s674_s13 = sphi %s712_s13, %s805_s13   ;;  %s670_s12 = sphi %s710_s12, %s804_s12  }
   0x4   : > { %p23_p0 = scmp.ge.s32.totalorder %s22_s17, 2  ;;  %p66_p2 = scmp.eq.s32.totalorder %s686_s16, 0 }
   0x5   : > { %s58_s19 = sadd.s32 1, %s674_s13  ;;  %p552_p5 = scmp.ge.s32.totalorder %s686_s16, 2 }
   0x6   : > { %s809_s17 = smov (%p23_p0, %s22_s17), 0  ;;  %p67_p3 = por %p66_p2, %p65_p1 }
   0x7   : > { %s55_s18 = ssub.s32 %s682_s15, %s809_s17  ;;  %152 = sbr.rel (%p552_p5) target bundleno = 26 (0x1a), region = 20 }
   0x8   : > { %p56_p4 = scmp.eq.s32.totalorder %s55_s18, 0 }
   0xa   : > { %s745_s20 = scalar_select %p56_p4, %s674_s13, %s58_s19  }
   0xc   : > { %155 = sbr.rel (!%p67_p3) target bundleno = 26 (0x1a), region = 24  ;;  %s157_s21 = sand.u32 (%p67_p3), 1, %s674_s13  }
   0xd   : > { %s554_s22 = sshll.u32 (%p67_p3), %s682_s15, 2  ;;  %s553_s23 = sshll.u32 (%p67_p3), %s157_s21, 6 }
   0xe   : > { %s753_s26 = scalar_lea.vmem (%p67_p3), %s801_s1, %s554_s22  ;;  %s159_s27 = scalar_lea.vmem (%p67_p3), [#allocation2], %s553_s23 }
   0xf   : > { %v178_v0 = vld [vmem:[%s753_s26] sm:$0xf] (%p67_p3)  ;;  %v180_v1 = vld [vmem:[%s753_s26 + $0x8] sm:$0xf] (%p67_p3)  ;;  %v182_v2 = vld [vmem:[%s753_s26 + $0x10] sm:$0xf] (%p67_p3) }
  0x10   : > { %179 = vst [vmem:[%s159_s27] sm:$0xf] (%p67_p3), %v178_v0  ;;  %181 = vst [vmem:[%s159_s27 + $0x4] sm:$0xf] (%p67_p3), %v180_v1  ;;  %v184_v3 = vld [vmem:[%s753_s26 + $0x18] sm:$0xf] (%p67_p3) }
  0x11   : > { %v186_v4 = vld [vmem:[%s753_s26 + $0x20] sm:$0xf]  ;;  %183 = vst [vmem:[%s159_s27 + $0x8] sm:$0xf] %v182_v2  ;;  %185 = vst [vmem:[%s159_s27 + $0xc] sm:$0xf] %v184_v3 }
  0x12   : > { %187 = vst [vmem:[%s159_s27 + $0x10] sm:$0xf] %v186_v4  ;;  %v188_v5 = vld [vmem:[%s753_s26 + $0x28] sm:$0xf]  ;;  %v190_v6 = vld [vmem:[%s753_s26 + $0x30] sm:$0xf] }
  0x13   : > { %v192_v7 = vld [vmem:[%s753_s26 + $0x38] sm:$0xf]  ;;  %189 = vst [vmem:[%s159_s27 + $0x14] sm:$0xf] %v188_v5  ;;  %191 = vst [vmem:[%s159_s27 + $0x18] sm:$0xf] %v190_v6 }
  0x14   : > { %193 = vst [vmem:[%s159_s27 + $0x1c] sm:$0xf] %v192_v7  ;;  %v194_v8 = vld [vmem:[%s753_s26 + $0x40] sm:$0xf]  ;;  %v196_v9 = vld [vmem:[%s753_s26 + $0x48] sm:$0xf] }
  0x15   : > { %v198_v10 = vld [vmem:[%s753_s26 + $0x50] sm:$0xf]  ;;  %195 = vst [vmem:[%s159_s27 + $0x20] sm:$0xf] %v194_v8  ;;  %197 = vst [vmem:[%s159_s27 + $0x24] sm:$0xf] %v196_v9 }
  0x16   : > { %199 = vst [vmem:[%s159_s27 + $0x28] sm:$0xf] %v198_v10  ;;  %v200_v11 = vld [vmem:[%s753_s26 + $0x58] sm:$0xf]  ;;  %v202_v12 = vld [vmem:[%s753_s26 + $0x60] sm:$0xf] }
  0x17   : > { %v204_v13 = vld [vmem:[%s753_s26 + $0x68] sm:$0xf]  ;;  %201 = vst [vmem:[%s159_s27 + $0x2c] sm:$0xf] %v200_v11  ;;  %203 = vst [vmem:[%s159_s27 + $0x30] sm:$0xf] %v202_v12 }
  0x18   : > { %205 = vst [vmem:[%s159_s27 + $0x34] sm:$0xf] %v204_v13  ;;  %v206_v14 = vld [vmem:[%s753_s26 + $0x70] sm:$0xf]  ;;  %v208_v15 = vld [vmem:[%s753_s26 + $0x78] sm:$0xf] }
  0x19   : > { %207 = vst [vmem:[%s159_s27 + $0x38] sm:$0xf] %v206_v14  ;;  %209 = vst [vmem:[%s159_s27 + $0x3c] sm:$0xf] %v208_v15 }
  0x1a PF: > { %p555_p6 = scmp.ge.s32.totalorder %s686_s16, 1  ;;  %p270_p7 = scmp.lt.s32.totalorder %s686_s16, 3 }
  0x1c   : > { %p271_p8 = pnand %p555_p6, %p270_p7 }
  0x1d   : > { %s277_s28 = sand.u32 (!%p271_p8), 1, %s670_s12   ;;  %p314_p9 = scmp.lt.s32.totalorder (!%p271_p8), %s678_s14, 1 }
  0x1e   : > { %274 = sbr.rel (%p271_p8) target bundleno = 267 (0x10b), region = 69  ;;  %s556_s29 = sshll.u32 (!%p271_p8), %s277_s28, 6 }
  0x1f   : > { %s279_s30 = scalar_lea.vmem (!%p271_p8), [#allocation2], %s556_s29 }
  0x23   : > { %v688_v16 = vmov 0.0   ;;  %vm689_vm0 = vmmov 0   ;;  %v640_v17 = vld [vmem:[%s279_s30 + $0x38] sm:$0xff]   ;;  %v641_v18 = vld [vmem:[%s279_s30 + $0x30] sm:$0xff]   ;;  %v642_v19 = vld [vmem:[%s279_s30 + $0x28] sm:$0xff]   ;;  %s811_s14 = smov (!%p314_p9, %s678_s14), 1 }
  0x24   : > { %578 = vmatprep.subr.bf16.mxu0 %v688_v16  ;;  %594 = vmatprep.mubr.msk.bf16.mxu0 %vm689_vm0, %v688_v16  ;;  %v643_v20 = vld [vmem:[%s279_s30 + $0x20] sm:$0xff]   ;;  %v644_v21 = vld [vmem:[%s279_s30 + $0x18] sm:$0xff]   ;;  %v645_v22 = vld [vmem:[%s279_s30 + $0x10] sm:$0xff]   ;;  %s316_s8 = scalar_lea.vmem %s802_s2, %s811_s14  ;;  %s557_s9 = sshll.u32 %s811_s14, 2 }
  0x25   : > { %579 = vmatpush3.bf16.msra.mxu0 %v640_v17  ;;  %v646_v23 = vld [vmem:[%s279_s30 + $0x8] sm:$0xff]   ;;  %v647_v24 = vld [vmem:[%s279_s30] sm:$0xff]   ;;  %s324_s12 = scalar_lea.vmem %s803_s3, %s557_s9 }
  0x26   : > { %580 = vmatprep.subr.bf16.mxu0 %v688_v16  ;;  %v326_v25 = vld [vmem:[%s800_s0] sm:$0xf] }
  0x27   : > { %v558_v26 = vld [vmem:[%s316_s8] ss:$0 sm:$0xff] }
  0x29   : > { %581 = vmatpush3.bf16.msra.mxu0 %v641_v18 }
  0x2a   : > { %582 = vmatprep.subr.bf16.mxu0 %v688_v16 }
  0x2d   : > { %583 = vmatpush3.bf16.msra.mxu0 %v642_v19 }
  0x2e   : > { %584 = vmatprep.subr.bf16.mxu0 %v688_v16 }
  0x31   : > { %585 = vmatpush3.bf16.msra.mxu0 %v643_v20 }
  0x32   : > { %586 = vmatprep.subr.bf16.mxu0 %v688_v16 }
  0x35   : > { %587 = vmatpush3.bf16.msra.mxu0 %v644_v21 }
  0x36   : > { %588 = vmatprep.subr.bf16.mxu0 %v688_v16 }
  0x39   : > { %589 = vmatpush3.bf16.msra.mxu0 %v645_v22 }
  0x3a   : > { %590 = vmatprep.subr.bf16.mxu0 %v688_v16 }
  0x3d   : > { %591 = vmatpush3.bf16.msra.mxu0 %v646_v23 }
  0x3e   : > { %592 = vmatprep.subr.bf16.mxu0 %v688_v16 }
  0x41   : > { %593 = vmatpush3.bf16.msra.mxu0 %v647_v24 }
  0x44   : > { %595 = vmatmul.mubr.bf16.vlgmr.msra.gmra.mxu0 %v326_v25 }
 0x104   : > { %v432_v27 = vpop.f32.mrf.mxu0 }
 0x105   : > { %v433_v28 = vadd.f32 %v558_v26, %v432_v27 }
 0x106   : > { %v596_v29 = vpop.f32.mrf.mxu0 }
 0x107   : > { %v438_v30 = vpack.c.bf16 %v433_v28, %v433_v28 }
 0x108   : > { %v435_v31 = vpop.f32.mrf.mxu0 }
 0x109   : > { %439 = vst [vmem:[%s324_s12] sm:$0xf] %v438_v30 }
 0x10a   : > { %v597_v32 = vpop.f32.mrf.mxu0 }
 0x10b PF: > { %s13_s16 = sadd.s32 1, %s686_s16   ;;  %s804_s12 = smov %s674_s13 }
 0x10c   : > { %p10_p10 = scmp.ge.s32.totalorder %s13_s16, 4   ;;  %s805_s13 = smov %s745_s20 }
 0x10d   : > { %s806_s14 = smov %s682_s15  ;;  %s807_s15 = smov %s809_s17 }
 0x10e   :  { %12 = sbr.rel (!%p10_p10) target bundleno = 3 (0x3), region = 114 }

// kernel: resnet34_forward.49
= control target key start
LH: loop header
LB: loop body
LE: loop exit
PB: predicated region body
PF: predicated region fallthrough
CT: control target
= control target key end

     0   :  { %vm1125_vm0 = vmmov 0   ;;  %s1383_s1 = inlined_call_operand.vmem [shape: bf16[1152,128], index: 1, kind: input, shape index: {}]   ;;  %s1384_s0 = inlined_call_operand.vmem [shape: bf16[8,1152], index: 0, kind: input, shape index: {}]   ;;  %s1385_s2 = inlined_call_operand.vmem [shape: f32[1,128], index: 2, kind: input, shape index: {}]   ;;  %s1386_s3 = inlined_call_operand.vmem [shape: bf16[8,128], index: 3, kind: output, shape index: {}]  }
   0x1   :  { %v1043_v0 = vld [vmem:[%s1383_s1 + $0x78] sm:$0xff]   ;;  %v1047_v4 = vld [vmem:[%s1383_s1 + $0x70] sm:$0xff]   ;;  %v1051_v8 = vld [vmem:[%s1383_s1 + $0x68] sm:$0xff]  }
   0x2   :  { %v1044_v1 = vld [vmem:[%s1383_s1 + $0x38] sm:$0xff]   ;;  %924 = vmatprep.subr.bf16.mxu0 %v1043_v0  ;;  %v1048_v5 = vld [vmem:[%s1383_s1 + $0x30] sm:$0xff]   ;;  %v1052_v9 = vld [vmem:[%s1383_s1 + $0x28] sm:$0xff]  }
   0x3   :  { %v1045_v2 = vld [vmem:[%s1383_s1 + $0xf8] sm:$0xff]   ;;  %925 = vmatpush3.bf16.msra.mxu0 %v1044_v1  ;;  %v1049_v6 = vld [vmem:[%s1383_s1 + $0xf0] sm:$0xff]   ;;  %v1053_v10 = vld [vmem:[%s1383_s1 + $0xe8] sm:$0xff]  }
   0x4   :  { %v1046_v3 = vld [vmem:[%s1383_s1 + $0xb8] sm:$0xff]   ;;  %946 = vmatprep.subr.bf16.mxu1 %v1045_v2  ;;  %926 = vmatprep.subr.bf16.mxu0 %v1047_v4  ;;  %v1050_v7 = vld [vmem:[%s1383_s1 + $0xb0] sm:$0xff]   ;;  %v1054_v11 = vld [vmem:[%s1383_s1 + $0xa8] sm:$0xff]  }
   0x5   :  { %947 = vmatpush3.bf16.msra.mxu1 %v1046_v3  ;;  %v1055_v12 = vld [vmem:[%s1383_s1 + $0x60] sm:$0xff]   ;;  %v1059_v16 = vld [vmem:[%s1383_s1 + $0x58] sm:$0xff]   ;;  %v1063_v20 = vld [vmem:[%s1383_s1 + $0x50] sm:$0xff]  }
   0x6   :  { %948 = vmatprep.subr.bf16.mxu1 %v1049_v6  ;;  %v1056_v13 = vld [vmem:[%s1383_s1 + $0x20] sm:$0xff]   ;;  %v1060_v17 = vld [vmem:[%s1383_s1 + $0x18] sm:$0xff]   ;;  %v1064_v21 = vld [vmem:[%s1383_s1 + $0x10] sm:$0xff]  }
   0x7   :  { %927 = vmatpush3.bf16.msra.mxu0 %v1048_v5  ;;  %v1057_v14 = vld [vmem:[%s1383_s1 + $0xe0] sm:$0xff]   ;;  %v1061_v18 = vld [vmem:[%s1383_s1 + $0xd8] sm:$0xff]   ;;  %v1065_v22 = vld [vmem:[%s1383_s1 + $0xd0] sm:$0xff]  }
   0x8   :  { %928 = vmatprep.subr.bf16.mxu0 %v1051_v8  ;;  %v1058_v15 = vld [vmem:[%s1383_s1 + $0xa0] sm:$0xff]   ;;  %v1062_v19 = vld [vmem:[%s1383_s1 + $0x98] sm:$0xff]   ;;  %v1066_v23 = vld [vmem:[%s1383_s1 + $0x90] sm:$0xff]  }
   0x9   :  { %949 = vmatpush3.bf16.msra.mxu1 %v1050_v7  ;;  %v1067_v24 = vld [vmem:[%s1383_s1 + $0x48] sm:$0xff]   ;;  %v1071_v28 = vld [vmem:[%s1383_s1 + $0x40] sm:$0xff]   ;;  %v1077_v35 = vld [vmem:[%s1383_s1 + $0x178] sm:$0xff]  }
   0xa   :  { %950 = vmatprep.subr.bf16.mxu1 %v1053_v10  ;;  %v1068_v25 = vld [vmem:[%s1383_s1 + $0x8] sm:$0xff]   ;;  %v1072_v29 = vld [vmem:[%s1383_s1] sm:$0xff]   ;;  %v1080_v39 = vld [vmem:[%s1383_s1 + $0x138] sm:$0xff]  }
   0xb   :  { %929 = vmatpush3.bf16.msra.mxu0 %v1052_v9  ;;  %v1069_v26 = vld [vmem:[%s1383_s1 + $0xc8] sm:$0xff]   ;;  %v1073_v30 = vld [vmem:[%s1383_s1 + $0xc0] sm:$0xff]   ;;  %v1081_v40 = vld [vmem:[%s1383_s1 + $0x1f8] sm:$0xff]   ;;  %v1124_v9 = vmov 0.0  }
   0xc   :  { %930 = vmatprep.subr.bf16.mxu0 %v1055_v12  ;;  %v1070_v27 = vld [vmem:[%s1383_s1 + $0x88] sm:$0xff]   ;;  %v15_v31 = vld [vmem:[%s1384_s0] sm:$0xff]  ;;  %v1082_v41 = vld [vmem:[%s1383_s1 + $0x1b8] sm:$0xff]  }
   0xd   :  { %951 = vmatpush3.bf16.msra.mxu1 %v1054_v11  ;;  %v843_v32 = vcombine.low %v15_v31, %v15_v31  ;;  %v844_v33 = vcombine.high %v15_v31, %v15_v31  ;;  %v1076_v34 = vld [vmem:[%s1383_s1 + $0x80] sm:$0xff]   ;;  %v16_v36 = vld [vmem:[%s1384_s0 + $0x8] sm:$0xff]  ;;  %v1083_v42 = vld [vmem:[%s1383_s1 + $0x170] sm:$0xff]  }
   0xe   :  { %952 = vmatprep.subr.bf16.mxu1 %v1057_v14  ;;  %v845_v37 = vcombine.low %v16_v36, %v16_v36  ;;  %v846_v38 = vcombine.high %v16_v36, %v16_v36  ;;  %v1084_v43 = vld [vmem:[%s1383_s1 + $0x130] sm:$0xff]   ;;  %v1087_v46 = vld [vmem:[%s1383_s1 + $0x168] sm:$0xff]   ;;  %v1091_v50 = vld [vmem:[%s1383_s1 + $0x160] sm:$0xff]  }
   0xf   :  { %931 = vmatpush3.bf16.msra.mxu0 %v1056_v13  ;;  %667 = vmatprep.mubr.bf16.mxu0 %v844_v33  ;;  %v1085_v44 = vld [vmem:[%s1383_s1 + $0x1f0] sm:$0xff]   ;;  %v1088_v47 = vld [vmem:[%s1383_s1 + $0x128] sm:$0xff]   ;;  %v1092_v51 = vld [vmem:[%s1383_s1 + $0x120] sm:$0xff]  }
  0x10   :  { %932 = vmatprep.subr.bf16.mxu0 %v1059_v16  ;;  %707 = vmatprep.mubr.bf16.mxu1 %v846_v38  ;;  %v1086_v45 = vld [vmem:[%s1383_s1 + $0x1b0] sm:$0xff]   ;;  %v1089_v48 = vld [vmem:[%s1383_s1 + $0x1e8] sm:$0xff]   ;;  %v1093_v52 = vld [vmem:[%s1383_s1 + $0x1e0] sm:$0xff]  }
  0x11   :  { %953 = vmatpush3.bf16.msra.mxu1 %v1058_v15  ;;  %v1090_v49 = vld [vmem:[%s1383_s1 + $0x1a8] sm:$0xff]   ;;  %v1094_v53 = vld [vmem:[%s1383_s1 + $0x1a0] sm:$0xff]   ;;  %v1095_v54 = vld [vmem:[%s1383_s1 + $0x158] sm:$0xff]  }
  0x12   :  { %954 = vmatprep.subr.bf16.mxu1 %v1061_v18  ;;  %v1096_v55 = vld [vmem:[%s1383_s1 + $0x118] sm:$0xff]   ;;  %v1099_v58 = vld [vmem:[%s1383_s1 + $0x150] sm:$0xff]   ;;  %v1103_v62 = vld [vmem:[%s1383_s1 + $0x148] sm:$0xff]  }
  0x13   :  { %933 = vmatpush3.bf16.msra.mxu0 %v1060_v17  ;;  %v1097_v56 = vld [vmem:[%s1383_s1 + $0x1d8] sm:$0xff]   ;;  %v1100_v59 = vld [vmem:[%s1383_s1 + $0x110] sm:$0xff]   ;;  %v1104_v63 = vld [vmem:[%s1383_s1 + $0x108] sm:$0xff]  }
  0x14   :  { %934 = vmatprep.subr.bf16.mxu0 %v1063_v20  ;;  %v1098_v57 = vld [vmem:[%s1383_s1 + $0x198] sm:$0xff]   ;;  %v1101_v60 = vld [vmem:[%s1383_s1 + $0x1d0] sm:$0xff]   ;;  %v1105_v0 = vld [vmem:[%s1383_s1 + $0x1c8] sm:$0xff]  }
  0x15   :  { %955 = vmatpush3.bf16.msra.mxu1 %v1062_v19  ;;  %v1102_v61 = vld [vmem:[%s1383_s1 + $0x190] sm:$0xff]   ;;  %v1106_v1 = vld [vmem:[%s1383_s1 + $0x188] sm:$0xff]   ;;  %v1107_v2 = vld [vmem:[%s1383_s1 + $0x140] sm:$0xff]  }
  0x16   :  { %956 = vmatprep.subr.bf16.mxu1 %v1065_v22  ;;  %v1108_v3 = vld [vmem:[%s1383_s1 + $0x100] sm:$0xff]   ;;  %v17_v5 = vld [vmem:[%s1384_s0 + $0x10] sm:$0xff]  ;;  %v18_v10 = vld [vmem:[%s1384_s0 + $0x18] sm:$0xff] }
  0x17   :  { %935 = vmatpush3.bf16.msra.mxu0 %v1064_v21  ;;  %v1109_v4 = vld [vmem:[%s1383_s1 + $0x1c0] sm:$0xff]   ;;  %v847_v6 = vcombine.low %v17_v5, %v17_v5  ;;  %v848_v7 = vcombine.high %v17_v5, %v17_v5  ;;  %v849_v11 = vcombine.low %v18_v10, %v18_v10  ;;  %v850_v12 = vcombine.high %v18_v10, %v18_v10  ;;  %v1115_v13 = vld [vmem:[%s1383_s1 + $0x238] sm:$0xff]   ;;  %v1116_v14 = vld [vmem:[%s1383_s1 + $0x230] sm:$0xff]  }
  0x18   :  { %936 = vmatprep.subr.bf16.mxu0 %v1067_v24  ;;  %v1112_v8 = vld [vmem:[%s1383_s1 + $0x180] sm:$0xff]   ;;  %v1117_v15 = vld [vmem:[%s1383_s1 + $0x228] sm:$0xff]   ;;  %v1119_v17 = vld [vmem:[%s1383_s1 + $0x218] sm:$0xff]  }
  0x19   :  { %957 = vmatpush3.bf16.msra.mxu1 %v1066_v23  ;;  %v1118_v16 = vld [vmem:[%s1383_s1 + $0x220] sm:$0xff]   ;;  %v1120_v18 = vld [vmem:[%s1383_s1 + $0x210] sm:$0xff]   ;;  %v1121_v19 = vld [vmem:[%s1383_s1 + $0x208] sm:$0xff]  }
  0x1a   :  { %958 = vmatprep.subr.bf16.mxu1 %v1069_v26  ;;  %v1122_v20 = vld [vmem:[%s1383_s1 + $0x200] sm:$0xff]  }
  0x1b   :  { %937 = vmatpush3.bf16.msra.mxu0 %v1068_v25  ;;  %v1123_v21 = vld [vmem:[%s1384_s0 + $0x20] ss:$0 sps:$4 sm:$0xff]  }
  0x1c   :  { %938 = vmatprep.subr.bf16.mxu0 %v1071_v28 }
  0x1d   :  { %959 = vmatpush3.bf16.msra.mxu1 %v1070_v27 }
  0x1e   :  { %960 = vmatprep.subr.bf16.mxu1 %v1073_v30 }
  0x1f   :  { %939 = vmatpush3.bf16.msra.mxu0 %v1072_v29 }
  0x20   :  { %968 = vmatprep.subr.bf16.mxu0 %v1077_v35 }
  0x21   :  { %961 = vmatpush3.bf16.msra.mxu1 %v1076_v34 }
  0x22   :  { %668 = vmatmul.mubr.bf16.vlgmr.msra.gmra.mxu0 %v843_v32  ;;  %990 = vmatprep.subr.bf16.mxu1 %v1081_v40 }
  0x23   :  { %969 = vmatpush3.bf16.msra.mxu0 %v1080_v39  ;;  %747 = vmatprep.mubr.bf16.mxu0 %v848_v7  ;;  %v842_v39 = vld [vmem:[%s1385_s2] ss:$0 sm:$0xff] }
  0x24   :  { %708 = vmatmul.mubr.bf16.vlgmr.msra.gmra.mxu1 %v845_v37  ;;  %970 = vmatprep.subr.bf16.mxu0 %v1083_v42 }
  0x25   :  { %991 = vmatpush3.bf16.msra.mxu1 %v1082_v41  ;;  %787 = vmatprep.mubr.bf16.mxu1 %v850_v12 }
  0x26   :  { %992 = vmatprep.subr.bf16.mxu1 %v1085_v44 }
  0x27   :  { %971 = vmatpush3.bf16.msra.mxu0 %v1084_v43 }
  0x28   :  { %972 = vmatprep.subr.bf16.mxu0 %v1087_v46 }
  0x29   :  { %993 = vmatpush3.bf16.msra.mxu1 %v1086_v45 }
  0x2a   :  { %994 = vmatprep.subr.bf16.mxu1 %v1089_v48 }
  0x2b   :  { %973 = vmatpush3.bf16.msra.mxu0 %v1088_v47 }
  0x2c   :  { %974 = vmatprep.subr.bf16.mxu0 %v1091_v50 }
  0x2d   :  { %995 = vmatpush3.bf16.msra.mxu1 %v1090_v49 }
  0x2e   :  { %996 = vmatprep.subr.bf16.mxu1 %v1093_v52 }
  0x2f   :  { %975 = vmatpush3.bf16.msra.mxu0 %v1092_v51 }
  0x30   :  { %976 = vmatprep.subr.bf16.mxu0 %v1095_v54 }
  0x31   :  { %997 = vmatpush3.bf16.msra.mxu1 %v1094_v53 }
  0x32   :  { %998 = vmatprep.subr.bf16.mxu1 %v1097_v56 }
  0x33   :  { %977 = vmatpush3.bf16.msra.mxu0 %v1096_v55 }
  0x34   :  { %978 = vmatprep.subr.bf16.mxu0 %v1099_v58 }
  0x35   :  { %999 = vmatpush3.bf16.msra.mxu1 %v1098_v57 }
  0x36   :  { %1000 = vmatprep.subr.bf16.mxu1 %v1101_v60 }
  0x37   :  { %979 = vmatpush3.bf16.msra.mxu0 %v1100_v59 }
  0x38   :  { %980 = vmatprep.subr.bf16.mxu0 %v1103_v62 }
  0x39   :  { %1001 = vmatpush3.bf16.msra.mxu1 %v1102_v61 }
  0x3a   :  { %1002 = vmatprep.subr.bf16.mxu1 %v1105_v0 }
  0x3b   :  { %981 = vmatpush3.bf16.msra.mxu0 %v1104_v63 }
  0x3c   :  { %982 = vmatprep.subr.bf16.mxu0 %v1107_v2 }
  0x3d   :  { %1003 = vmatpush3.bf16.msra.mxu1 %v1106_v1 }
  0x3e   :  { %1004 = vmatprep.subr.bf16.mxu1 %v1109_v4 }
  0x3f   :  { %983 = vmatpush3.bf16.msra.mxu0 %v1108_v3 }
  0x40   :  { %1021 = vmatprep.subr.bf16.mxu0 %v1124_v9 }
  0x41   :  { %1005 = vmatpush3.bf16.msra.mxu1 %v1112_v8 }
  0x42   :  { %748 = vmatmul.mubr.bf16.vlgmr.msra.gmra.mxu0 %v847_v6 }
  0x43   :  { %1022 = vmatpush3.bf16.msra.mxu0 %v1115_v13  ;;  %1037 = vmatprep.mubr.msk.bf16.mxu0 %vm1125_vm0, %v1124_v9 }
  0x44   :  { %788 = vmatmul.mubr.bf16.vlgmr.msra.gmra.mxu1 %v849_v11  ;;  %1023 = vmatprep.subr.bf16.mxu0 %v1124_v9 }
  0x47   :  { %1024 = vmatpush3.bf16.msra.mxu0 %v1116_v14 }
  0x48   :  { %1025 = vmatprep.subr.bf16.mxu0 %v1124_v9 }
  0x4b   :  { %1026 = vmatpush3.bf16.msra.mxu0 %v1117_v15 }
  0x4c   :  { %1027 = vmatprep.subr.bf16.mxu0 %v1124_v9 }
  0x4f   :  { %1028 = vmatpush3.bf16.msra.mxu0 %v1118_v16 }
  0x50   :  { %1029 = vmatprep.subr.bf16.mxu0 %v1124_v9 }
  0x53   :  { %1030 = vmatpush3.bf16.msra.mxu0 %v1119_v17 }
  0x54   :  { %1031 = vmatprep.subr.bf16.mxu0 %v1124_v9 }
  0x57   :  { %1032 = vmatpush3.bf16.msra.mxu0 %v1120_v18 }
  0x58   :  { %1033 = vmatprep.subr.bf16.mxu0 %v1124_v9 }
  0x5b   :  { %1034 = vmatpush3.bf16.msra.mxu0 %v1121_v19 }
  0x5c   :  { %1035 = vmatprep.subr.bf16.mxu0 %v1124_v9 }
  0x5f   :  { %1036 = vmatpush3.bf16.msra.mxu0 %v1122_v20 }
  0x62   :  { %1038 = vmatmul.mubr.bf16.vlgmr.msra.gmra.mxu0 %v1123_v21 }
  0xe2   :  { %v940_v22 = vpop.f32.mrf.mxu0 }
  0xe4   :  { %v941_v23 = vpop.f32.mrf.mxu0  ;;  %v962_v24 = vpop.f32.mrf.mxu1 }
  0xe5   :  { %v942_v38 = vadd.f32 %v941_v23, %v940_v22 }
  0xe6   :  { %v943_v25 = vpop.f32.mrf.mxu0  ;;  %v963_v26 = vpop.f32.mrf.mxu1 }
  0xe7   :  { %v670_v40 = vadd.f32 %v942_v38, %v842_v39  ;;  %v964_v41 = vadd.f32 %v963_v26, %v962_v24 }
  0xe8   :  { %v944_v27 = vpop.f32.mrf.mxu0  ;;  %v965_v28 = vpop.f32.mrf.mxu1 }
  0xe9   :  { %v710_v43 = vadd.f32 %v964_v41, %v670_v40 }
  0xea   :  { %v966_v29 = vpop.f32.mrf.mxu1 }
 0x102   :  { %v984_v30 = vpop.f32.mrf.mxu0 }
 0x104   :  { %v985_v31 = vpop.f32.mrf.mxu0  ;;  %v1006_v32 = vpop.f32.mrf.mxu1 }
 0x105   :  { %v986_v42 = vadd.f32 %v985_v31, %v984_v30 }
 0x106   :  { %v987_v33 = vpop.f32.mrf.mxu0  ;;  %v1007_v34 = vpop.f32.mrf.mxu1 }
 0x107   :  { %v750_v44 = vadd.f32 %v986_v42, %v710_v43  ;;  %v1008_v45 = vadd.f32 %v1007_v34, %v1006_v32 }
 0x108   :  { %v988_v35 = vpop.f32.mrf.mxu0  ;;  %v1009_v36 = vpop.f32.mrf.mxu1 }
 0x109   :  { %v790_v46 = vadd.f32 %v1008_v45, %v750_v44 }
 0x10a   :  { %v1010_v37 = vpop.f32.mrf.mxu1 }
 0x122   :  { %v829_v47 = vpop.f32.mrf.mxu0 }
 0x123   :  { %v830_v48 = vadd.f32 %v829_v47, %v790_v46 }
 0x124   :  { %v1039_v49 = vpop.f32.mrf.mxu0 }
 0x125   :  { %v835_v50 = vmax.f32 %v830_v48, 0.0 }
 0x126   :  { %v832_v51 = vpop.f32.mrf.mxu0 }
 0x127   :  { %v836_v52 = vpack.c.bf16 %v835_v50, %v835_v50 }
 0x128   :  { %v1040_v53 = vpop.f32.mrf.mxu0 }
 0x129   :  { %837 = vst [vmem:[%s1386_s3] sm:$0xf] %v836_v52 }

// kernel: resnet34_forward.48
= control target key start
LH: loop header
LB: loop body
LE: loop exit
PB: predicated region body
PF: predicated region fallthrough
CT: control target
= control target key end

     0   :  { %vm1131_vm0 = vmmov 0   ;;  %s1397_s1 = inlined_call_operand.vmem [shape: bf16[1152,128], index: 1, kind: input, shape index: {}]   ;;  %s1398_s0 = inlined_call_operand.vmem [shape: bf16[8,1152], index: 0, kind: input, shape index: {}]   ;;  %s1399_s2 = inlined_call_operand.vmem [shape: f32[1,128], index: 2, kind: input, shape index: {}]   ;;  %s1400_s3 = inlined_call_operand.vmem [shape: bf16[8,128], index: 3, kind: input, shape index: {}]   ;;  %s1401_s4 = inlined_call_operand.vmem [shape: bf16[8,128], index: 4, kind: output, shape index: {}]  }
   0x1   :  { %v1049_v0 = vld [vmem:[%s1397_s1 + $0x78] sm:$0xff]   ;;  %v1053_v4 = vld [vmem:[%s1397_s1 + $0x70] sm:$0xff]   ;;  %v1057_v8 = vld [vmem:[%s1397_s1 + $0x68] sm:$0xff]  }
   0x2   :  { %v1050_v1 = vld [vmem:[%s1397_s1 + $0x38] sm:$0xff]   ;;  %930 = vmatprep.subr.bf16.mxu0 %v1049_v0  ;;  %v1054_v5 = vld [vmem:[%s1397_s1 + $0x30] sm:$0xff]   ;;  %v1058_v9 = vld [vmem:[%s1397_s1 + $0x28] sm:$0xff]  }
   0x3   :  { %v1051_v2 = vld [vmem:[%s1397_s1 + $0xf8] sm:$0xff]   ;;  %931 = vmatpush3.bf16.msra.mxu0 %v1050_v1  ;;  %v1055_v6 = vld [vmem:[%s1397_s1 + $0xf0] sm:$0xff]   ;;  %v1059_v10 = vld [vmem:[%s1397_s1 + $0xe8] sm:$0xff]  }
   0x4   :  { %v1052_v3 = vld [vmem:[%s1397_s1 + $0xb8] sm:$0xff]   ;;  %952 = vmatprep.subr.bf16.mxu1 %v1051_v2  ;;  %932 = vmatprep.subr.bf16.mxu0 %v1053_v4  ;;  %v1056_v7 = vld [vmem:[%s1397_s1 + $0xb0] sm:$0xff]   ;;  %v1060_v11 = vld [vmem:[%s1397_s1 + $0xa8] sm:$0xff]  }
   0x5   :  { %953 = vmatpush3.bf16.msra.mxu1 %v1052_v3  ;;  %v1061_v12 = vld [vmem:[%s1397_s1 + $0x60] sm:$0xff]   ;;  %v1065_v16 = vld [vmem:[%s1397_s1 + $0x58] sm:$0xff]   ;;  %v1069_v20 = vld [vmem:[%s1397_s1 + $0x50] sm:$0xff]  }
   0x6   :  { %954 = vmatprep.subr.bf16.mxu1 %v1055_v6  ;;  %v1062_v13 = vld [vmem:[%s1397_s1 + $0x20] sm:$0xff]   ;;  %v1066_v17 = vld [vmem:[%s1397_s1 + $0x18] sm:$0xff]   ;;  %v1070_v21 = vld [vmem:[%s1397_s1 + $0x10] sm:$0xff]  }
   0x7   :  { %933 = vmatpush3.bf16.msra.mxu0 %v1054_v5  ;;  %v1063_v14 = vld [vmem:[%s1397_s1 + $0xe0] sm:$0xff]   ;;  %v1067_v18 = vld [vmem:[%s1397_s1 + $0xd8] sm:$0xff]   ;;  %v1071_v22 = vld [vmem:[%s1397_s1 + $0xd0] sm:$0xff]  }
   0x8   :  { %934 = vmatprep.subr.bf16.mxu0 %v1057_v8  ;;  %v1064_v15 = vld [vmem:[%s1397_s1 + $0xa0] sm:$0xff]   ;;  %v1068_v19 = vld [vmem:[%s1397_s1 + $0x98] sm:$0xff]   ;;  %v1072_v23 = vld [vmem:[%s1397_s1 + $0x90] sm:$0xff]  }
   0x9   :  { %955 = vmatpush3.bf16.msra.mxu1 %v1056_v7  ;;  %v1073_v24 = vld [vmem:[%s1397_s1 + $0x48] sm:$0xff]   ;;  %v1077_v28 = vld [vmem:[%s1397_s1 + $0x40] sm:$0xff]   ;;  %v1083_v35 = vld [vmem:[%s1397_s1 + $0x178] sm:$0xff]  }
   0xa   :  { %956 = vmatprep.subr.bf16.mxu1 %v1059_v10  ;;  %v1074_v25 = vld [vmem:[%s1397_s1 + $0x8] sm:$0xff]   ;;  %v1078_v29 = vld [vmem:[%s1397_s1] sm:$0xff]   ;;  %v1086_v39 = vld [vmem:[%s1397_s1 + $0x138] sm:$0xff]  }
   0xb   :  { %935 = vmatpush3.bf16.msra.mxu0 %v1058_v9  ;;  %v1075_v26 = vld [vmem:[%s1397_s1 + $0xc8] sm:$0xff]   ;;  %v1079_v30 = vld [vmem:[%s1397_s1 + $0xc0] sm:$0xff]   ;;  %v1087_v40 = vld [vmem:[%s1397_s1 + $0x1f8] sm:$0xff]   ;;  %v1130_v9 = vmov 0.0  }
   0xc   :  { %936 = vmatprep.subr.bf16.mxu0 %v1061_v12  ;;  %v1076_v27 = vld [vmem:[%s1397_s1 + $0x88] sm:$0xff]   ;;  %v18_v31 = vld [vmem:[%s1398_s0] sm:$0xff]  ;;  %v1088_v41 = vld [vmem:[%s1397_s1 + $0x1b8] sm:$0xff]  }
   0xd   :  { %957 = vmatpush3.bf16.msra.mxu1 %v1060_v11  ;;  %v849_v32 = vcombine.low %v18_v31, %v18_v31  ;;  %v850_v33 = vcombine.high %v18_v31, %v18_v31  ;;  %v1082_v34 = vld [vmem:[%s1397_s1 + $0x80] sm:$0xff]   ;;  %v19_v36 = vld [vmem:[%s1398_s0 + $0x8] sm:$0xff]  ;;  %v1089_v42 = vld [vmem:[%s1397_s1 + $0x170] sm:$0xff]  }
   0xe   :  { %958 = vmatprep.subr.bf16.mxu1 %v1063_v14  ;;  %v851_v37 = vcombine.low %v19_v36, %v19_v36  ;;  %v852_v38 = vcombine.high %v19_v36, %v19_v36  ;;  %v1090_v43 = vld [vmem:[%s1397_s1 + $0x130] sm:$0xff]   ;;  %v1093_v46 = vld [vmem:[%s1397_s1 + $0x168] sm:$0xff]   ;;  %v1097_v50 = vld [vmem:[%s1397_s1 + $0x160] sm:$0xff]  }
   0xf   :  { %937 = vmatpush3.bf16.msra.mxu0 %v1062_v13  ;;  %670 = vmatprep.mubr.bf16.mxu0 %v850_v33  ;;  %v1091_v44 = vld [vmem:[%s1397_s1 + $0x1f0] sm:$0xff]   ;;  %v1094_v47 = vld [vmem:[%s1397_s1 + $0x128] sm:$0xff]   ;;  %v1098_v51 = vld [vmem:[%s1397_s1 + $0x120] sm:$0xff]  }
  0x10   :  { %938 = vmatprep.subr.bf16.mxu0 %v1065_v16  ;;  %710 = vmatprep.mubr.bf16.mxu1 %v852_v38  ;;  %v1092_v45 = vld [vmem:[%s1397_s1 + $0x1b0] sm:$0xff]   ;;  %v1095_v48 = vld [vmem:[%s1397_s1 + $0x1e8] sm:$0xff]   ;;  %v1099_v52 = vld [vmem:[%s1397_s1 + $0x1e0] sm:$0xff]  }
  0x11   :  { %959 = vmatpush3.bf16.msra.mxu1 %v1064_v15  ;;  %v1096_v49 = vld [vmem:[%s1397_s1 + $0x1a8] sm:$0xff]   ;;  %v1100_v53 = vld [vmem:[%s1397_s1 + $0x1a0] sm:$0xff]   ;;  %v1101_v54 = vld [vmem:[%s1397_s1 + $0x158] sm:$0xff]  }
  0x12   :  { %960 = vmatprep.subr.bf16.mxu1 %v1067_v18  ;;  %v1102_v55 = vld [vmem:[%s1397_s1 + $0x118] sm:$0xff]   ;;  %v1105_v58 = vld [vmem:[%s1397_s1 + $0x150] sm:$0xff]   ;;  %v1109_v62 = vld [vmem:[%s1397_s1 + $0x148] sm:$0xff]  }
  0x13   :  { %939 = vmatpush3.bf16.msra.mxu0 %v1066_v17  ;;  %v1103_v56 = vld [vmem:[%s1397_s1 + $0x1d8] sm:$0xff]   ;;  %v1106_v59 = vld [vmem:[%s1397_s1 + $0x110] sm:$0xff]   ;;  %v1110_v63 = vld [vmem:[%s1397_s1 + $0x108] sm:$0xff]  }
  0x14   :  { %940 = vmatprep.subr.bf16.mxu0 %v1069_v20  ;;  %v1104_v57 = vld [vmem:[%s1397_s1 + $0x198] sm:$0xff]   ;;  %v1107_v60 = vld [vmem:[%s1397_s1 + $0x1d0] sm:$0xff]   ;;  %v1111_v0 = vld [vmem:[%s1397_s1 + $0x1c8] sm:$0xff]  }
  0x15   :  { %961 = vmatpush3.bf16.msra.mxu1 %v1068_v19  ;;  %v1108_v61 = vld [vmem:[%s1397_s1 + $0x190] sm:$0xff]   ;;  %v1112_v1 = vld [vmem:[%s1397_s1 + $0x188] sm:$0xff]   ;;  %v1113_v2 = vld [vmem:[%s1397_s1 + $0x140] sm:$0xff]  }
  0x16   :  { %962 = vmatprep.subr.bf16.mxu1 %v1071_v22  ;;  %v1114_v3 = vld [vmem:[%s1397_s1 + $0x100] sm:$0xff]   ;;  %v20_v5 = vld [vmem:[%s1398_s0 + $0x10] sm:$0xff]  ;;  %v21_v10 = vld [vmem:[%s1398_s0 + $0x18] sm:$0xff] }
  0x17   :  { %941 = vmatpush3.bf16.msra.mxu0 %v1070_v21  ;;  %v1115_v4 = vld [vmem:[%s1397_s1 + $0x1c0] sm:$0xff]   ;;  %v853_v6 = vcombine.low %v20_v5, %v20_v5  ;;  %v854_v7 = vcombine.high %v20_v5, %v20_v5  ;;  %v855_v11 = vcombine.low %v21_v10, %v21_v10  ;;  %v856_v12 = vcombine.high %v21_v10, %v21_v10  ;;  %v1121_v13 = vld [vmem:[%s1397_s1 + $0x238] sm:$0xff]   ;;  %v1122_v14 = vld [vmem:[%s1397_s1 + $0x230] sm:$0xff]  }
  0x18   :  { %942 = vmatprep.subr.bf16.mxu0 %v1073_v24  ;;  %v1118_v8 = vld [vmem:[%s1397_s1 + $0x180] sm:$0xff]   ;;  %v1123_v15 = vld [vmem:[%s1397_s1 + $0x228] sm:$0xff]   ;;  %v1125_v17 = vld [vmem:[%s1397_s1 + $0x218] sm:$0xff]  }
  0x19   :  { %963 = vmatpush3.bf16.msra.mxu1 %v1072_v23  ;;  %v1124_v16 = vld [vmem:[%s1397_s1 + $0x220] sm:$0xff]   ;;  %v1126_v18 = vld [vmem:[%s1397_s1 + $0x210] sm:$0xff]   ;;  %v1127_v19 = vld [vmem:[%s1397_s1 + $0x208] sm:$0xff]  }
  0x1a   :  { %964 = vmatprep.subr.bf16.mxu1 %v1075_v26  ;;  %v1128_v20 = vld [vmem:[%s1397_s1 + $0x200] sm:$0xff]  }
  0x1b   :  { %943 = vmatpush3.bf16.msra.mxu0 %v1074_v25  ;;  %v1129_v21 = vld [vmem:[%s1398_s0 + $0x20] ss:$0 sps:$4 sm:$0xff]  }
  0x1c   :  { %944 = vmatprep.subr.bf16.mxu0 %v1077_v28 }
  0x1d   :  { %965 = vmatpush3.bf16.msra.mxu1 %v1076_v27 }
  0x1e   :  { %966 = vmatprep.subr.bf16.mxu1 %v1079_v30 }
  0x1f   :  { %945 = vmatpush3.bf16.msra.mxu0 %v1078_v29 }
  0x20   :  { %974 = vmatprep.subr.bf16.mxu0 %v1083_v35 }
  0x21   :  { %967 = vmatpush3.bf16.msra.mxu1 %v1082_v34 }
  0x22   :  { %671 = vmatmul.mubr.bf16.vlgmr.msra.gmra.mxu0 %v849_v32  ;;  %996 = vmatprep.subr.bf16.mxu1 %v1087_v40 }
  0x23   :  { %975 = vmatpush3.bf16.msra.mxu0 %v1086_v39  ;;  %750 = vmatprep.mubr.bf16.mxu0 %v854_v7  ;;  %v848_v39 = vld [vmem:[%s1399_s2] ss:$0 sm:$0xff] }
  0x24   :  { %711 = vmatmul.mubr.bf16.vlgmr.msra.gmra.mxu1 %v851_v37  ;;  %976 = vmatprep.subr.bf16.mxu0 %v1089_v42 }
  0x25   :  { %997 = vmatpush3.bf16.msra.mxu1 %v1088_v41  ;;  %790 = vmatprep.mubr.bf16.mxu1 %v856_v12 }
  0x26   :  { %998 = vmatprep.subr.bf16.mxu1 %v1091_v44 }
  0x27   :  { %977 = vmatpush3.bf16.msra.mxu0 %v1090_v43 }
  0x28   :  { %978 = vmatprep.subr.bf16.mxu0 %v1093_v46  ;;  %v838_v46 = vld [vmem:[%s1400_s3] sm:$0xf] }
  0x29   :  { %999 = vmatpush3.bf16.msra.mxu1 %v1092_v45 }
  0x2a   :  { %1000 = vmatprep.subr.bf16.mxu1 %v1095_v48  ;;  %v839_v48 = vunpack.c.l.bf16 %v838_v46 }
  0x2b   :  { %979 = vmatpush3.bf16.msra.mxu0 %v1094_v47 }
  0x2c   :  { %980 = vmatprep.subr.bf16.mxu0 %v1097_v50 }
  0x2d   :  { %1001 = vmatpush3.bf16.msra.mxu1 %v1096_v49 }
  0x2e   :  { %1002 = vmatprep.subr.bf16.mxu1 %v1099_v52 }
  0x2f   :  { %981 = vmatpush3.bf16.msra.mxu0 %v1098_v51 }
  0x30   :  { %982 = vmatprep.subr.bf16.mxu0 %v1101_v54 }
  0x31   :  { %1003 = vmatpush3.bf16.msra.mxu1 %v1100_v53 }
  0x32   :  { %1004 = vmatprep.subr.bf16.mxu1 %v1103_v56 }
  0x33   :  { %983 = vmatpush3.bf16.msra.mxu0 %v1102_v55 }
  0x34   :  { %984 = vmatprep.subr.bf16.mxu0 %v1105_v58 }
  0x35   :  { %1005 = vmatpush3.bf16.msra.mxu1 %v1104_v57 }
  0x36   :  { %1006 = vmatprep.subr.bf16.mxu1 %v1107_v60 }
  0x37   :  { %985 = vmatpush3.bf16.msra.mxu0 %v1106_v59 }
  0x38   :  { %986 = vmatprep.subr.bf16.mxu0 %v1109_v62 }
  0x39   :  { %1007 = vmatpush3.bf16.msra.mxu1 %v1108_v61 }
  0x3a   :  { %1008 = vmatprep.subr.bf16.mxu1 %v1111_v0 }
  0x3b   :  { %987 = vmatpush3.bf16.msra.mxu0 %v1110_v63 }
  0x3c   :  { %988 = vmatprep.subr.bf16.mxu0 %v1113_v2 }
  0x3d   :  { %1009 = vmatpush3.bf16.msra.mxu1 %v1112_v1 }
  0x3e   :  { %1010 = vmatprep.subr.bf16.mxu1 %v1115_v4 }
  0x3f   :  { %989 = vmatpush3.bf16.msra.mxu0 %v1114_v3 }
  0x40   :  { %1027 = vmatprep.subr.bf16.mxu0 %v1130_v9 }
  0x41   :  { %1011 = vmatpush3.bf16.msra.mxu1 %v1118_v8 }
  0x42   :  { %751 = vmatmul.mubr.bf16.vlgmr.msra.gmra.mxu0 %v853_v6 }
  0x43   :  { %1028 = vmatpush3.bf16.msra.mxu0 %v1121_v13  ;;  %1043 = vmatprep.mubr.msk.bf16.mxu0 %vm1131_vm0, %v1130_v9 }
  0x44   :  { %791 = vmatmul.mubr.bf16.vlgmr.msra.gmra.mxu1 %v855_v11  ;;  %1029 = vmatprep.subr.bf16.mxu0 %v1130_v9 }
  0x47   :  { %1030 = vmatpush3.bf16.msra.mxu0 %v1122_v14 }
  0x48   :  { %1031 = vmatprep.subr.bf16.mxu0 %v1130_v9 }
  0x4b   :  { %1032 = vmatpush3.bf16.msra.mxu0 %v1123_v15 }
  0x4c   :  { %1033 = vmatprep.subr.bf16.mxu0 %v1130_v9 }
  0x4f   :  { %1034 = vmatpush3.bf16.msra.mxu0 %v1124_v16 }
  0x50   :  { %1035 = vmatprep.subr.bf16.mxu0 %v1130_v9 }
  0x53   :  { %1036 = vmatpush3.bf16.msra.mxu0 %v1125_v17 }
  0x54   :  { %1037 = vmatprep.subr.bf16.mxu0 %v1130_v9 }
  0x57   :  { %1038 = vmatpush3.bf16.msra.mxu0 %v1126_v18 }
  0x58   :  { %1039 = vmatprep.subr.bf16.mxu0 %v1130_v9 }
  0x5b   :  { %1040 = vmatpush3.bf16.msra.mxu0 %v1127_v19 }
  0x5c   :  { %1041 = vmatprep.subr.bf16.mxu0 %v1130_v9 }
  0x5f   :  { %1042 = vmatpush3.bf16.msra.mxu0 %v1128_v20 }
  0x62   :  { %1044 = vmatmul.mubr.bf16.vlgmr.msra.gmra.mxu0 %v1129_v21 }
  0xe2   :  { %v946_v22 = vpop.f32.mrf.mxu0 }
  0xe4   :  { %v947_v23 = vpop.f32.mrf.mxu0  ;;  %v968_v24 = vpop.f32.mrf.mxu1 }
  0xe5   :  { %v948_v38 = vadd.f32 %v947_v23, %v946_v22 }
  0xe6   :  { %v949_v25 = vpop.f32.mrf.mxu0  ;;  %v969_v26 = vpop.f32.mrf.mxu1 }
  0xe7   :  { %v673_v40 = vadd.f32 %v948_v38, %v848_v39  ;;  %v970_v41 = vadd.f32 %v969_v26, %v968_v24 }
  0xe8   :  { %v950_v27 = vpop.f32.mrf.mxu0  ;;  %v971_v28 = vpop.f32.mrf.mxu1 }
  0xe9   :  { %v713_v43 = vadd.f32 %v970_v41, %v673_v40 }
  0xea   :  { %v972_v29 = vpop.f32.mrf.mxu1 }
 0x102   :  { %v990_v30 = vpop.f32.mrf.mxu0 }
 0x104   :  { %v991_v31 = vpop.f32.mrf.mxu0  ;;  %v1012_v32 = vpop.f32.mrf.mxu1 }
 0x105   :  { %v992_v42 = vadd.f32 %v991_v31, %v990_v30 }
 0x106   :  { %v993_v33 = vpop.f32.mrf.mxu0  ;;  %v1013_v34 = vpop.f32.mrf.mxu1 }
 0x107   :  { %v753_v44 = vadd.f32 %v992_v42, %v713_v43  ;;  %v1014_v45 = vadd.f32 %v1013_v34, %v1012_v32 }
 0x108   :  { %v994_v35 = vpop.f32.mrf.mxu0  ;;  %v1015_v36 = vpop.f32.mrf.mxu1 }
 0x109   :  { %v793_v47 = vadd.f32 %v1014_v45, %v753_v44 }
 0x10a   :  { %v1016_v37 = vpop.f32.mrf.mxu1 }
 0x122   :  { %v832_v49 = vpop.f32.mrf.mxu0 }
 0x123   :  { %v833_v50 = vadd.f32 %v832_v49, %v793_v47 }
 0x124   :  { %v1045_v51 = vpop.f32.mrf.mxu0 }
 0x125   :  { %v840_v52 = vadd.f32 %v839_v48, %v833_v50 }
 0x126   :  { %v835_v53 = vpop.f32.mrf.mxu0 }
 0x127   :  { %v841_v54 = vmax.f32 %v840_v52, 0.0 }
 0x128   :  { %v1046_v55 = vpop.f32.mrf.mxu0 }
 0x129   :  { %v842_v56 = vpack.c.bf16 %v841_v54, %v841_v54 }
 0x12b   :  { %843 = vst [vmem:[%s1401_s4] sm:$0xf] %v842_v56 }

// kernel: resnet34_forward.55
= control target key start
LH: loop header
LB: loop body
LE: loop exit
PB: predicated region body
PF: predicated region fallthrough
CT: control target
= control target key end

     0   :  { %s1220_s12 = smov 0   ;;  %s1222_s13 = smov 0   ;;  %s1473_s0 = inlined_call_operand.vmem [shape: bf16[8,512], index: 0, kind: input, shape index: {}]   ;;  %s1474_s1 = inlined_call_operand.vmem [shape: bf16[512,256], index: 1, kind: input, shape index: {}]   ;;  %s1475_s2 = inlined_call_operand.vmem [shape: f32[1,256], index: 2, kind: input, shape index: {}]   ;;  %s1476_s3 = inlined_call_operand.vmem [shape: bf16[8,256], index: 3, kind: output, shape index: {}]  }
   0x1   :  { %s1224_s14 = smov 0   ;;  %s1226_s15 = smov 0  }
   0x2   :  { %s1228_s16 = smov 0  }
   0x3 LB: > { %s22_s17 = sadd.s32 1, %s1194_s15  ;;  %p65_p1 = scmp.ne.s32.totalorder %s1186_s13, %s1182_s12  ;;  %s1198_s16 = sphi %s1228_s16, %s13_s16   ;;  %s1194_s15 = sphi %s1226_s15, %s1480_s15   ;;  %s1190_s14 = sphi %s1224_s14, %s1479_s14   ;;  %s1186_s13 = sphi %s1222_s13, %s1478_s13   ;;  %s1182_s12 = sphi %s1220_s12, %s1477_s12  }
   0x4   : > { %p23_p0 = scmp.ge.s32.totalorder %s22_s17, 2  ;;  %p66_p2 = scmp.eq.s32.totalorder %s1198_s16, 0 }
   0x5   : > { %s58_s19 = sadd.s32 1, %s1186_s13  ;;  %p995_p5 = scmp.ge.s32.totalorder %s1198_s16, 2 }
   0x6   : > { %s1482_s17 = smov (%p23_p0, %s22_s17), 0  ;;  %p67_p3 = por %p66_p2, %p65_p1 }
   0x7   : > { %s55_s18 = ssub.s32 %s1194_s15, %s1482_s17  ;;  %153 = sbr.rel (%p995_p5) target bundleno = 58 (0x3a), region = 20 }
   0x8   : > { %p56_p4 = scmp.eq.s32.totalorder %s55_s18, 0 }
   0xa   : > { %s1255_s20 = scalar_select %p56_p4, %s1186_s13, %s58_s19  }
   0xc   : > { %156 = sbr.rel (!%p67_p3) target bundleno = 58 (0x3a), region = 24  ;;  %s158_s21 = sand.u32 (%p67_p3), 1, %s1186_s13  }
   0xd   : > { %s997_s22 = sshll.u32 (%p67_p3), %s1194_s15, 2  ;;  %s996_s23 = sshll.u32 (%p67_p3), %s158_s21, 8 }
   0xe   : > { %s1263_s26 = scalar_lea.vmem (%p67_p3), %s1474_s1, %s997_s22  ;;  %s1267_s27 = scalar_lea.vmem (%p67_p3), [#allocation2], %s996_s23 }
   0xf   : > { %v179_v0 = vld [vmem:[%s1263_s26] sm:$0xf] (%p67_p3)  ;;  %v181_v1 = vld [vmem:[%s1263_s26 + $0x8] sm:$0xf] (%p67_p3)  ;;  %v183_v2 = vld [vmem:[%s1263_s26 + $0x10] sm:$0xf] (%p67_p3) }
  0x10   : > { %180 = vst [vmem:[%s1267_s27] sm:$0xf] (%p67_p3), %v179_v0  ;;  %182 = vst [vmem:[%s1267_s27 + $0x4] sm:$0xf] (%p67_p3), %v181_v1  ;;  %v185_v3 = vld [vmem:[%s1263_s26 + $0x18] sm:$0xf] (%p67_p3) }
  0x11   : > { %v187_v4 = vld [vmem:[%s1263_s26 + $0x20] sm:$0xf]  ;;  %184 = vst [vmem:[%s1267_s27 + $0x8] sm:$0xf] %v183_v2  ;;  %186 = vst [vmem:[%s1267_s27 + $0xc] sm:$0xf] %v185_v3 }
  0x12   : > { %188 = vst [vmem:[%s1267_s27 + $0x10] sm:$0xf] %v187_v4  ;;  %v189_v5 = vld [vmem:[%s1263_s26 + $0x28] sm:$0xf]  ;;  %v191_v6 = vld [vmem:[%s1263_s26 + $0x30] sm:$0xf] }
  0x13   : > { %v193_v7 = vld [vmem:[%s1263_s26 + $0x38] sm:$0xf]  ;;  %190 = vst [vmem:[%s1267_s27 + $0x14] sm:$0xf] %v189_v5  ;;  %192 = vst [vmem:[%s1267_s27 + $0x18] sm:$0xf] %v191_v6 }
  0x14   : > { %194 = vst [vmem:[%s1267_s27 + $0x1c] sm:$0xf] %v193_v7  ;;  %v195_v8 = vld [vmem:[%s1263_s26 + $0x40] sm:$0xf]  ;;  %v197_v9 = vld [vmem:[%s1263_s26 + $0x48] sm:$0xf] }
  0x15   : > { %v199_v10 = vld [vmem:[%s1263_s26 + $0x50] sm:$0xf]  ;;  %196 = vst [vmem:[%s1267_s27 + $0x20] sm:$0xf] %v195_v8  ;;  %198 = vst [vmem:[%s1267_s27 + $0x24] sm:$0xf] %v197_v9 }
  0x16   : > { %200 = vst [vmem:[%s1267_s27 + $0x28] sm:$0xf] %v199_v10  ;;  %v201_v11 = vld [vmem:[%s1263_s26 + $0x58] sm:$0xf]  ;;  %v203_v12 = vld [vmem:[%s1263_s26 + $0x60] sm:$0xf] }
  0x17   : > { %v205_v13 = vld [vmem:[%s1263_s26 + $0x68] sm:$0xf]  ;;  %202 = vst [vmem:[%s1267_s27 + $0x2c] sm:$0xf] %v201_v11  ;;  %204 = vst [vmem:[%s1267_s27 + $0x30] sm:$0xf] %v203_v12 }
  0x18   : > { %206 = vst [vmem:[%s1267_s27 + $0x34] sm:$0xf] %v205_v13  ;;  %v207_v14 = vld [vmem:[%s1263_s26 + $0x70] sm:$0xf]  ;;  %v209_v15 = vld [vmem:[%s1263_s26 + $0x78] sm:$0xf] }
  0x19   : > { %v211_v16 = vld [vmem:[%s1263_s26 + $0x80] sm:$0xf]  ;;  %208 = vst [vmem:[%s1267_s27 + $0x38] sm:$0xf] %v207_v14  ;;  %210 = vst [vmem:[%s1267_s27 + $0x3c] sm:$0xf] %v209_v15 }
  0x1a   : > { %212 = vst [vmem:[%s1267_s27 + $0x40] sm:$0xf] %v211_v16  ;;  %v213_v17 = vld [vmem:[%s1263_s26 + $0x88] sm:$0xf]  ;;  %v215_v18 = vld [vmem:[%s1263_s26 + $0x90] sm:$0xf] }
  0x1b   : > { %v217_v19 = vld [vmem:[%s1263_s26 + $0x98] sm:$0xf]  ;;  %214 = vst [vmem:[%s1267_s27 + $0x44] sm:$0xf] %v213_v17  ;;  %216 = vst [vmem:[%s1267_s27 + $0x48] sm:$0xf] %v215_v18 }
  0x1c   : > { %218 = vst [vmem:[%s1267_s27 + $0x4c] sm:$0xf] %v217_v19  ;;  %v219_v20 = vld [vmem:[%s1263_s26 + $0xa0] sm:$0xf]  ;;  %v221_v21 = vld [vmem:[%s1263_s26 + $0xa8] sm:$0xf] }
  0x1d   : > { %v223_v22 = vld [vmem:[%s1263_s26 + $0xb0] sm:$0xf]  ;;  %220 = vst [vmem:[%s1267_s27 + $0x50] sm:$0xf] %v219_v20  ;;  %222 = vst [vmem:[%s1267_s27 + $0x54] sm:$0xf] %v221_v21 }
  0x1e   : > { %224 = vst [vmem:[%s1267_s27 + $0x58] sm:$0xf] %v223_v22  ;;  %v225_v23 = vld [vmem:[%s1263_s26 + $0xb8] sm:$0xf]  ;;  %v227_v24 = vld [vmem:[%s1263_s26 + $0xc0] sm:$0xf] }
  0x1f   : > { %v229_v25 = vld [vmem:[%s1263_s26 + $0xc8] sm:$0xf]  ;;  %226 = vst [vmem:[%s1267_s27 + $0x5c] sm:$0xf] %v225_v23  ;;  %228 = vst [vmem:[%s1267_s27 + $0x60] sm:$0xf] %v227_v24 }
  0x20   : > { %230 = vst [vmem:[%s1267_s27 + $0x64] sm:$0xf] %v229_v25  ;;  %v231_v26 = vld [vmem:[%s1263_s26 + $0xd0] sm:$0xf]  ;;  %v233_v27 = vld [vmem:[%s1263_s26 + $0xd8] sm:$0xf] }
  0x21   : > { %v235_v28 = vld [vmem:[%s1263_s26 + $0xe0] sm:$0xf]  ;;  %232 = vst [vmem:[%s1267_s27 + $0x68] sm:$0xf] %v231_v26  ;;  %234 = vst [vmem:[%s1267_s27 + $0x6c] sm:$0xf] %v233_v27 }
  0x22   : > { %236 = vst [vmem:[%s1267_s27 + $0x70] sm:$0xf] %v235_v28  ;;  %v237_v29 = vld [vmem:[%s1263_s26 + $0xe8] sm:$0xf]  ;;  %v239_v30 = vld [vmem:[%s1263_s26 + $0xf0] sm:$0xf] }
  0x23   : > { %v241_v31 = vld [vmem:[%s1263_s26 + $0xf8] sm:$0xf]  ;;  %238 = vst [vmem:[%s1267_s27 + $0x74] sm:$0xf] %v237_v29  ;;  %240 = vst [vmem:[%s1267_s27 + $0x78] sm:$0xf] %v239_v30 }
  0x24   : > { %242 = vst [vmem:[%s1267_s27 + $0x7c] sm:$0xf] %v241_v31  ;;  %v243_v32 = vld [vmem:[%s1263_s26 + $0x100] sm:$0xf]  ;;  %v245_v33 = vld [vmem:[%s1263_s26 + $0x108] sm:$0xf] }
  0x25   : > { %v247_v34 = vld [vmem:[%s1263_s26 + $0x110] sm:$0xf]  ;;  %244 = vst [vmem:[%s1267_s27 + $0x80] sm:$0xf] %v243_v32  ;;  %246 = vst [vmem:[%s1267_s27 + $0x84] sm:$0xf] %v245_v33 }
  0x26   : > { %248 = vst [vmem:[%s1267_s27 + $0x88] sm:$0xf] %v247_v34  ;;  %v249_v35 = vld [vmem:[%s1263_s26 + $0x118] sm:$0xf]  ;;  %v251_v36 = vld [vmem:[%s1263_s26 + $0x120] sm:$0xf] }
  0x27   : > { %v253_v37 = vld [vmem:[%s1263_s26 + $0x128] sm:$0xf]  ;;  %250 = vst [vmem:[%s1267_s27 + $0x8c] sm:$0xf] %v249_v35  ;;  %252 = vst [vmem:[%s1267_s27 + $0x90] sm:$0xf] %v251_v36 }
  0x28   : > { %254 = vst [vmem:[%s1267_s27 + $0x94] sm:$0xf] %v253_v37  ;;  %v255_v38 = vld [vmem:[%s1263_s26 + $0x130] sm:$0xf]  ;;  %v257_v39 = vld [vmem:[%s1263_s26 + $0x138] sm:$0xf] }
  0x29   : > { %v259_v40 = vld [vmem:[%s1263_s26 + $0x140] sm:$0xf]  ;;  %256 = vst [vmem:[%s1267_s27 + $0x98] sm:$0xf] %v255_v38  ;;  %258 = vst [vmem:[%s1267_s27 + $0x9c] sm:$0xf] %v257_v39 }
  0x2a   : > { %260 = vst [vmem:[%s1267_s27 + $0xa0] sm:$0xf] %v259_v40  ;;  %v261_v41 = vld [vmem:[%s1263_s26 + $0x148] sm:$0xf]  ;;  %v263_v42 = vld [vmem:[%s1263_s26 + $0x150] sm:$0xf] }
  0x2b   : > { %v265_v43 = vld [vmem:[%s1263_s26 + $0x158] sm:$0xf]  ;;  %262 = vst [vmem:[%s1267_s27 + $0xa4] sm:$0xf] %v261_v41  ;;  %264 = vst [vmem:[%s1267_s27 + $0xa8] sm:$0xf] %v263_v42 }
  0x2c   : > { %266 = vst [vmem:[%s1267_s27 + $0xac] sm:$0xf] %v265_v43  ;;  %v267_v44 = vld [vmem:[%s1263_s26 + $0x160] sm:$0xf]  ;;  %v269_v45 = vld [vmem:[%s1263_s26 + $0x168] sm:$0xf] }
  0x2d   : > { %v271_v46 = vld [vmem:[%s1263_s26 + $0x170] sm:$0xf]  ;;  %268 = vst [vmem:[%s1267_s27 + $0xb0] sm:$0xf] %v267_v44  ;;  %270 = vst [vmem:[%s1267_s27 + $0xb4] sm:$0xf] %v269_v45 }
  0x2e   : > { %272 = vst [vmem:[%s1267_s27 + $0xb8] sm:$0xf] %v271_v46  ;;  %v273_v47 = vld [vmem:[%s1263_s26 + $0x178] sm:$0xf]  ;;  %v275_v48 = vld [vmem:[%s1263_s26 + $0x180] sm:$0xf] }
  0x2f   : > { %v277_v49 = vld [vmem:[%s1263_s26 + $0x188] sm:$0xf]  ;;  %274 = vst [vmem:[%s1267_s27 + $0xbc] sm:$0xf] %v273_v47  ;;  %276 = vst [vmem:[%s1267_s27 + $0xc0] sm:$0xf] %v275_v48 }
  0x30   : > { %278 = vst [vmem:[%s1267_s27 + $0xc4] sm:$0xf] %v277_v49  ;;  %v279_v50 = vld [vmem:[%s1263_s26 + $0x190] sm:$0xf]  ;;  %v281_v51 = vld [vmem:[%s1263_s26 + $0x198] sm:$0xf] }
  0x31   : > { %v283_v52 = vld [vmem:[%s1263_s26 + $0x1a0] sm:$0xf]  ;;  %280 = vst [vmem:[%s1267_s27 + $0xc8] sm:$0xf] %v279_v50  ;;  %282 = vst [vmem:[%s1267_s27 + $0xcc] sm:$0xf] %v281_v51 }
  0x32   : > { %284 = vst [vmem:[%s1267_s27 + $0xd0] sm:$0xf] %v283_v52  ;;  %v285_v53 = vld [vmem:[%s1263_s26 + $0x1a8] sm:$0xf]  ;;  %v287_v54 = vld [vmem:[%s1263_s26 + $0x1b0] sm:$0xf] }
  0x33   : > { %v289_v55 = vld [vmem:[%s1263_s26 + $0x1b8] sm:$0xf]  ;;  %286 = vst [vmem:[%s1267_s27 + $0xd4] sm:$0xf] %v285_v53  ;;  %288 = vst [vmem:[%s1267_s27 + $0xd8] sm:$0xf] %v287_v54 }
  0x34   : > { %290 = vst [vmem:[%s1267_s27 + $0xdc] sm:$0xf] %v289_v55  ;;  %v291_v56 = vld [vmem:[%s1263_s26 + $0x1c0] sm:$0xf]  ;;  %v293_v57 = vld [vmem:[%s1263_s26 + $0x1c8] sm:$0xf] }
  0x35   : > { %v295_v58 = vld [vmem:[%s1263_s26 + $0x1d0] sm:$0xf]  ;;  %292 = vst [vmem:[%s1267_s27 + $0xe0] sm:$0xf] %v291_v56  ;;  %294 = vst [vmem:[%s1267_s27 + $0xe4] sm:$0xf] %v293_v57 }
  0x36   : > { %296 = vst [vmem:[%s1267_s27 + $0xe8] sm:$0xf] %v295_v58  ;;  %v297_v59 = vld [vmem:[%s1263_s26 + $0x1d8] sm:$0xf]  ;;  %v299_v60 = vld [vmem:[%s1263_s26 + $0x1e0] sm:$0xf] }
  0x37   : > { %v301_v61 = vld [vmem:[%s1263_s26 + $0x1e8] sm:$0xf]  ;;  %298 = vst [vmem:[%s1267_s27 + $0xec] sm:$0xf] %v297_v59  ;;  %300 = vst [vmem:[%s1267_s27 + $0xf0] sm:$0xf] %v299_v60 }
  0x38   : > { %302 = vst [vmem:[%s1267_s27 + $0xf4] sm:$0xf] %v301_v61  ;;  %v303_v62 = vld [vmem:[%s1263_s26 + $0x1f0] sm:$0xf]  ;;  %v305_v63 = vld [vmem:[%s1263_s26 + $0x1f8] sm:$0xf] }
  0x39   : > { %304 = vst [vmem:[%s1267_s27 + $0xf8] sm:$0xf] %v303_v62  ;;  %306 = vst [vmem:[%s1267_s27 + $0xfc] sm:$0xf] %v305_v63 }
  0x3a PF: > { %p998_p6 = scmp.ge.s32.totalorder %s1198_s16, 1  ;;  %p463_p7 = scmp.lt.s32.totalorder %s1198_s16, 3 }
  0x3c   : > { %p464_p8 = pnand %p998_p6, %p463_p7 }
  0x3d   : > { %s470_s28 = sand.u32 (!%p464_p8), 1, %s1182_s12   ;;  %p509_p9 = scmp.lt.s32.totalorder (!%p464_p8), %s1190_s14, 1 }
  0x3e   : > { %467 = sbr.rel (%p464_p8) target bundleno = 308 (0x134), region = 69  ;;  %s999_s6 = sshll.u32 (!%p464_p8), %s470_s28, 8 }
  0x3f   : > { %s1412_s7 = scalar_lea.vmem (!%p464_p8), [#allocation2], %s999_s6 }
  0x43   : > { %v1401_v0 = vld [vmem:[%s1473_s0] sm:$0xff]  ;;  %v1406_v1 = vld [vmem:[%s1473_s0 + $0x8] sm:$0xff]  ;;  %v1124_v4 = vld [vmem:[%s1412_s7 + $0x78] sm:$0xff]   ;;  %s1484_s14 = smov (!%p509_p9, %s1190_s14), 1 }
  0x44   : > { %v1003_v2 = vcombine.high %v1401_v0, %v1401_v0  ;;  %v1005_v3 = vcombine.high %v1406_v1, %v1406_v1  ;;  %v1125_v5 = vld [vmem:[%s1412_s7 + $0xf8] sm:$0xff]   ;;  %1040 = vmatprep.subr.bf16.mxu0 %v1124_v4  ;;  %v1128_v8 = vld [vmem:[%s1412_s7 + $0x70] sm:$0xff]   ;;  %v1132_v12 = vld [vmem:[%s1412_s7 + $0x68] sm:$0xff]   ;;  %v1002_v36 = vcombine.low %v1401_v0, %v1401_v0  ;;  %v1004_v37 = vcombine.low %v1406_v1, %v1406_v1  ;;  %s511_s10 = scalar_lea.vmem %s1475_s2, %s1484_s14  ;;  %s1000_s11 = sshll.u32 %s1484_s14, 2 }
  0x45   : > { %v1126_v6 = vld [vmem:[%s1412_s7 + $0x38] sm:$0xff]   ;;  %1062 = vmatprep.subr.bf16.mxu1 %v1125_v5  ;;  %v1129_v9 = vld [vmem:[%s1412_s7 + $0xf0] sm:$0xff]   ;;  %v1133_v13 = vld [vmem:[%s1412_s7 + $0xe8] sm:$0xff]   ;;  %s519_s19 = scalar_lea.vmem %s1476_s3, %s1000_s11 }
  0x46   : > { %832 = vmatprep.mubr.bf16.mxu0 %v1003_v2  ;;  %872 = vmatprep.mubr.bf16.mxu1 %v1005_v3  ;;  %v1127_v7 = vld [vmem:[%s1412_s7 + $0xb8] sm:$0xff]   ;;  %v1130_v10 = vld [vmem:[%s1412_s7 + $0x30] sm:$0xff]   ;;  %v1134_v14 = vld [vmem:[%s1412_s7 + $0x28] sm:$0xff]  }
  0x47   : > { %1041 = vmatpush3.bf16.msra.mxu0 %v1126_v6  ;;  %1063 = vmatpush3.bf16.msra.mxu1 %v1127_v7  ;;  %v1131_v11 = vld [vmem:[%s1412_s7 + $0xb0] sm:$0xff]   ;;  %v1135_v15 = vld [vmem:[%s1412_s7 + $0xa8] sm:$0xff]   ;;  %v1136_v16 = vld [vmem:[%s1412_s7 + $0x60] sm:$0xff]  }
  0x48   : > { %1042 = vmatprep.subr.bf16.mxu0 %v1128_v8  ;;  %1064 = vmatprep.subr.bf16.mxu1 %v1129_v9  ;;  %v1137_v17 = vld [vmem:[%s1412_s7 + $0xe0] sm:$0xff]   ;;  %v1140_v20 = vld [vmem:[%s1412_s7 + $0x58] sm:$0xff]   ;;  %v1144_v24 = vld [vmem:[%s1412_s7 + $0x50] sm:$0xff]  }
  0x49   : > { %v1138_v18 = vld [vmem:[%s1412_s7 + $0x20] sm:$0xff]   ;;  %v1141_v21 = vld [vmem:[%s1412_s7 + $0xd8] sm:$0xff]   ;;  %v1145_v25 = vld [vmem:[%s1412_s7 + $0xd0] sm:$0xff]  }
  0x4a   : > { %v1139_v19 = vld [vmem:[%s1412_s7 + $0xa0] sm:$0xff]   ;;  %v1142_v22 = vld [vmem:[%s1412_s7 + $0x18] sm:$0xff]   ;;  %v1146_v26 = vld [vmem:[%s1412_s7 + $0x10] sm:$0xff]  }
  0x4b   : > { %1043 = vmatpush3.bf16.msra.mxu0 %v1130_v10  ;;  %1065 = vmatpush3.bf16.msra.mxu1 %v1131_v11  ;;  %v1143_v23 = vld [vmem:[%s1412_s7 + $0x98] sm:$0xff]   ;;  %v1147_v27 = vld [vmem:[%s1412_s7 + $0x90] sm:$0xff]   ;;  %v1148_v28 = vld [vmem:[%s1412_s7 + $0x48] sm:$0xff]  }
  0x4c   : > { %1044 = vmatprep.subr.bf16.mxu0 %v1132_v12  ;;  %1066 = vmatprep.subr.bf16.mxu1 %v1133_v13  ;;  %v1149_v29 = vld [vmem:[%s1412_s7 + $0xc8] sm:$0xff]   ;;  %v1152_v32 = vld [vmem:[%s1412_s7 + $0x40] sm:$0xff]  }
  0x4d   : > { %v1150_v30 = vld [vmem:[%s1412_s7 + $0x8] sm:$0xff]   ;;  %v1153_v33 = vld [vmem:[%s1412_s7 + $0xc0] sm:$0xff]  }
  0x4e   : > { %v1151_v31 = vld [vmem:[%s1412_s7 + $0x88] sm:$0xff]   ;;  %v1154_v34 = vld [vmem:[%s1412_s7] sm:$0xff]  }
  0x4f   : > { %1045 = vmatpush3.bf16.msra.mxu0 %v1134_v14  ;;  %1067 = vmatpush3.bf16.msra.mxu1 %v1135_v15  ;;  %v1155_v35 = vld [vmem:[%s1412_s7 + $0x80] sm:$0xff]  }
  0x50   : > { %1046 = vmatprep.subr.bf16.mxu0 %v1136_v16  ;;  %1068 = vmatprep.subr.bf16.mxu1 %v1137_v17  ;;  %v1001_v40 = vld [vmem:[%s511_s10] ss:$0 sm:$0xff] }
  0x53   : > { %1047 = vmatpush3.bf16.msra.mxu0 %v1138_v18  ;;  %1069 = vmatpush3.bf16.msra.mxu1 %v1139_v19 }
  0x54   : > { %1048 = vmatprep.subr.bf16.mxu0 %v1140_v20  ;;  %1070 = vmatprep.subr.bf16.mxu1 %v1141_v21 }
  0x57   : > { %1049 = vmatpush3.bf16.msra.mxu0 %v1142_v22  ;;  %1071 = vmatpush3.bf16.msra.mxu1 %v1143_v23 }
  0x58   : > { %1050 = vmatprep.subr.bf16.mxu0 %v1144_v24  ;;  %1072 = vmatprep.subr.bf16.mxu1 %v1145_v25 }
  0x5b   : > { %1051 = vmatpush3.bf16.msra.mxu0 %v1146_v26  ;;  %1073 = vmatpush3.bf16.msra.mxu1 %v1147_v27 }
  0x5c   : > { %1052 = vmatprep.subr.bf16.mxu0 %v1148_v28  ;;  %1074 = vmatprep.subr.bf16.mxu1 %v1149_v29 }
  0x5f   : > { %1053 = vmatpush3.bf16.msra.mxu0 %v1150_v30  ;;  %1075 = vmatpush3.bf16.msra.mxu1 %v1151_v31 }
  0x60   : > { %1054 = vmatprep.subr.bf16.mxu0 %v1152_v32  ;;  %1076 = vmatprep.subr.bf16.mxu1 %v1153_v33 }
  0x63   : > { %1055 = vmatpush3.bf16.msra.mxu0 %v1154_v34  ;;  %1077 = vmatpush3.bf16.msra.mxu1 %v1155_v35 }
  0x66   : > { %833 = vmatmul.mubr.bf16.vlgmr.msra.gmra.mxu0 %v1002_v36  ;;  %873 = vmatmul.mubr.bf16.vlgmr.msra.gmra.mxu1 %v1004_v37 }
 0x126   : > { %v1056_v38 = vpop.f32.mrf.mxu0  ;;  %v1078_v39 = vpop.f32.mrf.mxu1 }
 0x128   : > { %v1057_v41 = vpop.f32.mrf.mxu0  ;;  %v1079_v43 = vpop.f32.mrf.mxu1 }
 0x129   : > { %v1058_v42 = vadd.f32 %v1057_v41, %v1056_v38  ;;  %v1080_v46 = vadd.f32 %v1079_v43, %v1078_v39 }
 0x12a   : > { %v1059_v44 = vpop.f32.mrf.mxu0  ;;  %v1081_v47 = vpop.f32.mrf.mxu1 }
 0x12b   : > { %v835_v45 = vadd.f32 %v1058_v42, %v1001_v40 }
 0x12c   : > { %v1060_v48 = vpop.f32.mrf.mxu0  ;;  %v1082_v50 = vpop.f32.mrf.mxu1 }
 0x12d   : > { %v875_v49 = vadd.f32 %v1080_v46, %v835_v45 }
 0x12f   : > { %v880_v51 = vmax.f32 %v875_v49, 0.0 }
 0x131   : > { %v881_v52 = vpack.c.bf16 %v880_v51, %v880_v51 }
 0x133   : > { %882 = vst [vmem:[%s519_s19] sm:$0xf] %v881_v52 }
 0x134 PF: > { %s13_s16 = sadd.s32 1, %s1198_s16   ;;  %s1477_s12 = smov %s1186_s13 }
 0x135   : > { %p10_p10 = scmp.ge.s32.totalorder %s13_s16, 4   ;;  %s1478_s13 = smov %s1255_s20 }
 0x136   : > { %s1479_s14 = smov %s1194_s15  ;;  %s1480_s15 = smov %s1482_s17 }
 0x137   :  { %12 = sbr.rel (!%p10_p10) target bundleno = 3 (0x3), region = 114 }

// kernel: resnet34_forward.57
= control target key start
LH: loop header
LB: loop body
LE: loop exit
PB: predicated region body
PF: predicated region fallthrough
CT: control target
= control target key end

     0   :  { %s943_s15 = smov 0   ;;  %s945_s16 = smov 0   ;;  %s1104_s0 = inlined_call_operand.vmem [shape: bf16[8,256], index: 0, kind: input, shape index: {}]   ;;  %s1105_s1 = inlined_call_operand.vmem [shape: bf16[256,256], index: 1, kind: input, shape index: {}]   ;;  %s1106_s2 = inlined_call_operand.vmem [shape: f32[1,256], index: 2, kind: input, shape index: {}]   ;;  %s1107_s3 = inlined_call_operand.vmem [shape: bf16[8,256], index: 3, kind: input, shape index: {}]   ;;  %s1108_s4 = inlined_call_operand.vmem [shape: bf16[8,256], index: 4, kind: output, shape index: {}]  }
   0x1   :  { %s947_s17 = smov 0   ;;  %s949_s18 = smov 0  }
   0x2   :  { %s951_s19 = smov 0  }
   0x3 LB: > { %s23_s20 = sadd.s32 1, %s912_s18  ;;  %p66_p1 = scmp.ne.s32.totalorder %s904_s16, %s900_s15  ;;  %s916_s19 = sphi %s951_s19, %s14_s19   ;;  %s912_s18 = sphi %s949_s18, %s1112_s18   ;;  %s908_s17 = sphi %s947_s17, %s1111_s17   ;;  %s904_s16 = sphi %s945_s16, %s1110_s16   ;;  %s900_s15 = sphi %s943_s15, %s1109_s15  }
   0x4   : > { %p24_p0 = scmp.ge.s32.totalorder %s23_s20, 2  ;;  %p67_p2 = scmp.eq.s32.totalorder %s916_s19, 0 }
   0x5   : > { %s59_s22 = sadd.s32 1, %s904_s16  ;;  %p770_p5 = scmp.ge.s32.totalorder %s916_s19, 2 }
   0x6   : > { %s1114_s20 = smov (%p24_p0, %s23_s20), 0  ;;  %p68_p3 = por %p67_p2, %p66_p1 }
   0x7   : > { %s56_s21 = ssub.s32 %s912_s18, %s1114_s20  ;;  %182 = sbr.rel (%p770_p5) target bundleno = 37 (0x25), region = 20 }
   0x8   : > { %p57_p4 = scmp.eq.s32.totalorder %s56_s21, 0 }
   0xa   : > { %s978_s23 = scalar_select %p57_p4, %s904_s16, %s59_s22  }
   0xc   : > { %185 = sbr.rel (!%p68_p3) target bundleno = 37 (0x25), region = 24  ;;  %s187_s24 = sand.u32 (%p68_p3), 1, %s904_s16  }
   0xd   : > { %s772_s25 = sshll.u32 (%p68_p3), %s912_s18, 2  ;;  %s771_s26 = sshll.u32 (%p68_p3), %s187_s24, 7 }
   0xe   : > { %s986_s29 = scalar_lea.vmem (%p68_p3), %s1105_s1, %s772_s25  ;;  %s990_s30 = scalar_lea.vmem (%p68_p3), [#allocation2], %s771_s26 }
   0xf   : > { %v208_v0 = vld [vmem:[%s986_s29] sm:$0xf] (%p68_p3)  ;;  %v210_v1 = vld [vmem:[%s986_s29 + $0x8] sm:$0xf] (%p68_p3)  ;;  %v212_v2 = vld [vmem:[%s986_s29 + $0x10] sm:$0xf] (%p68_p3) }
  0x10   : > { %209 = vst [vmem:[%s990_s30] sm:$0xf] (%p68_p3), %v208_v0  ;;  %211 = vst [vmem:[%s990_s30 + $0x4] sm:$0xf] (%p68_p3), %v210_v1  ;;  %v214_v3 = vld [vmem:[%s986_s29 + $0x18] sm:$0xf] (%p68_p3) }
  0x11   : > { %v216_v4 = vld [vmem:[%s986_s29 + $0x20] sm:$0xf]  ;;  %213 = vst [vmem:[%s990_s30 + $0x8] sm:$0xf] %v212_v2  ;;  %215 = vst [vmem:[%s990_s30 + $0xc] sm:$0xf] %v214_v3 }
  0x12   : > { %217 = vst [vmem:[%s990_s30 + $0x10] sm:$0xf] %v216_v4  ;;  %v218_v5 = vld [vmem:[%s986_s29 + $0x28] sm:$0xf]  ;;  %v220_v6 = vld [vmem:[%s986_s29 + $0x30] sm:$0xf] }
  0x13   : > { %v222_v7 = vld [vmem:[%s986_s29 + $0x38] sm:$0xf]  ;;  %219 = vst [vmem:[%s990_s30 + $0x14] sm:$0xf] %v218_v5  ;;  %221 = vst [vmem:[%s990_s30 + $0x18] sm:$0xf] %v220_v6 }
  0x14   : > { %223 = vst [vmem:[%s990_s30 + $0x1c] sm:$0xf] %v222_v7  ;;  %v224_v8 = vld [vmem:[%s986_s29 + $0x40] sm:$0xf]  ;;  %v226_v9 = vld [vmem:[%s986_s29 + $0x48] sm:$0xf] }
  0x15   : > { %v228_v10 = vld [vmem:[%s986_s29 + $0x50] sm:$0xf]  ;;  %225 = vst [vmem:[%s990_s30 + $0x20] sm:$0xf] %v224_v8  ;;  %227 = vst [vmem:[%s990_s30 + $0x24] sm:$0xf] %v226_v9 }
  0x16   : > { %229 = vst [vmem:[%s990_s30 + $0x28] sm:$0xf] %v228_v10  ;;  %v230_v11 = vld [vmem:[%s986_s29 + $0x58] sm:$0xf]  ;;  %v232_v12 = vld [vmem:[%s986_s29 + $0x60] sm:$0xf] }
  0x17   : > { %v234_v13 = vld [vmem:[%s986_s29 + $0x68] sm:$0xf]  ;;  %231 = vst [vmem:[%s990_s30 + $0x2c] sm:$0xf] %v230_v11  ;;  %233 = vst [vmem:[%s990_s30 + $0x30] sm:$0xf] %v232_v12 }
  0x18   : > { %235 = vst [vmem:[%s990_s30 + $0x34] sm:$0xf] %v234_v13  ;;  %v236_v14 = vld [vmem:[%s986_s29 + $0x70] sm:$0xf]  ;;  %v238_v15 = vld [vmem:[%s986_s29 + $0x78] sm:$0xf] }
  0x19   : > { %v240_v16 = vld [vmem:[%s986_s29 + $0x80] sm:$0xf]  ;;  %237 = vst [vmem:[%s990_s30 + $0x38] sm:$0xf] %v236_v14  ;;  %239 = vst [vmem:[%s990_s30 + $0x3c] sm:$0xf] %v238_v15 }
  0x1a   : > { %241 = vst [vmem:[%s990_s30 + $0x40] sm:$0xf] %v240_v16  ;;  %v242_v17 = vld [vmem:[%s986_s29 + $0x88] sm:$0xf]  ;;  %v244_v18 = vld [vmem:[%s986_s29 + $0x90] sm:$0xf] }
  0x1b   : > { %v246_v19 = vld [vmem:[%s986_s29 + $0x98] sm:$0xf]  ;;  %243 = vst [vmem:[%s990_s30 + $0x44] sm:$0xf] %v242_v17  ;;  %245 = vst [vmem:[%s990_s30 + $0x48] sm:$0xf] %v244_v18 }
  0x1c   : > { %247 = vst [vmem:[%s990_s30 + $0x4c] sm:$0xf] %v246_v19  ;;  %v248_v20 = vld [vmem:[%s986_s29 + $0xa0] sm:$0xf]  ;;  %v250_v21 = vld [vmem:[%s986_s29 + $0xa8] sm:$0xf] }
  0x1d   : > { %v252_v22 = vld [vmem:[%s986_s29 + $0xb0] sm:$0xf]  ;;  %249 = vst [vmem:[%s990_s30 + $0x50] sm:$0xf] %v248_v20  ;;  %251 = vst [vmem:[%s990_s30 + $0x54] sm:$0xf] %v250_v21 }
  0x1e   : > { %253 = vst [vmem:[%s990_s30 + $0x58] sm:$0xf] %v252_v22  ;;  %v254_v23 = vld [vmem:[%s986_s29 + $0xb8] sm:$0xf]  ;;  %v256_v24 = vld [vmem:[%s986_s29 + $0xc0] sm:$0xf] }
  0x1f   : > { %v258_v25 = vld [vmem:[%s986_s29 + $0xc8] sm:$0xf]  ;;  %255 = vst [vmem:[%s990_s30 + $0x5c] sm:$0xf] %v254_v23  ;;  %257 = vst [vmem:[%s990_s30 + $0x60] sm:$0xf] %v256_v24 }
  0x20   : > { %259 = vst [vmem:[%s990_s30 + $0x64] sm:$0xf] %v258_v25  ;;  %v260_v26 = vld [vmem:[%s986_s29 + $0xd0] sm:$0xf]  ;;  %v262_v27 = vld [vmem:[%s986_s29 + $0xd8] sm:$0xf] }
  0x21   : > { %v264_v28 = vld [vmem:[%s986_s29 + $0xe0] sm:$0xf]  ;;  %261 = vst [vmem:[%s990_s30 + $0x68] sm:$0xf] %v260_v26  ;;  %263 = vst [vmem:[%s990_s30 + $0x6c] sm:$0xf] %v262_v27 }
  0x22   : > { %265 = vst [vmem:[%s990_s30 + $0x70] sm:$0xf] %v264_v28  ;;  %v266_v29 = vld [vmem:[%s986_s29 + $0xe8] sm:$0xf]  ;;  %v268_v30 = vld [vmem:[%s986_s29 + $0xf0] sm:$0xf] }
  0x23   : > { %v270_v31 = vld [vmem:[%s986_s29 + $0xf8] sm:$0xf]  ;;  %267 = vst [vmem:[%s990_s30 + $0x74] sm:$0xf] %v266_v29  ;;  %269 = vst [vmem:[%s990_s30 + $0x78] sm:$0xf] %v268_v30 }
  0x24   : > { %271 = vst [vmem:[%s990_s30 + $0x7c] sm:$0xf] %v270_v31 }
  0x25 PF: > { %p773_p6 = scmp.ge.s32.totalorder %s916_s19, 1  ;;  %p375_p7 = scmp.lt.s32.totalorder %s916_s19, 3 }
  0x27   : > { %p376_p8 = pnand %p773_p6, %p375_p7 }
  0x28   : > { %s382_s5 = sand.u32 (!%p376_p8), 1, %s900_s15   ;;  %p431_p9 = scmp.lt.s32.totalorder (!%p376_p8), %s908_s17, 1 }
  0x29   : > { %379 = sbr.rel (%p376_p8) target bundleno = 285 (0x11d), region = 73  ;;  %s774_s8 = sshll.u32 (!%p376_p8), %s382_s5, 7 }
  0x2a   : > { %s1060_s9 = scalar_lea.vmem (!%p376_p8), [#allocation2], %s774_s8 }
  0x2e   : > { %v451_v32 = vld [vmem:[%s1104_s0] sm:$0xff]  ;;  %v860_v34 = vld [vmem:[%s1060_s9 + $0x78] sm:$0xff]   ;;  %v862_v36 = vld [vmem:[%s1060_s9 + $0x70] sm:$0xff]   ;;  %s1116_s17 = smov (!%p431_p9, %s908_s17), 1 }
  0x2f   : > { %v779_v33 = vcombine.high %v451_v32, %v451_v32  ;;  %v861_v35 = vld [vmem:[%s1060_s9 + $0x38] sm:$0xff]   ;;  %798 = vmatprep.subr.bf16.mxu0 %v860_v34  ;;  %v863_v37 = vld [vmem:[%s1060_s9 + $0x30] sm:$0xff]   ;;  %v864_v38 = vld [vmem:[%s1060_s9 + $0x68] sm:$0xff]   ;;  %v778_v50 = vcombine.low %v451_v32, %v451_v32  ;;  %s775_s10 = sshll.u32 %s1116_s17, 2  ;;  %s433_s21 = scalar_lea.vmem %s1106_s2, %s1116_s17 }
  0x30   : > { %799 = vmatpush3.bf16.msra.mxu0 %v861_v35  ;;  %v865_v39 = vld [vmem:[%s1060_s9 + $0x28] sm:$0xff]   ;;  %v866_v40 = vld [vmem:[%s1060_s9 + $0x60] sm:$0xff]   ;;  %v868_v42 = vld [vmem:[%s1060_s9 + $0x58] sm:$0xff]   ;;  %s441_s13 = scalar_lea.vmem %s1107_s3, %s775_s10  ;;  %s449_s25 = scalar_lea.vmem %s1108_s4, %s775_s10 }
  0x31   : > { %626 = vmatprep.mubr.bf16.mxu0 %v779_v33  ;;  %800 = vmatprep.subr.bf16.mxu0 %v862_v36  ;;  %v867_v41 = vld [vmem:[%s1060_s9 + $0x20] sm:$0xff]   ;;  %v869_v43 = vld [vmem:[%s1060_s9 + $0x18] sm:$0xff]   ;;  %v870_v44 = vld [vmem:[%s1060_s9 + $0x50] sm:$0xff]  }
  0x32   : > { %v871_v45 = vld [vmem:[%s1060_s9 + $0x10] sm:$0xff]   ;;  %v872_v46 = vld [vmem:[%s1060_s9 + $0x48] sm:$0xff]   ;;  %v874_v48 = vld [vmem:[%s1060_s9 + $0x40] sm:$0xff]  }
  0x33   : > { %v873_v47 = vld [vmem:[%s1060_s9 + $0x8] sm:$0xff]   ;;  %v875_v49 = vld [vmem:[%s1060_s9] sm:$0xff]  }
  0x34   : > { %801 = vmatpush3.bf16.msra.mxu0 %v863_v37  ;;  %v634_v52 = vld [vmem:[%s441_s13] sm:$0xf] }
  0x35   : > { %802 = vmatprep.subr.bf16.mxu0 %v864_v38  ;;  %v777_v53 = vld [vmem:[%s433_s21] ss:$0 sm:$0xff]  ;;  %v635_v56 = vunpack.c.l.bf16 %v634_v52 }
  0x38   : > { %803 = vmatpush3.bf16.msra.mxu0 %v865_v39 }
  0x39   : > { %804 = vmatprep.subr.bf16.mxu0 %v866_v40 }
  0x3c   : > { %805 = vmatpush3.bf16.msra.mxu0 %v867_v41 }
  0x3d   : > { %806 = vmatprep.subr.bf16.mxu0 %v868_v42 }
  0x40   : > { %807 = vmatpush3.bf16.msra.mxu0 %v869_v43 }
  0x41   : > { %808 = vmatprep.subr.bf16.mxu0 %v870_v44 }
  0x44   : > { %809 = vmatpush3.bf16.msra.mxu0 %v871_v45 }
  0x45   : > { %810 = vmatprep.subr.bf16.mxu0 %v872_v46 }
  0x48   : > { %811 = vmatpush3.bf16.msra.mxu0 %v873_v47 }
  0x49   : > { %812 = vmatprep.subr.bf16.mxu0 %v874_v48 }
  0x4c   : > { %813 = vmatpush3.bf16.msra.mxu0 %v875_v49 }
  0x4f   : > { %627 = vmatmul.mubr.bf16.vlgmr.msra.gmra.mxu0 %v778_v50 }
 0x10f   : > { %v814_v51 = vpop.f32.mrf.mxu0 }
 0x111   : > { %v815_v54 = vpop.f32.mrf.mxu0 }
 0x112   : > { %v816_v55 = vadd.f32 %v815_v54, %v814_v51 }
 0x113   : > { %v817_v57 = vpop.f32.mrf.mxu0 }
 0x114   : > { %v629_v58 = vadd.f32 %v816_v55, %v777_v53 }
 0x115   : > { %v818_v59 = vpop.f32.mrf.mxu0 }
 0x116   : > { %v636_v60 = vadd.f32 %v635_v56, %v629_v58 }
 0x118   : > { %v637_v61 = vmax.f32 %v636_v60, 0.0 }
 0x11a   : > { %v638_v62 = vpack.c.bf16 %v637_v61, %v637_v61 }
 0x11c   : > { %639 = vst [vmem:[%s449_s25] sm:$0xf] %v638_v62 }
 0x11d PF: > { %s14_s19 = sadd.s32 1, %s916_s19   ;;  %s1109_s15 = smov %s904_s16 }
 0x11e   : > { %p11_p10 = scmp.ge.s32.totalorder %s14_s19, 4   ;;  %s1110_s16 = smov %s978_s23 }
 0x11f   : > { %s1111_s17 = smov %s912_s18  ;;  %s1112_s18 = smov %s1114_s20 }
 0x120   :  { %13 = sbr.rel (!%p11_p10) target bundleno = 3 (0x3), region = 121 }

// kernel: resnet34_forward.58
= control target key start
LH: loop header
LB: loop body
LE: loop exit
PB: predicated region body
PF: predicated region fallthrough
CT: control target
= control target key end

     0   :  { %s858_s12 = smov 0   ;;  %s860_s13 = smov 0   ;;  %s1016_s0 = inlined_call_operand.vmem [shape: bf16[8,256], index: 0, kind: input, shape index: {}]   ;;  %s1017_s1 = inlined_call_operand.vmem [shape: bf16[256,256], index: 1, kind: input, shape index: {}]   ;;  %s1018_s2 = inlined_call_operand.vmem [shape: f32[1,256], index: 2, kind: input, shape index: {}]   ;;  %s1019_s3 = inlined_call_operand.vmem [shape: bf16[8,256], index: 3, kind: output, shape index: {}]  }
   0x1   :  { %s862_s14 = smov 0   ;;  %s864_s15 = smov 0  }
   0x2   :  { %s866_s16 = smov 0  }
   0x3 LB: > { %s22_s17 = sadd.s32 1, %s832_s15  ;;  %p65_p1 = scmp.ne.s32.totalorder %s824_s13, %s820_s12  ;;  %s836_s16 = sphi %s866_s16, %s13_s16   ;;  %s832_s15 = sphi %s864_s15, %s1023_s15   ;;  %s828_s14 = sphi %s862_s14, %s1022_s14   ;;  %s824_s13 = sphi %s860_s13, %s1021_s13   ;;  %s820_s12 = sphi %s858_s12, %s1020_s12  }
   0x4   : > { %p23_p0 = scmp.ge.s32.totalorder %s22_s17, 2  ;;  %p66_p2 = scmp.eq.s32.totalorder %s836_s16, 0 }
   0x5   : > { %s58_s19 = sadd.s32 1, %s824_s13  ;;  %p691_p5 = scmp.ge.s32.totalorder %s836_s16, 2 }
   0x6   : > { %s1025_s17 = smov (%p23_p0, %s22_s17), 0  ;;  %p67_p3 = por %p66_p2, %p65_p1 }
   0x7   : > { %s55_s18 = ssub.s32 %s832_s15, %s1025_s17  ;;  %153 = sbr.rel (%p691_p5) target bundleno = 37 (0x25), region = 20 }
   0x8   : > { %p56_p4 = scmp.eq.s32.totalorder %s55_s18, 0 }
   0xa   : > { %s893_s20 = scalar_select %p56_p4, %s824_s13, %s58_s19  }
   0xc   : > { %156 = sbr.rel (!%p67_p3) target bundleno = 37 (0x25), region = 24  ;;  %s158_s21 = sand.u32 (%p67_p3), 1, %s824_s13  }
   0xd   : > { %s693_s22 = sshll.u32 (%p67_p3), %s832_s15, 2  ;;  %s692_s23 = sshll.u32 (%p67_p3), %s158_s21, 7 }
   0xe   : > { %s901_s26 = scalar_lea.vmem (%p67_p3), %s1017_s1, %s693_s22  ;;  %s905_s27 = scalar_lea.vmem (%p67_p3), [#allocation2], %s692_s23 }
   0xf   : > { %v179_v0 = vld [vmem:[%s901_s26] sm:$0xf] (%p67_p3)  ;;  %v181_v1 = vld [vmem:[%s901_s26 + $0x8] sm:$0xf] (%p67_p3)  ;;  %v183_v2 = vld [vmem:[%s901_s26 + $0x10] sm:$0xf] (%p67_p3) }
  0x10   : > { %180 = vst [vmem:[%s905_s27] sm:$0xf] (%p67_p3), %v179_v0  ;;  %182 = vst [vmem:[%s905_s27 + $0x4] sm:$0xf] (%p67_p3), %v181_v1  ;;  %v185_v3 = vld [vmem:[%s901_s26 + $0x18] sm:$0xf] (%p67_p3) }
  0x11   : > { %v187_v4 = vld [vmem:[%s901_s26 + $0x20] sm:$0xf]  ;;  %184 = vst [vmem:[%s905_s27 + $0x8] sm:$0xf] %v183_v2  ;;  %186 = vst [vmem:[%s905_s27 + $0xc] sm:$0xf] %v185_v3 }
  0x12   : > { %188 = vst [vmem:[%s905_s27 + $0x10] sm:$0xf] %v187_v4  ;;  %v189_v5 = vld [vmem:[%s901_s26 + $0x28] sm:$0xf]  ;;  %v191_v6 = vld [vmem:[%s901_s26 + $0x30] sm:$0xf] }
  0x13   : > { %v193_v7 = vld [vmem:[%s901_s26 + $0x38] sm:$0xf]  ;;  %190 = vst [vmem:[%s905_s27 + $0x14] sm:$0xf] %v189_v5  ;;  %192 = vst [vmem:[%s905_s27 + $0x18] sm:$0xf] %v191_v6 }
  0x14   : > { %194 = vst [vmem:[%s905_s27 + $0x1c] sm:$0xf] %v193_v7  ;;  %v195_v8 = vld [vmem:[%s901_s26 + $0x40] sm:$0xf]  ;;  %v197_v9 = vld [vmem:[%s901_s26 + $0x48] sm:$0xf] }
  0x15   : > { %v199_v10 = vld [vmem:[%s901_s26 + $0x50] sm:$0xf]  ;;  %196 = vst [vmem:[%s905_s27 + $0x20] sm:$0xf] %v195_v8  ;;  %198 = vst [vmem:[%s905_s27 + $0x24] sm:$0xf] %v197_v9 }
  0x16   : > { %200 = vst [vmem:[%s905_s27 + $0x28] sm:$0xf] %v199_v10  ;;  %v201_v11 = vld [vmem:[%s901_s26 + $0x58] sm:$0xf]  ;;  %v203_v12 = vld [vmem:[%s901_s26 + $0x60] sm:$0xf] }
  0x17   : > { %v205_v13 = vld [vmem:[%s901_s26 + $0x68] sm:$0xf]  ;;  %202 = vst [vmem:[%s905_s27 + $0x2c] sm:$0xf] %v201_v11  ;;  %204 = vst [vmem:[%s905_s27 + $0x30] sm:$0xf] %v203_v12 }
  0x18   : > { %206 = vst [vmem:[%s905_s27 + $0x34] sm:$0xf] %v205_v13  ;;  %v207_v14 = vld [vmem:[%s901_s26 + $0x70] sm:$0xf]  ;;  %v209_v15 = vld [vmem:[%s901_s26 + $0x78] sm:$0xf] }
  0x19   : > { %v211_v16 = vld [vmem:[%s901_s26 + $0x80] sm:$0xf]  ;;  %208 = vst [vmem:[%s905_s27 + $0x38] sm:$0xf] %v207_v14  ;;  %210 = vst [vmem:[%s905_s27 + $0x3c] sm:$0xf] %v209_v15 }
  0x1a   : > { %212 = vst [vmem:[%s905_s27 + $0x40] sm:$0xf] %v211_v16  ;;  %v213_v17 = vld [vmem:[%s901_s26 + $0x88] sm:$0xf]  ;;  %v215_v18 = vld [vmem:[%s901_s26 + $0x90] sm:$0xf] }
  0x1b   : > { %v217_v19 = vld [vmem:[%s901_s26 + $0x98] sm:$0xf]  ;;  %214 = vst [vmem:[%s905_s27 + $0x44] sm:$0xf] %v213_v17  ;;  %216 = vst [vmem:[%s905_s27 + $0x48] sm:$0xf] %v215_v18 }
  0x1c   : > { %218 = vst [vmem:[%s905_s27 + $0x4c] sm:$0xf] %v217_v19  ;;  %v219_v20 = vld [vmem:[%s901_s26 + $0xa0] sm:$0xf]  ;;  %v221_v21 = vld [vmem:[%s901_s26 + $0xa8] sm:$0xf] }
  0x1d   : > { %v223_v22 = vld [vmem:[%s901_s26 + $0xb0] sm:$0xf]  ;;  %220 = vst [vmem:[%s905_s27 + $0x50] sm:$0xf] %v219_v20  ;;  %222 = vst [vmem:[%s905_s27 + $0x54] sm:$0xf] %v221_v21 }
  0x1e   : > { %224 = vst [vmem:[%s905_s27 + $0x58] sm:$0xf] %v223_v22  ;;  %v225_v23 = vld [vmem:[%s901_s26 + $0xb8] sm:$0xf]  ;;  %v227_v24 = vld [vmem:[%s901_s26 + $0xc0] sm:$0xf] }
  0x1f   : > { %v229_v25 = vld [vmem:[%s901_s26 + $0xc8] sm:$0xf]  ;;  %226 = vst [vmem:[%s905_s27 + $0x5c] sm:$0xf] %v225_v23  ;;  %228 = vst [vmem:[%s905_s27 + $0x60] sm:$0xf] %v227_v24 }
  0x20   : > { %230 = vst [vmem:[%s905_s27 + $0x64] sm:$0xf] %v229_v25  ;;  %v231_v26 = vld [vmem:[%s901_s26 + $0xd0] sm:$0xf]  ;;  %v233_v27 = vld [vmem:[%s901_s26 + $0xd8] sm:$0xf] }
  0x21   : > { %v235_v28 = vld [vmem:[%s901_s26 + $0xe0] sm:$0xf]  ;;  %232 = vst [vmem:[%s905_s27 + $0x68] sm:$0xf] %v231_v26  ;;  %234 = vst [vmem:[%s905_s27 + $0x6c] sm:$0xf] %v233_v27 }
  0x22   : > { %236 = vst [vmem:[%s905_s27 + $0x70] sm:$0xf] %v235_v28  ;;  %v237_v29 = vld [vmem:[%s901_s26 + $0xe8] sm:$0xf]  ;;  %v239_v30 = vld [vmem:[%s901_s26 + $0xf0] sm:$0xf] }
  0x23   : > { %v241_v31 = vld [vmem:[%s901_s26 + $0xf8] sm:$0xf]  ;;  %238 = vst [vmem:[%s905_s27 + $0x74] sm:$0xf] %v237_v29  ;;  %240 = vst [vmem:[%s905_s27 + $0x78] sm:$0xf] %v239_v30 }
  0x24   : > { %242 = vst [vmem:[%s905_s27 + $0x7c] sm:$0xf] %v241_v31 }
  0x25 PF: > { %p694_p6 = scmp.ge.s32.totalorder %s836_s16, 1  ;;  %p335_p7 = scmp.lt.s32.totalorder %s836_s16, 3 }
  0x27   : > { %p336_p8 = pnand %p694_p6, %p335_p7 }
  0x28   : > { %s342_s28 = sand.u32 (!%p336_p8), 1, %s820_s12   ;;  %p381_p9 = scmp.lt.s32.totalorder (!%p336_p8), %s828_s14, 1 }
  0x29   : > { %339 = sbr.rel (%p336_p8) target bundleno = 283 (0x11b), region = 69  ;;  %s695_s4 = sshll.u32 (!%p336_p8), %s342_s28, 7 }
  0x2a   : > { %s975_s5 = scalar_lea.vmem (!%p336_p8), [#allocation2], %s695_s4 }
  0x2e   : > { %v393_v32 = vld [vmem:[%s1016_s0] sm:$0xff]  ;;  %v780_v34 = vld [vmem:[%s975_s5 + $0x78] sm:$0xff]   ;;  %v782_v36 = vld [vmem:[%s975_s5 + $0x70] sm:$0xff]   ;;  %s1027_s14 = smov (!%p381_p9, %s828_s14), 1 }
  0x2f   : > { %v699_v33 = vcombine.high %v393_v32, %v393_v32  ;;  %v781_v35 = vld [vmem:[%s975_s5 + $0x38] sm:$0xff]   ;;  %718 = vmatprep.subr.bf16.mxu0 %v780_v34  ;;  %v783_v37 = vld [vmem:[%s975_s5 + $0x30] sm:$0xff]   ;;  %v784_v38 = vld [vmem:[%s975_s5 + $0x68] sm:$0xff]   ;;  %v698_v50 = vcombine.low %v393_v32, %v393_v32  ;;  %s383_s8 = scalar_lea.vmem %s1018_s2, %s1027_s14  ;;  %s696_s9 = sshll.u32 %s1027_s14, 2 }
  0x30   : > { %719 = vmatpush3.bf16.msra.mxu0 %v781_v35  ;;  %v785_v39 = vld [vmem:[%s975_s5 + $0x28] sm:$0xff]   ;;  %v786_v40 = vld [vmem:[%s975_s5 + $0x60] sm:$0xff]   ;;  %v788_v42 = vld [vmem:[%s975_s5 + $0x58] sm:$0xff]   ;;  %s391_s12 = scalar_lea.vmem %s1019_s3, %s696_s9 }
  0x31   : > { %568 = vmatprep.mubr.bf16.mxu0 %v699_v33  ;;  %720 = vmatprep.subr.bf16.mxu0 %v782_v36  ;;  %v787_v41 = vld [vmem:[%s975_s5 + $0x20] sm:$0xff]   ;;  %v789_v43 = vld [vmem:[%s975_s5 + $0x18] sm:$0xff]   ;;  %v790_v44 = vld [vmem:[%s975_s5 + $0x50] sm:$0xff]  }
  0x32   : > { %v791_v45 = vld [vmem:[%s975_s5 + $0x10] sm:$0xff]   ;;  %v792_v46 = vld [vmem:[%s975_s5 + $0x48] sm:$0xff]   ;;  %v794_v48 = vld [vmem:[%s975_s5 + $0x40] sm:$0xff]  }
  0x33   : > { %v793_v47 = vld [vmem:[%s975_s5 + $0x8] sm:$0xff]   ;;  %v795_v49 = vld [vmem:[%s975_s5] sm:$0xff]  }
  0x34   : > { %721 = vmatpush3.bf16.msra.mxu0 %v783_v37  ;;  %v697_v52 = vld [vmem:[%s383_s8] ss:$0 sm:$0xff] }
  0x35   : > { %722 = vmatprep.subr.bf16.mxu0 %v784_v38 }
  0x38   : > { %723 = vmatpush3.bf16.msra.mxu0 %v785_v39 }
  0x39   : > { %724 = vmatprep.subr.bf16.mxu0 %v786_v40 }
  0x3c   : > { %725 = vmatpush3.bf16.msra.mxu0 %v787_v41 }
  0x3d   : > { %726 = vmatprep.subr.bf16.mxu0 %v788_v42 }
  0x40   : > { %727 = vmatpush3.bf16.msra.mxu0 %v789_v43 }
  0x41   : > { %728 = vmatprep.subr.bf16.mxu0 %v790_v44 }
  0x44   : > { %729 = vmatpush3.bf16.msra.mxu0 %v791_v45 }
  0x45   : > { %730 = vmatprep.subr.bf16.mxu0 %v792_v46 }
  0x48   : > { %731 = vmatpush3.bf16.msra.mxu0 %v793_v47 }
  0x49   : > { %732 = vmatprep.subr.bf16.mxu0 %v794_v48 }
  0x4c   : > { %733 = vmatpush3.bf16.msra.mxu0 %v795_v49 }
  0x4f   : > { %569 = vmatmul.mubr.bf16.vlgmr.msra.gmra.mxu0 %v698_v50 }
 0x10f   : > { %v734_v51 = vpop.f32.mrf.mxu0 }
 0x111   : > { %v735_v53 = vpop.f32.mrf.mxu0 }
 0x112   : > { %v736_v54 = vadd.f32 %v735_v53, %v734_v51 }
 0x113   : > { %v737_v55 = vpop.f32.mrf.mxu0 }
 0x114   : > { %v571_v56 = vadd.f32 %v736_v54, %v697_v52 }
 0x115   : > { %v738_v57 = vpop.f32.mrf.mxu0 }
 0x116   : > { %v576_v58 = vmax.f32 %v571_v56, 0.0 }
 0x118   : > { %v577_v59 = vpack.c.bf16 %v576_v58, %v576_v58 }
 0x11a   : > { %578 = vst [vmem:[%s391_s12] sm:$0xf] %v577_v59 }
 0x11b PF: > { %s13_s16 = sadd.s32 1, %s836_s16   ;;  %s1020_s12 = smov %s824_s13 }
 0x11c   : > { %p10_p10 = scmp.ge.s32.totalorder %s13_s16, 4   ;;  %s1021_s13 = smov %s893_s20 }
 0x11d   : > { %s1022_s14 = smov %s832_s15  ;;  %s1023_s15 = smov %s1025_s17 }
 0x11e   :  { %12 = sbr.rel (!%p10_p10) target bundleno = 3 (0x3), region = 114 }

// kernel: resnet34_forward.69
= control target key start
LH: loop header
LB: loop body
LE: loop exit
PB: predicated region body
PF: predicated region fallthrough
CT: control target
= control target key end

     0   :  { %s969_s12 = smov 0   ;;  %s971_s13 = smov 0   ;;  %s1148_s0 = inlined_call_operand.vmem [shape: bf16[8,256], index: 0, kind: input, shape index: {}]   ;;  %s1149_s1 = inlined_call_operand.vmem [shape: bf16[256,512], index: 1, kind: input, shape index: {}]   ;;  %s1150_s2 = inlined_call_operand.vmem [shape: f32[1,512], index: 2, kind: input, shape index: {}]   ;;  %s1151_s3 = inlined_call_operand.vmem [shape: bf16[8,512], index: 3, kind: output, shape index: {}]  }
   0x1   :  { %s973_s14 = smov 0   ;;  %s975_s15 = smov 0  }
   0x2   :  { %s977_s16 = smov 0  }
   0x3 LB: > { %s22_s17 = sadd.s32 1, %s943_s15  ;;  %p65_p1 = scmp.ne.s32.totalorder %s935_s13, %s931_s12  ;;  %s947_s16 = sphi %s977_s16, %s13_s16   ;;  %s943_s15 = sphi %s975_s15, %s1155_s15   ;;  %s939_s14 = sphi %s973_s14, %s1154_s14   ;;  %s935_s13 = sphi %s971_s13, %s1153_s13   ;;  %s931_s12 = sphi %s969_s12, %s1152_s12  }
   0x4   : > { %p23_p0 = scmp.ge.s32.totalorder %s22_s17, 2  ;;  %p66_p2 = scmp.eq.s32.totalorder %s947_s16, 0 }
   0x5   : > { %s58_s19 = sadd.s32 1, %s935_s13  ;;  %p771_p5 = scmp.ge.s32.totalorder %s947_s16, 2 }
   0x6   : > { %s1157_s17 = smov (%p23_p0, %s22_s17), 0  ;;  %p67_p3 = por %p66_p2, %p65_p1 }
   0x7   : > { %s55_s18 = ssub.s32 %s943_s15, %s1157_s17  ;;  %153 = sbr.rel (%p771_p5) target bundleno = 32 (0x20), region = 20 }
   0x8   : > { %p56_p4 = scmp.eq.s32.totalorder %s55_s18, 0 }
   0xa   : > { %s1004_s20 = scalar_select %p56_p4, %s935_s13, %s58_s19  }
   0xc   : > { %156 = sbr.rel (!%p67_p3) target bundleno = 32 (0x20), region = 24  ;;  %s158_s21 = sand.u32 (%p67_p3), 1, %s935_s13  }
   0xd   : > { %s817_s22 = sshll.u32 (%p67_p3), %s943_s15, 3  ;;  %s772_s23 = sshll.u32 (%p67_p3), %s158_s21, 8 }
   0xe   : > { %s1012_s26 = scalar_lea.vmem (%p67_p3), %s1149_s1, %s817_s22  ;;  %s1017_s27 = scalar_lea.vmem (%p67_p3), [#allocation2], %s772_s23 }
   0xf   : > { %v254_v0 = vld [vmem:[%s1012_s26] sm:$0xff] (%p67_p3)  ;;  %v256_v1 = vld [vmem:[%s1012_s26 + $0x10] sm:$0xff] (%p67_p3) }
  0x10   : > { %v258_v2 = vld [vmem:[%s1012_s26 + $0x20] sm:$0xff] (%p67_p3)  ;;  %255 = vst [vmem:[%s1017_s27] sm:$0xff] (%p67_p3), %v254_v0  ;;  %257 = vst [vmem:[%s1017_s27 + $0x8] sm:$0xff] (%p67_p3), %v256_v1  ;;  %v260_v3 = vld [vmem:[%s1012_s26 + $0x30] sm:$0xff] (%p67_p3) }
  0x11   : > { %259 = vst [vmem:[%s1017_s27 + $0x10] sm:$0xff] %v258_v2  ;;  %v262_v4 = vld [vmem:[%s1012_s26 + $0x40] sm:$0xff]  ;;  %v264_v5 = vld [vmem:[%s1012_s26 + $0x50] sm:$0xff]  ;;  %261 = vst [vmem:[%s1017_s27 + $0x18] sm:$0xff] %v260_v3 }
  0x12   : > { %263 = vst [vmem:[%s1017_s27 + $0x20] sm:$0xff] %v262_v4  ;;  %265 = vst [vmem:[%s1017_s27 + $0x28] sm:$0xff] %v264_v5  ;;  %v266_v6 = vld [vmem:[%s1012_s26 + $0x60] sm:$0xff]  ;;  %v268_v7 = vld [vmem:[%s1012_s26 + $0x70] sm:$0xff] }
  0x13   : > { %v270_v8 = vld [vmem:[%s1012_s26 + $0x80] sm:$0xff]  ;;  %267 = vst [vmem:[%s1017_s27 + $0x30] sm:$0xff] %v266_v6  ;;  %269 = vst [vmem:[%s1017_s27 + $0x38] sm:$0xff] %v268_v7  ;;  %v272_v9 = vld [vmem:[%s1012_s26 + $0x90] sm:$0xff] }
  0x14   : > { %271 = vst [vmem:[%s1017_s27 + $0x40] sm:$0xff] %v270_v8  ;;  %v274_v10 = vld [vmem:[%s1012_s26 + $0xa0] sm:$0xff]  ;;  %v276_v11 = vld [vmem:[%s1012_s26 + $0xb0] sm:$0xff]  ;;  %273 = vst [vmem:[%s1017_s27 + $0x48] sm:$0xff] %v272_v9 }
  0x15   : > { %275 = vst [vmem:[%s1017_s27 + $0x50] sm:$0xff] %v274_v10  ;;  %277 = vst [vmem:[%s1017_s27 + $0x58] sm:$0xff] %v276_v11  ;;  %v278_v12 = vld [vmem:[%s1012_s26 + $0xc0] sm:$0xff]  ;;  %v280_v13 = vld [vmem:[%s1012_s26 + $0xd0] sm:$0xff] }
  0x16   : > { %v282_v14 = vld [vmem:[%s1012_s26 + $0xe0] sm:$0xff]  ;;  %279 = vst [vmem:[%s1017_s27 + $0x60] sm:$0xff] %v278_v12  ;;  %281 = vst [vmem:[%s1017_s27 + $0x68] sm:$0xff] %v280_v13  ;;  %v284_v15 = vld [vmem:[%s1012_s26 + $0xf0] sm:$0xff] }
  0x17   : > { %283 = vst [vmem:[%s1017_s27 + $0x70] sm:$0xff] %v282_v14  ;;  %v286_v16 = vld [vmem:[%s1012_s26 + $0x100] sm:$0xff]  ;;  %v288_v17 = vld [vmem:[%s1012_s26 + $0x110] sm:$0xff]  ;;  %285 = vst [vmem:[%s1017_s27 + $0x78] sm:$0xff] %v284_v15 }
  0x18   : > { %287 = vst [vmem:[%s1017_s27 + $0x80] sm:$0xff] %v286_v16  ;;  %289 = vst [vmem:[%s1017_s27 + $0x88] sm:$0xff] %v288_v17  ;;  %v290_v18 = vld [vmem:[%s1012_s26 + $0x120] sm:$0xff]  ;;  %v292_v19 = vld [vmem:[%s1012_s26 + $0x130] sm:$0xff] }
  0x19   : > { %v294_v20 = vld [vmem:[%s1012_s26 + $0x140] sm:$0xff]  ;;  %291 = vst [vmem:[%s1017_s27 + $0x90] sm:$0xff] %v290_v18  ;;  %293 = vst [vmem:[%s1017_s27 + $0x98] sm:$0xff] %v292_v19  ;;  %v296_v21 = vld [vmem:[%s1012_s26 + $0x150] sm:$0xff] }
  0x1a   : > { %295 = vst [vmem:[%s1017_s27 + $0xa0] sm:$0xff] %v294_v20  ;;  %v298_v22 = vld [vmem:[%s1012_s26 + $0x160] sm:$0xff]  ;;  %v300_v23 = vld [vmem:[%s1012_s26 + $0x170] sm:$0xff]  ;;  %297 = vst [vmem:[%s1017_s27 + $0xa8] sm:$0xff] %v296_v21 }
  0x1b   : > { %299 = vst [vmem:[%s1017_s27 + $0xb0] sm:$0xff] %v298_v22  ;;  %301 = vst [vmem:[%s1017_s27 + $0xb8] sm:$0xff] %v300_v23  ;;  %v302_v24 = vld [vmem:[%s1012_s26 + $0x180] sm:$0xff]  ;;  %v304_v25 = vld [vmem:[%s1012_s26 + $0x190] sm:$0xff] }
  0x1c   : > { %v306_v26 = vld [vmem:[%s1012_s26 + $0x1a0] sm:$0xff]  ;;  %303 = vst [vmem:[%s1017_s27 + $0xc0] sm:$0xff] %v302_v24  ;;  %305 = vst [vmem:[%s1017_s27 + $0xc8] sm:$0xff] %v304_v25  ;;  %v308_v27 = vld [vmem:[%s1012_s26 + $0x1b0] sm:$0xff] }
  0x1d   : > { %307 = vst [vmem:[%s1017_s27 + $0xd0] sm:$0xff] %v306_v26  ;;  %v310_v28 = vld [vmem:[%s1012_s26 + $0x1c0] sm:$0xff]  ;;  %v312_v29 = vld [vmem:[%s1012_s26 + $0x1d0] sm:$0xff]  ;;  %309 = vst [vmem:[%s1017_s27 + $0xd8] sm:$0xff] %v308_v27 }
  0x1e   : > { %311 = vst [vmem:[%s1017_s27 + $0xe0] sm:$0xff] %v310_v28  ;;  %313 = vst [vmem:[%s1017_s27 + $0xe8] sm:$0xff] %v312_v29  ;;  %v314_v30 = vld [vmem:[%s1012_s26 + $0x1e0] sm:$0xff]  ;;  %v316_v31 = vld [vmem:[%s1012_s26 + $0x1f0] sm:$0xff] }
  0x1f   : > { %315 = vst [vmem:[%s1017_s27 + $0xf0] sm:$0xff] %v314_v30  ;;  %317 = vst [vmem:[%s1017_s27 + $0xf8] sm:$0xff] %v316_v31 }
  0x20 PF: > { %p775_p6 = scmp.ge.s32.totalorder %s947_s16, 1  ;;  %p330_p7 = scmp.lt.s32.totalorder %s947_s16, 3 }
  0x22   : > { %p331_p8 = pnand %p775_p6, %p330_p7 }
  0x23   : > { %s337_s28 = sand.u32 (!%p331_p8), 1, %s931_s12   ;;  %s777_s6 = sshll.u32 (!%p331_p8), %s939_s14, 1 }
  0x24   : > { %334 = sbr.rel (%p331_p8) target bundleno = 306 (0x132), region = 66  ;;  %s776_s4 = sshll.u32 (!%p331_p8), %s337_s28, 8 }
  0x25   : > { %s1090_s5 = scalar_lea.vmem (!%p331_p8), [#allocation2], %s776_s4  ;;  %p380_p9 = scmp.lt.s32.totalorder (!%p331_p8), %s777_s6, 3 }
  0x29   : > { %v1086_v32 = vld [vmem:[%s1148_s0] sm:$0xff]  ;;  %v859_v34 = vld [vmem:[%s1090_s5 + $0x74] ss:$8 sps:$4 sm:$0xff]   ;;  %v861_v35 = vld [vmem:[%s1090_s5 + $0x70] ss:$8 sps:$4 sm:$0xff]   ;;  %v429_v3 = vlaneseq  ;;  %s1159_s6 = smov (!%p380_p9, %s777_s6), 3 }
  0x2a   : > { %v781_v33 = vcombine.high %v1086_v32, %v1086_v32  ;;  %606 = vmatprep.subr.bf16.mxu0 %v859_v34  ;;  %v862_v36 = vld [vmem:[%s1090_s5 + $0x64] ss:$8 sps:$4 sm:$0xff]   ;;  %v864_v37 = vld [vmem:[%s1090_s5 + $0x60] ss:$8 sps:$4 sm:$0xff]   ;;  %v865_v38 = vld [vmem:[%s1090_s5 + $0x54] ss:$8 sps:$4 sm:$0xff]   ;;  %v780_v2 = vcombine.low %v1086_v32, %v1086_v32  ;;  %s382_s9 = scalar_lea.vmem %s1150_s2, %s1159_s6 }
  0x2b   : > { %607 = vmatpush1.bf16.msra.mxu0 %v861_v35  ;;  %v867_v39 = vld [vmem:[%s1090_s5 + $0x50] ss:$8 sps:$4 sm:$0xff]   ;;  %v868_v40 = vld [vmem:[%s1090_s5 + $0x44] ss:$8 sps:$4 sm:$0xff]   ;;  %v870_v41 = vld [vmem:[%s1090_s5 + $0x40] ss:$8 sps:$4 sm:$0xff]  }
  0x2c   : > { %638 = vmatprep.mubr.bf16.mxu0 %v781_v33  ;;  %608 = vmatprep.subr.bf16.mxu0 %v862_v36  ;;  %v871_v42 = vld [vmem:[%s1090_s5 + $0x34] ss:$8 sps:$4 sm:$0xff]   ;;  %v873_v43 = vld [vmem:[%s1090_s5 + $0x30] ss:$8 sps:$4 sm:$0xff]   ;;  %v874_v44 = vld [vmem:[%s1090_s5 + $0x24] ss:$8 sps:$4 sm:$0xff]  }
  0x2d   : > { %v876_v45 = vld [vmem:[%s1090_s5 + $0x20] ss:$8 sps:$4 sm:$0xff]   ;;  %v877_v46 = vld [vmem:[%s1090_s5 + $0x14] ss:$8 sps:$4 sm:$0xff]   ;;  %v879_v47 = vld [vmem:[%s1090_s5 + $0x10] ss:$8 sps:$4 sm:$0xff]  }
  0x2e   : > { %v880_v48 = vld [vmem:[%s1090_s5 + $0x4] ss:$8 sps:$4 sm:$0xff]   ;;  %v882_v49 = vld [vmem:[%s1090_s5] ss:$8 sps:$4 sm:$0xff]   ;;  %v883_v50 = vld [vmem:[%s1090_s5 + $0xf4] ss:$8 sps:$4 sm:$0xff]  }
  0x2f   : > { %609 = vmatpush1.bf16.msra.mxu0 %v864_v37  ;;  %v885_v51 = vld [vmem:[%s1090_s5 + $0xf0] ss:$8 sps:$4 sm:$0xff]   ;;  %v886_v52 = vld [vmem:[%s1090_s5 + $0xe4] ss:$8 sps:$4 sm:$0xff]   ;;  %v888_v53 = vld [vmem:[%s1090_s5 + $0xe0] ss:$8 sps:$4 sm:$0xff]  }
  0x30   : > { %610 = vmatprep.subr.bf16.mxu0 %v865_v38  ;;  %v889_v54 = vld [vmem:[%s1090_s5 + $0xd4] ss:$8 sps:$4 sm:$0xff]   ;;  %v891_v55 = vld [vmem:[%s1090_s5 + $0xd0] ss:$8 sps:$4 sm:$0xff]   ;;  %v892_v56 = vld [vmem:[%s1090_s5 + $0xc4] ss:$8 sps:$4 sm:$0xff]  }
  0x31   : > { %v894_v57 = vld [vmem:[%s1090_s5 + $0xc0] ss:$8 sps:$4 sm:$0xff]   ;;  %v895_v58 = vld [vmem:[%s1090_s5 + $0xb4] ss:$8 sps:$4 sm:$0xff]   ;;  %v897_v59 = vld [vmem:[%s1090_s5 + $0xb0] ss:$8 sps:$4 sm:$0xff]  }
  0x32   : > { %v898_v60 = vld [vmem:[%s1090_s5 + $0xa4] ss:$8 sps:$4 sm:$0xff]   ;;  %v900_v61 = vld [vmem:[%s1090_s5 + $0xa0] ss:$8 sps:$4 sm:$0xff]   ;;  %v901_v62 = vld [vmem:[%s1090_s5 + $0x94] ss:$8 sps:$4 sm:$0xff]  }
  0x33   : > { %611 = vmatpush1.bf16.msra.mxu0 %v867_v39  ;;  %v903_v63 = vld [vmem:[%s1090_s5 + $0x90] ss:$8 sps:$4 sm:$0xff]   ;;  %v904_v0 = vld [vmem:[%s1090_s5 + $0x84] ss:$8 sps:$4 sm:$0xff]   ;;  %v906_v1 = vld [vmem:[%s1090_s5 + $0x80] ss:$8 sps:$4 sm:$0xff]  }
  0x34   : > { %612 = vmatprep.subr.bf16.mxu0 %v868_v40  ;;  %v430_v4 = vshrl.u32 %v429_v3, 7  ;;  %v427_v7 = vld [vmem:[%s382_s9] sm:$0x3]  ;;  %s779_s10 = sshll.u32 %s1159_s6, 2 }
  0x35   : > { %s392_s14 = scalar_lea.vmem %s1151_s3, %s779_s10 }
  0x36   : > { %v431_v5 = vsub.s32 0, %v430_v4  ;;  %v435_v6 = vsub.s32 1, %v430_v4 }
  0x37   : > { %613 = vmatpush1.bf16.msra.mxu0 %v870_v41 }
  0x38   : > { %614 = vmatprep.subr.bf16.mxu0 %v871_v42  ;;  %v432_v8 = vrot.slane %v427_v7, %v431_v5  ;;  %v436_v9 = vrot.slane %v427_v7, %v435_v6 }
  0x3b   : > { %615 = vmatpush1.bf16.msra.mxu0 %v873_v43 }
  0x3c   : > { %616 = vmatprep.subr.bf16.mxu0 %v874_v44 }
  0x3f   : > { %617 = vmatpush1.bf16.msra.mxu0 %v876_v45 }
  0x40   : > { %618 = vmatprep.subr.bf16.mxu0 %v877_v46 }
  0x43   : > { %619 = vmatpush1.bf16.msra.mxu0 %v879_v47 }
  0x44   : > { %620 = vmatprep.subr.bf16.mxu0 %v880_v48 }
  0x47   : > { %621 = vmatpush1.bf16.msra.mxu0 %v882_v49 }
  0x48   : > { %622 = vmatprep.subr.bf16.mxu0 %v883_v50 }
  0x4b   : > { %623 = vmatpush2.bf16.msra.mxu0 %v885_v51 }
  0x4c   : > { %624 = vmatprep.subr.bf16.mxu0 %v886_v52 }
  0x4f   : > { %625 = vmatpush2.bf16.msra.mxu0 %v888_v53 }
  0x50   : > { %626 = vmatprep.subr.bf16.mxu0 %v889_v54 }
  0x53   : > { %627 = vmatpush2.bf16.msra.mxu0 %v891_v55 }
  0x54   : > { %628 = vmatprep.subr.bf16.mxu0 %v892_v56 }
  0x57   : > { %629 = vmatpush2.bf16.msra.mxu0 %v894_v57 }
  0x58   : > { %630 = vmatprep.subr.bf16.mxu0 %v895_v58 }
  0x5b   : > { %631 = vmatpush2.bf16.msra.mxu0 %v897_v59 }
  0x5c   : > { %632 = vmatprep.subr.bf16.mxu0 %v898_v60 }
  0x5f   : > { %633 = vmatpush2.bf16.msra.mxu0 %v900_v61 }
  0x60   : > { %634 = vmatprep.subr.bf16.mxu0 %v901_v62 }
  0x63   : > { %635 = vmatpush2.bf16.msra.mxu0 %v903_v63 }
  0x64   : > { %636 = vmatprep.subr.bf16.mxu0 %v904_v0 }
  0x67   : > { %637 = vmatpush2.bf16.msra.mxu0 %v906_v1 }
  0x6a   : > { %639 = vmatmul.mubr.bf16.vlgmr.msra.gmra.mxu0 %v780_v2 }
 0x12a   : > { %v640_v10 = vpop.f32.mrf.mxu0 }
 0x12b   : > { %v641_v12 = vadd.f32 %v640_v10, %v432_v8 }
 0x12c   : > { %v642_v11 = vpop.f32.mrf.mxu0 }
 0x12d   : > { %v643_v13 = vadd.f32 %v642_v11, %v436_v9 }
 0x12e   : > { %v644_v14 = vpop.f32.mrf.mxu0 }
 0x12f   : > { %v818_v15 = vpack.c.bf16 %v643_v13, %v641_v12 }
 0x130   : > { %v645_v16 = vpop.f32.mrf.mxu0 }
 0x131   : > { %655 = vst [vmem:[%s392_s14] sm:$0xff] %v818_v15 }
 0x132 PF: > { %s13_s16 = sadd.s32 1, %s947_s16   ;;  %s1152_s12 = smov %s935_s13 }
 0x133   : > { %p10_p10 = scmp.ge.s32.totalorder %s13_s16, 4   ;;  %s1153_s13 = smov %s1004_s20 }
 0x134   : > { %s1154_s14 = smov %s943_s15  ;;  %s1155_s15 = smov %s1157_s17 }
 0x135   :  { %12 = sbr.rel (!%p10_p10) target bundleno = 3 (0x3), region = 111 }

// kernel: resnet34_forward.68
= control target key start
LH: loop header
LB: loop body
LE: loop exit
PB: predicated region body
PF: predicated region fallthrough
CT: control target
= control target key end

     0   :  { %s971_s12 = smov 0   ;;  %s973_s13 = smov 0   ;;  %s1150_s0 = inlined_call_operand.vmem [shape: bf16[8,256], index: 0, kind: input, shape index: {}]   ;;  %s1151_s1 = inlined_call_operand.vmem [shape: bf16[256,512], index: 1, kind: input, shape index: {}]   ;;  %s1152_s2 = inlined_call_operand.vmem [shape: f32[1,512], index: 2, kind: input, shape index: {}]   ;;  %s1153_s3 = inlined_call_operand.vmem [shape: bf16[8,512], index: 3, kind: output, shape index: {}]  }
   0x1   :  { %s975_s14 = smov 0   ;;  %s977_s15 = smov 0  }
   0x2   :  { %s979_s16 = smov 0  }
   0x3 LB: > { %s22_s17 = sadd.s32 1, %s945_s15  ;;  %p65_p1 = scmp.ne.s32.totalorder %s937_s13, %s933_s12  ;;  %s949_s16 = sphi %s979_s16, %s13_s16   ;;  %s945_s15 = sphi %s977_s15, %s1157_s15   ;;  %s941_s14 = sphi %s975_s14, %s1156_s14   ;;  %s937_s13 = sphi %s973_s13, %s1155_s13   ;;  %s933_s12 = sphi %s971_s12, %s1154_s12  }
   0x4   : > { %p23_p0 = scmp.ge.s32.totalorder %s22_s17, 2  ;;  %p66_p2 = scmp.eq.s32.totalorder %s949_s16, 0 }
   0x5   : > { %s58_s19 = sadd.s32 1, %s937_s13  ;;  %p773_p5 = scmp.ge.s32.totalorder %s949_s16, 2 }
   0x6   : > { %s1159_s17 = smov (%p23_p0, %s22_s17), 0  ;;  %p67_p3 = por %p66_p2, %p65_p1 }
   0x7   : > { %s55_s18 = ssub.s32 %s945_s15, %s1159_s17  ;;  %153 = sbr.rel (%p773_p5) target bundleno = 32 (0x20), region = 20 }
   0x8   : > { %p56_p4 = scmp.eq.s32.totalorder %s55_s18, 0 }
   0xa   : > { %s1006_s20 = scalar_select %p56_p4, %s937_s13, %s58_s19  }
   0xc   : > { %156 = sbr.rel (!%p67_p3) target bundleno = 32 (0x20), region = 24  ;;  %s158_s21 = sand.u32 (%p67_p3), 1, %s937_s13  }
   0xd   : > { %s819_s22 = sshll.u32 (%p67_p3), %s945_s15, 3  ;;  %s774_s23 = sshll.u32 (%p67_p3), %s158_s21, 8 }
   0xe   : > { %s1014_s26 = scalar_lea.vmem (%p67_p3), %s1151_s1, %s819_s22  ;;  %s1019_s27 = scalar_lea.vmem (%p67_p3), [#allocation2], %s774_s23 }
   0xf   : > { %v254_v0 = vld [vmem:[%s1014_s26] sm:$0xff] (%p67_p3)  ;;  %v256_v1 = vld [vmem:[%s1014_s26 + $0x10] sm:$0xff] (%p67_p3) }
  0x10   : > { %v258_v2 = vld [vmem:[%s1014_s26 + $0x20] sm:$0xff] (%p67_p3)  ;;  %255 = vst [vmem:[%s1019_s27] sm:$0xff] (%p67_p3), %v254_v0  ;;  %257 = vst [vmem:[%s1019_s27 + $0x8] sm:$0xff] (%p67_p3), %v256_v1  ;;  %v260_v3 = vld [vmem:[%s1014_s26 + $0x30] sm:$0xff] (%p67_p3) }
  0x11   : > { %259 = vst [vmem:[%s1019_s27 + $0x10] sm:$0xff] %v258_v2  ;;  %v262_v4 = vld [vmem:[%s1014_s26 + $0x40] sm:$0xff]  ;;  %v264_v5 = vld [vmem:[%s1014_s26 + $0x50] sm:$0xff]  ;;  %261 = vst [vmem:[%s1019_s27 + $0x18] sm:$0xff] %v260_v3 }
  0x12   : > { %263 = vst [vmem:[%s1019_s27 + $0x20] sm:$0xff] %v262_v4  ;;  %265 = vst [vmem:[%s1019_s27 + $0x28] sm:$0xff] %v264_v5  ;;  %v266_v6 = vld [vmem:[%s1014_s26 + $0x60] sm:$0xff]  ;;  %v268_v7 = vld [vmem:[%s1014_s26 + $0x70] sm:$0xff] }
  0x13   : > { %v270_v8 = vld [vmem:[%s1014_s26 + $0x80] sm:$0xff]  ;;  %267 = vst [vmem:[%s1019_s27 + $0x30] sm:$0xff] %v266_v6  ;;  %269 = vst [vmem:[%s1019_s27 + $0x38] sm:$0xff] %v268_v7  ;;  %v272_v9 = vld [vmem:[%s1014_s26 + $0x90] sm:$0xff] }
  0x14   : > { %271 = vst [vmem:[%s1019_s27 + $0x40] sm:$0xff] %v270_v8  ;;  %v274_v10 = vld [vmem:[%s1014_s26 + $0xa0] sm:$0xff]  ;;  %v276_v11 = vld [vmem:[%s1014_s26 + $0xb0] sm:$0xff]  ;;  %273 = vst [vmem:[%s1019_s27 + $0x48] sm:$0xff] %v272_v9 }
  0x15   : > { %275 = vst [vmem:[%s1019_s27 + $0x50] sm:$0xff] %v274_v10  ;;  %277 = vst [vmem:[%s1019_s27 + $0x58] sm:$0xff] %v276_v11  ;;  %v278_v12 = vld [vmem:[%s1014_s26 + $0xc0] sm:$0xff]  ;;  %v280_v13 = vld [vmem:[%s1014_s26 + $0xd0] sm:$0xff] }
  0x16   : > { %v282_v14 = vld [vmem:[%s1014_s26 + $0xe0] sm:$0xff]  ;;  %279 = vst [vmem:[%s1019_s27 + $0x60] sm:$0xff] %v278_v12  ;;  %281 = vst [vmem:[%s1019_s27 + $0x68] sm:$0xff] %v280_v13  ;;  %v284_v15 = vld [vmem:[%s1014_s26 + $0xf0] sm:$0xff] }
  0x17   : > { %283 = vst [vmem:[%s1019_s27 + $0x70] sm:$0xff] %v282_v14  ;;  %v286_v16 = vld [vmem:[%s1014_s26 + $0x100] sm:$0xff]  ;;  %v288_v17 = vld [vmem:[%s1014_s26 + $0x110] sm:$0xff]  ;;  %285 = vst [vmem:[%s1019_s27 + $0x78] sm:$0xff] %v284_v15 }
  0x18   : > { %287 = vst [vmem:[%s1019_s27 + $0x80] sm:$0xff] %v286_v16  ;;  %289 = vst [vmem:[%s1019_s27 + $0x88] sm:$0xff] %v288_v17  ;;  %v290_v18 = vld [vmem:[%s1014_s26 + $0x120] sm:$0xff]  ;;  %v292_v19 = vld [vmem:[%s1014_s26 + $0x130] sm:$0xff] }
  0x19   : > { %v294_v20 = vld [vmem:[%s1014_s26 + $0x140] sm:$0xff]  ;;  %291 = vst [vmem:[%s1019_s27 + $0x90] sm:$0xff] %v290_v18  ;;  %293 = vst [vmem:[%s1019_s27 + $0x98] sm:$0xff] %v292_v19  ;;  %v296_v21 = vld [vmem:[%s1014_s26 + $0x150] sm:$0xff] }
  0x1a   : > { %295 = vst [vmem:[%s1019_s27 + $0xa0] sm:$0xff] %v294_v20  ;;  %v298_v22 = vld [vmem:[%s1014_s26 + $0x160] sm:$0xff]  ;;  %v300_v23 = vld [vmem:[%s1014_s26 + $0x170] sm:$0xff]  ;;  %297 = vst [vmem:[%s1019_s27 + $0xa8] sm:$0xff] %v296_v21 }
  0x1b   : > { %299 = vst [vmem:[%s1019_s27 + $0xb0] sm:$0xff] %v298_v22  ;;  %301 = vst [vmem:[%s1019_s27 + $0xb8] sm:$0xff] %v300_v23  ;;  %v302_v24 = vld [vmem:[%s1014_s26 + $0x180] sm:$0xff]  ;;  %v304_v25 = vld [vmem:[%s1014_s26 + $0x190] sm:$0xff] }
  0x1c   : > { %v306_v26 = vld [vmem:[%s1014_s26 + $0x1a0] sm:$0xff]  ;;  %303 = vst [vmem:[%s1019_s27 + $0xc0] sm:$0xff] %v302_v24  ;;  %305 = vst [vmem:[%s1019_s27 + $0xc8] sm:$0xff] %v304_v25  ;;  %v308_v27 = vld [vmem:[%s1014_s26 + $0x1b0] sm:$0xff] }
  0x1d   : > { %307 = vst [vmem:[%s1019_s27 + $0xd0] sm:$0xff] %v306_v26  ;;  %v310_v28 = vld [vmem:[%s1014_s26 + $0x1c0] sm:$0xff]  ;;  %v312_v29 = vld [vmem:[%s1014_s26 + $0x1d0] sm:$0xff]  ;;  %309 = vst [vmem:[%s1019_s27 + $0xd8] sm:$0xff] %v308_v27 }
  0x1e   : > { %311 = vst [vmem:[%s1019_s27 + $0xe0] sm:$0xff] %v310_v28  ;;  %313 = vst [vmem:[%s1019_s27 + $0xe8] sm:$0xff] %v312_v29  ;;  %v314_v30 = vld [vmem:[%s1014_s26 + $0x1e0] sm:$0xff]  ;;  %v316_v31 = vld [vmem:[%s1014_s26 + $0x1f0] sm:$0xff] }
  0x1f   : > { %315 = vst [vmem:[%s1019_s27 + $0xf0] sm:$0xff] %v314_v30  ;;  %317 = vst [vmem:[%s1019_s27 + $0xf8] sm:$0xff] %v316_v31 }
  0x20 PF: > { %p777_p6 = scmp.ge.s32.totalorder %s949_s16, 1  ;;  %p330_p7 = scmp.lt.s32.totalorder %s949_s16, 3 }
  0x22   : > { %p331_p8 = pnand %p777_p6, %p330_p7 }
  0x23   : > { %s337_s28 = sand.u32 (!%p331_p8), 1, %s933_s12   ;;  %s779_s6 = sshll.u32 (!%p331_p8), %s941_s14, 1 }
  0x24   : > { %334 = sbr.rel (%p331_p8) target bundleno = 308 (0x134), region = 66  ;;  %s778_s4 = sshll.u32 (!%p331_p8), %s337_s28, 8 }
  0x25   : > { %s1092_s5 = scalar_lea.vmem (!%p331_p8), [#allocation2], %s778_s4  ;;  %p380_p9 = scmp.lt.s32.totalorder (!%p331_p8), %s779_s6, 3 }
  0x29   : > { %v1088_v32 = vld [vmem:[%s1150_s0] sm:$0xff]  ;;  %v861_v34 = vld [vmem:[%s1092_s5 + $0x74] ss:$8 sps:$4 sm:$0xff]   ;;  %v863_v35 = vld [vmem:[%s1092_s5 + $0x70] ss:$8 sps:$4 sm:$0xff]   ;;  %v429_v3 = vlaneseq  ;;  %s1161_s6 = smov (!%p380_p9, %s779_s6), 3 }
  0x2a   : > { %v783_v33 = vcombine.high %v1088_v32, %v1088_v32  ;;  %606 = vmatprep.subr.bf16.mxu0 %v861_v34  ;;  %v864_v36 = vld [vmem:[%s1092_s5 + $0x64] ss:$8 sps:$4 sm:$0xff]   ;;  %v866_v37 = vld [vmem:[%s1092_s5 + $0x60] ss:$8 sps:$4 sm:$0xff]   ;;  %v867_v38 = vld [vmem:[%s1092_s5 + $0x54] ss:$8 sps:$4 sm:$0xff]   ;;  %v782_v2 = vcombine.low %v1088_v32, %v1088_v32  ;;  %s382_s9 = scalar_lea.vmem %s1152_s2, %s1161_s6 }
  0x2b   : > { %607 = vmatpush1.bf16.msra.mxu0 %v863_v35  ;;  %v869_v39 = vld [vmem:[%s1092_s5 + $0x50] ss:$8 sps:$4 sm:$0xff]   ;;  %v870_v40 = vld [vmem:[%s1092_s5 + $0x44] ss:$8 sps:$4 sm:$0xff]   ;;  %v872_v41 = vld [vmem:[%s1092_s5 + $0x40] ss:$8 sps:$4 sm:$0xff]  }
  0x2c   : > { %638 = vmatprep.mubr.bf16.mxu0 %v783_v33  ;;  %608 = vmatprep.subr.bf16.mxu0 %v864_v36  ;;  %v873_v42 = vld [vmem:[%s1092_s5 + $0x34] ss:$8 sps:$4 sm:$0xff]   ;;  %v875_v43 = vld [vmem:[%s1092_s5 + $0x30] ss:$8 sps:$4 sm:$0xff]   ;;  %v876_v44 = vld [vmem:[%s1092_s5 + $0x24] ss:$8 sps:$4 sm:$0xff]  }
  0x2d   : > { %v878_v45 = vld [vmem:[%s1092_s5 + $0x20] ss:$8 sps:$4 sm:$0xff]   ;;  %v879_v46 = vld [vmem:[%s1092_s5 + $0x14] ss:$8 sps:$4 sm:$0xff]   ;;  %v881_v47 = vld [vmem:[%s1092_s5 + $0x10] ss:$8 sps:$4 sm:$0xff]  }
  0x2e   : > { %v882_v48 = vld [vmem:[%s1092_s5 + $0x4] ss:$8 sps:$4 sm:$0xff]   ;;  %v884_v49 = vld [vmem:[%s1092_s5] ss:$8 sps:$4 sm:$0xff]   ;;  %v885_v50 = vld [vmem:[%s1092_s5 + $0xf4] ss:$8 sps:$4 sm:$0xff]  }
  0x2f   : > { %609 = vmatpush1.bf16.msra.mxu0 %v866_v37  ;;  %v887_v51 = vld [vmem:[%s1092_s5 + $0xf0] ss:$8 sps:$4 sm:$0xff]   ;;  %v888_v52 = vld [vmem:[%s1092_s5 + $0xe4] ss:$8 sps:$4 sm:$0xff]   ;;  %v890_v53 = vld [vmem:[%s1092_s5 + $0xe0] ss:$8 sps:$4 sm:$0xff]  }
  0x30   : > { %610 = vmatprep.subr.bf16.mxu0 %v867_v38  ;;  %v891_v54 = vld [vmem:[%s1092_s5 + $0xd4] ss:$8 sps:$4 sm:$0xff]   ;;  %v893_v55 = vld [vmem:[%s1092_s5 + $0xd0] ss:$8 sps:$4 sm:$0xff]   ;;  %v894_v56 = vld [vmem:[%s1092_s5 + $0xc4] ss:$8 sps:$4 sm:$0xff]  }
  0x31   : > { %v896_v57 = vld [vmem:[%s1092_s5 + $0xc0] ss:$8 sps:$4 sm:$0xff]   ;;  %v897_v58 = vld [vmem:[%s1092_s5 + $0xb4] ss:$8 sps:$4 sm:$0xff]   ;;  %v899_v59 = vld [vmem:[%s1092_s5 + $0xb0] ss:$8 sps:$4 sm:$0xff]  }
  0x32   : > { %v900_v60 = vld [vmem:[%s1092_s5 + $0xa4] ss:$8 sps:$4 sm:$0xff]   ;;  %v902_v61 = vld [vmem:[%s1092_s5 + $0xa0] ss:$8 sps:$4 sm:$0xff]   ;;  %v903_v62 = vld [vmem:[%s1092_s5 + $0x94] ss:$8 sps:$4 sm:$0xff]  }
  0x33   : > { %611 = vmatpush1.bf16.msra.mxu0 %v869_v39  ;;  %v905_v63 = vld [vmem:[%s1092_s5 + $0x90] ss:$8 sps:$4 sm:$0xff]   ;;  %v906_v0 = vld [vmem:[%s1092_s5 + $0x84] ss:$8 sps:$4 sm:$0xff]   ;;  %v908_v1 = vld [vmem:[%s1092_s5 + $0x80] ss:$8 sps:$4 sm:$0xff]  }
  0x34   : > { %612 = vmatprep.subr.bf16.mxu0 %v870_v40  ;;  %v430_v4 = vshrl.u32 %v429_v3, 7  ;;  %v427_v6 = vld [vmem:[%s382_s9] sm:$0x3]  ;;  %s781_s10 = sshll.u32 %s1161_s6, 2 }
  0x35   : > { %s392_s14 = scalar_lea.vmem %s1153_s3, %s781_s10 }
  0x36   : > { %v431_v5 = vsub.s32 0, %v430_v4  ;;  %v435_v7 = vsub.s32 1, %v430_v4 }
  0x37   : > { %613 = vmatpush1.bf16.msra.mxu0 %v872_v41 }
  0x38   : > { %614 = vmatprep.subr.bf16.mxu0 %v873_v42  ;;  %v432_v8 = vrot.slane %v427_v6, %v431_v5  ;;  %v436_v9 = vrot.slane %v427_v6, %v435_v7 }
  0x3b   : > { %615 = vmatpush1.bf16.msra.mxu0 %v875_v43 }
  0x3c   : > { %616 = vmatprep.subr.bf16.mxu0 %v876_v44 }
  0x3f   : > { %617 = vmatpush1.bf16.msra.mxu0 %v878_v45 }
  0x40   : > { %618 = vmatprep.subr.bf16.mxu0 %v879_v46 }
  0x43   : > { %619 = vmatpush1.bf16.msra.mxu0 %v881_v47 }
  0x44   : > { %620 = vmatprep.subr.bf16.mxu0 %v882_v48 }
  0x47   : > { %621 = vmatpush1.bf16.msra.mxu0 %v884_v49 }
  0x48   : > { %622 = vmatprep.subr.bf16.mxu0 %v885_v50 }
  0x4b   : > { %623 = vmatpush2.bf16.msra.mxu0 %v887_v51 }
  0x4c   : > { %624 = vmatprep.subr.bf16.mxu0 %v888_v52 }
  0x4f   : > { %625 = vmatpush2.bf16.msra.mxu0 %v890_v53 }
  0x50   : > { %626 = vmatprep.subr.bf16.mxu0 %v891_v54 }
  0x53   : > { %627 = vmatpush2.bf16.msra.mxu0 %v893_v55 }
  0x54   : > { %628 = vmatprep.subr.bf16.mxu0 %v894_v56 }
  0x57   : > { %629 = vmatpush2.bf16.msra.mxu0 %v896_v57 }
  0x58   : > { %630 = vmatprep.subr.bf16.mxu0 %v897_v58 }
  0x5b   : > { %631 = vmatpush2.bf16.msra.mxu0 %v899_v59 }
  0x5c   : > { %632 = vmatprep.subr.bf16.mxu0 %v900_v60 }
  0x5f   : > { %633 = vmatpush2.bf16.msra.mxu0 %v902_v61 }
  0x60   : > { %634 = vmatprep.subr.bf16.mxu0 %v903_v62 }
  0x63   : > { %635 = vmatpush2.bf16.msra.mxu0 %v905_v63 }
  0x64   : > { %636 = vmatprep.subr.bf16.mxu0 %v906_v0 }
  0x67   : > { %637 = vmatpush2.bf16.msra.mxu0 %v908_v1 }
  0x6a   : > { %639 = vmatmul.mubr.bf16.vlgmr.msra.gmra.mxu0 %v782_v2 }
 0x12a   : > { %v640_v10 = vpop.f32.mrf.mxu0 }
 0x12b   : > { %v641_v11 = vadd.f32 %v640_v10, %v432_v8 }
 0x12c   : > { %v642_v12 = vpop.f32.mrf.mxu0 }
 0x12d   : > { %v643_v13 = vadd.f32 %v642_v12, %v436_v9  ;;  %v647_v15 = vmax.f32 %v641_v11, 0.0 }
 0x12e   : > { %v644_v14 = vpop.f32.mrf.mxu0 }
 0x12f   : > { %v648_v16 = vmax.f32 %v643_v13, 0.0 }
 0x130   : > { %v645_v17 = vpop.f32.mrf.mxu0 }
 0x131   : > { %v820_v18 = vpack.c.bf16 %v648_v16, %v647_v15 }
 0x133   : > { %657 = vst [vmem:[%s392_s14] sm:$0xff] %v820_v18 }
 0x134 PF: > { %s13_s16 = sadd.s32 1, %s949_s16   ;;  %s1154_s12 = smov %s937_s13 }
 0x135   : > { %p10_p10 = scmp.ge.s32.totalorder %s13_s16, 4   ;;  %s1155_s13 = smov %s1006_s20 }
 0x136   : > { %s1156_s14 = smov %s945_s15  ;;  %s1157_s15 = smov %s1159_s17 }
 0x137   :  { %12 = sbr.rel (!%p10_p10) target bundleno = 3 (0x3), region = 111 }

// kernel: resnet34_forward.70
= control target key start
LH: loop header
LB: loop body
LE: loop exit
PB: predicated region body
PF: predicated region fallthrough
CT: control target
= control target key end

     0   :  { %s1517_s15 = smov 0   ;;  %s1519_s16 = smov 0   ;;  %s1808_s0 = inlined_call_operand.vmem [shape: bf16[8,512], index: 0, kind: input, shape index: {}]   ;;  %s1809_s1 = inlined_call_operand.vmem [shape: bf16[512,512], index: 1, kind: input, shape index: {}]   ;;  %s1810_s2 = inlined_call_operand.vmem [shape: f32[1,512], index: 2, kind: input, shape index: {}]   ;;  %s1811_s3 = inlined_call_operand.vmem [shape: bf16[8,512], index: 3, kind: input, shape index: {}]   ;;  %s1812_s4 = inlined_call_operand.vmem [shape: bf16[8,512], index: 4, kind: output, shape index: {}]  }
   0x1   :  { %s1521_s17 = smov 0   ;;  %s1523_s18 = smov 0  }
   0x2   :  { %s1525_s19 = smov 0  }
   0x3 LB: > { %s23_s20 = sadd.s32 1, %s1486_s18  ;;  %p66_p1 = scmp.ne.s32.totalorder %s1478_s16, %s1474_s15  ;;  %s1490_s19 = sphi %s1525_s19, %s14_s19   ;;  %s1486_s18 = sphi %s1523_s18, %s1816_s18   ;;  %s1482_s17 = sphi %s1521_s17, %s1815_s17   ;;  %s1478_s16 = sphi %s1519_s16, %s1814_s16   ;;  %s1474_s15 = sphi %s1517_s15, %s1813_s15  }
   0x4   : > { %p24_p0 = scmp.ge.s32.totalorder %s23_s20, 2  ;;  %p67_p2 = scmp.eq.s32.totalorder %s1490_s19, 0 }
   0x5   : > { %s59_s22 = sadd.s32 1, %s1478_s16  ;;  %p1228_p5 = scmp.ge.s32.totalorder %s1490_s19, 2 }
   0x6   : > { %s1818_s20 = smov (%p24_p0, %s23_s20), 0  ;;  %p68_p3 = por %p67_p2, %p66_p1 }
   0x7   : > { %s56_s21 = ssub.s32 %s1486_s18, %s1818_s20  ;;  %182 = sbr.rel (%p1228_p5) target bundleno = 48 (0x30), region = 20 }
   0x8   : > { %p57_p4 = scmp.eq.s32.totalorder %s56_s21, 0 }
   0xa   : > { %s1552_s23 = scalar_select %p57_p4, %s1478_s16, %s59_s22  }
   0xc   : > { %185 = sbr.rel (!%p68_p3) target bundleno = 48 (0x30), region = 24  ;;  %s187_s24 = sand.u32 (%p68_p3), 1, %s1478_s16  }
   0xd   : > { %s1310_s25 = sshll.u32 (%p68_p3), %s1486_s18, 3  ;;  %s1229_s26 = sshll.u32 (%p68_p3), %s187_s24, 9 }
   0xe   : > { %s1560_s29 = scalar_lea.vmem (%p68_p3), %s1809_s1, %s1310_s25  ;;  %s1565_s30 = scalar_lea.vmem (%p68_p3), [#allocation2], %s1229_s26 }
   0xf   : > { %v347_v0 = vld [vmem:[%s1560_s29] sm:$0xff] (%p68_p3)  ;;  %v349_v1 = vld [vmem:[%s1560_s29 + $0x10] sm:$0xff] (%p68_p3) }
  0x10   : > { %v351_v2 = vld [vmem:[%s1560_s29 + $0x20] sm:$0xff] (%p68_p3)  ;;  %348 = vst [vmem:[%s1565_s30] sm:$0xff] (%p68_p3), %v347_v0  ;;  %350 = vst [vmem:[%s1565_s30 + $0x8] sm:$0xff] (%p68_p3), %v349_v1  ;;  %v353_v3 = vld [vmem:[%s1560_s29 + $0x30] sm:$0xff] (%p68_p3) }
  0x11   : > { %352 = vst [vmem:[%s1565_s30 + $0x10] sm:$0xff] %v351_v2  ;;  %v355_v4 = vld [vmem:[%s1560_s29 + $0x40] sm:$0xff]  ;;  %v357_v5 = vld [vmem:[%s1560_s29 + $0x50] sm:$0xff]  ;;  %354 = vst [vmem:[%s1565_s30 + $0x18] sm:$0xff] %v353_v3 }
  0x12   : > { %356 = vst [vmem:[%s1565_s30 + $0x20] sm:$0xff] %v355_v4  ;;  %358 = vst [vmem:[%s1565_s30 + $0x28] sm:$0xff] %v357_v5  ;;  %v359_v6 = vld [vmem:[%s1560_s29 + $0x60] sm:$0xff]  ;;  %v361_v7 = vld [vmem:[%s1560_s29 + $0x70] sm:$0xff] }
  0x13   : > { %v363_v8 = vld [vmem:[%s1560_s29 + $0x80] sm:$0xff]  ;;  %360 = vst [vmem:[%s1565_s30 + $0x30] sm:$0xff] %v359_v6  ;;  %362 = vst [vmem:[%s1565_s30 + $0x38] sm:$0xff] %v361_v7  ;;  %v365_v9 = vld [vmem:[%s1560_s29 + $0x90] sm:$0xff] }
  0x14   : > { %364 = vst [vmem:[%s1565_s30 + $0x40] sm:$0xff] %v363_v8  ;;  %v367_v10 = vld [vmem:[%s1560_s29 + $0xa0] sm:$0xff]  ;;  %v369_v11 = vld [vmem:[%s1560_s29 + $0xb0] sm:$0xff]  ;;  %366 = vst [vmem:[%s1565_s30 + $0x48] sm:$0xff] %v365_v9 }
  0x15   : > { %368 = vst [vmem:[%s1565_s30 + $0x50] sm:$0xff] %v367_v10  ;;  %370 = vst [vmem:[%s1565_s30 + $0x58] sm:$0xff] %v369_v11  ;;  %v371_v12 = vld [vmem:[%s1560_s29 + $0xc0] sm:$0xff]  ;;  %v373_v13 = vld [vmem:[%s1560_s29 + $0xd0] sm:$0xff] }
  0x16   : > { %v375_v14 = vld [vmem:[%s1560_s29 + $0xe0] sm:$0xff]  ;;  %372 = vst [vmem:[%s1565_s30 + $0x60] sm:$0xff] %v371_v12  ;;  %374 = vst [vmem:[%s1565_s30 + $0x68] sm:$0xff] %v373_v13  ;;  %v377_v15 = vld [vmem:[%s1560_s29 + $0xf0] sm:$0xff] }
  0x17   : > { %376 = vst [vmem:[%s1565_s30 + $0x70] sm:$0xff] %v375_v14  ;;  %v379_v16 = vld [vmem:[%s1560_s29 + $0x100] sm:$0xff]  ;;  %v381_v17 = vld [vmem:[%s1560_s29 + $0x110] sm:$0xff]  ;;  %378 = vst [vmem:[%s1565_s30 + $0x78] sm:$0xff] %v377_v15 }
  0x18   : > { %380 = vst [vmem:[%s1565_s30 + $0x80] sm:$0xff] %v379_v16  ;;  %382 = vst [vmem:[%s1565_s30 + $0x88] sm:$0xff] %v381_v17  ;;  %v383_v18 = vld [vmem:[%s1560_s29 + $0x120] sm:$0xff]  ;;  %v385_v19 = vld [vmem:[%s1560_s29 + $0x130] sm:$0xff] }
  0x19   : > { %v387_v20 = vld [vmem:[%s1560_s29 + $0x140] sm:$0xff]  ;;  %384 = vst [vmem:[%s1565_s30 + $0x90] sm:$0xff] %v383_v18  ;;  %386 = vst [vmem:[%s1565_s30 + $0x98] sm:$0xff] %v385_v19  ;;  %v389_v21 = vld [vmem:[%s1560_s29 + $0x150] sm:$0xff] }
  0x1a   : > { %388 = vst [vmem:[%s1565_s30 + $0xa0] sm:$0xff] %v387_v20  ;;  %v391_v22 = vld [vmem:[%s1560_s29 + $0x160] sm:$0xff]  ;;  %v393_v23 = vld [vmem:[%s1560_s29 + $0x170] sm:$0xff]  ;;  %390 = vst [vmem:[%s1565_s30 + $0xa8] sm:$0xff] %v389_v21 }
  0x1b   : > { %392 = vst [vmem:[%s1565_s30 + $0xb0] sm:$0xff] %v391_v22  ;;  %394 = vst [vmem:[%s1565_s30 + $0xb8] sm:$0xff] %v393_v23  ;;  %v395_v24 = vld [vmem:[%s1560_s29 + $0x180] sm:$0xff]  ;;  %v397_v25 = vld [vmem:[%s1560_s29 + $0x190] sm:$0xff] }
  0x1c   : > { %v399_v26 = vld [vmem:[%s1560_s29 + $0x1a0] sm:$0xff]  ;;  %396 = vst [vmem:[%s1565_s30 + $0xc0] sm:$0xff] %v395_v24  ;;  %398 = vst [vmem:[%s1565_s30 + $0xc8] sm:$0xff] %v397_v25  ;;  %v401_v27 = vld [vmem:[%s1560_s29 + $0x1b0] sm:$0xff] }
  0x1d   : > { %400 = vst [vmem:[%s1565_s30 + $0xd0] sm:$0xff] %v399_v26  ;;  %v403_v28 = vld [vmem:[%s1560_s29 + $0x1c0] sm:$0xff]  ;;  %v405_v29 = vld [vmem:[%s1560_s29 + $0x1d0] sm:$0xff]  ;;  %402 = vst [vmem:[%s1565_s30 + $0xd8] sm:$0xff] %v401_v27 }
  0x1e   : > { %404 = vst [vmem:[%s1565_s30 + $0xe0] sm:$0xff] %v403_v28  ;;  %406 = vst [vmem:[%s1565_s30 + $0xe8] sm:$0xff] %v405_v29  ;;  %v407_v30 = vld [vmem:[%s1560_s29 + $0x1e0] sm:$0xff]  ;;  %v409_v31 = vld [vmem:[%s1560_s29 + $0x1f0] sm:$0xff] }
  0x1f   : > { %v411_v32 = vld [vmem:[%s1560_s29 + $0x200] sm:$0xff]  ;;  %408 = vst [vmem:[%s1565_s30 + $0xf0] sm:$0xff] %v407_v30  ;;  %410 = vst [vmem:[%s1565_s30 + $0xf8] sm:$0xff] %v409_v31  ;;  %v413_v33 = vld [vmem:[%s1560_s29 + $0x210] sm:$0xff] }
  0x20   : > { %412 = vst [vmem:[%s1565_s30 + $0x100] sm:$0xff] %v411_v32  ;;  %v415_v34 = vld [vmem:[%s1560_s29 + $0x220] sm:$0xff]  ;;  %v417_v35 = vld [vmem:[%s1560_s29 + $0x230] sm:$0xff]  ;;  %414 = vst [vmem:[%s1565_s30 + $0x108] sm:$0xff] %v413_v33 }
  0x21   : > { %416 = vst [vmem:[%s1565_s30 + $0x110] sm:$0xff] %v415_v34  ;;  %418 = vst [vmem:[%s1565_s30 + $0x118] sm:$0xff] %v417_v35  ;;  %v419_v36 = vld [vmem:[%s1560_s29 + $0x240] sm:$0xff]  ;;  %v421_v37 = vld [vmem:[%s1560_s29 + $0x250] sm:$0xff] }
  0x22   : > { %v423_v38 = vld [vmem:[%s1560_s29 + $0x260] sm:$0xff]  ;;  %420 = vst [vmem:[%s1565_s30 + $0x120] sm:$0xff] %v419_v36  ;;  %422 = vst [vmem:[%s1565_s30 + $0x128] sm:$0xff] %v421_v37  ;;  %v425_v39 = vld [vmem:[%s1560_s29 + $0x270] sm:$0xff] }
  0x23   : > { %424 = vst [vmem:[%s1565_s30 + $0x130] sm:$0xff] %v423_v38  ;;  %v427_v40 = vld [vmem:[%s1560_s29 + $0x280] sm:$0xff]  ;;  %v429_v41 = vld [vmem:[%s1560_s29 + $0x290] sm:$0xff]  ;;  %426 = vst [vmem:[%s1565_s30 + $0x138] sm:$0xff] %v425_v39 }
  0x24   : > { %428 = vst [vmem:[%s1565_s30 + $0x140] sm:$0xff] %v427_v40  ;;  %430 = vst [vmem:[%s1565_s30 + $0x148] sm:$0xff] %v429_v41  ;;  %v431_v42 = vld [vmem:[%s1560_s29 + $0x2a0] sm:$0xff]  ;;  %v433_v43 = vld [vmem:[%s1560_s29 + $0x2b0] sm:$0xff] }
  0x25   : > { %v435_v44 = vld [vmem:[%s1560_s29 + $0x2c0] sm:$0xff]  ;;  %432 = vst [vmem:[%s1565_s30 + $0x150] sm:$0xff] %v431_v42  ;;  %434 = vst [vmem:[%s1565_s30 + $0x158] sm:$0xff] %v433_v43  ;;  %v437_v45 = vld [vmem:[%s1560_s29 + $0x2d0] sm:$0xff] }
  0x26   : > { %436 = vst [vmem:[%s1565_s30 + $0x160] sm:$0xff] %v435_v44  ;;  %v439_v46 = vld [vmem:[%s1560_s29 + $0x2e0] sm:$0xff]  ;;  %v441_v47 = vld [vmem:[%s1560_s29 + $0x2f0] sm:$0xff]  ;;  %438 = vst [vmem:[%s1565_s30 + $0x168] sm:$0xff] %v437_v45 }
  0x27   : > { %440 = vst [vmem:[%s1565_s30 + $0x170] sm:$0xff] %v439_v46  ;;  %442 = vst [vmem:[%s1565_s30 + $0x178] sm:$0xff] %v441_v47  ;;  %v443_v48 = vld [vmem:[%s1560_s29 + $0x300] sm:$0xff]  ;;  %v445_v49 = vld [vmem:[%s1560_s29 + $0x310] sm:$0xff] }
  0x28   : > { %v447_v50 = vld [vmem:[%s1560_s29 + $0x320] sm:$0xff]  ;;  %444 = vst [vmem:[%s1565_s30 + $0x180] sm:$0xff] %v443_v48  ;;  %446 = vst [vmem:[%s1565_s30 + $0x188] sm:$0xff] %v445_v49  ;;  %v449_v51 = vld [vmem:[%s1560_s29 + $0x330] sm:$0xff] }
  0x29   : > { %448 = vst [vmem:[%s1565_s30 + $0x190] sm:$0xff] %v447_v50  ;;  %v451_v52 = vld [vmem:[%s1560_s29 + $0x340] sm:$0xff]  ;;  %v453_v53 = vld [vmem:[%s1560_s29 + $0x350] sm:$0xff]  ;;  %450 = vst [vmem:[%s1565_s30 + $0x198] sm:$0xff] %v449_v51 }
  0x2a   : > { %452 = vst [vmem:[%s1565_s30 + $0x1a0] sm:$0xff] %v451_v52  ;;  %454 = vst [vmem:[%s1565_s30 + $0x1a8] sm:$0xff] %v453_v53  ;;  %v455_v54 = vld [vmem:[%s1560_s29 + $0x360] sm:$0xff]  ;;  %v457_v55 = vld [vmem:[%s1560_s29 + $0x370] sm:$0xff] }
  0x2b   : > { %v459_v56 = vld [vmem:[%s1560_s29 + $0x380] sm:$0xff]  ;;  %456 = vst [vmem:[%s1565_s30 + $0x1b0] sm:$0xff] %v455_v54  ;;  %458 = vst [vmem:[%s1565_s30 + $0x1b8] sm:$0xff] %v457_v55  ;;  %v461_v57 = vld [vmem:[%s1560_s29 + $0x390] sm:$0xff] }
  0x2c   : > { %460 = vst [vmem:[%s1565_s30 + $0x1c0] sm:$0xff] %v459_v56  ;;  %v463_v58 = vld [vmem:[%s1560_s29 + $0x3a0] sm:$0xff]  ;;  %v465_v59 = vld [vmem:[%s1560_s29 + $0x3b0] sm:$0xff]  ;;  %462 = vst [vmem:[%s1565_s30 + $0x1c8] sm:$0xff] %v461_v57 }
  0x2d   : > { %464 = vst [vmem:[%s1565_s30 + $0x1d0] sm:$0xff] %v463_v58  ;;  %466 = vst [vmem:[%s1565_s30 + $0x1d8] sm:$0xff] %v465_v59  ;;  %v467_v60 = vld [vmem:[%s1560_s29 + $0x3c0] sm:$0xff]  ;;  %v469_v61 = vld [vmem:[%s1560_s29 + $0x3d0] sm:$0xff] }
  0x2e   : > { %v471_v62 = vld [vmem:[%s1560_s29 + $0x3e0] sm:$0xff]  ;;  %468 = vst [vmem:[%s1565_s30 + $0x1e0] sm:$0xff] %v467_v60  ;;  %470 = vst [vmem:[%s1565_s30 + $0x1e8] sm:$0xff] %v469_v61  ;;  %v473_v63 = vld [vmem:[%s1560_s29 + $0x3f0] sm:$0xff] }
  0x2f   : > { %472 = vst [vmem:[%s1565_s30 + $0x1f0] sm:$0xff] %v471_v62  ;;  %474 = vst [vmem:[%s1565_s30 + $0x1f8] sm:$0xff] %v473_v63 }
  0x30 PF: > { %p1232_p6 = scmp.ge.s32.totalorder %s1490_s19, 1  ;;  %p500_p7 = scmp.lt.s32.totalorder %s1490_s19, 3 }
  0x32   : > { %p501_p8 = pnand %p1232_p6, %p500_p7 }
  0x33   : > { %s507_s5 = sand.u32 (!%p501_p8), 1, %s1474_s15   ;;  %s1234_s12 = sshll.u32 (!%p501_p8), %s1482_s17, 1 }
  0x34   : > { %504 = sbr.rel (%p501_p8) target bundleno = 328 (0x148), region = 70  ;;  %s1233_s10 = sshll.u32 (!%p501_p8), %s507_s5, 9 }
  0x35   : > { %s1709_s11 = scalar_lea.vmem (!%p501_p8), [#allocation2], %s1233_s10  ;;  %p561_p9 = scmp.lt.s32.totalorder (!%p501_p8), %s1234_s12, 3 }
  0x39   : > { %v1698_v0 = vld [vmem:[%s1808_s0] sm:$0xff]  ;;  %v1703_v1 = vld [vmem:[%s1808_s0 + $0x8] sm:$0xff]  ;;  %v1352_v4 = vld [vmem:[%s1709_s11 + $0x74] ss:$8 sps:$4 sm:$0xff]   ;;  %s1820_s12 = smov (!%p561_p9, %s1234_s12), 3 }
  0x3a   : > { %v1240_v2 = vcombine.high %v1698_v0, %v1698_v0  ;;  %v1242_v3 = vcombine.high %v1703_v1, %v1703_v1  ;;  %v1354_v5 = vld [vmem:[%s1709_s11 + $0x174] ss:$8 sps:$4 sm:$0xff]   ;;  %997 = vmatprep.subr.bf16.mxu0 %v1352_v4  ;;  %v1356_v6 = vld [vmem:[%s1709_s11 + $0x70] ss:$8 sps:$4 sm:$0xff]   ;;  %v1358_v8 = vld [vmem:[%s1709_s11 + $0x64] ss:$8 sps:$4 sm:$0xff]   ;;  %s563_s15 = scalar_lea.vmem %s1810_s2, %s1820_s12 }
  0x3b   : > { %v1357_v7 = vld [vmem:[%s1709_s11 + $0x170] ss:$8 sps:$4 sm:$0xff]   ;;  %1038 = vmatprep.subr.bf16.mxu1 %v1354_v5  ;;  %998 = vmatpush1.bf16.msra.mxu0 %v1356_v6  ;;  %v1360_v9 = vld [vmem:[%s1709_s11 + $0x164] ss:$8 sps:$4 sm:$0xff]   ;;  %v1362_v10 = vld [vmem:[%s1709_s11 + $0x60] ss:$8 sps:$4 sm:$0xff]   ;;  %v1239_v6 = vcombine.low %v1698_v0, %v1698_v0 }
  0x3c   : > { %1029 = vmatprep.mubr.bf16.mxu0 %v1240_v2  ;;  %1070 = vmatprep.mubr.bf16.mxu1 %v1242_v3  ;;  %v1363_v11 = vld [vmem:[%s1709_s11 + $0x160] ss:$8 sps:$4 sm:$0xff]   ;;  %v1364_v12 = vld [vmem:[%s1709_s11 + $0x54] ss:$8 sps:$4 sm:$0xff]   ;;  %v1368_v14 = vld [vmem:[%s1709_s11 + $0x50] ss:$8 sps:$4 sm:$0xff]  }
  0x3d   : > { %1039 = vmatpush1.bf16.msra.mxu1 %v1357_v7  ;;  %999 = vmatprep.subr.bf16.mxu0 %v1358_v8  ;;  %v1366_v13 = vld [vmem:[%s1709_s11 + $0x154] ss:$8 sps:$4 sm:$0xff]   ;;  %v1369_v15 = vld [vmem:[%s1709_s11 + $0x150] ss:$8 sps:$4 sm:$0xff]   ;;  %v1370_v16 = vld [vmem:[%s1709_s11 + $0x44] ss:$8 sps:$4 sm:$0xff]   ;;  %v1241_v7 = vcombine.low %v1703_v1, %v1703_v1  ;;  %v653_v8 = vlaneseq }
  0x3e   : > { %1040 = vmatprep.subr.bf16.mxu1 %v1360_v9  ;;  %v1372_v17 = vld [vmem:[%s1709_s11 + $0x144] ss:$8 sps:$4 sm:$0xff]   ;;  %v1374_v18 = vld [vmem:[%s1709_s11 + $0x40] ss:$8 sps:$4 sm:$0xff]   ;;  %v1376_v20 = vld [vmem:[%s1709_s11 + $0x34] ss:$8 sps:$4 sm:$0xff]  }
  0x3f   : > { %1000 = vmatpush1.bf16.msra.mxu0 %v1362_v10  ;;  %v1375_v19 = vld [vmem:[%s1709_s11 + $0x140] ss:$8 sps:$4 sm:$0xff]   ;;  %v1378_v21 = vld [vmem:[%s1709_s11 + $0x134] ss:$8 sps:$4 sm:$0xff]   ;;  %v1380_v22 = vld [vmem:[%s1709_s11 + $0x30] ss:$8 sps:$4 sm:$0xff]  }
  0x40   : > { %1001 = vmatprep.subr.bf16.mxu0 %v1364_v12  ;;  %v1381_v23 = vld [vmem:[%s1709_s11 + $0x130] ss:$8 sps:$4 sm:$0xff]   ;;  %v1382_v24 = vld [vmem:[%s1709_s11 + $0x24] ss:$8 sps:$4 sm:$0xff]   ;;  %v1386_v26 = vld [vmem:[%s1709_s11 + $0x20] ss:$8 sps:$4 sm:$0xff]  }
  0x41   : > { %1041 = vmatpush1.bf16.msra.mxu1 %v1363_v11  ;;  %v1384_v25 = vld [vmem:[%s1709_s11 + $0x124] ss:$8 sps:$4 sm:$0xff]   ;;  %v1387_v27 = vld [vmem:[%s1709_s11 + $0x120] ss:$8 sps:$4 sm:$0xff]   ;;  %v1388_v28 = vld [vmem:[%s1709_s11 + $0x14] ss:$8 sps:$4 sm:$0xff]  }
  0x42   : > { %1042 = vmatprep.subr.bf16.mxu1 %v1366_v13  ;;  %v1390_v29 = vld [vmem:[%s1709_s11 + $0x114] ss:$8 sps:$4 sm:$0xff]   ;;  %v1392_v30 = vld [vmem:[%s1709_s11 + $0x10] ss:$8 sps:$4 sm:$0xff]   ;;  %v1394_v32 = vld [vmem:[%s1709_s11 + $0x4] ss:$8 sps:$4 sm:$0xff]  }
  0x43   : > { %1002 = vmatpush1.bf16.msra.mxu0 %v1368_v14  ;;  %v1393_v31 = vld [vmem:[%s1709_s11 + $0x110] ss:$8 sps:$4 sm:$0xff]   ;;  %v1396_v33 = vld [vmem:[%s1709_s11 + $0x104] ss:$8 sps:$4 sm:$0xff]   ;;  %v1398_v34 = vld [vmem:[%s1709_s11] ss:$8 sps:$4 sm:$0xff]  }
  0x44   : > { %1003 = vmatprep.subr.bf16.mxu0 %v1370_v16  ;;  %v1399_v35 = vld [vmem:[%s1709_s11 + $0x100] ss:$8 sps:$4 sm:$0xff]   ;;  %v1400_v36 = vld [vmem:[%s1709_s11 + $0xf4] ss:$8 sps:$4 sm:$0xff]   ;;  %v1404_v38 = vld [vmem:[%s1709_s11 + $0xf0] ss:$8 sps:$4 sm:$0xff]  }
  0x45   : > { %1043 = vmatpush1.bf16.msra.mxu1 %v1369_v15  ;;  %v1402_v37 = vld [vmem:[%s1709_s11 + $0x1f4] ss:$8 sps:$4 sm:$0xff]   ;;  %v1405_v39 = vld [vmem:[%s1709_s11 + $0x1f0] ss:$8 sps:$4 sm:$0xff]   ;;  %v1406_v40 = vld [vmem:[%s1709_s11 + $0xe4] ss:$8 sps:$4 sm:$0xff]  }
  0x46   : > { %1044 = vmatprep.subr.bf16.mxu1 %v1372_v17  ;;  %v1408_v41 = vld [vmem:[%s1709_s11 + $0x1e4] ss:$8 sps:$4 sm:$0xff]   ;;  %v1410_v42 = vld [vmem:[%s1709_s11 + $0xe0] ss:$8 sps:$4 sm:$0xff]   ;;  %v1412_v44 = vld [vmem:[%s1709_s11 + $0xd4] ss:$8 sps:$4 sm:$0xff]  }
  0x47   : > { %1004 = vmatpush1.bf16.msra.mxu0 %v1374_v18  ;;  %v1411_v43 = vld [vmem:[%s1709_s11 + $0x1e0] ss:$8 sps:$4 sm:$0xff]   ;;  %v1414_v45 = vld [vmem:[%s1709_s11 + $0x1d4] ss:$8 sps:$4 sm:$0xff]   ;;  %v1416_v46 = vld [vmem:[%s1709_s11 + $0xd0] ss:$8 sps:$4 sm:$0xff]  }
  0x48   : > { %1005 = vmatprep.subr.bf16.mxu0 %v1376_v20  ;;  %v1417_v47 = vld [vmem:[%s1709_s11 + $0x1d0] ss:$8 sps:$4 sm:$0xff]   ;;  %v1418_v48 = vld [vmem:[%s1709_s11 + $0xc4] ss:$8 sps:$4 sm:$0xff]   ;;  %v1422_v50 = vld [vmem:[%s1709_s11 + $0xc0] ss:$8 sps:$4 sm:$0xff]  }
  0x49   : > { %1045 = vmatpush1.bf16.msra.mxu1 %v1375_v19  ;;  %v1420_v49 = vld [vmem:[%s1709_s11 + $0x1c4] ss:$8 sps:$4 sm:$0xff]   ;;  %v1423_v51 = vld [vmem:[%s1709_s11 + $0x1c0] ss:$8 sps:$4 sm:$0xff]   ;;  %v1424_v52 = vld [vmem:[%s1709_s11 + $0xb4] ss:$8 sps:$4 sm:$0xff]  }
  0x4a   : > { %1046 = vmatprep.subr.bf16.mxu1 %v1378_v21  ;;  %v1426_v53 = vld [vmem:[%s1709_s11 + $0x1b4] ss:$8 sps:$4 sm:$0xff]   ;;  %v1428_v54 = vld [vmem:[%s1709_s11 + $0xb0] ss:$8 sps:$4 sm:$0xff]   ;;  %v1430_v56 = vld [vmem:[%s1709_s11 + $0xa4] ss:$8 sps:$4 sm:$0xff]  }
  0x4b   : > { %1006 = vmatpush1.bf16.msra.mxu0 %v1380_v22  ;;  %v1429_v55 = vld [vmem:[%s1709_s11 + $0x1b0] ss:$8 sps:$4 sm:$0xff]   ;;  %v1432_v57 = vld [vmem:[%s1709_s11 + $0x1a4] ss:$8 sps:$4 sm:$0xff]   ;;  %v1434_v58 = vld [vmem:[%s1709_s11 + $0xa0] ss:$8 sps:$4 sm:$0xff]  }
  0x4c   : > { %1007 = vmatprep.subr.bf16.mxu0 %v1382_v24  ;;  %v1435_v59 = vld [vmem:[%s1709_s11 + $0x1a0] ss:$8 sps:$4 sm:$0xff]   ;;  %v1436_v60 = vld [vmem:[%s1709_s11 + $0x94] ss:$8 sps:$4 sm:$0xff]   ;;  %v1440_v62 = vld [vmem:[%s1709_s11 + $0x90] ss:$8 sps:$4 sm:$0xff]  }
  0x4d   : > { %1047 = vmatpush1.bf16.msra.mxu1 %v1381_v23  ;;  %v1438_v61 = vld [vmem:[%s1709_s11 + $0x194] ss:$8 sps:$4 sm:$0xff]   ;;  %v1441_v63 = vld [vmem:[%s1709_s11 + $0x190] ss:$8 sps:$4 sm:$0xff]   ;;  %v1442_v2 = vld [vmem:[%s1709_s11 + $0x84] ss:$8 sps:$4 sm:$0xff]  }
  0x4e   : > { %1048 = vmatprep.subr.bf16.mxu1 %v1384_v25  ;;  %v1444_v3 = vld [vmem:[%s1709_s11 + $0x184] ss:$8 sps:$4 sm:$0xff]   ;;  %v1446_v4 = vld [vmem:[%s1709_s11 + $0x80] ss:$8 sps:$4 sm:$0xff]   ;;  %v654_v9 = vshrl.u32 %v653_v8, 7  ;;  %s1236_s21 = sshll.u32 %s1820_s12, 2 }
  0x4f   : > { %1008 = vmatpush1.bf16.msra.mxu0 %v1386_v26  ;;  %v1447_v5 = vld [vmem:[%s1709_s11 + $0x180] ss:$8 sps:$4 sm:$0xff]   ;;  %s573_s25 = scalar_lea.vmem %s1811_s3, %s1236_s21  ;;  %s583_s27 = scalar_lea.vmem %s1812_s4, %s1236_s21 }
  0x50   : > { %1009 = vmatprep.subr.bf16.mxu0 %v1388_v28  ;;  %v655_v0 = vsub.s32 0, %v654_v9  ;;  %v651_v10 = vld [vmem:[%s563_s15] sm:$0x3]  ;;  %v659_v1 = vsub.s32 1, %v654_v9 }
  0x51   : > { %1049 = vmatpush1.bf16.msra.mxu1 %v1387_v27  ;;  %v1079_v12 = vld [vmem:[%s573_s25] sm:$0xff] }
  0x52   : > { %1050 = vmatprep.subr.bf16.mxu1 %v1390_v29  ;;  %v656_v11 = vrot.slane %v651_v10, %v655_v0  ;;  %v660_v13 = vrot.slane %v651_v10, %v659_v1  ;;  %v1080_v17 = vunpack.c.l.bf16 %v1079_v12  ;;  %v1081_v22 = vunpack.c.h.bf16 %v1079_v12 }
  0x53   : > { %1010 = vmatpush1.bf16.msra.mxu0 %v1392_v30 }
  0x54   : > { %1011 = vmatprep.subr.bf16.mxu0 %v1394_v32 }
  0x55   : > { %1051 = vmatpush1.bf16.msra.mxu1 %v1393_v31 }
  0x56   : > { %1052 = vmatprep.subr.bf16.mxu1 %v1396_v33 }
  0x57   : > { %1012 = vmatpush1.bf16.msra.mxu0 %v1398_v34 }
  0x58   : > { %1013 = vmatprep.subr.bf16.mxu0 %v1400_v36 }
  0x59   : > { %1053 = vmatpush1.bf16.msra.mxu1 %v1399_v35 }
  0x5a   : > { %1054 = vmatprep.subr.bf16.mxu1 %v1402_v37 }
  0x5b   : > { %1014 = vmatpush2.bf16.msra.mxu0 %v1404_v38 }
  0x5c   : > { %1015 = vmatprep.subr.bf16.mxu0 %v1406_v40 }
  0x5d   : > { %1055 = vmatpush2.bf16.msra.mxu1 %v1405_v39 }
  0x5e   : > { %1056 = vmatprep.subr.bf16.mxu1 %v1408_v41 }
  0x5f   : > { %1016 = vmatpush2.bf16.msra.mxu0 %v1410_v42 }
  0x60   : > { %1017 = vmatprep.subr.bf16.mxu0 %v1412_v44 }
  0x61   : > { %1057 = vmatpush2.bf16.msra.mxu1 %v1411_v43 }
  0x62   : > { %1058 = vmatprep.subr.bf16.mxu1 %v1414_v45 }
  0x63   : > { %1018 = vmatpush2.bf16.msra.mxu0 %v1416_v46 }
  0x64   : > { %1019 = vmatprep.subr.bf16.mxu0 %v1418_v48 }
  0x65   : > { %1059 = vmatpush2.bf16.msra.mxu1 %v1417_v47 }
  0x66   : > { %1060 = vmatprep.subr.bf16.mxu1 %v1420_v49 }
  0x67   : > { %1020 = vmatpush2.bf16.msra.mxu0 %v1422_v50 }
  0x68   : > { %1021 = vmatprep.subr.bf16.mxu0 %v1424_v52 }
  0x69   : > { %1061 = vmatpush2.bf16.msra.mxu1 %v1423_v51 }
  0x6a   : > { %1062 = vmatprep.subr.bf16.mxu1 %v1426_v53 }
  0x6b   : > { %1022 = vmatpush2.bf16.msra.mxu0 %v1428_v54 }
  0x6c   : > { %1023 = vmatprep.subr.bf16.mxu0 %v1430_v56 }
  0x6d   : > { %1063 = vmatpush2.bf16.msra.mxu1 %v1429_v55 }
  0x6e   : > { %1064 = vmatprep.subr.bf16.mxu1 %v1432_v57 }
  0x6f   : > { %1024 = vmatpush2.bf16.msra.mxu0 %v1434_v58 }
  0x70   : > { %1025 = vmatprep.subr.bf16.mxu0 %v1436_v60 }
  0x71   : > { %1065 = vmatpush2.bf16.msra.mxu1 %v1435_v59 }
  0x72   : > { %1066 = vmatprep.subr.bf16.mxu1 %v1438_v61 }
  0x73   : > { %1026 = vmatpush2.bf16.msra.mxu0 %v1440_v62 }
  0x74   : > { %1027 = vmatprep.subr.bf16.mxu0 %v1442_v2 }
  0x75   : > { %1067 = vmatpush2.bf16.msra.mxu1 %v1441_v63 }
  0x76   : > { %1068 = vmatprep.subr.bf16.mxu1 %v1444_v3 }
  0x77   : > { %1028 = vmatpush2.bf16.msra.mxu0 %v1446_v4 }
  0x79   : > { %1069 = vmatpush2.bf16.msra.mxu1 %v1447_v5 }
  0x7a   : > { %1030 = vmatmul.mubr.bf16.vlgmr.msra.gmra.mxu0 %v1239_v6 }
  0x7c   : > { %1071 = vmatmul.mubr.bf16.vlgmr.msra.gmra.mxu1 %v1241_v7 }
 0x13a   : > { %v1031_v14 = vpop.f32.mrf.mxu0 }
 0x13b   : > { %v1032_v16 = vadd.f32 %v1031_v14, %v656_v11 }
 0x13c   : > { %v1072_v15 = vpop.f32.mrf.mxu1  ;;  %v1033_v18 = vpop.f32.mrf.mxu0 }
 0x13d   : > { %v1073_v20 = vadd.f32 %v1072_v15, %v1032_v16  ;;  %v1034_v21 = vadd.f32 %v1033_v18, %v660_v13 }
 0x13e   : > { %v1074_v19 = vpop.f32.mrf.mxu1  ;;  %v1035_v23 = vpop.f32.mrf.mxu0 }
 0x13f   : > { %v1082_v25 = vadd.f32 %v1080_v17, %v1073_v20  ;;  %v1075_v26 = vadd.f32 %v1074_v19, %v1034_v21 }
 0x140   : > { %v1076_v24 = vpop.f32.mrf.mxu1  ;;  %v1036_v27 = vpop.f32.mrf.mxu0 }
 0x141   : > { %v1083_v29 = vadd.f32 %v1081_v22, %v1075_v26  ;;  %v1084_v30 = vmax.f32 %v1082_v25, 0.0 }
 0x142   : > { %v1077_v28 = vpop.f32.mrf.mxu1 }
 0x143   : > { %v1085_v31 = vmax.f32 %v1083_v29, 0.0 }
 0x145   : > { %v1311_v32 = vpack.c.bf16 %v1085_v31, %v1084_v30 }
 0x147   : > { %1094 = vst [vmem:[%s583_s27] sm:$0xff] %v1311_v32 }
 0x148 PF: > { %s14_s19 = sadd.s32 1, %s1490_s19   ;;  %s1813_s15 = smov %s1478_s16 }
 0x149   : > { %p11_p10 = scmp.ge.s32.totalorder %s14_s19, 4   ;;  %s1814_s16 = smov %s1552_s23 }
 0x14a   : > { %s1815_s17 = smov %s1486_s18  ;;  %s1816_s18 = smov %s1818_s20 }
 0x14b   :  { %13 = sbr.rel (!%p11_p10) target bundleno = 3 (0x3), region = 118 }

// kernel: resnet34_forward.75
= control target key start
LH: loop header
LB: loop body
LE: loop exit
PB: predicated region body
PF: predicated region fallthrough
CT: control target
= control target key end

     0   :  { %s1218_s12 = smov 0   ;;  %s1220_s13 = smov 0   ;;  %s1471_s0 = inlined_call_operand.vmem [shape: bf16[8,512], index: 0, kind: input, shape index: {}]   ;;  %s1472_s1 = inlined_call_operand.vmem [shape: bf16[512,256], index: 1, kind: input, shape index: {}]   ;;  %s1473_s2 = inlined_call_operand.vmem [shape: f32[1,256], index: 2, kind: input, shape index: {}]   ;;  %s1474_s3 = inlined_call_operand.vmem [shape: f32[8,256], index: 3, kind: output, shape index: {}]  }
   0x1   :  { %s1222_s14 = smov 0   ;;  %s1224_s15 = smov 0  }
   0x2   :  { %s1226_s16 = smov 0  }
   0x3 LB: > { %s22_s17 = sadd.s32 1, %s1192_s15  ;;  %p65_p1 = scmp.ne.s32.totalorder %s1184_s13, %s1180_s12  ;;  %s1196_s16 = sphi %s1226_s16, %s13_s16   ;;  %s1192_s15 = sphi %s1224_s15, %s1478_s15   ;;  %s1188_s14 = sphi %s1222_s14, %s1477_s14   ;;  %s1184_s13 = sphi %s1220_s13, %s1476_s13   ;;  %s1180_s12 = sphi %s1218_s12, %s1475_s12  }
   0x4   : > { %p23_p0 = scmp.ge.s32.totalorder %s22_s17, 2  ;;  %p66_p2 = scmp.eq.s32.totalorder %s1196_s16, 0 }
   0x5   : > { %s58_s19 = sadd.s32 1, %s1184_s13  ;;  %p993_p5 = scmp.ge.s32.totalorder %s1196_s16, 2 }
   0x6   : > { %s1480_s17 = smov (%p23_p0, %s22_s17), 0  ;;  %p67_p3 = por %p66_p2, %p65_p1 }
   0x7   : > { %s55_s18 = ssub.s32 %s1192_s15, %s1480_s17  ;;  %153 = sbr.rel (%p993_p5) target bundleno = 58 (0x3a), region = 20 }
   0x8   : > { %p56_p4 = scmp.eq.s32.totalorder %s55_s18, 0 }
   0xa   : > { %s1253_s20 = scalar_select %p56_p4, %s1184_s13, %s58_s19  }
   0xc   : > { %156 = sbr.rel (!%p67_p3) target bundleno = 58 (0x3a), region = 24  ;;  %s158_s21 = sand.u32 (%p67_p3), 1, %s1184_s13  }
   0xd   : > { %s995_s22 = sshll.u32 (%p67_p3), %s1192_s15, 2  ;;  %s994_s23 = sshll.u32 (%p67_p3), %s158_s21, 8 }
   0xe   : > { %s1261_s26 = scalar_lea.vmem (%p67_p3), %s1472_s1, %s995_s22  ;;  %s1265_s27 = scalar_lea.vmem (%p67_p3), [#allocation2], %s994_s23 }
   0xf   : > { %v179_v0 = vld [vmem:[%s1261_s26] sm:$0xf] (%p67_p3)  ;;  %v181_v1 = vld [vmem:[%s1261_s26 + $0x8] sm:$0xf] (%p67_p3)  ;;  %v183_v2 = vld [vmem:[%s1261_s26 + $0x10] sm:$0xf] (%p67_p3) }
  0x10   : > { %180 = vst [vmem:[%s1265_s27] sm:$0xf] (%p67_p3), %v179_v0  ;;  %182 = vst [vmem:[%s1265_s27 + $0x4] sm:$0xf] (%p67_p3), %v181_v1  ;;  %v185_v3 = vld [vmem:[%s1261_s26 + $0x18] sm:$0xf] (%p67_p3) }
  0x11   : > { %v187_v4 = vld [vmem:[%s1261_s26 + $0x20] sm:$0xf]  ;;  %184 = vst [vmem:[%s1265_s27 + $0x8] sm:$0xf] %v183_v2  ;;  %186 = vst [vmem:[%s1265_s27 + $0xc] sm:$0xf] %v185_v3 }
  0x12   : > { %188 = vst [vmem:[%s1265_s27 + $0x10] sm:$0xf] %v187_v4  ;;  %v189_v5 = vld [vmem:[%s1261_s26 + $0x28] sm:$0xf]  ;;  %v191_v6 = vld [vmem:[%s1261_s26 + $0x30] sm:$0xf] }
  0x13   : > { %v193_v7 = vld [vmem:[%s1261_s26 + $0x38] sm:$0xf]  ;;  %190 = vst [vmem:[%s1265_s27 + $0x14] sm:$0xf] %v189_v5  ;;  %192 = vst [vmem:[%s1265_s27 + $0x18] sm:$0xf] %v191_v6 }
  0x14   : > { %194 = vst [vmem:[%s1265_s27 + $0x1c] sm:$0xf] %v193_v7  ;;  %v195_v8 = vld [vmem:[%s1261_s26 + $0x40] sm:$0xf]  ;;  %v197_v9 = vld [vmem:[%s1261_s26 + $0x48] sm:$0xf] }
  0x15   : > { %v199_v10 = vld [vmem:[%s1261_s26 + $0x50] sm:$0xf]  ;;  %196 = vst [vmem:[%s1265_s27 + $0x20] sm:$0xf] %v195_v8  ;;  %198 = vst [vmem:[%s1265_s27 + $0x24] sm:$0xf] %v197_v9 }
  0x16   : > { %200 = vst [vmem:[%s1265_s27 + $0x28] sm:$0xf] %v199_v10  ;;  %v201_v11 = vld [vmem:[%s1261_s26 + $0x58] sm:$0xf]  ;;  %v203_v12 = vld [vmem:[%s1261_s26 + $0x60] sm:$0xf] }
  0x17   : > { %v205_v13 = vld [vmem:[%s1261_s26 + $0x68] sm:$0xf]  ;;  %202 = vst [vmem:[%s1265_s27 + $0x2c] sm:$0xf] %v201_v11  ;;  %204 = vst [vmem:[%s1265_s27 + $0x30] sm:$0xf] %v203_v12 }
  0x18   : > { %206 = vst [vmem:[%s1265_s27 + $0x34] sm:$0xf] %v205_v13  ;;  %v207_v14 = vld [vmem:[%s1261_s26 + $0x70] sm:$0xf]  ;;  %v209_v15 = vld [vmem:[%s1261_s26 + $0x78] sm:$0xf] }
  0x19   : > { %v211_v16 = vld [vmem:[%s1261_s26 + $0x80] sm:$0xf]  ;;  %208 = vst [vmem:[%s1265_s27 + $0x38] sm:$0xf] %v207_v14  ;;  %210 = vst [vmem:[%s1265_s27 + $0x3c] sm:$0xf] %v209_v15 }
  0x1a   : > { %212 = vst [vmem:[%s1265_s27 + $0x40] sm:$0xf] %v211_v16  ;;  %v213_v17 = vld [vmem:[%s1261_s26 + $0x88] sm:$0xf]  ;;  %v215_v18 = vld [vmem:[%s1261_s26 + $0x90] sm:$0xf] }
  0x1b   : > { %v217_v19 = vld [vmem:[%s1261_s26 + $0x98] sm:$0xf]  ;;  %214 = vst [vmem:[%s1265_s27 + $0x44] sm:$0xf] %v213_v17  ;;  %216 = vst [vmem:[%s1265_s27 + $0x48] sm:$0xf] %v215_v18 }
  0x1c   : > { %218 = vst [vmem:[%s1265_s27 + $0x4c] sm:$0xf] %v217_v19  ;;  %v219_v20 = vld [vmem:[%s1261_s26 + $0xa0] sm:$0xf]  ;;  %v221_v21 = vld [vmem:[%s1261_s26 + $0xa8] sm:$0xf] }
  0x1d   : > { %v223_v22 = vld [vmem:[%s1261_s26 + $0xb0] sm:$0xf]  ;;  %220 = vst [vmem:[%s1265_s27 + $0x50] sm:$0xf] %v219_v20  ;;  %222 = vst [vmem:[%s1265_s27 + $0x54] sm:$0xf] %v221_v21 }
  0x1e   : > { %224 = vst [vmem:[%s1265_s27 + $0x58] sm:$0xf] %v223_v22  ;;  %v225_v23 = vld [vmem:[%s1261_s26 + $0xb8] sm:$0xf]  ;;  %v227_v24 = vld [vmem:[%s1261_s26 + $0xc0] sm:$0xf] }
  0x1f   : > { %v229_v25 = vld [vmem:[%s1261_s26 + $0xc8] sm:$0xf]  ;;  %226 = vst [vmem:[%s1265_s27 + $0x5c] sm:$0xf] %v225_v23  ;;  %228 = vst [vmem:[%s1265_s27 + $0x60] sm:$0xf] %v227_v24 }
  0x20   : > { %230 = vst [vmem:[%s1265_s27 + $0x64] sm:$0xf] %v229_v25  ;;  %v231_v26 = vld [vmem:[%s1261_s26 + $0xd0] sm:$0xf]  ;;  %v233_v27 = vld [vmem:[%s1261_s26 + $0xd8] sm:$0xf] }
  0x21   : > { %v235_v28 = vld [vmem:[%s1261_s26 + $0xe0] sm:$0xf]  ;;  %232 = vst [vmem:[%s1265_s27 + $0x68] sm:$0xf] %v231_v26  ;;  %234 = vst [vmem:[%s1265_s27 + $0x6c] sm:$0xf] %v233_v27 }
  0x22   : > { %236 = vst [vmem:[%s1265_s27 + $0x70] sm:$0xf] %v235_v28  ;;  %v237_v29 = vld [vmem:[%s1261_s26 + $0xe8] sm:$0xf]  ;;  %v239_v30 = vld [vmem:[%s1261_s26 + $0xf0] sm:$0xf] }
  0x23   : > { %v241_v31 = vld [vmem:[%s1261_s26 + $0xf8] sm:$0xf]  ;;  %238 = vst [vmem:[%s1265_s27 + $0x74] sm:$0xf] %v237_v29  ;;  %240 = vst [vmem:[%s1265_s27 + $0x78] sm:$0xf] %v239_v30 }
  0x24   : > { %242 = vst [vmem:[%s1265_s27 + $0x7c] sm:$0xf] %v241_v31  ;;  %v243_v32 = vld [vmem:[%s1261_s26 + $0x100] sm:$0xf]  ;;  %v245_v33 = vld [vmem:[%s1261_s26 + $0x108] sm:$0xf] }
  0x25   : > { %v247_v34 = vld [vmem:[%s1261_s26 + $0x110] sm:$0xf]  ;;  %244 = vst [vmem:[%s1265_s27 + $0x80] sm:$0xf] %v243_v32  ;;  %246 = vst [vmem:[%s1265_s27 + $0x84] sm:$0xf] %v245_v33 }
  0x26   : > { %248 = vst [vmem:[%s1265_s27 + $0x88] sm:$0xf] %v247_v34  ;;  %v249_v35 = vld [vmem:[%s1261_s26 + $0x118] sm:$0xf]  ;;  %v251_v36 = vld [vmem:[%s1261_s26 + $0x120] sm:$0xf] }
  0x27   : > { %v253_v37 = vld [vmem:[%s1261_s26 + $0x128] sm:$0xf]  ;;  %250 = vst [vmem:[%s1265_s27 + $0x8c] sm:$0xf] %v249_v35  ;;  %252 = vst [vmem:[%s1265_s27 + $0x90] sm:$0xf] %v251_v36 }
  0x28   : > { %254 = vst [vmem:[%s1265_s27 + $0x94] sm:$0xf] %v253_v37  ;;  %v255_v38 = vld [vmem:[%s1261_s26 + $0x130] sm:$0xf]  ;;  %v257_v39 = vld [vmem:[%s1261_s26 + $0x138] sm:$0xf] }
  0x29   : > { %v259_v40 = vld [vmem:[%s1261_s26 + $0x140] sm:$0xf]  ;;  %256 = vst [vmem:[%s1265_s27 + $0x98] sm:$0xf] %v255_v38  ;;  %258 = vst [vmem:[%s1265_s27 + $0x9c] sm:$0xf] %v257_v39 }
  0x2a   : > { %260 = vst [vmem:[%s1265_s27 + $0xa0] sm:$0xf] %v259_v40  ;;  %v261_v41 = vld [vmem:[%s1261_s26 + $0x148] sm:$0xf]  ;;  %v263_v42 = vld [vmem:[%s1261_s26 + $0x150] sm:$0xf] }
  0x2b   : > { %v265_v43 = vld [vmem:[%s1261_s26 + $0x158] sm:$0xf]  ;;  %262 = vst [vmem:[%s1265_s27 + $0xa4] sm:$0xf] %v261_v41  ;;  %264 = vst [vmem:[%s1265_s27 + $0xa8] sm:$0xf] %v263_v42 }
  0x2c   : > { %266 = vst [vmem:[%s1265_s27 + $0xac] sm:$0xf] %v265_v43  ;;  %v267_v44 = vld [vmem:[%s1261_s26 + $0x160] sm:$0xf]  ;;  %v269_v45 = vld [vmem:[%s1261_s26 + $0x168] sm:$0xf] }
  0x2d   : > { %v271_v46 = vld [vmem:[%s1261_s26 + $0x170] sm:$0xf]  ;;  %268 = vst [vmem:[%s1265_s27 + $0xb0] sm:$0xf] %v267_v44  ;;  %270 = vst [vmem:[%s1265_s27 + $0xb4] sm:$0xf] %v269_v45 }
  0x2e   : > { %272 = vst [vmem:[%s1265_s27 + $0xb8] sm:$0xf] %v271_v46  ;;  %v273_v47 = vld [vmem:[%s1261_s26 + $0x178] sm:$0xf]  ;;  %v275_v48 = vld [vmem:[%s1261_s26 + $0x180] sm:$0xf] }
  0x2f   : > { %v277_v49 = vld [vmem:[%s1261_s26 + $0x188] sm:$0xf]  ;;  %274 = vst [vmem:[%s1265_s27 + $0xbc] sm:$0xf] %v273_v47  ;;  %276 = vst [vmem:[%s1265_s27 + $0xc0] sm:$0xf] %v275_v48 }
  0x30   : > { %278 = vst [vmem:[%s1265_s27 + $0xc4] sm:$0xf] %v277_v49  ;;  %v279_v50 = vld [vmem:[%s1261_s26 + $0x190] sm:$0xf]  ;;  %v281_v51 = vld [vmem:[%s1261_s26 + $0x198] sm:$0xf] }
  0x31   : > { %v283_v52 = vld [vmem:[%s1261_s26 + $0x1a0] sm:$0xf]  ;;  %280 = vst [vmem:[%s1265_s27 + $0xc8] sm:$0xf] %v279_v50  ;;  %282 = vst [vmem:[%s1265_s27 + $0xcc] sm:$0xf] %v281_v51 }
  0x32   : > { %284 = vst [vmem:[%s1265_s27 + $0xd0] sm:$0xf] %v283_v52  ;;  %v285_v53 = vld [vmem:[%s1261_s26 + $0x1a8] sm:$0xf]  ;;  %v287_v54 = vld [vmem:[%s1261_s26 + $0x1b0] sm:$0xf] }
  0x33   : > { %v289_v55 = vld [vmem:[%s1261_s26 + $0x1b8] sm:$0xf]  ;;  %286 = vst [vmem:[%s1265_s27 + $0xd4] sm:$0xf] %v285_v53  ;;  %288 = vst [vmem:[%s1265_s27 + $0xd8] sm:$0xf] %v287_v54 }
  0x34   : > { %290 = vst [vmem:[%s1265_s27 + $0xdc] sm:$0xf] %v289_v55  ;;  %v291_v56 = vld [vmem:[%s1261_s26 + $0x1c0] sm:$0xf]  ;;  %v293_v57 = vld [vmem:[%s1261_s26 + $0x1c8] sm:$0xf] }
  0x35   : > { %v295_v58 = vld [vmem:[%s1261_s26 + $0x1d0] sm:$0xf]  ;;  %292 = vst [vmem:[%s1265_s27 + $0xe0] sm:$0xf] %v291_v56  ;;  %294 = vst [vmem:[%s1265_s27 + $0xe4] sm:$0xf] %v293_v57 }
  0x36   : > { %296 = vst [vmem:[%s1265_s27 + $0xe8] sm:$0xf] %v295_v58  ;;  %v297_v59 = vld [vmem:[%s1261_s26 + $0x1d8] sm:$0xf]  ;;  %v299_v60 = vld [vmem:[%s1261_s26 + $0x1e0] sm:$0xf] }
  0x37   : > { %v301_v61 = vld [vmem:[%s1261_s26 + $0x1e8] sm:$0xf]  ;;  %298 = vst [vmem:[%s1265_s27 + $0xec] sm:$0xf] %v297_v59  ;;  %300 = vst [vmem:[%s1265_s27 + $0xf0] sm:$0xf] %v299_v60 }
  0x38   : > { %302 = vst [vmem:[%s1265_s27 + $0xf4] sm:$0xf] %v301_v61  ;;  %v303_v62 = vld [vmem:[%s1261_s26 + $0x1f0] sm:$0xf]  ;;  %v305_v63 = vld [vmem:[%s1261_s26 + $0x1f8] sm:$0xf] }
  0x39   : > { %304 = vst [vmem:[%s1265_s27 + $0xf8] sm:$0xf] %v303_v62  ;;  %306 = vst [vmem:[%s1265_s27 + $0xfc] sm:$0xf] %v305_v63 }
  0x3a PF: > { %p996_p6 = scmp.ge.s32.totalorder %s1196_s16, 1  ;;  %p463_p7 = scmp.lt.s32.totalorder %s1196_s16, 3 }
  0x3c   : > { %p464_p8 = pnand %p996_p6, %p463_p7 }
  0x3d   : > { %s470_s28 = sand.u32 (!%p464_p8), 1, %s1180_s12   ;;  %p509_p9 = scmp.lt.s32.totalorder (!%p464_p8), %s1188_s14, 1 }
  0x3e   : > { %467 = sbr.rel (%p464_p8) target bundleno = 304 (0x130), region = 69  ;;  %s997_s6 = sshll.u32 (!%p464_p8), %s470_s28, 8 }
  0x3f   : > { %s1410_s7 = scalar_lea.vmem (!%p464_p8), [#allocation2], %s997_s6 }
  0x43   : > { %v1399_v0 = vld [vmem:[%s1471_s0] sm:$0xff]  ;;  %v1404_v1 = vld [vmem:[%s1471_s0 + $0x8] sm:$0xff]  ;;  %v1122_v4 = vld [vmem:[%s1410_s7 + $0x78] sm:$0xff]   ;;  %s1482_s14 = smov (!%p509_p9, %s1188_s14), 1 }
  0x44   : > { %v1001_v2 = vcombine.high %v1399_v0, %v1399_v0  ;;  %v1003_v3 = vcombine.high %v1404_v1, %v1404_v1  ;;  %v1123_v5 = vld [vmem:[%s1410_s7 + $0xf8] sm:$0xff]   ;;  %1038 = vmatprep.subr.bf16.mxu0 %v1122_v4  ;;  %v1126_v8 = vld [vmem:[%s1410_s7 + $0x70] sm:$0xff]   ;;  %v1130_v12 = vld [vmem:[%s1410_s7 + $0x68] sm:$0xff]   ;;  %v1000_v36 = vcombine.low %v1399_v0, %v1399_v0  ;;  %v1002_v37 = vcombine.low %v1404_v1, %v1404_v1  ;;  %s511_s10 = scalar_lea.vmem %s1473_s2, %s1482_s14  ;;  %s998_s11 = sshll.u32 %s1482_s14, 3 }
  0x45   : > { %v1124_v6 = vld [vmem:[%s1410_s7 + $0x38] sm:$0xff]   ;;  %1060 = vmatprep.subr.bf16.mxu1 %v1123_v5  ;;  %v1127_v9 = vld [vmem:[%s1410_s7 + $0xf0] sm:$0xff]   ;;  %v1131_v13 = vld [vmem:[%s1410_s7 + $0xe8] sm:$0xff]   ;;  %s519_s19 = scalar_lea.vmem %s1474_s3, %s998_s11 }
  0x46   : > { %832 = vmatprep.mubr.bf16.mxu0 %v1001_v2  ;;  %872 = vmatprep.mubr.bf16.mxu1 %v1003_v3  ;;  %v1125_v7 = vld [vmem:[%s1410_s7 + $0xb8] sm:$0xff]   ;;  %v1128_v10 = vld [vmem:[%s1410_s7 + $0x30] sm:$0xff]   ;;  %v1132_v14 = vld [vmem:[%s1410_s7 + $0x28] sm:$0xff]  }
  0x47   : > { %1039 = vmatpush3.bf16.msra.mxu0 %v1124_v6  ;;  %1061 = vmatpush3.bf16.msra.mxu1 %v1125_v7  ;;  %v1129_v11 = vld [vmem:[%s1410_s7 + $0xb0] sm:$0xff]   ;;  %v1133_v15 = vld [vmem:[%s1410_s7 + $0xa8] sm:$0xff]   ;;  %v1134_v16 = vld [vmem:[%s1410_s7 + $0x60] sm:$0xff]  }
  0x48   : > { %1040 = vmatprep.subr.bf16.mxu0 %v1126_v8  ;;  %1062 = vmatprep.subr.bf16.mxu1 %v1127_v9  ;;  %v1135_v17 = vld [vmem:[%s1410_s7 + $0xe0] sm:$0xff]   ;;  %v1138_v20 = vld [vmem:[%s1410_s7 + $0x58] sm:$0xff]   ;;  %v1142_v24 = vld [vmem:[%s1410_s7 + $0x50] sm:$0xff]  }
  0x49   : > { %v1136_v18 = vld [vmem:[%s1410_s7 + $0x20] sm:$0xff]   ;;  %v1139_v21 = vld [vmem:[%s1410_s7 + $0xd8] sm:$0xff]   ;;  %v1143_v25 = vld [vmem:[%s1410_s7 + $0xd0] sm:$0xff]  }
  0x4a   : > { %v1137_v19 = vld [vmem:[%s1410_s7 + $0xa0] sm:$0xff]   ;;  %v1140_v22 = vld [vmem:[%s1410_s7 + $0x18] sm:$0xff]   ;;  %v1144_v26 = vld [vmem:[%s1410_s7 + $0x10] sm:$0xff]  }
  0x4b   : > { %1041 = vmatpush3.bf16.msra.mxu0 %v1128_v10  ;;  %1063 = vmatpush3.bf16.msra.mxu1 %v1129_v11  ;;  %v1141_v23 = vld [vmem:[%s1410_s7 + $0x98] sm:$0xff]   ;;  %v1145_v27 = vld [vmem:[%s1410_s7 + $0x90] sm:$0xff]   ;;  %v1146_v28 = vld [vmem:[%s1410_s7 + $0x48] sm:$0xff]  }
  0x4c   : > { %1042 = vmatprep.subr.bf16.mxu0 %v1130_v12  ;;  %1064 = vmatprep.subr.bf16.mxu1 %v1131_v13  ;;  %v1147_v29 = vld [vmem:[%s1410_s7 + $0xc8] sm:$0xff]   ;;  %v1150_v32 = vld [vmem:[%s1410_s7 + $0x40] sm:$0xff]  }
  0x4d   : > { %v1148_v30 = vld [vmem:[%s1410_s7 + $0x8] sm:$0xff]   ;;  %v1151_v33 = vld [vmem:[%s1410_s7 + $0xc0] sm:$0xff]  }
  0x4e   : > { %v1149_v31 = vld [vmem:[%s1410_s7 + $0x88] sm:$0xff]   ;;  %v1152_v34 = vld [vmem:[%s1410_s7] sm:$0xff]  }
  0x4f   : > { %1043 = vmatpush3.bf16.msra.mxu0 %v1132_v14  ;;  %1065 = vmatpush3.bf16.msra.mxu1 %v1133_v15  ;;  %v1153_v35 = vld [vmem:[%s1410_s7 + $0x80] sm:$0xff]  }
  0x50   : > { %1044 = vmatprep.subr.bf16.mxu0 %v1134_v16  ;;  %1066 = vmatprep.subr.bf16.mxu1 %v1135_v17  ;;  %v999_v40 = vld [vmem:[%s511_s10] ss:$0 sm:$0xff] }
  0x53   : > { %1045 = vmatpush3.bf16.msra.mxu0 %v1136_v18  ;;  %1067 = vmatpush3.bf16.msra.mxu1 %v1137_v19 }
  0x54   : > { %1046 = vmatprep.subr.bf16.mxu0 %v1138_v20  ;;  %1068 = vmatprep.subr.bf16.mxu1 %v1139_v21 }
  0x57   : > { %1047 = vmatpush3.bf16.msra.mxu0 %v1140_v22  ;;  %1069 = vmatpush3.bf16.msra.mxu1 %v1141_v23 }
  0x58   : > { %1048 = vmatprep.subr.bf16.mxu0 %v1142_v24  ;;  %1070 = vmatprep.subr.bf16.mxu1 %v1143_v25 }
  0x5b   : > { %1049 = vmatpush3.bf16.msra.mxu0 %v1144_v26  ;;  %1071 = vmatpush3.bf16.msra.mxu1 %v1145_v27 }
  0x5c   : > { %1050 = vmatprep.subr.bf16.mxu0 %v1146_v28  ;;  %1072 = vmatprep.subr.bf16.mxu1 %v1147_v29 }
  0x5f   : > { %1051 = vmatpush3.bf16.msra.mxu0 %v1148_v30  ;;  %1073 = vmatpush3.bf16.msra.mxu1 %v1149_v31 }
  0x60   : > { %1052 = vmatprep.subr.bf16.mxu0 %v1150_v32  ;;  %1074 = vmatprep.subr.bf16.mxu1 %v1151_v33 }
  0x63   : > { %1053 = vmatpush3.bf16.msra.mxu0 %v1152_v34  ;;  %1075 = vmatpush3.bf16.msra.mxu1 %v1153_v35 }
  0x66   : > { %833 = vmatmul.mubr.bf16.vlgmr.msra.gmra.mxu0 %v1000_v36  ;;  %873 = vmatmul.mubr.bf16.vlgmr.msra.gmra.mxu1 %v1002_v37 }
 0x126   : > { %v1054_v38 = vpop.f32.mrf.mxu0  ;;  %v1076_v39 = vpop.f32.mrf.mxu1 }
 0x128   : > { %v1055_v41 = vpop.f32.mrf.mxu0  ;;  %v1077_v43 = vpop.f32.mrf.mxu1 }
 0x129   : > { %v1056_v42 = vadd.f32 %v1055_v41, %v1054_v38  ;;  %v1078_v46 = vadd.f32 %v1077_v43, %v1076_v39 }
 0x12a   : > { %v1057_v44 = vpop.f32.mrf.mxu0  ;;  %v1079_v47 = vpop.f32.mrf.mxu1 }
 0x12b   : > { %v835_v45 = vadd.f32 %v1056_v42, %v999_v40 }
 0x12c   : > { %v1058_v48 = vpop.f32.mrf.mxu0  ;;  %v1080_v50 = vpop.f32.mrf.mxu1 }
 0x12d   : > { %v875_v49 = vadd.f32 %v1078_v46, %v835_v45 }
 0x12f   : > { %880 = vst [vmem:[%s519_s19] sm:$0xff] %v875_v49 }
 0x130 PF: > { %s13_s16 = sadd.s32 1, %s1196_s16   ;;  %s1475_s12 = smov %s1184_s13 }
 0x131   : > { %p10_p10 = scmp.ge.s32.totalorder %s13_s16, 4   ;;  %s1476_s13 = smov %s1253_s20 }
 0x132   : > { %s1477_s14 = smov %s1192_s15  ;;  %s1478_s15 = smov %s1480_s17 }
 0x133   :  { %12 = sbr.rel (!%p10_p10) target bundleno = 3 (0x3), region = 114 }

// kernel: resnet34_forward.71
= control target key start
LH: loop header
LB: loop body
LE: loop exit
PB: predicated region body
PF: predicated region fallthrough
CT: control target
= control target key end

     0   :  { %s1424_s12 = smov 0   ;;  %s1426_s13 = smov 0   ;;  %s1708_s0 = inlined_call_operand.vmem [shape: bf16[8,512], index: 0, kind: input, shape index: {}]   ;;  %s1709_s1 = inlined_call_operand.vmem [shape: bf16[512,512], index: 1, kind: input, shape index: {}]   ;;  %s1710_s2 = inlined_call_operand.vmem [shape: f32[1,512], index: 2, kind: input, shape index: {}]   ;;  %s1711_s3 = inlined_call_operand.vmem [shape: bf16[8,512], index: 3, kind: output, shape index: {}]  }
   0x1   :  { %s1428_s14 = smov 0   ;;  %s1430_s15 = smov 0  }
   0x2   :  { %s1432_s16 = smov 0  }
   0x3 LB: > { %s22_s17 = sadd.s32 1, %s1398_s15  ;;  %p65_p1 = scmp.ne.s32.totalorder %s1390_s13, %s1386_s12  ;;  %s1402_s16 = sphi %s1432_s16, %s13_s16   ;;  %s1398_s15 = sphi %s1430_s15, %s1715_s15   ;;  %s1394_s14 = sphi %s1428_s14, %s1714_s14   ;;  %s1390_s13 = sphi %s1426_s13, %s1713_s13   ;;  %s1386_s12 = sphi %s1424_s12, %s1712_s12  }
   0x4   : > { %p23_p0 = scmp.ge.s32.totalorder %s22_s17, 2  ;;  %p66_p2 = scmp.eq.s32.totalorder %s1402_s16, 0 }
   0x5   : > { %s58_s19 = sadd.s32 1, %s1390_s13  ;;  %p1142_p5 = scmp.ge.s32.totalorder %s1402_s16, 2 }
   0x6   : > { %s1717_s17 = smov (%p23_p0, %s22_s17), 0  ;;  %p67_p3 = por %p66_p2, %p65_p1 }
   0x7   : > { %s55_s18 = ssub.s32 %s1398_s15, %s1717_s17  ;;  %153 = sbr.rel (%p1142_p5) target bundleno = 48 (0x30), region = 20 }
   0x8   : > { %p56_p4 = scmp.eq.s32.totalorder %s55_s18, 0 }
   0xa   : > { %s1459_s20 = scalar_select %p56_p4, %s1390_s13, %s58_s19  }
   0xc   : > { %156 = sbr.rel (!%p67_p3) target bundleno = 48 (0x30), region = 24  ;;  %s158_s21 = sand.u32 (%p67_p3), 1, %s1390_s13  }
   0xd   : > { %s1222_s22 = sshll.u32 (%p67_p3), %s1398_s15, 3  ;;  %s1143_s23 = sshll.u32 (%p67_p3), %s158_s21, 9 }
   0xe   : > { %s1467_s26 = scalar_lea.vmem (%p67_p3), %s1709_s1, %s1222_s22  ;;  %s1472_s27 = scalar_lea.vmem (%p67_p3), [#allocation2], %s1143_s23 }
   0xf   : > { %v318_v0 = vld [vmem:[%s1467_s26] sm:$0xff] (%p67_p3)  ;;  %v320_v1 = vld [vmem:[%s1467_s26 + $0x10] sm:$0xff] (%p67_p3) }
  0x10   : > { %v322_v2 = vld [vmem:[%s1467_s26 + $0x20] sm:$0xff] (%p67_p3)  ;;  %319 = vst [vmem:[%s1472_s27] sm:$0xff] (%p67_p3), %v318_v0  ;;  %321 = vst [vmem:[%s1472_s27 + $0x8] sm:$0xff] (%p67_p3), %v320_v1  ;;  %v324_v3 = vld [vmem:[%s1467_s26 + $0x30] sm:$0xff] (%p67_p3) }
  0x11   : > { %323 = vst [vmem:[%s1472_s27 + $0x10] sm:$0xff] %v322_v2  ;;  %v326_v4 = vld [vmem:[%s1467_s26 + $0x40] sm:$0xff]  ;;  %v328_v5 = vld [vmem:[%s1467_s26 + $0x50] sm:$0xff]  ;;  %325 = vst [vmem:[%s1472_s27 + $0x18] sm:$0xff] %v324_v3 }
  0x12   : > { %327 = vst [vmem:[%s1472_s27 + $0x20] sm:$0xff] %v326_v4  ;;  %329 = vst [vmem:[%s1472_s27 + $0x28] sm:$0xff] %v328_v5  ;;  %v330_v6 = vld [vmem:[%s1467_s26 + $0x60] sm:$0xff]  ;;  %v332_v7 = vld [vmem:[%s1467_s26 + $0x70] sm:$0xff] }
  0x13   : > { %v334_v8 = vld [vmem:[%s1467_s26 + $0x80] sm:$0xff]  ;;  %331 = vst [vmem:[%s1472_s27 + $0x30] sm:$0xff] %v330_v6  ;;  %333 = vst [vmem:[%s1472_s27 + $0x38] sm:$0xff] %v332_v7  ;;  %v336_v9 = vld [vmem:[%s1467_s26 + $0x90] sm:$0xff] }
  0x14   : > { %335 = vst [vmem:[%s1472_s27 + $0x40] sm:$0xff] %v334_v8  ;;  %v338_v10 = vld [vmem:[%s1467_s26 + $0xa0] sm:$0xff]  ;;  %v340_v11 = vld [vmem:[%s1467_s26 + $0xb0] sm:$0xff]  ;;  %337 = vst [vmem:[%s1472_s27 + $0x48] sm:$0xff] %v336_v9 }
  0x15   : > { %339 = vst [vmem:[%s1472_s27 + $0x50] sm:$0xff] %v338_v10  ;;  %341 = vst [vmem:[%s1472_s27 + $0x58] sm:$0xff] %v340_v11  ;;  %v342_v12 = vld [vmem:[%s1467_s26 + $0xc0] sm:$0xff]  ;;  %v344_v13 = vld [vmem:[%s1467_s26 + $0xd0] sm:$0xff] }
  0x16   : > { %v346_v14 = vld [vmem:[%s1467_s26 + $0xe0] sm:$0xff]  ;;  %343 = vst [vmem:[%s1472_s27 + $0x60] sm:$0xff] %v342_v12  ;;  %345 = vst [vmem:[%s1472_s27 + $0x68] sm:$0xff] %v344_v13  ;;  %v348_v15 = vld [vmem:[%s1467_s26 + $0xf0] sm:$0xff] }
  0x17   : > { %347 = vst [vmem:[%s1472_s27 + $0x70] sm:$0xff] %v346_v14  ;;  %v350_v16 = vld [vmem:[%s1467_s26 + $0x100] sm:$0xff]  ;;  %v352_v17 = vld [vmem:[%s1467_s26 + $0x110] sm:$0xff]  ;;  %349 = vst [vmem:[%s1472_s27 + $0x78] sm:$0xff] %v348_v15 }
  0x18   : > { %351 = vst [vmem:[%s1472_s27 + $0x80] sm:$0xff] %v350_v16  ;;  %353 = vst [vmem:[%s1472_s27 + $0x88] sm:$0xff] %v352_v17  ;;  %v354_v18 = vld [vmem:[%s1467_s26 + $0x120] sm:$0xff]  ;;  %v356_v19 = vld [vmem:[%s1467_s26 + $0x130] sm:$0xff] }
  0x19   : > { %v358_v20 = vld [vmem:[%s1467_s26 + $0x140] sm:$0xff]  ;;  %355 = vst [vmem:[%s1472_s27 + $0x90] sm:$0xff] %v354_v18  ;;  %357 = vst [vmem:[%s1472_s27 + $0x98] sm:$0xff] %v356_v19  ;;  %v360_v21 = vld [vmem:[%s1467_s26 + $0x150] sm:$0xff] }
  0x1a   : > { %359 = vst [vmem:[%s1472_s27 + $0xa0] sm:$0xff] %v358_v20  ;;  %v362_v22 = vld [vmem:[%s1467_s26 + $0x160] sm:$0xff]  ;;  %v364_v23 = vld [vmem:[%s1467_s26 + $0x170] sm:$0xff]  ;;  %361 = vst [vmem:[%s1472_s27 + $0xa8] sm:$0xff] %v360_v21 }
  0x1b   : > { %363 = vst [vmem:[%s1472_s27 + $0xb0] sm:$0xff] %v362_v22  ;;  %365 = vst [vmem:[%s1472_s27 + $0xb8] sm:$0xff] %v364_v23  ;;  %v366_v24 = vld [vmem:[%s1467_s26 + $0x180] sm:$0xff]  ;;  %v368_v25 = vld [vmem:[%s1467_s26 + $0x190] sm:$0xff] }
  0x1c   : > { %v370_v26 = vld [vmem:[%s1467_s26 + $0x1a0] sm:$0xff]  ;;  %367 = vst [vmem:[%s1472_s27 + $0xc0] sm:$0xff] %v366_v24  ;;  %369 = vst [vmem:[%s1472_s27 + $0xc8] sm:$0xff] %v368_v25  ;;  %v372_v27 = vld [vmem:[%s1467_s26 + $0x1b0] sm:$0xff] }
  0x1d   : > { %371 = vst [vmem:[%s1472_s27 + $0xd0] sm:$0xff] %v370_v26  ;;  %v374_v28 = vld [vmem:[%s1467_s26 + $0x1c0] sm:$0xff]  ;;  %v376_v29 = vld [vmem:[%s1467_s26 + $0x1d0] sm:$0xff]  ;;  %373 = vst [vmem:[%s1472_s27 + $0xd8] sm:$0xff] %v372_v27 }
  0x1e   : > { %375 = vst [vmem:[%s1472_s27 + $0xe0] sm:$0xff] %v374_v28  ;;  %377 = vst [vmem:[%s1472_s27 + $0xe8] sm:$0xff] %v376_v29  ;;  %v378_v30 = vld [vmem:[%s1467_s26 + $0x1e0] sm:$0xff]  ;;  %v380_v31 = vld [vmem:[%s1467_s26 + $0x1f0] sm:$0xff] }
  0x1f   : > { %v382_v32 = vld [vmem:[%s1467_s26 + $0x200] sm:$0xff]  ;;  %379 = vst [vmem:[%s1472_s27 + $0xf0] sm:$0xff] %v378_v30  ;;  %381 = vst [vmem:[%s1472_s27 + $0xf8] sm:$0xff] %v380_v31  ;;  %v384_v33 = vld [vmem:[%s1467_s26 + $0x210] sm:$0xff] }
  0x20   : > { %383 = vst [vmem:[%s1472_s27 + $0x100] sm:$0xff] %v382_v32  ;;  %v386_v34 = vld [vmem:[%s1467_s26 + $0x220] sm:$0xff]  ;;  %v388_v35 = vld [vmem:[%s1467_s26 + $0x230] sm:$0xff]  ;;  %385 = vst [vmem:[%s1472_s27 + $0x108] sm:$0xff] %v384_v33 }
  0x21   : > { %387 = vst [vmem:[%s1472_s27 + $0x110] sm:$0xff] %v386_v34  ;;  %389 = vst [vmem:[%s1472_s27 + $0x118] sm:$0xff] %v388_v35  ;;  %v390_v36 = vld [vmem:[%s1467_s26 + $0x240] sm:$0xff]  ;;  %v392_v37 = vld [vmem:[%s1467_s26 + $0x250] sm:$0xff] }
  0x22   : > { %v394_v38 = vld [vmem:[%s1467_s26 + $0x260] sm:$0xff]  ;;  %391 = vst [vmem:[%s1472_s27 + $0x120] sm:$0xff] %v390_v36  ;;  %393 = vst [vmem:[%s1472_s27 + $0x128] sm:$0xff] %v392_v37  ;;  %v396_v39 = vld [vmem:[%s1467_s26 + $0x270] sm:$0xff] }
  0x23   : > { %395 = vst [vmem:[%s1472_s27 + $0x130] sm:$0xff] %v394_v38  ;;  %v398_v40 = vld [vmem:[%s1467_s26 + $0x280] sm:$0xff]  ;;  %v400_v41 = vld [vmem:[%s1467_s26 + $0x290] sm:$0xff]  ;;  %397 = vst [vmem:[%s1472_s27 + $0x138] sm:$0xff] %v396_v39 }
  0x24   : > { %399 = vst [vmem:[%s1472_s27 + $0x140] sm:$0xff] %v398_v40  ;;  %401 = vst [vmem:[%s1472_s27 + $0x148] sm:$0xff] %v400_v41  ;;  %v402_v42 = vld [vmem:[%s1467_s26 + $0x2a0] sm:$0xff]  ;;  %v404_v43 = vld [vmem:[%s1467_s26 + $0x2b0] sm:$0xff] }
  0x25   : > { %v406_v44 = vld [vmem:[%s1467_s26 + $0x2c0] sm:$0xff]  ;;  %403 = vst [vmem:[%s1472_s27 + $0x150] sm:$0xff] %v402_v42  ;;  %405 = vst [vmem:[%s1472_s27 + $0x158] sm:$0xff] %v404_v43  ;;  %v408_v45 = vld [vmem:[%s1467_s26 + $0x2d0] sm:$0xff] }
  0x26   : > { %407 = vst [vmem:[%s1472_s27 + $0x160] sm:$0xff] %v406_v44  ;;  %v410_v46 = vld [vmem:[%s1467_s26 + $0x2e0] sm:$0xff]  ;;  %v412_v47 = vld [vmem:[%s1467_s26 + $0x2f0] sm:$0xff]  ;;  %409 = vst [vmem:[%s1472_s27 + $0x168] sm:$0xff] %v408_v45 }
  0x27   : > { %411 = vst [vmem:[%s1472_s27 + $0x170] sm:$0xff] %v410_v46  ;;  %413 = vst [vmem:[%s1472_s27 + $0x178] sm:$0xff] %v412_v47  ;;  %v414_v48 = vld [vmem:[%s1467_s26 + $0x300] sm:$0xff]  ;;  %v416_v49 = vld [vmem:[%s1467_s26 + $0x310] sm:$0xff] }
  0x28   : > { %v418_v50 = vld [vmem:[%s1467_s26 + $0x320] sm:$0xff]  ;;  %415 = vst [vmem:[%s1472_s27 + $0x180] sm:$0xff] %v414_v48  ;;  %417 = vst [vmem:[%s1472_s27 + $0x188] sm:$0xff] %v416_v49  ;;  %v420_v51 = vld [vmem:[%s1467_s26 + $0x330] sm:$0xff] }
  0x29   : > { %419 = vst [vmem:[%s1472_s27 + $0x190] sm:$0xff] %v418_v50  ;;  %v422_v52 = vld [vmem:[%s1467_s26 + $0x340] sm:$0xff]  ;;  %v424_v53 = vld [vmem:[%s1467_s26 + $0x350] sm:$0xff]  ;;  %421 = vst [vmem:[%s1472_s27 + $0x198] sm:$0xff] %v420_v51 }
  0x2a   : > { %423 = vst [vmem:[%s1472_s27 + $0x1a0] sm:$0xff] %v422_v52  ;;  %425 = vst [vmem:[%s1472_s27 + $0x1a8] sm:$0xff] %v424_v53  ;;  %v426_v54 = vld [vmem:[%s1467_s26 + $0x360] sm:$0xff]  ;;  %v428_v55 = vld [vmem:[%s1467_s26 + $0x370] sm:$0xff] }
  0x2b   : > { %v430_v56 = vld [vmem:[%s1467_s26 + $0x380] sm:$0xff]  ;;  %427 = vst [vmem:[%s1472_s27 + $0x1b0] sm:$0xff] %v426_v54  ;;  %429 = vst [vmem:[%s1472_s27 + $0x1b8] sm:$0xff] %v428_v55  ;;  %v432_v57 = vld [vmem:[%s1467_s26 + $0x390] sm:$0xff] }
  0x2c   : > { %431 = vst [vmem:[%s1472_s27 + $0x1c0] sm:$0xff] %v430_v56  ;;  %v434_v58 = vld [vmem:[%s1467_s26 + $0x3a0] sm:$0xff]  ;;  %v436_v59 = vld [vmem:[%s1467_s26 + $0x3b0] sm:$0xff]  ;;  %433 = vst [vmem:[%s1472_s27 + $0x1c8] sm:$0xff] %v432_v57 }
  0x2d   : > { %435 = vst [vmem:[%s1472_s27 + $0x1d0] sm:$0xff] %v434_v58  ;;  %437 = vst [vmem:[%s1472_s27 + $0x1d8] sm:$0xff] %v436_v59  ;;  %v438_v60 = vld [vmem:[%s1467_s26 + $0x3c0] sm:$0xff]  ;;  %v440_v61 = vld [vmem:[%s1467_s26 + $0x3d0] sm:$0xff] }
  0x2e   : > { %v442_v62 = vld [vmem:[%s1467_s26 + $0x3e0] sm:$0xff]  ;;  %439 = vst [vmem:[%s1472_s27 + $0x1e0] sm:$0xff] %v438_v60  ;;  %441 = vst [vmem:[%s1472_s27 + $0x1e8] sm:$0xff] %v440_v61  ;;  %v444_v63 = vld [vmem:[%s1467_s26 + $0x3f0] sm:$0xff] }
  0x2f   : > { %443 = vst [vmem:[%s1472_s27 + $0x1f0] sm:$0xff] %v442_v62  ;;  %445 = vst [vmem:[%s1472_s27 + $0x1f8] sm:$0xff] %v444_v63 }
  0x30 PF: > { %p1146_p6 = scmp.ge.s32.totalorder %s1402_s16, 1  ;;  %p458_p7 = scmp.lt.s32.totalorder %s1402_s16, 3 }
  0x32   : > { %p459_p8 = pnand %p1146_p6, %p458_p7 }
  0x33   : > { %s465_s28 = sand.u32 (!%p459_p8), 1, %s1386_s12   ;;  %s1148_s8 = sshll.u32 (!%p459_p8), %s1394_s14, 1 }
  0x34   : > { %462 = sbr.rel (%p459_p8) target bundleno = 326 (0x146), region = 66  ;;  %s1147_s6 = sshll.u32 (!%p459_p8), %s465_s28, 9 }
  0x35   : > { %s1616_s7 = scalar_lea.vmem (!%p459_p8), [#allocation2], %s1147_s6  ;;  %p508_p9 = scmp.lt.s32.totalorder (!%p459_p8), %s1148_s8, 3 }
  0x39   : > { %v1605_v0 = vld [vmem:[%s1708_s0] sm:$0xff]  ;;  %v1610_v1 = vld [vmem:[%s1708_s0 + $0x8] sm:$0xff]  ;;  %v1264_v4 = vld [vmem:[%s1616_s7 + $0x74] ss:$8 sps:$4 sm:$0xff]   ;;  %s1719_s8 = smov (!%p508_p9, %s1148_s8), 3 }
  0x3a   : > { %v1152_v2 = vcombine.high %v1605_v0, %v1605_v0  ;;  %v1154_v3 = vcombine.high %v1610_v1, %v1610_v1  ;;  %v1266_v5 = vld [vmem:[%s1616_s7 + $0x174] ss:$8 sps:$4 sm:$0xff]   ;;  %934 = vmatprep.subr.bf16.mxu0 %v1264_v4  ;;  %v1268_v6 = vld [vmem:[%s1616_s7 + $0x70] ss:$8 sps:$4 sm:$0xff]   ;;  %v1270_v8 = vld [vmem:[%s1616_s7 + $0x64] ss:$8 sps:$4 sm:$0xff]   ;;  %s510_s11 = scalar_lea.vmem %s1710_s2, %s1719_s8 }
  0x3b   : > { %v1269_v7 = vld [vmem:[%s1616_s7 + $0x170] ss:$8 sps:$4 sm:$0xff]   ;;  %975 = vmatprep.subr.bf16.mxu1 %v1266_v5  ;;  %935 = vmatpush1.bf16.msra.mxu0 %v1268_v6  ;;  %v1272_v9 = vld [vmem:[%s1616_s7 + $0x164] ss:$8 sps:$4 sm:$0xff]   ;;  %v1274_v10 = vld [vmem:[%s1616_s7 + $0x60] ss:$8 sps:$4 sm:$0xff]   ;;  %v1151_v6 = vcombine.low %v1605_v0, %v1605_v0 }
  0x3c   : > { %966 = vmatprep.mubr.bf16.mxu0 %v1152_v2  ;;  %1007 = vmatprep.mubr.bf16.mxu1 %v1154_v3  ;;  %v1275_v11 = vld [vmem:[%s1616_s7 + $0x160] ss:$8 sps:$4 sm:$0xff]   ;;  %v1276_v12 = vld [vmem:[%s1616_s7 + $0x54] ss:$8 sps:$4 sm:$0xff]   ;;  %v1280_v14 = vld [vmem:[%s1616_s7 + $0x50] ss:$8 sps:$4 sm:$0xff]  }
  0x3d   : > { %976 = vmatpush1.bf16.msra.mxu1 %v1269_v7  ;;  %936 = vmatprep.subr.bf16.mxu0 %v1270_v8  ;;  %v1278_v13 = vld [vmem:[%s1616_s7 + $0x154] ss:$8 sps:$4 sm:$0xff]   ;;  %v1281_v15 = vld [vmem:[%s1616_s7 + $0x150] ss:$8 sps:$4 sm:$0xff]   ;;  %v1282_v16 = vld [vmem:[%s1616_s7 + $0x44] ss:$8 sps:$4 sm:$0xff]   ;;  %v1153_v7 = vcombine.low %v1610_v1, %v1610_v1  ;;  %v590_v8 = vlaneseq }
  0x3e   : > { %977 = vmatprep.subr.bf16.mxu1 %v1272_v9  ;;  %v1284_v17 = vld [vmem:[%s1616_s7 + $0x144] ss:$8 sps:$4 sm:$0xff]   ;;  %v1286_v18 = vld [vmem:[%s1616_s7 + $0x40] ss:$8 sps:$4 sm:$0xff]   ;;  %v1288_v20 = vld [vmem:[%s1616_s7 + $0x34] ss:$8 sps:$4 sm:$0xff]  }
  0x3f   : > { %937 = vmatpush1.bf16.msra.mxu0 %v1274_v10  ;;  %v1287_v19 = vld [vmem:[%s1616_s7 + $0x140] ss:$8 sps:$4 sm:$0xff]   ;;  %v1290_v21 = vld [vmem:[%s1616_s7 + $0x134] ss:$8 sps:$4 sm:$0xff]   ;;  %v1292_v22 = vld [vmem:[%s1616_s7 + $0x30] ss:$8 sps:$4 sm:$0xff]  }
  0x40   : > { %938 = vmatprep.subr.bf16.mxu0 %v1276_v12  ;;  %v1293_v23 = vld [vmem:[%s1616_s7 + $0x130] ss:$8 sps:$4 sm:$0xff]   ;;  %v1294_v24 = vld [vmem:[%s1616_s7 + $0x24] ss:$8 sps:$4 sm:$0xff]   ;;  %v1298_v26 = vld [vmem:[%s1616_s7 + $0x20] ss:$8 sps:$4 sm:$0xff]  }
  0x41   : > { %978 = vmatpush1.bf16.msra.mxu1 %v1275_v11  ;;  %v1296_v25 = vld [vmem:[%s1616_s7 + $0x124] ss:$8 sps:$4 sm:$0xff]   ;;  %v1299_v27 = vld [vmem:[%s1616_s7 + $0x120] ss:$8 sps:$4 sm:$0xff]   ;;  %v1300_v28 = vld [vmem:[%s1616_s7 + $0x14] ss:$8 sps:$4 sm:$0xff]  }
  0x42   : > { %979 = vmatprep.subr.bf16.mxu1 %v1278_v13  ;;  %v1302_v29 = vld [vmem:[%s1616_s7 + $0x114] ss:$8 sps:$4 sm:$0xff]   ;;  %v1304_v30 = vld [vmem:[%s1616_s7 + $0x10] ss:$8 sps:$4 sm:$0xff]   ;;  %v1306_v32 = vld [vmem:[%s1616_s7 + $0x4] ss:$8 sps:$4 sm:$0xff]  }
  0x43   : > { %939 = vmatpush1.bf16.msra.mxu0 %v1280_v14  ;;  %v1305_v31 = vld [vmem:[%s1616_s7 + $0x110] ss:$8 sps:$4 sm:$0xff]   ;;  %v1308_v33 = vld [vmem:[%s1616_s7 + $0x104] ss:$8 sps:$4 sm:$0xff]   ;;  %v1310_v34 = vld [vmem:[%s1616_s7] ss:$8 sps:$4 sm:$0xff]  }
  0x44   : > { %940 = vmatprep.subr.bf16.mxu0 %v1282_v16  ;;  %v1311_v35 = vld [vmem:[%s1616_s7 + $0x100] ss:$8 sps:$4 sm:$0xff]   ;;  %v1312_v36 = vld [vmem:[%s1616_s7 + $0xf4] ss:$8 sps:$4 sm:$0xff]   ;;  %v1316_v38 = vld [vmem:[%s1616_s7 + $0xf0] ss:$8 sps:$4 sm:$0xff]  }
  0x45   : > { %980 = vmatpush1.bf16.msra.mxu1 %v1281_v15  ;;  %v1314_v37 = vld [vmem:[%s1616_s7 + $0x1f4] ss:$8 sps:$4 sm:$0xff]   ;;  %v1317_v39 = vld [vmem:[%s1616_s7 + $0x1f0] ss:$8 sps:$4 sm:$0xff]   ;;  %v1318_v40 = vld [vmem:[%s1616_s7 + $0xe4] ss:$8 sps:$4 sm:$0xff]  }
  0x46   : > { %981 = vmatprep.subr.bf16.mxu1 %v1284_v17  ;;  %v1320_v41 = vld [vmem:[%s1616_s7 + $0x1e4] ss:$8 sps:$4 sm:$0xff]   ;;  %v1322_v42 = vld [vmem:[%s1616_s7 + $0xe0] ss:$8 sps:$4 sm:$0xff]   ;;  %v1324_v44 = vld [vmem:[%s1616_s7 + $0xd4] ss:$8 sps:$4 sm:$0xff]  }
  0x47   : > { %941 = vmatpush1.bf16.msra.mxu0 %v1286_v18  ;;  %v1323_v43 = vld [vmem:[%s1616_s7 + $0x1e0] ss:$8 sps:$4 sm:$0xff]   ;;  %v1326_v45 = vld [vmem:[%s1616_s7 + $0x1d4] ss:$8 sps:$4 sm:$0xff]   ;;  %v1328_v46 = vld [vmem:[%s1616_s7 + $0xd0] ss:$8 sps:$4 sm:$0xff]  }
  0x48   : > { %942 = vmatprep.subr.bf16.mxu0 %v1288_v20  ;;  %v1329_v47 = vld [vmem:[%s1616_s7 + $0x1d0] ss:$8 sps:$4 sm:$0xff]   ;;  %v1330_v48 = vld [vmem:[%s1616_s7 + $0xc4] ss:$8 sps:$4 sm:$0xff]   ;;  %v1334_v50 = vld [vmem:[%s1616_s7 + $0xc0] ss:$8 sps:$4 sm:$0xff]  }
  0x49   : > { %982 = vmatpush1.bf16.msra.mxu1 %v1287_v19  ;;  %v1332_v49 = vld [vmem:[%s1616_s7 + $0x1c4] ss:$8 sps:$4 sm:$0xff]   ;;  %v1335_v51 = vld [vmem:[%s1616_s7 + $0x1c0] ss:$8 sps:$4 sm:$0xff]   ;;  %v1336_v52 = vld [vmem:[%s1616_s7 + $0xb4] ss:$8 sps:$4 sm:$0xff]  }
  0x4a   : > { %983 = vmatprep.subr.bf16.mxu1 %v1290_v21  ;;  %v1338_v53 = vld [vmem:[%s1616_s7 + $0x1b4] ss:$8 sps:$4 sm:$0xff]   ;;  %v1340_v54 = vld [vmem:[%s1616_s7 + $0xb0] ss:$8 sps:$4 sm:$0xff]   ;;  %v1342_v56 = vld [vmem:[%s1616_s7 + $0xa4] ss:$8 sps:$4 sm:$0xff]  }
  0x4b   : > { %943 = vmatpush1.bf16.msra.mxu0 %v1292_v22  ;;  %v1341_v55 = vld [vmem:[%s1616_s7 + $0x1b0] ss:$8 sps:$4 sm:$0xff]   ;;  %v1344_v57 = vld [vmem:[%s1616_s7 + $0x1a4] ss:$8 sps:$4 sm:$0xff]   ;;  %v1346_v58 = vld [vmem:[%s1616_s7 + $0xa0] ss:$8 sps:$4 sm:$0xff]  }
  0x4c   : > { %944 = vmatprep.subr.bf16.mxu0 %v1294_v24  ;;  %v1347_v59 = vld [vmem:[%s1616_s7 + $0x1a0] ss:$8 sps:$4 sm:$0xff]   ;;  %v1348_v60 = vld [vmem:[%s1616_s7 + $0x94] ss:$8 sps:$4 sm:$0xff]   ;;  %v1352_v62 = vld [vmem:[%s1616_s7 + $0x90] ss:$8 sps:$4 sm:$0xff]  }
  0x4d   : > { %984 = vmatpush1.bf16.msra.mxu1 %v1293_v23  ;;  %v1350_v61 = vld [vmem:[%s1616_s7 + $0x194] ss:$8 sps:$4 sm:$0xff]   ;;  %v1353_v63 = vld [vmem:[%s1616_s7 + $0x190] ss:$8 sps:$4 sm:$0xff]   ;;  %v1354_v2 = vld [vmem:[%s1616_s7 + $0x84] ss:$8 sps:$4 sm:$0xff]  }
  0x4e   : > { %985 = vmatprep.subr.bf16.mxu1 %v1296_v25  ;;  %v1356_v3 = vld [vmem:[%s1616_s7 + $0x184] ss:$8 sps:$4 sm:$0xff]   ;;  %v1358_v4 = vld [vmem:[%s1616_s7 + $0x80] ss:$8 sps:$4 sm:$0xff]   ;;  %v591_v9 = vshrl.u32 %v590_v8, 7  ;;  %s1150_s12 = sshll.u32 %s1719_s8, 2 }
  0x4f   : > { %945 = vmatpush1.bf16.msra.mxu0 %v1298_v26  ;;  %v1359_v5 = vld [vmem:[%s1616_s7 + $0x180] ss:$8 sps:$4 sm:$0xff]   ;;  %s520_s19 = scalar_lea.vmem %s1711_s3, %s1150_s12 }
  0x50   : > { %946 = vmatprep.subr.bf16.mxu0 %v1300_v28  ;;  %v592_v10 = vsub.s32 0, %v591_v9  ;;  %v588_v11 = vld [vmem:[%s510_s11] sm:$0x3]  ;;  %v596_v12 = vsub.s32 1, %v591_v9 }
  0x51   : > { %986 = vmatpush1.bf16.msra.mxu1 %v1299_v27 }
  0x52   : > { %987 = vmatprep.subr.bf16.mxu1 %v1302_v29  ;;  %v593_v0 = vrot.slane %v588_v11, %v592_v10  ;;  %v597_v13 = vrot.slane %v588_v11, %v596_v12 }
  0x53   : > { %947 = vmatpush1.bf16.msra.mxu0 %v1304_v30 }
  0x54   : > { %948 = vmatprep.subr.bf16.mxu0 %v1306_v32 }
  0x55   : > { %988 = vmatpush1.bf16.msra.mxu1 %v1305_v31 }
  0x56   : > { %989 = vmatprep.subr.bf16.mxu1 %v1308_v33 }
  0x57   : > { %949 = vmatpush1.bf16.msra.mxu0 %v1310_v34 }
  0x58   : > { %950 = vmatprep.subr.bf16.mxu0 %v1312_v36 }
  0x59   : > { %990 = vmatpush1.bf16.msra.mxu1 %v1311_v35 }
  0x5a   : > { %991 = vmatprep.subr.bf16.mxu1 %v1314_v37 }
  0x5b   : > { %951 = vmatpush2.bf16.msra.mxu0 %v1316_v38 }
  0x5c   : > { %952 = vmatprep.subr.bf16.mxu0 %v1318_v40 }
  0x5d   : > { %992 = vmatpush2.bf16.msra.mxu1 %v1317_v39 }
  0x5e   : > { %993 = vmatprep.subr.bf16.mxu1 %v1320_v41 }
  0x5f   : > { %953 = vmatpush2.bf16.msra.mxu0 %v1322_v42 }
  0x60   : > { %954 = vmatprep.subr.bf16.mxu0 %v1324_v44 }
  0x61   : > { %994 = vmatpush2.bf16.msra.mxu1 %v1323_v43 }
  0x62   : > { %995 = vmatprep.subr.bf16.mxu1 %v1326_v45 }
  0x63   : > { %955 = vmatpush2.bf16.msra.mxu0 %v1328_v46 }
  0x64   : > { %956 = vmatprep.subr.bf16.mxu0 %v1330_v48 }
  0x65   : > { %996 = vmatpush2.bf16.msra.mxu1 %v1329_v47 }
  0x66   : > { %997 = vmatprep.subr.bf16.mxu1 %v1332_v49 }
  0x67   : > { %957 = vmatpush2.bf16.msra.mxu0 %v1334_v50 }
  0x68   : > { %958 = vmatprep.subr.bf16.mxu0 %v1336_v52 }
  0x69   : > { %998 = vmatpush2.bf16.msra.mxu1 %v1335_v51 }
  0x6a   : > { %999 = vmatprep.subr.bf16.mxu1 %v1338_v53 }
  0x6b   : > { %959 = vmatpush2.bf16.msra.mxu0 %v1340_v54 }
  0x6c   : > { %960 = vmatprep.subr.bf16.mxu0 %v1342_v56 }
  0x6d   : > { %1000 = vmatpush2.bf16.msra.mxu1 %v1341_v55 }
  0x6e   : > { %1001 = vmatprep.subr.bf16.mxu1 %v1344_v57 }
  0x6f   : > { %961 = vmatpush2.bf16.msra.mxu0 %v1346_v58 }
  0x70   : > { %962 = vmatprep.subr.bf16.mxu0 %v1348_v60 }
  0x71   : > { %1002 = vmatpush2.bf16.msra.mxu1 %v1347_v59 }
  0x72   : > { %1003 = vmatprep.subr.bf16.mxu1 %v1350_v61 }
  0x73   : > { %963 = vmatpush2.bf16.msra.mxu0 %v1352_v62 }
  0x74   : > { %964 = vmatprep.subr.bf16.mxu0 %v1354_v2 }
  0x75   : > { %1004 = vmatpush2.bf16.msra.mxu1 %v1353_v63 }
  0x76   : > { %1005 = vmatprep.subr.bf16.mxu1 %v1356_v3 }
  0x77   : > { %965 = vmatpush2.bf16.msra.mxu0 %v1358_v4 }
  0x79   : > { %1006 = vmatpush2.bf16.msra.mxu1 %v1359_v5 }
  0x7a   : > { %967 = vmatmul.mubr.bf16.vlgmr.msra.gmra.mxu0 %v1151_v6 }
  0x7c   : > { %1008 = vmatmul.mubr.bf16.vlgmr.msra.gmra.mxu1 %v1153_v7 }
 0x13a   : > { %v968_v14 = vpop.f32.mrf.mxu0 }
 0x13b   : > { %v969_v15 = vadd.f32 %v968_v14, %v593_v0 }
 0x13c   : > { %v1009_v1 = vpop.f32.mrf.mxu1  ;;  %v970_v16 = vpop.f32.mrf.mxu0 }
 0x13d   : > { %v1010_v18 = vadd.f32 %v1009_v1, %v969_v15  ;;  %v971_v19 = vadd.f32 %v970_v16, %v597_v13 }
 0x13e   : > { %v1011_v17 = vpop.f32.mrf.mxu1  ;;  %v972_v20 = vpop.f32.mrf.mxu0 }
 0x13f   : > { %v1012_v22 = vadd.f32 %v1011_v17, %v971_v19  ;;  %v1016_v25 = vmax.f32 %v1010_v18, 0.0 }
 0x140   : > { %v1013_v21 = vpop.f32.mrf.mxu1  ;;  %v973_v23 = vpop.f32.mrf.mxu0 }
 0x141   : > { %v1017_v26 = vmax.f32 %v1012_v22, 0.0 }
 0x142   : > { %v1014_v24 = vpop.f32.mrf.mxu1 }
 0x143   : > { %v1223_v27 = vpack.c.bf16 %v1017_v26, %v1016_v25 }
 0x145   : > { %1026 = vst [vmem:[%s520_s19] sm:$0xff] %v1223_v27 }
 0x146 PF: > { %s13_s16 = sadd.s32 1, %s1402_s16   ;;  %s1712_s12 = smov %s1390_s13 }
 0x147   : > { %p10_p10 = scmp.ge.s32.totalorder %s13_s16, 4   ;;  %s1713_s13 = smov %s1459_s20 }
 0x148   : > { %s1714_s14 = smov %s1398_s15  ;;  %s1715_s15 = smov %s1717_s17 }
 0x149   :  { %12 = sbr.rel (!%p10_p10) target bundleno = 3 (0x3), region = 111 }

</bundles_post_ra>
